<compile_context>
chip_gen: v5e
topology: v5e:2x2
jax: 0.10.0
libtpu: 0.0.40
codegen_flags: <defaults>
</compile_context>

<pallas_src>
import functools

import jax
import jax.numpy as jnp
from jax.experimental import pallas as pl
from jax.experimental.pallas import tpu as pltpu

_INT32_MAX = 2**31 - 1


def fmodel_kernel(ids_ref, enc_ref, dec_ref, lblf_ref, inr_ref, w_ref,
                  loss_ref, pred_ref, corr_ref, cnt_ref,
                  h_sc, m_sc, l_sc, lblv_sc, arg_sc, *, pad_id):
    """Fused belief+resp seq2seq step, tiled over the vocab axis.

    grid = (V // TV,): the single ('arbitrary') grid axis walks lane-dense
    vocab tiles of the bf16 LM-head weight; online softmax stats / argmax /
    label logits are carried in VMEM scratch across tiles.
    """
    v = pl.program_id(0)
    nv = pl.num_programs(0)

    P, B, T_in = ids_ref.shape          # passes (belief[,resp]), batch, src len
    _, _, T, H = dec_ref.shape          # tgt len, hidden
    TV = w_ref.shape[1]                 # vocab tile width (lane-dense)
    BT = B * T
    M = P * BT                          # MXU rows (>=256 target on v6e/v7x)

    # ---- once per call (first vocab tile): encoder pooling + decoder hidden.
    #      f32 on the VPU/EUP, then cached as the bf16 (M, H) MXU operand. ----
    @pl.when(v == 0)
    def _init():
        ids = ids_ref[...]                                           # (P,B,Tin)
        mask = jnp.where(ids == pad_id, 0.0, 1.0).astype(jnp.float32)
        enc = enc_ref[...]                                           # (P,B,Tin,H)
        denom = jnp.maximum(jnp.sum(mask, axis=2, keepdims=True), 1.0)   # (P,B,1)
        ctx = jnp.sum(enc * mask[..., None], axis=2) / denom         # (P,B,H)
        h = jnp.tanh(dec_ref[...] + ctx[:, :, None, :])              # (P,B,T,H)
        h_sc[...] = h.reshape(M, H).astype(jnp.bfloat16)
        m_sc[...] = jnp.full((M, 1), -jnp.inf, dtype=jnp.float32)
        l_sc[...] = jnp.zeros((M, 1), jnp.float32)
        lblv_sc[...] = jnp.zeros((M, 1), jnp.float32)
        arg_sc[...] = jnp.zeros((M, 1), jnp.int32)

    # ---- per vocab tile: bf16 MXU matmul + online softmax/argmax update. ----
    logits = jnp.dot(h_sc[...], w_ref[...],
                     preferred_element_type=jnp.float32)             # (M, TV) f32

    v_off = v * TV
    col = jax.lax.broadcasted_iota(jnp.int32, (1, TV), 1)            # tile-local

    tile_max = jnp.max(logits, axis=-1, keepdims=True)               # (M, 1)
    m_prev = m_sc[...]
    m_new = jnp.maximum(m_prev, tile_max)
    l_sc[...] = (l_sc[...] * jnp.exp(m_prev - m_new)
                 + jnp.sum(jnp.exp(logits - m_new), axis=-1, keepdims=True))

    # Running argmax (first maximal index): strictly-greater tiles take over,
    # ties keep the earlier (smaller global index) tile; within a tile the
    # smallest matching column wins.
    tile_arg = jnp.min(
        jnp.where(logits == tile_max, col + v_off, jnp.int32(_INT32_MAX)),
        axis=-1, keepdims=True)
    arg_sc[...] = jnp.where(tile_max > m_prev, tile_arg, arg_sc[...])
    m_sc[...] = m_new

    # Label logit: each label lands in exactly one vocab tile.
    lbl_flat = lblf_ref[...]                                         # (M, 1) i32
    hit = col == (lbl_flat - v_off)                                  # (M, TV)
    lblv_sc[...] = lblv_sc[...] + jnp.sum(
        jnp.where(hit, logits, 0.0), axis=-1, keepdims=True)

    # ---- last vocab tile: loss / pred / count_tokens, split per pass. ----
    @pl.when(v == nv - 1)
    def _finalize():
        lse = m_sc[...] + jnp.log(l_sc[...])                         # (M, 1)
        # Mean over ALL label positions (incl. pad-id labels): HF ignores only
        # -100, mirroring the reference FModel behaviour.
        loss_per = lse - lblv_sc[...]                                # (M, 1)

        # Lane-dense pred store: one (1, M) int32 row instead of M masked
        # sublane stores; the wrapper reshapes back to (P, B, T).
        pred_ref[...] = arg_sc[...].reshape(1, M)

        valid = lbl_flat != pad_id                                   # (M, 1)
        in_range = inr_ref[...] != 0                                 # (M, 1)
        match = (arg_sc[...] == lbl_flat) & in_range                 # (M, 1)
        row = jax.lax.broadcasted_iota(jnp.int32, (M, 1), 0)

        # Per-pass scalar reductions -> SMEM outputs (belief = pass 0, ...).
        for p in range(P):
            sel = (row >= p * BT) & (row < (p + 1) * BT)
            loss_ref[p] = jnp.sum(jnp.where(sel, loss_per, 0.0)) * (1.0 / BT)
            cnt_ref[p] = jnp.sum((sel & valid).astype(jnp.int32))
            corr_ref[p] = jnp.sum((sel & match).astype(jnp.int32))


def _pick_v_tile(vocab, target=256):
    """Largest lane-dense vocab tile (multiple of 128) that divides V."""
    for cand in (target, 512, 384, 256, 128):
        if cand <= vocab and vocab % cand == 0:
            return cand
    return vocab


def fused_seq2seq_passes(input_ids, labels, params, pad_id):
    """All passes (belief [+ resp]) through ONE pallas_call.

    input_ids: (P, B, T_in) int32; labels: (P, B, T) int32.
    Returns per-pass (loss (P,), pred (P,B,T), correct (P,), count (P,)).
    """
    emb = params["embedding"].astype(jnp.float32)       # (Vocab, H)
    w_lm = params["w_lm"]                                # (H, Vocab)

    # Embedding gathers kept as XLA glue (tiny vs the LM-head traffic here).
    # TODO(synk): fuse the row gathers into the kernel (PrefetchScalarGridSpec
    # + pl.Element row gather) to drop one HBM round trip on the activations.
    enc_emb = jnp.take(emb, input_ids, axis=0)           # (P, B, Tin, H) f32
    dec_emb = jnp.take(emb, labels, axis=0)              # (P, B, T,   H) f32
    w_bf16 = w_lm.astype(jnp.bfloat16)                   # bf16 MXU operand

    P, B, T = labels.shape
    _, _, T_in = input_ids.shape
    H = emb.shape[1]
    V = w_lm.shape[1]
    M = P * B * T

    # count_tokens bookkeeping (tiny int32 glue): per-example valid_len and the
    # "first valid_len positions" mask, flattened to the kernel's row domain.
    valid = labels != pad_id                             # (P, B, T)
    valid_len = jnp.sum(valid.astype(jnp.int32), axis=2, keepdims=True)
    pos = jnp.arange(T, dtype=jnp.int32)[None, None, :]
    in_range_flat = (pos < valid_len).reshape(M, 1).astype(jnp.int32)
    labels_flat = labels.reshape(M, 1).astype(jnp.int32)

    v_tile = _pick_v_tile(V)
    grid = (V // v_tile,)

    kernel = functools.partial(fmodel_kernel, pad_id=pad_id)
    smem = pl.BlockSpec(memory_space=pltpu.MemorySpace.SMEM)

    loss, pred, correct, count = pl.pallas_call(
        kernel,
        grid=grid,
        in_specs=[
            pl.BlockSpec((P, B, T_in), lambda v: (0, 0, 0)),          # ids
            pl.BlockSpec((P, B, T_in, H), lambda v: (0, 0, 0, 0)),    # enc emb
            pl.BlockSpec((P, B, T, H), lambda v: (0, 0, 0, 0)),       # dec emb
            pl.BlockSpec((M, 1), lambda v: (0, 0)),                   # labels flat
            pl.BlockSpec((M, 1), lambda v: (0, 0)),                   # in_range flat
            pl.BlockSpec((H, v_tile), lambda v: (0, v)),              # w_lm tile
        ],
        out_specs=(
            smem,                                                     # loss / pass
            pl.BlockSpec((1, M), lambda v: (0, 0)),                   # pred (lane-dense)
            smem,                                                     # correct / pass
            smem,                                                     # count / pass
        ),
        out_shape=(
            jax.ShapeDtypeStruct((P,), jnp.float32),
            jax.ShapeDtypeStruct((1, M), jnp.int32),
            jax.ShapeDtypeStruct((P,), jnp.int32),
            jax.ShapeDtypeStruct((P,), jnp.int32),
        ),
        scratch_shapes=[
            pltpu.VMEM((M, H), jnp.bfloat16),    # decoder hidden (MXU lhs)
            pltpu.VMEM((M, 1), jnp.float32),     # running max
            pltpu.VMEM((M, 1), jnp.float32),     # running sum-exp
            pltpu.VMEM((M, 1), jnp.float32),     # label logit
            pltpu.VMEM((M, 1), jnp.int32),       # running argmax
        ],
        compiler_params=pltpu.CompilerParams(
            dimension_semantics=("arbitrary",),  # online-softmax reduction axis
            vmem_limit_bytes=32 * 1024 * 1024,
        ),
    )(input_ids, enc_emb, dec_emb, labels_flat, in_range_flat, w_bf16)

    return loss, pred.reshape(P, B, T), correct, count


def fmodel_forward(belief_inputs, belief_labels, resp_inputs, resp_labels,
                   params, pad_id, task="e2e", resp_loss_coeff=1.0):
    """Mirrors FModel.forward (cfg.task == 'e2e').

    Both passes are folded into a single pallas_call so the LM-head weight is
    streamed once and the MXU sees 2*B*T rows.  (Belief/resp must share
    sequence lengths here; pad in the caller otherwise.)
    """
    if task == "e2e":
        input_ids = jnp.stack([belief_inputs, resp_inputs], axis=0)
        labels = jnp.stack([belief_labels, resp_labels], axis=0)
    else:
        input_ids = belief_inputs[None]
        labels = belief_labels[None]

    loss_pp, pred_pp, corr_pp, cnt_pp = fused_seq2seq_passes(
        input_ids, labels, params, pad_id)

    b_loss, b_correct, b_count = loss_pp[0], corr_pp[0], cnt_pp[0]
    loss = b_loss
    outputs = {"belief": (b_loss, b_correct, b_count), "belief_pred": pred_pp[0]}

    if task == "e2e":
        r_loss, r_correct, r_count = loss_pp[1], corr_pp[1], cnt_pp[1]
        if resp_loss_coeff > 0:
            loss = loss + resp_loss_coeff * r_loss
        outputs["resp"] = (r_loss, r_correct, r_count)
        outputs["resp_pred"] = pred_pp[1]

    outputs["loss"] = loss
    return outputs


def _ref_step(input_ids, labels, params, pad_id):
    """Pure-JAX reference for one synthetic seq2seq pass (bf16 LM head)."""
    emb = params["embedding"].astype(jnp.float32)
    w = params["w_lm"]
    enc = jnp.take(emb, input_ids, axis=0)
    dec = jnp.take(emb, labels, axis=0)
    mask = (input_ids != pad_id).astype(jnp.float32)
    denom = jnp.maximum(mask.sum(axis=1, keepdims=True), 1.0)
    ctx = (enc * mask[:, :, None]).sum(axis=1) / denom
    h = jnp.tanh(dec + ctx[:, None, :])
    B, T = labels.shape
    logits = jnp.dot(h.reshape(B * T, -1).astype(jnp.bfloat16),
                     w.astype(jnp.bfloat16),
                     preferred_element_type=jnp.float32).reshape(B, T, -1)
    lse = jax.nn.logsumexp(logits, axis=-1)
    lbl_logit = jnp.take_along_axis(logits, labels[..., None], axis=-1)[..., 0]
    loss = jnp.mean(lse - lbl_logit)
    pred = jnp.argmax(logits, axis=-1).astype(jnp.int32)
    valid = labels != pad_id
    count = valid.sum()
    valid_len = valid.sum(axis=1, keepdims=True)
    pos = jnp.arange(T, dtype=jnp.int32)[None, :]
    correct = ((pred == labels) & (pos < valid_len)).sum()
    return loss, pred, correct, count


def _make_padded_ids(key, batch, seq_len, vocab, pad_id, min_len=3):
    """Random token ids with trailing pad_id padding (pad_sequence style)."""
    k1, k2 = jax.random.split(key)
    ids = jax.random.randint(k1, (batch, seq_len), 1, vocab, dtype=jnp.int32)
    lens = jax.random.randint(k2, (batch, 1), min_len, seq_len + 1, dtype=jnp.int32)
    pos = jnp.arange(seq_len, dtype=jnp.int32)[None, :]
    return jnp.where(pos < lens, ids, jnp.int32(pad_id))


if __name__ == "__main__":
    B, T_IN, T_OUT, H, V = 2, 64, 64, 128, 512
    PAD_ID = 0
    RESP_LOSS_COEFF = 1.0

    key = jax.random.PRNGKey(0)
    k_emb, k_lm, k_bi, k_bl, k_ri, k_rl = jax.random.split(key, 6)

    params = {
        "embedding": 0.02 * jax.random.normal(k_emb, (V, H), jnp.float32),
        "w_lm": 0.02 * jax.random.normal(k_lm, (H, V), jnp.float32),
    }

    belief_inputs = _make_padded_ids(k_bi, B, T_IN, V, PAD_ID)
    belief_labels = _make_padded_ids(k_bl, B, T_OUT, V, PAD_ID)
    resp_inputs = _make_padded_ids(k_ri, B, T_IN, V, PAD_ID)
    resp_labels = _make_padded_ids(k_rl, B, T_OUT, V, PAD_ID)

    out = fmodel_forward(belief_inputs, belief_labels, resp_inputs, resp_labels,
                         params, PAD_ID, task="e2e",
                         resp_loss_coeff=RESP_LOSS_COEFF)
    out = jax.block_until_ready(out)

    b_loss, b_correct, b_count = out["belief"]
    r_loss, r_correct, r_count = out["resp"]

    # FModel.forward's own sanity check.
    if int(b_correct) > int(b_count):
        raise Exception("acc calculating error")

    # Pure-JAX reference (same bf16 LM-head path).
    rb_loss, _, _, rb_count = _ref_step(belief_inputs, belief_labels, params, PAD_ID)
    rr_loss, _, _, rr_count = _ref_step(resp_inputs, resp_labels, params, PAD_ID)

    assert abs(float(b_loss) - float(rb_loss)) < 1e-2
    assert abs(float(r_loss) - float(rr_loss)) < 1e-2
    assert int(b_count) == int(rb_count)
    assert int(r_count) == int(rr_count)
    assert int(r_correct) <= int(r_count)
    assert out["belief_pred"].shape == (B, T_OUT)
    assert out["resp_pred"].shape == (B, T_OUT)
    assert jnp.isfinite(out["loss"])

    step_outputs = {
        "belief": {"loss": float(b_loss), "correct": int(b_correct),
                   "count": int(b_count)},
        "resp": {"loss": float(r_loss), "correct": int(r_correct),
                 "count": int(r_count)},
    }
    result = {"loss": float(out["loss"]), "step_outputs": step_outputs}

    print("KERNEL_OK")
</pallas_src>

<mosaic_0001>
module attributes {stable_mosaic.version = 11 : i64} {
  func.func @fmodel_kernel(%arg0: i32, %arg1: memref<2x2x64xi32, #tpu.memory_space<vmem>>, %arg2: memref<2x2x64x128xf32, #tpu.memory_space<vmem>>, %arg3: memref<2x2x64x128xf32, #tpu.memory_space<vmem>>, %arg4: memref<256x1xi32, #tpu.memory_space<vmem>>, %arg5: memref<256x1xi32, #tpu.memory_space<vmem>>, %arg6: memref<128x256xbf16, #tpu.memory_space<vmem>>, %arg7: memref<2xf32, #tpu.memory_space<smem>>, %arg8: memref<1x256xi32, #tpu.memory_space<vmem>>, %arg9: memref<2xi32, #tpu.memory_space<smem>>, %arg10: memref<2xi32, #tpu.memory_space<smem>>, %arg11: memref<256x128xbf16, #tpu.memory_space<vmem>>, %arg12: memref<256x1xf32, #tpu.memory_space<vmem>>, %arg13: memref<256x1xf32, #tpu.memory_space<vmem>>, %arg14: memref<256x1xf32, #tpu.memory_space<vmem>>, %arg15: memref<256x1xi32, #tpu.memory_space<vmem>>) attributes {dimension_semantics = [#tpu.dimension_semantics<arbitrary>], iteration_bounds = array<i64: 2>, scalar_prefetch = 0 : i64, scratch_operands = 5 : i64, tpu.core_type = #tpu.core_type<tc>, window_params = [{pipeline_mode = #tpu.pipeline_mode<synchronous>, transform_indices = @transform_0, window_bounds = array<i64: 2, 2, 64>}, {pipeline_mode = #tpu.pipeline_mode<synchronous>, transform_indices = @transform_1, window_bounds = array<i64: 2, 2, 64, 128>}, {pipeline_mode = #tpu.pipeline_mode<synchronous>, transform_indices = @transform_2, window_bounds = array<i64: 2, 2, 64, 128>}, {pipeline_mode = #tpu.pipeline_mode<synchronous>, transform_indices = @transform_3, window_bounds = array<i64: 256, 1>}, {pipeline_mode = #tpu.pipeline_mode<synchronous>, transform_indices = @transform_4, window_bounds = array<i64: 256, 1>}, {transform_indices = @transform_5, window_bounds = array<i64: 128, 256>}, {transform_indices = @transform_6, window_bounds = array<i64: 2>}, {pipeline_mode = #tpu.pipeline_mode<synchronous>, transform_indices = @transform_7, window_bounds = array<i64: 1, 256>}, {transform_indices = @transform_8, window_bounds = array<i64: 2>}, {transform_indices = @transform_9, window_bounds = array<i64: 2>}]} {
    %c0_i32 = arith.constant 0 : i32
    %0 = arith.cmpi eq, %arg0, %c0_i32 : i32
    %1 = arith.extui %0 : i1 to i32
    %c0_i32_0 = arith.constant 0 : i32
    %2 = arith.cmpi ne, %1, %c0_i32_0 : i32
    scf.if %2 {
      %c0_28 = arith.constant 0 : index
      %c0_29 = arith.constant 0 : index
      %c0_30 = arith.constant 0 : index
      %54 = vector.load %arg1[%c0_28, %c0_29, %c0_30] : memref<2x2x64xi32, #tpu.memory_space<vmem>>, vector<2x2x64xi32>
      %c0_i32_31 = arith.constant 0 : i32
      %55 = vector.broadcast %c0_i32_31 : i32 to vector<2x2x64xi32>
      %56 = arith.cmpi eq, %54, %55 : vector<2x2x64xi32>
      %cst_32 = arith.constant 0.000000e+00 : f32
      %cst_33 = arith.constant 1.000000e+00 : f32
      %57 = vector.broadcast %cst_32 : f32 to vector<2x2x64xf32>
      %58 = vector.broadcast %cst_33 : f32 to vector<2x2x64xf32>
      %59 = arith.select %56, %57, %58 : vector<2x2x64xi1>, vector<2x2x64xf32>
      %c0_34 = arith.constant 0 : index
      %c0_35 = arith.constant 0 : index
      %c0_36 = arith.constant 0 : index
      %c0_37 = arith.constant 0 : index
      %60 = vector.load %arg2[%c0_34, %c0_35, %c0_36, %c0_37] : memref<2x2x64x128xf32, #tpu.memory_space<vmem>>, vector<2x2x64x128xf32>
      %cst_38 = arith.constant dense<0.000000e+00> : vector<2x2xf32>
      %61 = vector.multi_reduction <add>, %59, %cst_38 [2] : vector<2x2x64xf32> to vector<2x2xf32>
      %62 = vector.shape_cast %61 : vector<2x2xf32> to vector<2x2x1xf32>
      %cst_39 = arith.constant 1.000000e+00 : f32
      %63 = vector.broadcast %cst_39 : f32 to vector<2x2x1xf32>
      %64 = arith.maximumf %62, %63 : vector<2x2x1xf32>
      %65 = vector.shape_cast %59 : vector<2x2x64xf32> to vector<2x2x64x1xf32>
      %66 = vector.broadcast %65 : vector<2x2x64x1xf32> to vector<2x2x64x128xf32>
      %67 = arith.mulf %60, %66 : vector<2x2x64x128xf32>
      %cst_40 = arith.constant dense<0.000000e+00> : vector<2x2x128xf32>
      %68 = vector.multi_reduction <add>, %67, %cst_40 [2] : vector<2x2x64x128xf32> to vector<2x2x128xf32>
      %69 = vector.broadcast %64 : vector<2x2x1xf32> to vector<2x2x128xf32>
      %70 = arith.divf %68, %69 : vector<2x2x128xf32>
      %c0_41 = arith.constant 0 : index
      %c0_42 = arith.constant 0 : index
      %c0_43 = arith.constant 0 : index
      %c0_44 = arith.constant 0 : index
      %71 = vector.load %arg3[%c0_41, %c0_42, %c0_43, %c0_44] : memref<2x2x64x128xf32, #tpu.memory_space<vmem>>, vector<2x2x64x128xf32>
      %72 = vector.shape_cast %70 : vector<2x2x128xf32> to vector<2x2x1x128xf32>
      %73 = vector.broadcast %72 : vector<2x2x1x128xf32> to vector<2x2x64x128xf32>
      %74 = arith.addf %71, %73 : vector<2x2x64x128xf32>
      %75 = math.tanh %74 : vector<2x2x64x128xf32>
      %76 = vector.shape_cast %75 : vector<2x2x64x128xf32> to vector<256x128xf32>
      %77 = arith.truncf %76 : vector<256x128xf32> to vector<256x128xbf16>
      %c0_45 = arith.constant 0 : index
      %c0_46 = arith.constant 0 : index
      %78 = vector.load %arg11[%c0_45, %c0_46] : memref<256x128xbf16, #tpu.memory_space<vmem>>, vector<256x128xbf16>
      tpu.vector_store %arg11[%c0_45, %c0_46], %77 {strides = array<i32>} : memref<256x128xbf16, #tpu.memory_space<vmem>>, vector<256x128xbf16>,
      %cst_47 = arith.constant 0xFF800000 : f32
      %79 = vector.broadcast %cst_47 : f32 to vector<256x1xf32>
      %c0_48 = arith.constant 0 : index
      %c0_49 = arith.constant 0 : index
      %80 = vector.load %arg12[%c0_48, %c0_49] : memref<256x1xf32, #tpu.memory_space<vmem>>, vector<256x1xf32>
      tpu.vector_store %arg12[%c0_48, %c0_49], %79 {strides = array<i32>} : memref<256x1xf32, #tpu.memory_space<vmem>>, vector<256x1xf32>,
      %cst_50 = arith.constant 0.000000e+00 : f32
      %81 = vector.broadcast %cst_50 : f32 to vector<256x1xf32>
      %c0_51 = arith.constant 0 : index
      %c0_52 = arith.constant 0 : index
      %82 = vector.load %arg13[%c0_51, %c0_52] : memref<256x1xf32, #tpu.memory_space<vmem>>, vector<256x1xf32>
      tpu.vector_store %arg13[%c0_51, %c0_52], %81 {strides = array<i32>} : memref<256x1xf32, #tpu.memory_space<vmem>>, vector<256x1xf32>,
      %cst_53 = arith.constant 0.000000e+00 : f32
      %83 = vector.broadcast %cst_53 : f32 to vector<256x1xf32>
      %c0_54 = arith.constant 0 : index
      %c0_55 = arith.constant 0 : index
      %84 = vector.load %arg14[%c0_54, %c0_55] : memref<256x1xf32, #tpu.memory_space<vmem>>, vector<256x1xf32>
      tpu.vector_store %arg14[%c0_54, %c0_55], %83 {strides = array<i32>} : memref<256x1xf32, #tpu.memory_space<vmem>>, vector<256x1xf32>,
      %c0_i32_56 = arith.constant 0 : i32
      %85 = vector.broadcast %c0_i32_56 : i32 to vector<256x1xi32>
      %c0_57 = arith.constant 0 : index
      %c0_58 = arith.constant 0 : index
      %86 = vector.load %arg15[%c0_57, %c0_58] : memref<256x1xi32, #tpu.memory_space<vmem>>, vector<256x1xi32>
      tpu.vector_store %arg15[%c0_57, %c0_58], %85 {strides = array<i32>} : memref<256x1xi32, #tpu.memory_space<vmem>>, vector<256x1xi32>,
    } else {
    }
    %c0 = arith.constant 0 : index
    %c0_1 = arith.constant 0 : index
    %3 = vector.load %arg11[%c0, %c0_1] : memref<256x128xbf16, #tpu.memory_space<vmem>>, vector<256x128xbf16>
    %c0_2 = arith.constant 0 : index
    %c0_3 = arith.constant 0 : index
    %4 = vector.load %arg6[%c0_2, %c0_3] : memref<128x256xbf16, #tpu.memory_space<vmem>>, vector<128x256xbf16>
    %cst = arith.constant dense<0.000000e+00> : vector<256x256xf32>
    %5 = tpu.matmul %3, %4, %cst {dimension_numbers = #tpu.dot_dimension_numbers<[1], [0], [0], [1], [0, 0, 1, 1], [], []>} : vector<256x128xbf16>, vector<128x256xbf16>, vector<256x256xf32> -> vector<256x256xf32>
    %c256_i32 = arith.constant 256 : i32
    %6 = arith.muli %arg0, %c256_i32 : i32
    %7 = tpu.iota {dimensions = array<i32: 1>} : vector<1x256xi32>
    %cst_4 = arith.constant dense<0xFF800000> : vector<256xf32>
    %8 = vector.multi_reduction <maximumf>, %5, %cst_4 [1] : vector<256x256xf32> to vector<256xf32>
    %9 = vector.shape_cast %8 : vector<256xf32> to vector<256x1xf32>
    %c0_5 = arith.constant 0 : index
    %c0_6 = arith.constant 0 : index
    %10 = vector.load %arg12[%c0_5, %c0_6] : memref<256x1xf32, #tpu.memory_space<vmem>>, vector<256x1xf32>
    %11 = arith.maximumf %10, %9 : vector<256x1xf32>
    %c0_7 = arith.constant 0 : index
    %c0_8 = arith.constant 0 : index
    %12 = vector.load %arg13[%c0_7, %c0_8] : memref<256x1xf32, #tpu.memory_space<vmem>>, vector<256x1xf32>
    %13 = arith.subf %10, %11 : vector<256x1xf32>
    %14 = math.exp %13 : vector<256x1xf32>
    %15 = arith.mulf %12, %14 : vector<256x1xf32>
    %16 = vector.broadcast %11 : vector<256x1xf32> to vector<256x256xf32>
    %17 = arith.subf %5, %16 : vector<256x256xf32>
    %18 = math.exp %17 : vector<256x256xf32>
    %cst_9 = arith.constant dense<0.000000e+00> : vector<256xf32>
    %19 = vector.multi_reduction <add>, %18, %cst_9 [1] : vector<256x256xf32> to vector<256xf32>
    %20 = vector.shape_cast %19 : vector<256xf32> to vector<256x1xf32>
    %21 = arith.addf %15, %20 : vector<256x1xf32>
    %c0_10 = arith.constant 0 : index
    %c0_11 = arith.constant 0 : index
    %22 = vector.load %arg13[%c0_10, %c0_11] : memref<256x1xf32, #tpu.memory_space<vmem>>, vector<256x1xf32>
    tpu.vector_store %arg13[%c0_10, %c0_11], %21 {strides = array<i32>} : memref<256x1xf32, #tpu.memory_space<vmem>>, vector<256x1xf32>,
    %23 = vector.broadcast %9 : vector<256x1xf32> to vector<256x256xf32>
    %24 = arith.cmpf oeq, %5, %23 : vector<256x256xf32>
    %25 = vector.broadcast %6 : i32 to vector<1x256xi32>
    %26 = arith.addi %7, %25 : vector<1x256xi32>
    %c2147483647_i32 = arith.constant 2147483647 : i32
    %27 = vector.shape_cast %26 : vector<1x256xi32> to vector<1x256xi32>
    %28 = vector.broadcast %27 : vector<1x256xi32> to vector<256x256xi32>
    %29 = vector.broadcast %c2147483647_i32 : i32 to vector<256x256xi32>
    %30 = arith.select %24, %28, %29 : vector<256x256xi1>, vector<256x256xi32>
    %cst_12 = arith.constant dense<2147483647> : vector<256xi32>
    %31 = vector.multi_reduction <minsi>, %30, %cst_12 [1] : vector<256x256xi32> to vector<256xi32>
    %32 = vector.shape_cast %31 : vector<256xi32> to vector<256x1xi32>
    %33 = arith.cmpf ogt, %9, %10 : vector<256x1xf32>
    %c0_13 = arith.constant 0 : index
    %c0_14 = arith.constant 0 : index
    %34 = vector.load %arg15[%c0_13, %c0_14] : memref<256x1xi32, #tpu.memory_space<vmem>>, vector<256x1xi32>
    %35 = arith.select %33, %32, %34 : vector<256x1xi1>, vector<256x1xi32>
    %c0_15 = arith.constant 0 : index
    %c0_16 = arith.constant 0 : index
    %36 = vector.load %arg15[%c0_15, %c0_16] : memref<256x1xi32, #tpu.memory_space<vmem>>, vector<256x1xi32>
    tpu.vector_store %arg15[%c0_15, %c0_16], %35 {strides = array<i32>} : memref<256x1xi32, #tpu.memory_space<vmem>>, vector<256x1xi32>,
    %c0_17 = arith.constant 0 : index
    %c0_18 = arith.constant 0 : index
    %37 = vector.load %arg12[%c0_17, %c0_18] : memref<256x1xf32, #tpu.memory_space<vmem>>, vector<256x1xf32>
    tpu.vector_store %arg12[%c0_17, %c0_18], %11 {strides = array<i32>} : memref<256x1xf32, #tpu.memory_space<vmem>>, vector<256x1xf32>,
    %c0_19 = arith.constant 0 : index
    %c0_20 = arith.constant 0 : index
    %38 = vector.load %arg4[%c0_19, %c0_20] : memref<256x1xi32, #tpu.memory_space<vmem>>, vector<256x1xi32>
    %39 = vector.broadcast %6 : i32 to vector<256x1xi32>
    %40 = arith.subi %38, %39 : vector<256x1xi32>
    %41 = vector.broadcast %7 : vector<1x256xi32> to vector<256x256xi32>
    %42 = vector.broadcast %40 : vector<256x1xi32> to vector<256x256xi32>
    %43 = arith.cmpi eq, %41, %42 : vector<256x256xi32>
    %c0_21 = arith.constant 0 : index
    %c0_22 = arith.constant 0 : index
    %44 = vector.load %arg14[%c0_21, %c0_22] : memref<256x1xf32, #tpu.memory_space<vmem>>, vector<256x1xf32>
    %cst_23 = arith.constant 0.000000e+00 : f32
    %45 = vector.broadcast %cst_23 : f32 to vector<256x256xf32>
    %46 = arith.select %43, %5, %45 : vector<256x256xi1>, vector<256x256xf32>
    %cst_24 = arith.constant dense<0.000000e+00> : vector<256xf32>
    %47 = vector.multi_reduction <add>, %46, %cst_24 [1] : vector<256x256xf32> to vector<256xf32>
    %48 = vector.shape_cast %47 : vector<256xf32> to vector<256x1xf32>
    %49 = arith.addf %44, %48 : vector<256x1xf32>
    %c0_25 = arith.constant 0 : index
    %c0_26 = arith.constant 0 : index
    %50 = vector.load %arg14[%c0_25, %c0_26] : memref<256x1xf32, #tpu.memory_space<vmem>>, vector<256x1xf32>
    tpu.vector_store %arg14[%c0_25, %c0_26], %49 {strides = array<i32>} : memref<256x1xf32, #tpu.memory_space<vmem>>, vector<256x1xf32>,
    %c1_i32 = arith.constant 1 : i32
    %51 = arith.cmpi eq, %arg0, %c1_i32 : i32
    %52 = arith.extui %51 : i1 to i32
    %c0_i32_27 = arith.constant 0 : i32
    %53 = arith.cmpi ne, %52, %c0_i32_27 : i32
    scf.if %53 {
      %c0_28 = arith.constant 0 : index
      %c0_29 = arith.constant 0 : index
      %54 = vector.load %arg12[%c0_28, %c0_29] : memref<256x1xf32, #tpu.memory_space<vmem>>, vector<256x1xf32>
      %c0_30 = arith.constant 0 : index
      %c0_31 = arith.constant 0 : index
      %55 = vector.load %arg13[%c0_30, %c0_31] : memref<256x1xf32, #tpu.memory_space<vmem>>, vector<256x1xf32>
      %56 = math.log %55 : vector<256x1xf32>
      %57 = arith.addf %54, %56 : vector<256x1xf32>
      %c0_32 = arith.constant 0 : index
      %c0_33 = arith.constant 0 : index
      %58 = vector.load %arg14[%c0_32, %c0_33] : memref<256x1xf32, #tpu.memory_space<vmem>>, vector<256x1xf32>
      %59 = arith.subf %57, %58 : vector<256x1xf32>
      %c0_34 = arith.constant 0 : index
      %c0_35 = arith.constant 0 : index
      %60 = vector.load %arg15[%c0_34, %c0_35] : memref<256x1xi32, #tpu.memory_space<vmem>>, vector<256x1xi32>
      %61 = vector.shape_cast %60 : vector<256x1xi32> to vector<1x256xi32>
      %c0_36 = arith.constant 0 : index
      %c0_37 = arith.constant 0 : index
      %62 = vector.load %arg8[%c0_36, %c0_37] : memref<1x256xi32, #tpu.memory_space<vmem>>, vector<1x256xi32>
      tpu.vector_store %arg8[%c0_36, %c0_37], %61 {strides = array<i32>} : memref<1x256xi32, #tpu.memory_space<vmem>>, vector<1x256xi32>,
      %c0_i32_38 = arith.constant 0 : i32
      %63 = vector.broadcast %c0_i32_38 : i32 to vector<256x1xi32>
      %64 = arith.cmpi ne, %38, %63 : vector<256x1xi32>
      %c0_39 = arith.constant 0 : index
      %c0_40 = arith.constant 0 : index
      %65 = vector.load %arg5[%c0_39, %c0_40] : memref<256x1xi32, #tpu.memory_space<vmem>>, vector<256x1xi32>
      %c0_i32_41 = arith.constant 0 : i32
      %66 = vector.broadcast %c0_i32_41 : i32 to vector<256x1xi32>
      %67 = arith.cmpi ne, %65, %66 : vector<256x1xi32>
      %c0_42 = arith.constant 0 : index
      %c0_43 = arith.constant 0 : index
      %68 = vector.load %arg15[%c0_42, %c0_43] : memref<256x1xi32, #tpu.memory_space<vmem>>, vector<256x1xi32>
      %69 = arith.cmpi eq, %68, %38 : vector<256x1xi32>
      %70 = arith.andi %69, %67 : vector<256x1xi1>
      %71 = tpu.iota {dimensions = array<i32: 0>} : vector<256x1xi32>
      %c0_i32_44 = arith.constant 0 : i32
      %72 = vector.broadcast %c0_i32_44 : i32 to vector<256x1xi32>
      %73 = arith.cmpi sge, %71, %72 : vector<256x1xi32>
      %c128_i32 = arith.constant 128 : i32
      %74 = vector.broadcast %c128_i32 : i32 to vector<256x1xi32>
      %75 = arith.cmpi slt, %71, %74 : vector<256x1xi32>
      %76 = arith.andi %73, %75 : vector<256x1xi1>
      %cst_45 = arith.constant 0.000000e+00 : f32
      %77 = vector.broadcast %cst_45 : f32 to vector<256x1xf32>
      %78 = arith.select %76, %59, %77 : vector<256x1xi1>, vector<256x1xf32>
      %79 = vector.shape_cast %78 : vector<256x1xf32> to vector<1x256x1xf32>
      %cst_46 = arith.constant dense<0.000000e+00> : vector<1xf32>
      %80 = vector.multi_reduction <add>, %79, %cst_46 [1, 2] : vector<1x256x1xf32> to vector<1xf32>
      %81 = vector.shape_cast %80 : vector<1xf32> to vector<1x1x1xf32>
      %82 = vector.extract %81[0, 0, 0] : f32 from vector<1x1x1xf32>
      %cst_47 = arith.constant 7.812500e-03 : f32
      %83 = arith.mulf %82, %cst_47 : f32
      %c0_48 = arith.constant 0 : index
      %84 = memref.load %arg7[%c0_48] : memref<2xf32, #tpu.memory_space<smem>>
      memref.store %83, %arg7[%c0_48] : memref<2xf32, #tpu.memory_space<smem>>
      %85 = arith.andi %76, %64 : vector<256x1xi1>
      %86 = arith.extui %85 : vector<256x1xi1> to vector<256x1xi32>
      %87 = vector.shape_cast %86 : vector<256x1xi32> to vector<1x256x1xi32>
      %cst_49 = arith.constant dense<0> : vector<1xi32>
      %88 = vector.multi_reduction <add>, %87, %cst_49 [1, 2] : vector<1x256x1xi32> to vector<1xi32>
      %89 = vector.shape_cast %88 : vector<1xi32> to vector<1x1x1xi32>
      %90 = vector.extract %89[0, 0, 0] : i32 from vector<1x1x1xi32>
      %c0_50 = arith.constant 0 : index
      %91 = memref.load %arg10[%c0_50] : memref<2xi32, #tpu.memory_space<smem>>
      memref.store %90, %arg10[%c0_50] : memref<2xi32, #tpu.memory_space<smem>>
      %92 = arith.andi %76, %70 : vector<256x1xi1>
      %93 = arith.extui %92 : vector<256x1xi1> to vector<256x1xi32>
      %94 = vector.shape_cast %93 : vector<256x1xi32> to vector<1x256x1xi32>
      %cst_51 = arith.constant dense<0> : vector<1xi32>
      %95 = vector.multi_reduction <add>, %94, %cst_51 [1, 2] : vector<1x256x1xi32> to vector<1xi32>
      %96 = vector.shape_cast %95 : vector<1xi32> to vector<1x1x1xi32>
      %97 = vector.extract %96[0, 0, 0] : i32 from vector<1x1x1xi32>
      %c0_52 = arith.constant 0 : index
      %98 = memref.load %arg9[%c0_52] : memref<2xi32, #tpu.memory_space<smem>>
      memref.store %97, %arg9[%c0_52] : memref<2xi32, #tpu.memory_space<smem>>
      %c128_i32_53 = arith.constant 128 : i32
      %99 = vector.broadcast %c128_i32_53 : i32 to vector<256x1xi32>
      %100 = arith.cmpi sge, %71, %99 : vector<256x1xi32>
      %c256_i32_54 = arith.constant 256 : i32
      %101 = vector.broadcast %c256_i32_54 : i32 to vector<256x1xi32>
      %102 = arith.cmpi slt, %71, %101 : vector<256x1xi32>
      %103 = arith.andi %100, %102 : vector<256x1xi1>
      %cst_55 = arith.constant 0.000000e+00 : f32
      %104 = vector.broadcast %cst_55 : f32 to vector<256x1xf32>
      %105 = arith.select %103, %59, %104 : vector<256x1xi1>, vector<256x1xf32>
      %106 = vector.shape_cast %105 : vector<256x1xf32> to vector<1x256x1xf32>
      %cst_56 = arith.constant dense<0.000000e+00> : vector<1xf32>
      %107 = vector.multi_reduction <add>, %106, %cst_56 [1, 2] : vector<1x256x1xf32> to vector<1xf32>
      %108 = vector.shape_cast %107 : vector<1xf32> to vector<1x1x1xf32>
      %109 = vector.extract %108[0, 0, 0] : f32 from vector<1x1x1xf32>
      %cst_57 = arith.constant 7.812500e-03 : f32
      %110 = arith.mulf %109, %cst_57 : f32
      %c1 = arith.constant 1 : index
      %111 = memref.load %arg7[%c1] : memref<2xf32, #tpu.memory_space<smem>>
      memref.store %110, %arg7[%c1] : memref<2xf32, #tpu.memory_space<smem>>
      %112 = arith.andi %103, %64 : vector<256x1xi1>
      %113 = arith.extui %112 : vector<256x1xi1> to vector<256x1xi32>
      %114 = vector.shape_cast %113 : vector<256x1xi32> to vector<1x256x1xi32>
      %cst_58 = arith.constant dense<0> : vector<1xi32>
      %115 = vector.multi_reduction <add>, %114, %cst_58 [1, 2] : vector<1x256x1xi32> to vector<1xi32>
      %116 = vector.shape_cast %115 : vector<1xi32> to vector<1x1x1xi32>
      %117 = vector.extract %116[0, 0, 0] : i32 from vector<1x1x1xi32>
      %c1_59 = arith.constant 1 : index
      %118 = memref.load %arg10[%c1_59] : memref<2xi32, #tpu.memory_space<smem>>
      memref.store %117, %arg10[%c1_59] : memref<2xi32, #tpu.memory_space<smem>>
      %119 = arith.andi %103, %70 : vector<256x1xi1>
      %120 = arith.extui %119 : vector<256x1xi1> to vector<256x1xi32>
      %121 = vector.shape_cast %120 : vector<256x1xi32> to vector<1x256x1xi32>
      %cst_60 = arith.constant dense<0> : vector<1xi32>
      %122 = vector.multi_reduction <add>, %121, %cst_60 [1, 2] : vector<1x256x1xi32> to vector<1xi32>
      %123 = vector.shape_cast %122 : vector<1xi32> to vector<1x1x1xi32>
      %124 = vector.extract %123[0, 0, 0] : i32 from vector<1x1x1xi32>
      %c1_61 = arith.constant 1 : index
      %125 = memref.load %arg9[%c1_61] : memref<2xi32, #tpu.memory_space<smem>>
      memref.store %124, %arg9[%c1_61] : memref<2xi32, #tpu.memory_space<smem>>
    } else {
    }
    return
  }
  func.func @transform_0(%arg0: i32) -> (i32, i32, i32) {
    %c0_i32 = arith.constant 0 : i32
    %c0_i32_0 = arith.constant 0 : i32
    %c0_i32_1 = arith.constant 0 : i32
    %c0_i32_2 = arith.constant 0 : i32
    return %c0_i32, %c0_i32_0, %c0_i32_1 : i32, i32, i32
  }
  func.func @transform_1(%arg0: i32) -> (i32, i32, i32, i32) {
    %c0_i32 = arith.constant 0 : i32
    %c0_i32_0 = arith.constant 0 : i32
    %c0_i32_1 = arith.constant 0 : i32
    %c0_i32_2 = arith.constant 0 : i32
    %c0_i32_3 = arith.constant 0 : i32
    return %c0_i32, %c0_i32_0, %c0_i32_1, %c0_i32_2 : i32, i32, i32, i32
  }
  func.func @transform_2(%arg0: i32) -> (i32, i32, i32, i32) {
    %c0_i32 = arith.constant 0 : i32
    %c0_i32_0 = arith.constant 0 : i32
    %c0_i32_1 = arith.constant 0 : i32
    %c0_i32_2 = arith.constant 0 : i32
    %c0_i32_3 = arith.constant 0 : i32
    return %c0_i32, %c0_i32_0, %c0_i32_1, %c0_i32_2 : i32, i32, i32, i32
  }
  func.func @transform_3(%arg0: i32) -> (i32, i32) {
    %c0_i32 = arith.constant 0 : i32
    %c0_i32_0 = arith.constant 0 : i32
    %c0_i32_1 = arith.constant 0 : i32
    return %c0_i32, %c0_i32_0 : i32, i32
  }
  func.func @transform_4(%arg0: i32) -> (i32, i32) {
    %c0_i32 = arith.constant 0 : i32
    %c0_i32_0 = arith.constant 0 : i32
    %c0_i32_1 = arith.constant 0 : i32
    return %c0_i32, %c0_i32_0 : i32, i32
  }
  func.func @transform_5(%arg0: i32) -> (i32, i32) {
    %c0_i32 = arith.constant 0 : i32
    %c0_i32_0 = arith.constant 0 : i32
    return %c0_i32, %arg0 : i32, i32
  }
  func.func @transform_6(%arg0: i32) -> i32 {
    %c0_i32 = arith.constant 0 : i32
    %c0_i32_0 = arith.constant 0 : i32
    return %c0_i32 : i32
  }
  func.func @transform_7(%arg0: i32) -> (i32, i32) {
    %c0_i32 = arith.constant 0 : i32
    %c0_i32_0 = arith.constant 0 : i32
    %c0_i32_1 = arith.constant 0 : i32
    return %c0_i32, %c0_i32_0 : i32, i32
  }
  func.func @transform_8(%arg0: i32) -> i32 {
    %c0_i32 = arith.constant 0 : i32
    %c0_i32_0 = arith.constant 0 : i32
    return %c0_i32 : i32
  }
  func.func @transform_9(%arg0: i32) -> i32 {
    %c0_i32 = arith.constant 0 : i32
    %c0_i32_0 = arith.constant 0 : i32
    return %c0_i32 : i32
  }
}

</mosaic_0001>

<bundles_post_ra>
// kernel: tpu_custom_call.1
= control target key start
LH: loop header
LB: loop body
LE: loop exit
PB: predicated region body
PF: predicated region fallthrough
CT: control target
= control target key end

     0   :  { %s10492_s0 = inlined_call_operand.hbm [shape: s32[2,2,64], index: 0, kind: input, shape index: {}]   ;;  %s10493_s1 = inlined_call_operand.vmem [shape: f32[2,2,64,128], index: 1, kind: input, shape index: {}]   ;;  %s10494_s2 = inlined_call_operand.vmem [shape: f32[2,2,64,128], index: 2, kind: input, shape index: {}]   ;;  %s10495_s3 = inlined_call_operand.vmem [shape: s32[256,1], index: 3, kind: input, shape index: {}]   ;;  %s10496_s4 = inlined_call_operand.vmem [shape: s32[256,1], index: 4, kind: input, shape index: {}]   ;;  %s10497_s5 = inlined_call_operand.hbm [shape: bf16[128,512], index: 5, kind: input, shape index: {}]   ;;  %s10498_s6 = inlined_call_operand.hbm [shape: f32[2], index: 6, kind: output, shape index: {0}]   ;;  %s10499_s7 = inlined_call_operand.hbm [shape: s32[1,256], index: 7, kind: output, shape index: {1}]   ;;  %s10500_s8 = inlined_call_operand.hbm [shape: s32[2], index: 8, kind: output, shape index: {2}]   ;;  %s10501_s9 = inlined_call_operand.hbm [shape: s32[2], index: 9, kind: output, shape index: {3}]  }
   0x1   :  { %10905 = sst [smem:[#allocation265_spill]] %s10492_s0 }
   0x2   :  { %10906 = sst [smem:[#allocation266_spill]] %s10501_s9 }
   0x3   :  { %15 = vsyncpa [#allocation8], 0 }
   0x4   :  { %16 = vsyncpa [#allocation12], 0 }
   0x5   :  { %18 = vsyncpa [#allocation12 + $0x1], 0 }
   0x6   :  { %19 = vsyncpa [#allocation10], 0 }
   0x7   :  { %20 = vsyncpa [#allocation9], 0 }
   0x8   :  { %21 = vsyncpa [#allocation16], 0  ;;  %s6978_s30 = smov 0   ;;  %s6980_s10 = smov 0  }
   0x9   :  { %s6982_s11 = smov 0   ;;  %s6984_s12 = smov 0  }
   0xa LB: > { %s6997_s13 = sadd.s32 4294967295, %s6910_s12   ;;  %p152_p0 = scmp.ne.s32.totalorder %s6902_s10, %s6898_s30  ;;  %s6910_s12 = sphi %s6984_s12, %s11670_s12   ;;  %s6906_s11 = sphi %s6982_s11, %s11669_s11   ;;  %s6902_s10 = sphi %s6980_s10, %s11668_s10   ;;  %s6898_s30 = sphi %s6978_s30, %s11667_s30  }
   0xb   : > { %p153_p1 = scmp.eq.s32.totalorder %s6997_s13, 0  ;;  %p5905_p2 = scmp.ge.s32.totalorder %s6910_s12, 1 }
   0xc   : > { %p247_p3 = scmp.lt.s32.totalorder %s6910_s12, 3  ;;  %p5906_p4 = scmp.ne.s32.totalorder %s6997_s13, 0 }
   0xd   : > { %p7006_p5 = por %p153_p1, %p152_p0  ;;  %s10908_s0 = sld [smem:[#allocation265_spill]] }
   0xe   : > { %p7013_p6 = pnand %p5905_p2, %p247_p3  ;;  %s6912_s19 = smov [#allocation7]  }
   0xf   : > { %s260_s20 = sshll.u32 %s6912_s19, 4  ;;  %s7022_s21 = sadd.s32 1, %s6910_s12   ;;  %s261_s20 = int_to_ptr.vmem [resolvable:$true] %s260_s20 }
  0x10   : > { %p6233_p7 = pneg %p7013_p6  ;;  %s6913_s22 = smov 32  }
  0x11   : > { %s6914_s23 = smov 2   ;;  %s136_s24 = ssub.s32 %s6910_s12, %s7022_s21 }
  0x12   : > { %p6234_p8 = pnand %p6233_p7, %p153_p1  ;;  %s139_s25 = sadd.s32 1, %s6906_s11 }
  0x13   : > { %s258_s17 = sshll.u32 %s10908_s0, 4  ;;  %p137_p9 = scmp.eq.s32.totalorder %s136_s24, 0  ;;  %s259_s17 = int_to_ptr.hbm [resolvable:$true] %s258_s17 }
  0x14   : > { %6236 = dma.hbm_to_vmem [thread:$0]  (!%p6234_p8), %s259_s17, 64, %s261_s20, [#allocation8], %s6913_s22, %s6913_s22, %s6914_s23  }
  0x15   : > { %p146_p10 = scmp.ne.s32.totalorder %s6906_s11, %s6902_s10  ;;  %p147_p11 = scmp.eq.s32.totalorder %s6910_s12, 0 }
  0x16   : > { %p6242_p12 = scmp.lt.s32.totalorder %s6910_s12, 2  ;;  %s286_s27 = sand.u32 1, %s6906_s11  }
  0x17   : > { %s7032_s26 = scalar_select %p137_p9, %s6906_s11, %s139_s25  }
  0x18   : > { %p148_p13 = por %p147_p11, %p146_p10  ;;  %s5908_s28 = sshll.u32 %s286_s27, 7 }
  0x19   : > { %s6055_s29 = sshll.u32 %s6910_s12, 3  ;;  %s290_s19 = scalar_lea.vmem [#allocation11], %s5908_s28 }
  0x1a   : > { %s295_s16 = scalar_lea.hbm %s10497_s5, %s6055_s29  ;;  %s298_s0 = sshll.u32 %s290_s19, 4  ;;  %s299_s0 = int_to_ptr.vmem [resolvable:$true] %s298_s0 }
  0x1b   : > { %s296_s9 = sshll.u32 %s295_s16, 4  ;;  %p7039_p0 = pnand %p6242_p12, %p148_p13  ;;  %s297_s9 = int_to_ptr.hbm [resolvable:$true] %s296_s9 }
  0x1c   : > { %s287_s20 = scalar_lea.sflag [#allocation12], %s286_s27  ;;  %s6760_s22 = sshra.s32 %s297_s9, 4  ;;  %s6761_s22 = int_to_ptr.hbm [resolvable:$true] %s6760_s22 }
  0x1d   : > { %s6762_s23 = scalar_lea.hbm %s6761_s22, 128  ;;  %p6764_p3 = pneg %p7039_p0 }
  0x1e   : > { %p6763_p2 = scmp.ne.s32.totalorder %s6761_s22, %s6762_s23  ;;  %s6767_s25 = scalar_lea.hbm %s10497_s5, 256 }
  0x1f   : > { %p6768_p9 = scmp.lt.s32.totalorder %s6761_s22, %s10497_s5  ;;  %p6769_p10 = scmp.lt.s32.totalorder %s6767_s25, %s6762_s23 }
  0x20   : > { %p6765_p7 = pnand %p6764_p3, %p6763_p2 }
  0x21   : > { %p6770_p11 = por %p6769_p10, %p6768_p9 }
  0x22   : > { %p6766_p8 = pneg %p6765_p7 }
  0x24   : > { %p6771_p12 = pnand %p6770_p11, %p6766_p8 }
  0x26   : > { %6774 = shalt.err (!%p6771_p12)
}
  0x27   : > { %s6915_s27 = smov 256   ;;  %s6916_s30 = smov 128  }
  0x28   : > { %s6917_s15 = smov 8   ;;  %310 = sbr.rel (%p7013_p6) target bundleno = 2644 (0xa54), region = 44 }
  0x29   : > { %6240 = dma.hbm_to_vmem [thread:$0]  (!%p7039_p0), %s297_s9, 2048, %s299_s0, %s287_s20, %s6915_s27, %s6916_s30, %s6917_s15  }
  0x2d   : > { %6877 = dma.done.wait (%p153_p1), [#allocation8], 64  }
  0x2e   : > { %6879 = vsyncadd (%p153_p1), [#allocation8], 4294967232  ;;  %s317_s16 = sand.u32 1, %s6902_s10  }
  0x2f   : > { %s5913_s19 = sshll.u32 %s317_s16, 7  ;;  %s318_s22 = scalar_lea.sflag [#allocation12], %s317_s16 }
  0x30   : > { %s7060_s23 = scalar_lea.vmem [#allocation11], %s5913_s19 }
  0x31   : > { %6881 = dma.done.wait (%p7006_p5), %s318_s22, 2048  }
  0x32   : > { %6883 = vsyncadd (%p7006_p5), %s318_s22, 4294965248  ;;  %356 = sbr.rel (%p5906_p4) target bundleno = 414 (0x19e), region = 56 }
  0x37   : > { %v405_v0 = vlaneseq  ;;  %v357_v1 = vld [vmem:[#allocation7] sm:$0x3]  ;;  %vm395_vm0 = vcmask 517120   ;;  %v358_v2 = vld [vmem:[#allocation7 + $0x2] sm:$0x3]  ;;  %v6918_v4 = vmov 1.0  }
  0x38   : > { %vm359_vm1 = vcmp.eq.s32.totalorder %v357_v1, 0  ;;  %vm360_vm2 = vcmp.eq.s32.totalorder %v358_v2, 0  ;;  %v364_v29 = vld [vmem:[%s10493_s1 + $0x8] sm:$0xff]  ;;  %v363_v33 = vld [vmem:[%s10493_s1] sm:$0xff]  ;;  %v365_v41 = vld [vmem:[%s10493_s1 + $0x10] sm:$0xff] }
  0x39   : > { %v406_v3 = vshrl.u32 %v405_v0, 7  ;;  %v361_v5 = vsel %vm359_vm1, 0.0, %v6918_v4  ;;  %v362_v11 = vsel %vm360_vm2, 0.0, %v6918_v4  ;;  %v372_v30 = vld [vmem:[%s10493_s1 + $0x48] sm:$0xff]  ;;  %v371_v34 = vld [vmem:[%s10493_s1 + $0x40] sm:$0xff]  ;;  %v373_v42 = vld [vmem:[%s10493_s1 + $0x50] sm:$0xff] }
  0x3a   : > { %v396_v6 = vsel %vm395_vm0, %v361_v5, 0.0  ;;  %v404_v7 = vperm.slane %v361_v5, 0  ;;  %v453_v8 = vperm.slane %v361_v5, 1  ;;  %v399_v13 = vsel %vm395_vm0, %v362_v11, 0.0  ;;  %v366_v53 = vld [vmem:[%s10493_s1 + $0x18] sm:$0xff]  ;;  %v367_v60 = vld [vmem:[%s10493_s1 + $0x20] sm:$0xff] }
  0x3b   : > { %6300 = vset.pattern.permute.xlu1 %v406_v3  ;;  %397 = vadd.xlane.f32.xlu0 %v396_v6  ;;  %v431_v9 = vadd.s32 32, %v406_v3  ;;  %v419_v10 = vadd.s32 16, %v406_v3  ;;  %v413_v14 = vadd.s32 8, %v406_v3  ;;  %v425_v15 = vadd.s32 24, %v406_v3  ;;  %v374_v54 = vld [vmem:[%s10493_s1 + $0x58] sm:$0xff]  ;;  %v375_v61 = vld [vmem:[%s10493_s1 + $0x60] sm:$0xff] }
  0x3c   : > { %v6301_v12 = vpack.i.bf16 %v453_v8, %v404_v7  ;;  %v437_v16 = vadd.s32 40, %v406_v3  ;;  %v443_v17 = vadd.s32 48, %v406_v3  ;;  %v449_v18 = vadd.s32 56, %v406_v3  ;;  %v368_v2 = vld [vmem:[%s10493_s1 + $0x28] sm:$0xff] }
  0x3d   : > { %6324 = vset.pattern.permute.xlu0 %v431_v9  ;;  %6312 = vset.pattern.permute.xlu2 %v419_v10  ;;  %v502_v19 = vperm.slane %v362_v11, 0  ;;  %v551_v20 = vperm.slane %v362_v11, 1 }
  0x3f   : > { %v6349_v21 = vpack.i.bf16 %v551_v20, %v502_v19 }
  0x43   : > { %6302 = vperm.xlu1 %6300, %v6301_v12   ;;  %400 = vadd.xlane.f32.xlu0 %v399_v13 }
  0x45   : > { %6314 = vperm.xlu2 %6312, %v6301_v12  }
  0x4b   : > { %6306 = vset.pattern.permute.xlu1 %v413_v14 }
  0x4d   : > { %6318 = vset.pattern.permute.xlu2 %v425_v15 }
  0x53   : > { %6308 = vperm.xlu1 %6306, %v6301_v12  }
  0x55   : > { %6320 = vperm.xlu2 %6318, %v6301_v12  }
  0x57   : > { %6326 = vperm.xlu0 %6324, %v6301_v12  }
  0x5b   : > { %6330 = vset.pattern.permute.xlu1 %v437_v16 }
  0x5d   : > { %6336 = vset.pattern.permute.xlu2 %v443_v17 }
  0x5f   : > { %6390 = vset.pattern.permute.xlu0 %v449_v18 }
  0x63   : > { %6332 = vperm.xlu1 %6330, %v6301_v12  }
  0x65   : > { %6338 = vperm.xlu2 %6336, %v6301_v12  }
  0x67   : > { %6392 = vperm.xlu0 %6390, %v6349_v21  }
  0x6b   : > { %6342 = vset.pattern.permute.xlu1 %v449_v18 }
  0x6d   : > { %6348 = vset.pattern.permute.xlu2 %v406_v3  ;;  %v376_v3 = vld [vmem:[%s10493_s1 + $0x68] sm:$0xff] }
  0x73   : > { %6344 = vperm.xlu1 %6342, %v6301_v12  }
  0x75   : > { %6350 = vperm.xlu2 %6348, %v6349_v21  }
  0x7b   : > { %6354 = vset.pattern.permute.xlu1 %v413_v14  ;;  %v369_v14 = vld [vmem:[%s10493_s1 + $0x30] sm:$0xff] }
  0x7d   : > { %6360 = vset.pattern.permute.xlu2 %v419_v10 }
  0x83   : > { %6356 = vperm.xlu1 %6354, %v6349_v21  }
  0x85   : > { %6362 = vperm.xlu2 %6360, %v6349_v21  }
  0x8b   : > { %6366 = vset.pattern.permute.xlu1 %v425_v15  ;;  %v377_v15 = vld [vmem:[%s10493_s1 + $0x70] sm:$0xff] }
  0x8d   : > { %6372 = vset.pattern.permute.xlu2 %v431_v9 }
  0x93   : > { %6368 = vperm.xlu1 %6366, %v6349_v21  }
  0x95   : > { %6374 = vperm.xlu2 %6372, %v6349_v21  }
  0x9b   : > { %6378 = vset.pattern.permute.xlu1 %v437_v16 }
  0x9d   : > { %6384 = vset.pattern.permute.xlu2 %v443_v17 }
  0x9f   : > { %v6315_v25 = vpop.permute.xlu2 %6314 }
  0xa0   : > { %v6317_v39 = vunpack.i.h.bf16 %v6315_v25  ;;  %v6316_v40 = vunpack.i.l.bf16 %v6315_v25  ;;  %v378_v25 = vld [vmem:[%s10493_s1 + $0x78] sm:$0xff] }
  0xa2   : > { %v610_v48 = vmul.f32 %v6317_v39, %v373_v42  ;;  %v602_v49 = vmul.f32 %v6316_v40, %v365_v41 }
  0xa3   : > { %6380 = vperm.xlu1 %6378, %v6349_v21  }
  0xa5   : > { %6386 = vperm.xlu2 %6384, %v6349_v21  }
  0xae   : > { %v398_v23 = vpop.xlane.xlu0 %397 }
  0xaf   : > { %v7090_v43 = vmax.f32 %v398_v23, 1.0  ;;  %v6321_v44 = vpop.permute.xlu2 %6320 }
  0xb0   : > { %v6323_v50 = vunpack.i.h.bf16 %v6321_v44  ;;  %v6322_v51 = vunpack.i.l.bf16 %v6321_v44 }
  0xb1   : > { %v7093_v52 = vrot.slane %v7090_v43, 1  ;;  %6396 = vrcp.f32 %v7090_v43  ;;  %vm697_vm3 = vweird.f32 %v7090_v43 }
  0xb2   : > { %v611_v62 = vmul.f32 %v6323_v50, %v374_v54  ;;  %v603_v63 = vmul.f32 %v6322_v51, %v366_v53  ;;  %v767_v51 = vld [vmem:[%s10494_s2 + $0x78] sm:$0xff] }
  0xb3   : > { %6398 = vrcp.f32 %v7093_v52  ;;  %vm712_vm5 = vweird.f32 %v7093_v52  ;;  %v718_v53 = vand.u32 2147483648, %v7093_v52 }
  0xb5   : > { %v6303_v22 = vpop.permute.xlu1 %6302 }
  0xb6   : > { %v7070_v26 = vpop.xlane.xlu0 %400  ;;  %v6305_v31 = vunpack.i.h.bf16 %v6303_v22  ;;  %v6304_v32 = vunpack.i.l.bf16 %v6303_v22 }
  0xb7   : > { %v7115_v9 = vpop.eup %6396 }
  0xb8   : > { %v608_v37 = vmul.f32 %v6305_v31, %v371_v34  ;;  %v600_v38 = vmul.f32 %v6304_v32, %v363_v33  ;;  %v693_v19 = vmul.f32 %v7115_v9, %v7090_v43  ;;  %vm698_vm4 = vweird.f32 %v7115_v9 }
  0xb9   : > { %v6399_v18 = vpop.eup %6398  ;;  %vm7139_vm7 = vmor %vm697_vm3, %vm698_vm4  ;;  %vm916_vm3 = vcmask 7168  }
  0xba   : > { %v694_v31 = vsub.f32 1.0, %v693_v19  ;;  %vm713_vm6 = vweird.f32 %v6399_v18  ;;  %v759_v19 = vld [vmem:[%s10494_s2 + $0x38] sm:$0xff] }
  0xbb   : > { %vm7145_vm8 = vmor %vm712_vm5, %vm713_vm6 }
  0xbc   : > { %v695_v39 = vmul.f32 %v7115_v9, %v694_v31 }
  0xbf   : > { %v6339_v4 = vpop.permute.xlu2 %6338 }
  0xc0   : > { %v6341_v12 = vunpack.i.h.bf16 %v6339_v4  ;;  %v6340_v13 = vunpack.i.l.bf16 %v6339_v4 }
  0xc2   : > { %v614_v22 = vmul.f32 %v6341_v12, %v377_v15  ;;  %v606_v23 = vmul.f32 %v6340_v13, %v369_v14  ;;  %v756_v13 = vld [vmem:[%s10494_s2 + $0x20] sm:$0xff]  ;;  %v757_v15 = vld [vmem:[%s10494_s2 + $0x28] sm:$0xff] }
  0xc5   : > { %v6309_v24 = vpop.permute.xlu1 %6308 }
  0xc6   : > { %v6311_v27 = vunpack.i.h.bf16 %v6309_v24  ;;  %v6310_v28 = vunpack.i.l.bf16 %v6309_v24  ;;  %v370_v24 = vld [vmem:[%s10493_s1 + $0x38] sm:$0xff] }
  0xc8   : > { %v609_v35 = vmul.f32 %v6311_v27, %v372_v30  ;;  %v601_v36 = vmul.f32 %v6310_v28, %v364_v29  ;;  %v708_v30 = vmul.f32 %v6399_v18, %v7093_v52 }
  0xc9   : > { %v6327_v47 = vpop.permute.xlu0 %6326 }
  0xca   : > { %v632_v45 = vadd.f32 %v601_v36, %v600_v38  ;;  %v645_v46 = vadd.f32 %v609_v35, %v608_v37  ;;  %v6329_v58 = vunpack.i.h.bf16 %v6327_v47  ;;  %v6328_v59 = vunpack.i.l.bf16 %v6327_v47 }
  0xcb   : > { %v709_v38 = vsub.f32 1.0, %v708_v30  ;;  %v696_v47 = vadd.f32 %v7115_v9, %v695_v39  ;;  %v765_v39 = vld [vmem:[%s10494_s2 + $0x68] sm:$0xff] }
  0xcc   : > { %v633_v56 = vadd.f32 %v632_v45, %v602_v49  ;;  %v646_v57 = vadd.f32 %v645_v46, %v610_v48  ;;  %v612_v7 = vmul.f32 %v6329_v58, %v375_v61  ;;  %v604_v8 = vmul.f32 %v6328_v59, %v367_v60 }
  0xcd   : > { %v710_v45 = vmul.f32 %v6399_v18, %v709_v38  ;;  %v703_v46 = vand.u32 2147483648, %v7090_v43  ;;  %v701_v48 = vand.u32 2147483647, %v7090_v43  ;;  %v700_v61 = vsel %vm7139_vm7, %v7115_v9, %v696_v47 }
  0xce   : > { %v634_v5 = vadd.f32 %v633_v56, %v603_v63  ;;  %v647_v6 = vadd.f32 %v646_v57, %v611_v62  ;;  %v716_v57 = vand.u32 2147483647, %v7093_v52  ;;  %v719_v62 = vor.u32 1.1754944e-38, %v718_v53 }
  0xcf   : > { %v711_v56 = vadd.f32 %v6399_v18, %v710_v45  ;;  %v704_v58 = vor.u32 1.1754944e-38, %v703_v46  ;;  %vm702_vm9 = vcmp.eq.f32.partialorder %v701_v48, 8.507059e+37  ;;  %v7155_v52 = vmax.f32 %v7070_v26, 1.0  ;;  %v7157_v4 = vpop.permute.xlu2 %6350  ;;  %v754_v26 = vld [vmem:[%s10494_s2 + $0x10] sm:$0xff] }
  0xd0   : > { %v648_v16 = vadd.f32 %v647_v6, %v612_v7  ;;  %v635_v17 = vadd.f32 %v634_v5, %v604_v8  ;;  %vm717_vm10 = vcmp.eq.f32.partialorder %v716_v57, 8.507059e+37  ;;  %v752_v5 = vld [vmem:[%s10494_s2] sm:$0xff]  ;;  %v753_v7 = vld [vmem:[%s10494_s2 + $0x8] sm:$0xff]  ;;  %v766_v45 = vld [vmem:[%s10494_s2 + $0x70] sm:$0xff]  ;;  %v6353_v47 = vunpack.i.h.bf16 %v7157_v4 }
  0xd1   : > { %v7166_v9 = vrot.slane %v7155_v52, 1  ;;  %6400 = vrcp.f32 %v7155_v52  ;;  %v6352_v48 = vunpack.i.l.bf16 %v7157_v4  ;;  %v389_v4 = vld [vmem:[%s10493_s1 + $0xd0] sm:$0xff]  ;;  %vm727_vm13 = vweird.f32 %v7155_v52 }
  0xd3   : > { %6402 = vrcp.f32 %v7166_v9  ;;  %vm742_vm11 = vweird.f32 %v7166_v9 }
  0xd5   : > { %v6333_v55 = vpop.permute.xlu1 %6332 }
  0xd6   : > { %v6335_v0 = vunpack.i.h.bf16 %v6333_v55  ;;  %v6334_v1 = vunpack.i.l.bf16 %v6333_v55 }
  0xd7   : > { %v7199_v31 = vpop.eup %6400 }
  0xd8   : > { %v613_v10 = vmul.f32 %v6335_v0, %v376_v3  ;;  %v605_v11 = vmul.f32 %v6334_v1, %v368_v2  ;;  %v715_v0 = vsel %vm7145_vm8, %v6399_v18, %v711_v56  ;;  %v705_v1 = vsel %vm702_vm9, %v704_v58, %v700_v61  ;;  %v387_v56 = vld [vmem:[%s10493_s1 + $0xc0] sm:$0xff] }
  0xd9   : > { %v720_v6 = vsel %vm717_vm10, %v719_v62, %v715_v0  ;;  %vm728_vm14 = vweird.f32 %v7199_v31 }
  0xda   : > { %v636_v20 = vadd.f32 %v635_v17, %v605_v11  ;;  %v649_v21 = vadd.f32 %v648_v16, %v613_v10  ;;  %v755_v10 = vld [vmem:[%s10494_s2 + $0x18] sm:$0xff]  ;;  %v758_v17 = vld [vmem:[%s10494_s2 + $0x30] sm:$0xff]  ;;  %vm7294_vm0 = vmor %vm727_vm13, %vm728_vm14 }
  0xdc   : > { %v637_v32 = vadd.f32 %v636_v20, %v606_v23  ;;  %v650_v33 = vadd.f32 %v649_v21, %v614_v22  ;;  %v760_v23 = vld [vmem:[%s10494_s2 + $0x40] sm:$0xff] }
  0xdf   : > { %v7188_v22 = vpop.permute.xlu2 %6362 }
  0xe0   : > { %v6365_v57 = vunpack.i.h.bf16 %v7188_v22  ;;  %v6364_v61 = vunpack.i.l.bf16 %v7188_v22 }
  0xe5   : > { %v6345_v27 = vpop.permute.xlu1 %6344 }
  0xe6   : > { %v6347_v28 = vunpack.i.h.bf16 %v6345_v27  ;;  %v6346_v29 = vunpack.i.l.bf16 %v6345_v27  ;;  %v761_v27 = vld [vmem:[%s10494_s2 + $0x48] sm:$0xff] }
  0xe8   : > { %v615_v34 = vmul.f32 %v6347_v28, %v378_v25  ;;  %v607_v35 = vmul.f32 %v6346_v29, %v370_v24  ;;  %v762_v29 = vld [vmem:[%s10494_s2 + $0x50] sm:$0xff] }
  0xea   : > { %v638_v36 = vadd.f32 %v637_v32, %v607_v35  ;;  %v651_v37 = vadd.f32 %v650_v33, %v615_v34  ;;  %v763_v32 = vld [vmem:[%s10494_s2 + $0x58] sm:$0xff]  ;;  %v7204_v34 = vpop.eup %6402  ;;  %v764_v35 = vld [vmem:[%s10494_s2 + $0x60] sm:$0xff] }
  0xeb   : > { %vm743_vm12 = vweird.f32 %v7204_v34 }
  0xec   : > { %v639_v40 = vrot.slane %v638_v36, 4  ;;  %v652_v41 = vrot.slane %v651_v37, 4  ;;  %vm7290_vm15 = vmor %vm742_vm11, %vm743_vm12 }
  0xee   : > { %v640_v42 = vadd.f32 %v639_v40, %v638_v36  ;;  %v653_v44 = vadd.f32 %v652_v41, %v651_v37  ;;  %v388_v41 = vld [vmem:[%s10493_s1 + $0xc8] sm:$0xff] }
  0xef   : > { %v7233_v58 = vpop.permute.xlu2 %6374 }
  0xf0   : > { %v641_v49 = vrot.slane %v640_v42, 2  ;;  %v654_v50 = vrot.slane %v653_v44, 2 }
  0xf2   : > { %v642_v54 = vadd.f32 %v641_v49, %v640_v42  ;;  %v655_v55 = vadd.f32 %v654_v50, %v653_v44  ;;  %v380_v49 = vld [vmem:[%s10493_s1 + $0x88] sm:$0xff] }
  0xf4   : > { %v643_v43 = vrot.slane %v642_v54, 1  ;;  %v656_v60 = vrot.slane %v655_v55, 1 }
  0xf5   : > { %v6357_v25 = vpop.permute.xlu1 %6356 }
  0xf6   : > { %v644_v63 = vadd.f32 %v643_v43, %v642_v54  ;;  %v657_v2 = vadd.f32 %v656_v60, %v655_v55  ;;  %v6359_v37 = vunpack.i.h.bf16 %v6357_v25  ;;  %v6358_v42 = vunpack.i.l.bf16 %v6357_v25  ;;  %v379_v55 = vld [vmem:[%s10493_s1 + $0x80] sm:$0xff] }
  0xf8   : > { %v706_v3 = vmul.f32 %v705_v1, %v644_v63  ;;  %v721_v11 = vmul.f32 %v720_v6, %v657_v2  ;;  %v625_v60 = vmul.f32 %v6359_v37, %v388_v41  ;;  %v617_v2 = vmul.f32 %v6358_v42, %v380_v49 }
  0xfa   : > { %v784_v8 = vperm.slane %v706_v3, 0  ;;  %v785_v20 = vperm.slane %v721_v11, 0  ;;  %v381_v3 = vld [vmem:[%s10493_s1 + $0x90] sm:$0xff] }
  0xfc   : > { %v788_v12 = vadd.f32 %v784_v8, %v752_v5  ;;  %v789_v14 = vadd.f32 %v784_v8, %v753_v7  ;;  %v790_v16 = vadd.f32 %v784_v8, %v754_v26  ;;  %v791_v18 = vadd.f32 %v784_v8, %v755_v10 }
  0xfd   : > { %v792_v21 = vadd.f32 %v784_v8, %v756_v13  ;;  %v793_v24 = vadd.f32 %v784_v8, %v757_v15  ;;  %v794_v28 = vadd.f32 %v784_v8, %v758_v17  ;;  %v795_v30 = vadd.f32 %v784_v8, %v759_v19  ;;  %v390_v17 = vld [vmem:[%s10493_s1 + $0xd8] sm:$0xff] }
  0xfe   : > { %6404 = vtanh.f32 %v788_v12  ;;  %v796_v33 = vadd.f32 %v785_v20, %v760_v23  ;;  %v797_v36 = vadd.f32 %v785_v20, %v761_v27  ;;  %v798_v40 = vadd.f32 %v785_v20, %v762_v29  ;;  %v391_v29 = vld [vmem:[%s10493_s1 + $0xe0] sm:$0xff] }
  0xff   : > { %6406 = vtanh.f32 %v789_v14  ;;  %v799_v46 = vadd.f32 %v785_v20, %v763_v32  ;;  %v800_v53 = vadd.f32 %v785_v20, %v764_v35  ;;  %v801_v43 = vadd.f32 %v785_v20, %v765_v39  ;;  %v6387_v32 = vpop.permute.xlu2 %6386  ;;  %v383_v35 = vld [vmem:[%s10493_s1 + $0xa0] sm:$0xff] }
 0x100   : > { %6408 = vtanh.f32 %v790_v16  ;;  %v802_v0 = vadd.f32 %v785_v20, %v766_v45  ;;  %v803_v6 = vadd.f32 %v785_v20, %v767_v51  ;;  %v624_v7 = vmul.f32 %v6353_v47, %v387_v56  ;;  %v382_v16 = vld [vmem:[%s10493_s1 + $0x98] sm:$0xff]  ;;  %v385_v51 = vld [vmem:[%s10493_s1 + $0xb0] sm:$0xff]  ;;  %v392_v56 = vld [vmem:[%s10493_s1 + $0xe8] sm:$0xff] }
 0x101   : > { %6410 = vtanh.f32 %v791_v18  ;;  %v616_v8 = vmul.f32 %v6352_v48, %v379_v55  ;;  %v626_v14 = vmul.f32 %v6365_v57, %v389_v4  ;;  %v618_v15 = vmul.f32 %v6364_v61, %v381_v3  ;;  %v384_v55 = vld [vmem:[%s10493_s1 + $0xa8] sm:$0xff] }
 0x102   : > { %6412 = vtanh.f32 %v792_v21  ;;  %v671_v20 = vadd.f32 %v625_v60, %v624_v7  ;;  %v6377_v23 = vunpack.i.h.bf16 %v7233_v58  ;;  %v6388_v45 = vunpack.i.l.bf16 %v6387_v32 }
 0x103   : > { %6414 = vtanh.f32 %v793_v24  ;;  %v658_v21 = vadd.f32 %v617_v2, %v616_v8  ;;  %v738_v2 = vmul.f32 %v7204_v34, %v7166_v9  ;;  %v723_v7 = vmul.f32 %v7199_v31, %v7155_v52 }
 0x104   : > { %v6405_v38 = vpop.eup %6404  ;;  %6416 = vtanh.f32 %v794_v28  ;;  %v672_v39 = vadd.f32 %v671_v20, %v626_v14  ;;  %v628_v42 = vmul.f32 %v6377_v23, %v391_v29 }
 0x105   : > { %v6407_v44 = vpop.eup %6406  ;;  %6418 = vtanh.f32 %v795_v30  ;;  %v6369_v62 = vpop.permute.xlu1 %6368  ;;  %v6376_v30 = vunpack.i.l.bf16 %v7233_v58  ;;  %v739_v14 = vsub.f32 1.0, %v738_v2  ;;  %v769_v2 = vld [vmem:[%s10494_s2 + $0x88] sm:$0xff] }
 0x106   : > { %v6409_v50 = vpop.eup %6408  ;;  %6420 = vtanh.f32 %v796_v33  ;;  %v6091_v54 = vpack.c.bf16 %v6407_v44, %v6405_v38  ;;  %v6371_v11 = vunpack.i.h.bf16 %v6369_v62  ;;  %v6370_v12 = vunpack.i.l.bf16 %v6369_v62 }
 0x107   : > { %v6411_v59 = vpop.eup %6410  ;;  %6422 = vtanh.f32 %v797_v36  ;;  %v659_v38 = vadd.f32 %v658_v21, %v618_v15  ;;  %v6389_v44 = vunpack.i.h.bf16 %v6387_v32  ;;  %v724_v15 = vsub.f32 1.0, %v723_v7 }
 0x108   : > { %v6413_v63 = vpop.eup %6412  ;;  %6424 = vtanh.f32 %v798_v40  ;;  %6092 = vst [vmem:[#allocation2 + $0x30] sm:$0xff] %v6091_v54   ;;  %v6096_v1 = vpack.c.bf16 %v6411_v59, %v6409_v50  ;;  %v627_v27 = vmul.f32 %v6371_v11, %v390_v17  ;;  %v619_v28 = vmul.f32 %v6370_v12, %v382_v16  ;;  %v6393_v40 = vpop.permute.xlu0 %6392 }
 0x109   : > { %v6415_v5 = vpop.eup %6414  ;;  %6426 = vtanh.f32 %v799_v46  ;;  %v620_v50 = vmul.f32 %v6376_v30, %v383_v35  ;;  %v6395_v58 = vunpack.i.h.bf16 %v6393_v40  ;;  %v6394_v61 = vunpack.i.l.bf16 %v6393_v40 }
 0x10a   : > { %v6417_v26 = vpop.eup %6416  ;;  %6428 = vtanh.f32 %v800_v53  ;;  %6168 = vst [vmem:[#allocation2] sm:$0xff] %v6096_v1   ;;  %v6101_v10 = vpack.c.bf16 %v6415_v5, %v6413_v63  ;;  %v660_v48 = vadd.f32 %v659_v38, %v619_v28  ;;  %v673_v49 = vadd.f32 %v672_v39, %v627_v27  ;;  %v393_v53 = vld [vmem:[%s10493_s1 + $0xf0] sm:$0xff]  ;;  %v394_v1 = vld [vmem:[%s10493_s1 + $0xf8] sm:$0xff] }
 0x10b   : > { %v6419_v13 = vpop.eup %6418  ;;  %6430 = vtanh.f32 %v801_v43  ;;  %v630_v62 = vmul.f32 %v6389_v44, %v393_v53  ;;  %v622_v63 = vmul.f32 %v6388_v45, %v385_v51  ;;  %v725_v21 = vmul.f32 %v7199_v31, %v724_v15  ;;  %v779_v51 = vld [vmem:[%s10494_s2 + $0xd8] sm:$0xff] }
 0x10c   : > { %v6421_v18 = vpop.eup %6420  ;;  %6432 = vtanh.f32 %v802_v0  ;;  %6169 = vst [vmem:[#allocation2 + $0x58] sm:$0xff] %v6101_v10   ;;  %v6106_v19 = vpack.c.bf16 %v6419_v13, %v6417_v26  ;;  %v386_v0 = vld [vmem:[%s10493_s1 + $0xb8] sm:$0xff]  ;;  %v661_v3 = vadd.f32 %v660_v48, %v620_v50  ;;  %v674_v4 = vadd.f32 %v673_v49, %v628_v42  ;;  %v776_v49 = vld [vmem:[%s10494_s2 + $0xc0] sm:$0xff]  ;;  %v778_v50 = vld [vmem:[%s10494_s2 + $0xd0] sm:$0xff] }
 0x10d   : > { %v6423_v22 = vpop.eup %6422  ;;  %6434 = vtanh.f32 %v803_v6  ;;  %v631_v10 = vmul.f32 %v6395_v58, %v394_v1  ;;  %v623_v11 = vmul.f32 %v6394_v61, %v386_v0  ;;  %v746_v27 = vand.u32 2147483647, %v7166_v9  ;;  %v783_v61 = vld [vmem:[%s10494_s2 + $0xf8] sm:$0xff]  ;;  %v768_v0 = vld [vmem:[%s10494_s2 + $0x80] sm:$0xff] }
 0x10e   : > { %v6425_v24 = vpop.eup %6424  ;;  %6170 = vst [vmem:[#allocation2 + $0x18] sm:$0xff] %v6106_v19   ;;  %v6111_v25 = vpack.c.bf16 %v6423_v22, %v6421_v18  ;;  %v740_v18 = vmul.f32 %v7204_v34, %v739_v14  ;;  %v726_v30 = vadd.f32 %v7199_v31, %v725_v21  ;;  %v731_v32 = vand.u32 2147483647, %v7155_v52  ;;  %v774_v14 = vld [vmem:[%s10494_s2 + $0xb0] sm:$0xff] }
 0x10f   : > { %v6427_v33 = vpop.eup %6426  ;;  %vm747_vm1 = vcmp.eq.f32.partialorder %v746_v27, 8.507059e+37 }
 0x110   : > { %v6429_v36 = vpop.eup %6428  ;;  %6171 = vst [vmem:[#allocation2 + $0x50] sm:$0xff] %v6111_v25   ;;  %v6116_v37 = vpack.c.bf16 %v6427_v33, %v6425_v24  ;;  %v748_v24 = vand.u32 2147483648, %v7166_v9  ;;  %v741_v25 = vadd.f32 %v7204_v34, %v740_v18  ;;  %v733_v33 = vand.u32 2147483648, %v7155_v52 }
 0x111   : > { %v6431_v41 = vpop.eup %6430  ;;  %v730_v52 = vsel %vm7294_vm0, %v7199_v31, %v726_v30  ;;  %vm732_vm2 = vcmp.eq.f32.partialorder %v731_v32, 8.507059e+37  ;;  %v777_v31 = vld [vmem:[%s10494_s2 + $0xc8] sm:$0xff] }
 0x112   : > { %v6433_v46 = vpop.eup %6432  ;;  %6172 = vst [vmem:[#allocation2 + $0x68] sm:$0xff] %v6116_v37   ;;  %v6121_v47 = vpack.c.bf16 %v6431_v41, %v6429_v36  ;;  %v749_v39 = vor.u32 1.1754944e-38, %v748_v24  ;;  %v745_v9 = vsel %vm7290_vm15, %v7204_v34, %v741_v25  ;;  %v734_v42 = vor.u32 1.1754944e-38, %v733_v33 }
 0x113   : > { %v6435_v54 = vpop.eup %6434 }
 0x114   : > { %6173 = vst [vmem:[#allocation2 + $0x8] sm:$0xff] %v6121_v47   ;;  %v6126_v59 = vpack.c.bf16 %v6435_v54, %v6433_v46  ;;  %v750_v46 = vsel %vm747_vm1, %v749_v39, %v745_v9  ;;  %v6919_v47 = vmov -inf   ;;  %v735_v34 = vsel %vm732_vm2, %v734_v42, %v730_v52 }
 0x115   : > { %v6381_v57 = vpop.permute.xlu1 %6380  ;;  %917 = vst.msk [vmem:[#allocation3] sm:$0xff] %vm916_vm3, %v6919_v47 }
 0x116   : > { %v6383_v43 = vunpack.i.h.bf16 %v6381_v57  ;;  %v6382_v60 = vunpack.i.l.bf16 %v6381_v57  ;;  %6174 = vst [vmem:[#allocation2 + $0x48] sm:$0xff] %v6126_v59  }
 0x117   : > { %918 = vst.msk [vmem:[#allocation3 + $0x8] sm:$0xff] %vm916_vm3, %v6919_v47 }
 0x118   : > { %v629_v5 = vmul.f32 %v6383_v43, %v392_v56  ;;  %v621_v6 = vmul.f32 %v6382_v60, %v384_v55  ;;  %919 = vst.msk [vmem:[#allocation3 + $0x10] sm:$0xff] %vm916_vm3, %v6919_v47  ;;  %v780_v55 = vld [vmem:[%s10494_s2 + $0xe0] sm:$0xff]  ;;  %v781_v56 = vld [vmem:[%s10494_s2 + $0xe8] sm:$0xff]  ;;  %v782_v43 = vld [vmem:[%s10494_s2 + $0xf0] sm:$0xff] }
 0x119   : > { %920 = vst.msk [vmem:[#allocation3 + $0x18] sm:$0xff] %vm916_vm3, %v6919_v47 }
 0x11a   : > { %v662_v8 = vadd.f32 %v661_v3, %v621_v6  ;;  %v675_v26 = vadd.f32 %v674_v4, %v629_v5  ;;  %921 = vst.msk [vmem:[#allocation3 + $0x20] sm:$0xff] %vm916_vm3, %v6919_v47  ;;  %v770_v4 = vld [vmem:[%s10494_s2 + $0x90] sm:$0xff]  ;;  %v771_v6 = vld [vmem:[%s10494_s2 + $0x98] sm:$0xff] }
 0x11b   : > { %922 = vst.msk [vmem:[#allocation3 + $0x28] sm:$0xff] %vm916_vm3, %v6919_v47 }
 0x11c   : > { %v663_v12 = vadd.f32 %v662_v8, %v622_v63  ;;  %v676_v13 = vadd.f32 %v675_v26, %v630_v62  ;;  %923 = vst.msk [vmem:[#allocation3 + $0x30] sm:$0xff] %vm916_vm3, %v6919_v47  ;;  %v772_v8 = vld [vmem:[%s10494_s2 + $0xa0] sm:$0xff] }
 0x11d   : > { %924 = vst.msk [vmem:[#allocation3 + $0x38] sm:$0xff] %vm916_vm3, %v6919_v47 }
 0x11e   : > { %v677_v16 = vadd.f32 %v676_v13, %v631_v10  ;;  %v664_v17 = vadd.f32 %v663_v12, %v623_v11  ;;  %925 = vst.msk [vmem:[#allocation3 + $0x40] sm:$0xff] %vm916_vm3, %v6919_v47  ;;  %v773_v11 = vld [vmem:[%s10494_s2 + $0xa8] sm:$0xff] }
 0x11f   : > { %926 = vst.msk [vmem:[#allocation3 + $0x48] sm:$0xff] %vm916_vm3, %v6919_v47 }
 0x120   : > { %v678_v19 = vrot.slane %v677_v16, 4  ;;  %v665_v20 = vrot.slane %v664_v17, 4  ;;  %927 = vst.msk [vmem:[#allocation3 + $0x50] sm:$0xff] %vm916_vm3, %v6919_v47 }
 0x121   : > { %928 = vst.msk [vmem:[#allocation3 + $0x58] sm:$0xff] %vm916_vm3, %v6919_v47 }
 0x122   : > { %v679_v22 = vadd.f32 %v678_v19, %v677_v16  ;;  %v666_v23 = vadd.f32 %v665_v20, %v664_v17  ;;  %929 = vst.msk [vmem:[#allocation3 + $0x60] sm:$0xff] %vm916_vm3, %v6919_v47  ;;  %v775_v17 = vld [vmem:[%s10494_s2 + $0xb8] sm:$0xff] }
 0x123   : > { %930 = vst.msk [vmem:[#allocation3 + $0x68] sm:$0xff] %vm916_vm3, %v6919_v47 }
 0x124   : > { %v680_v28 = vrot.slane %v679_v22, 2  ;;  %v667_v29 = vrot.slane %v666_v23, 2  ;;  %931 = vst.msk [vmem:[#allocation3 + $0x70] sm:$0xff] %vm916_vm3, %v6919_v47 }
 0x125   : > { %932 = vst.msk [vmem:[#allocation3 + $0x78] sm:$0xff] %vm916_vm3, %v6919_v47 }
 0x126   : > { %v681_v37 = vadd.f32 %v680_v28, %v679_v22  ;;  %v668_v38 = vadd.f32 %v667_v29, %v666_v23  ;;  %933 = vst.msk [vmem:[#allocation3 + $0x80] sm:$0xff] %vm916_vm3, %v6919_v47 }
 0x127   : > { %934 = vst.msk [vmem:[#allocation3 + $0x88] sm:$0xff] %vm916_vm3, %v6919_v47 }
 0x128   : > { %v682_v40 = vrot.slane %v681_v37, 1  ;;  %v669_v41 = vrot.slane %v668_v38, 1  ;;  %935 = vst.msk [vmem:[#allocation3 + $0x90] sm:$0xff] %vm916_vm3, %v6919_v47 }
 0x129   : > { %936 = vst.msk [vmem:[#allocation3 + $0x98] sm:$0xff] %vm916_vm3, %v6919_v47 }
 0x12a   : > { %v683_v44 = vadd.f32 %v682_v40, %v681_v37  ;;  %v670_v45 = vadd.f32 %v669_v41, %v668_v38  ;;  %937 = vst.msk [vmem:[#allocation3 + $0xa0] sm:$0xff] %vm916_vm3, %v6919_v47 }
 0x12b   : > { %938 = vst.msk [vmem:[#allocation3 + $0xa8] sm:$0xff] %vm916_vm3, %v6919_v47 }
 0x12c   : > { %v751_v48 = vmul.f32 %v750_v46, %v683_v44  ;;  %v736_v54 = vmul.f32 %v735_v34, %v670_v45  ;;  %939 = vst.msk [vmem:[#allocation3 + $0xb0] sm:$0xff] %vm916_vm3, %v6919_v47  ;;  %v6920_v45 = vmov 0.0   ;;  %v6921_v46 = vmov 0  }
 0x12d   : > { %940 = vst.msk [vmem:[#allocation3 + $0xb8] sm:$0xff] %vm916_vm3, %v6919_v47 }
 0x12e   : > { %v787_v53 = vperm.slane %v751_v48, 0  ;;  %v786_v63 = vperm.slane %v736_v54, 0  ;;  %941 = vst.msk [vmem:[#allocation3 + $0xc0] sm:$0xff] %vm916_vm3, %v6919_v47 }
 0x12f   : > { %942 = vst.msk [vmem:[#allocation3 + $0xc8] sm:$0xff] %vm916_vm3, %v6919_v47 }
 0x130   : > { %v812_v57 = vadd.f32 %v787_v53, %v776_v49  ;;  %v813_v58 = vadd.f32 %v787_v53, %v777_v31  ;;  %v814_v59 = vadd.f32 %v787_v53, %v778_v50  ;;  %v815_v60 = vadd.f32 %v787_v53, %v779_v51  ;;  %943 = vst.msk [vmem:[#allocation3 + $0xd0] sm:$0xff] %vm916_vm3, %v6919_v47 }
 0x131   : > { %v816_v62 = vadd.f32 %v787_v53, %v780_v55  ;;  %v817_v1 = vadd.f32 %v787_v53, %v781_v56  ;;  %v818_v3 = vadd.f32 %v787_v53, %v782_v43  ;;  %v819_v5 = vadd.f32 %v787_v53, %v783_v61  ;;  %944 = vst.msk [vmem:[#allocation3 + $0xd8] sm:$0xff] %vm916_vm3, %v6919_v47 }
 0x132   : > { %6436 = vtanh.f32 %v812_v57  ;;  %v804_v7 = vadd.f32 %v786_v63, %v768_v0  ;;  %v805_v26 = vadd.f32 %v786_v63, %v769_v2  ;;  %v806_v12 = vadd.f32 %v786_v63, %v770_v4  ;;  %945 = vst.msk [vmem:[#allocation3 + $0xe0] sm:$0xff] %vm916_vm3, %v6919_v47 }
 0x133   : > { %6438 = vtanh.f32 %v813_v58  ;;  %v807_v15 = vadd.f32 %v786_v63, %v771_v6  ;;  %v808_v19 = vadd.f32 %v786_v63, %v772_v8  ;;  %v809_v21 = vadd.f32 %v786_v63, %v773_v11  ;;  %946 = vst.msk [vmem:[#allocation3 + $0xe8] sm:$0xff] %vm916_vm3, %v6919_v47 }
 0x134   : > { %6440 = vtanh.f32 %v814_v59  ;;  %v810_v24 = vadd.f32 %v786_v63, %v774_v14  ;;  %v811_v27 = vadd.f32 %v786_v63, %v775_v17  ;;  %947 = vst.msk [vmem:[#allocation3 + $0xf0] sm:$0xff] %vm916_vm3, %v6919_v47 }
 0x135   : > { %6442 = vtanh.f32 %v815_v60  ;;  %948 = vst.msk [vmem:[#allocation3 + $0xf8] sm:$0xff] %vm916_vm3, %v6919_v47 }
 0x136   : > { %6444 = vtanh.f32 %v816_v62  ;;  %949 = vst.msk [vmem:[#allocation4] sm:$0xff] %vm916_vm3, %v6920_v45 }
 0x137   : > { %6446 = vtanh.f32 %v817_v1  ;;  %950 = vst.msk [vmem:[#allocation4 + $0x8] sm:$0xff] %vm916_vm3, %v6920_v45 }
 0x138   : > { %v6437_v10 = vpop.eup %6436  ;;  %6448 = vtanh.f32 %v818_v3  ;;  %951 = vst.msk [vmem:[#allocation4 + $0x10] sm:$0xff] %vm916_vm3, %v6920_v45 }
 0x139   : > { %v6439_v13 = vpop.eup %6438  ;;  %6450 = vtanh.f32 %v819_v5  ;;  %952 = vst.msk [vmem:[#allocation4 + $0x18] sm:$0xff] %vm916_vm3, %v6920_v45 }
 0x13a   : > { %v6441_v16 = vpop.eup %6440  ;;  %v6151_v18 = vpack.c.bf16 %v6439_v13, %v6437_v10  ;;  %6452 = vtanh.f32 %v804_v7  ;;  %953 = vst.msk [vmem:[#allocation4 + $0x20] sm:$0xff] %vm916_vm3, %v6920_v45 }
 0x13b   : > { %v6443_v20 = vpop.eup %6442  ;;  %6454 = vtanh.f32 %v805_v26  ;;  %954 = vst.msk [vmem:[#allocation4 + $0x28] sm:$0xff] %vm916_vm3, %v6920_v45 }
 0x13c   : > { %v6445_v22 = vpop.eup %6444  ;;  %6179 = vst [vmem:[#allocation2 + $0x60] sm:$0xff] %v6151_v18   ;;  %v6156_v23 = vpack.c.bf16 %v6443_v20, %v6441_v16  ;;  %6456 = vtanh.f32 %v806_v12 }
 0x13d   : > { %v6447_v25 = vpop.eup %6446  ;;  %6458 = vtanh.f32 %v807_v15  ;;  %955 = vst.msk [vmem:[#allocation4 + $0x30] sm:$0xff] %vm916_vm3, %v6920_v45 }
 0x13e   : > { %v6449_v28 = vpop.eup %6448  ;;  %6180 = vst [vmem:[#allocation2 + $0x70] sm:$0xff] %v6156_v23   ;;  %v6161_v29 = vpack.c.bf16 %v6447_v25, %v6445_v22  ;;  %6460 = vtanh.f32 %v808_v19 }
 0x13f   : > { %v6451_v30 = vpop.eup %6450  ;;  %6462 = vtanh.f32 %v809_v21  ;;  %956 = vst.msk [vmem:[#allocation4 + $0x38] sm:$0xff] %vm916_vm3, %v6920_v45 }
 0x140   : > { %v6453_v32 = vpop.eup %6452  ;;  %6181 = vst [vmem:[#allocation2 + $0x78] sm:$0xff] %v6161_v29   ;;  %v6166_v33 = vpack.c.bf16 %v6451_v30, %v6449_v28  ;;  %6464 = vtanh.f32 %v810_v24 }
 0x141   : > { %v6455_v35 = vpop.eup %6454  ;;  %6466 = vtanh.f32 %v811_v27  ;;  %957 = vst.msk [vmem:[#allocation4 + $0x40] sm:$0xff] %vm916_vm3, %v6920_v45 }
 0x142   : > { %v6457_v36 = vpop.eup %6456  ;;  %6182 = vst [vmem:[#allocation2 + $0x28] sm:$0xff] %v6166_v33   ;;  %v6131_v37 = vpack.c.bf16 %v6455_v35, %v6453_v32 }
 0x143   : > { %v6459_v38 = vpop.eup %6458  ;;  %958 = vst.msk [vmem:[#allocation4 + $0x48] sm:$0xff] %vm916_vm3, %v6920_v45 }
 0x144   : > { %v6461_v39 = vpop.eup %6460  ;;  %6175 = vst [vmem:[#allocation2 + $0x40] sm:$0xff] %v6131_v37   ;;  %v6136_v9 = vpack.c.bf16 %v6459_v38, %v6457_v36 }
 0x145   : > { %v6463_v40 = vpop.eup %6462  ;;  %959 = vst.msk [vmem:[#allocation4 + $0x50] sm:$0xff] %vm916_vm3, %v6920_v45 }
 0x146   : > { %v6465_v41 = vpop.eup %6464  ;;  %6176 = vst [vmem:[#allocation2 + $0x20] sm:$0xff] %v6136_v9   ;;  %v6141_v52 = vpack.c.bf16 %v6463_v40, %v6461_v39 }
 0x147   : > { %v6467_v42 = vpop.eup %6466  ;;  %960 = vst.msk [vmem:[#allocation4 + $0x58] sm:$0xff] %vm916_vm3, %v6920_v45 }
 0x148   : > { %6177 = vst [vmem:[#allocation2 + $0x10] sm:$0xff] %v6141_v52   ;;  %v6146_v44 = vpack.c.bf16 %v6467_v42, %v6465_v41 }
 0x149   : > { %961 = vst.msk [vmem:[#allocation4 + $0x60] sm:$0xff] %vm916_vm3, %v6920_v45 }
 0x14a   : > { %6178 = vst [vmem:[#allocation2 + $0x38] sm:$0xff] %v6146_v44  }
 0x14b   : > { %962 = vst.msk [vmem:[#allocation4 + $0x68] sm:$0xff] %vm916_vm3, %v6920_v45 }
 0x14c   : > { %963 = vst.msk [vmem:[#allocation4 + $0x70] sm:$0xff] %vm916_vm3, %v6920_v45 }
 0x14d   : > { %964 = vst.msk [vmem:[#allocation4 + $0x78] sm:$0xff] %vm916_vm3, %v6920_v45 }
 0x14e   : > { %965 = vst.msk [vmem:[#allocation4 + $0x80] sm:$0xff] %vm916_vm3, %v6920_v45 }
 0x14f   : > { %966 = vst.msk [vmem:[#allocation4 + $0x88] sm:$0xff] %vm916_vm3, %v6920_v45 }
 0x150   : > { %967 = vst.msk [vmem:[#allocation4 + $0x90] sm:$0xff] %vm916_vm3, %v6920_v45 }
 0x151   : > { %968 = vst.msk [vmem:[#allocation4 + $0x98] sm:$0xff] %vm916_vm3, %v6920_v45 }
 0x152   : > { %969 = vst.msk [vmem:[#allocation4 + $0xa0] sm:$0xff] %vm916_vm3, %v6920_v45 }
 0x153   : > { %970 = vst.msk [vmem:[#allocation4 + $0xa8] sm:$0xff] %vm916_vm3, %v6920_v45 }
 0x154   : > { %971 = vst.msk [vmem:[#allocation4 + $0xb0] sm:$0xff] %vm916_vm3, %v6920_v45 }
 0x155   : > { %972 = vst.msk [vmem:[#allocation4 + $0xb8] sm:$0xff] %vm916_vm3, %v6920_v45 }
 0x156   : > { %973 = vst.msk [vmem:[#allocation4 + $0xc0] sm:$0xff] %vm916_vm3, %v6920_v45 }
 0x157   : > { %974 = vst.msk [vmem:[#allocation4 + $0xc8] sm:$0xff] %vm916_vm3, %v6920_v45 }
 0x158   : > { %975 = vst.msk [vmem:[#allocation4 + $0xd0] sm:$0xff] %vm916_vm3, %v6920_v45 }
 0x159   : > { %976 = vst.msk [vmem:[#allocation4 + $0xd8] sm:$0xff] %vm916_vm3, %v6920_v45 }
 0x15a   : > { %977 = vst.msk [vmem:[#allocation4 + $0xe0] sm:$0xff] %vm916_vm3, %v6920_v45 }
 0x15b   : > { %978 = vst.msk [vmem:[#allocation4 + $0xe8] sm:$0xff] %vm916_vm3, %v6920_v45 }
 0x15c   : > { %979 = vst.msk [vmem:[#allocation4 + $0xf0] sm:$0xff] %vm916_vm3, %v6920_v45 }
 0x15d   : > { %980 = vst.msk [vmem:[#allocation4 + $0xf8] sm:$0xff] %vm916_vm3, %v6920_v45 }
 0x15e   : > { %981 = vst.msk [vmem:[#allocation5] sm:$0xff] %vm916_vm3, %v6920_v45 }
 0x15f   : > { %982 = vst.msk [vmem:[#allocation5 + $0x8] sm:$0xff] %vm916_vm3, %v6920_v45 }
 0x160   : > { %983 = vst.msk [vmem:[#allocation5 + $0x10] sm:$0xff] %vm916_vm3, %v6920_v45 }
 0x161   : > { %984 = vst.msk [vmem:[#allocation5 + $0x18] sm:$0xff] %vm916_vm3, %v6920_v45 }
 0x162   : > { %985 = vst.msk [vmem:[#allocation5 + $0x20] sm:$0xff] %vm916_vm3, %v6920_v45 }
 0x163   : > { %986 = vst.msk [vmem:[#allocation5 + $0x28] sm:$0xff] %vm916_vm3, %v6920_v45 }
 0x164   : > { %987 = vst.msk [vmem:[#allocation5 + $0x30] sm:$0xff] %vm916_vm3, %v6920_v45 }
 0x165   : > { %988 = vst.msk [vmem:[#allocation5 + $0x38] sm:$0xff] %vm916_vm3, %v6920_v45 }
 0x166   : > { %989 = vst.msk [vmem:[#allocation5 + $0x40] sm:$0xff] %vm916_vm3, %v6920_v45 }
 0x167   : > { %990 = vst.msk [vmem:[#allocation5 + $0x48] sm:$0xff] %vm916_vm3, %v6920_v45 }
 0x168   : > { %991 = vst.msk [vmem:[#allocation5 + $0x50] sm:$0xff] %vm916_vm3, %v6920_v45 }
 0x169   : > { %992 = vst.msk [vmem:[#allocation5 + $0x58] sm:$0xff] %vm916_vm3, %v6920_v45 }
 0x16a   : > { %993 = vst.msk [vmem:[#allocation5 + $0x60] sm:$0xff] %vm916_vm3, %v6920_v45 }
 0x16b   : > { %994 = vst.msk [vmem:[#allocation5 + $0x68] sm:$0xff] %vm916_vm3, %v6920_v45 }
 0x16c   : > { %995 = vst.msk [vmem:[#allocation5 + $0x70] sm:$0xff] %vm916_vm3, %v6920_v45 }
 0x16d   : > { %996 = vst.msk [vmem:[#allocation5 + $0x78] sm:$0xff] %vm916_vm3, %v6920_v45 }
 0x16e   : > { %997 = vst.msk [vmem:[#allocation5 + $0x80] sm:$0xff] %vm916_vm3, %v6920_v45 }
 0x16f   : > { %998 = vst.msk [vmem:[#allocation5 + $0x88] sm:$0xff] %vm916_vm3, %v6920_v45 }
 0x170   : > { %999 = vst.msk [vmem:[#allocation5 + $0x90] sm:$0xff] %vm916_vm3, %v6920_v45 }
 0x171   : > { %1000 = vst.msk [vmem:[#allocation5 + $0x98] sm:$0xff] %vm916_vm3, %v6920_v45 }
 0x172   : > { %1001 = vst.msk [vmem:[#allocation5 + $0xa0] sm:$0xff] %vm916_vm3, %v6920_v45 }
 0x173   : > { %1002 = vst.msk [vmem:[#allocation5 + $0xa8] sm:$0xff] %vm916_vm3, %v6920_v45 }
 0x174   : > { %1003 = vst.msk [vmem:[#allocation5 + $0xb0] sm:$0xff] %vm916_vm3, %v6920_v45 }
 0x175   : > { %1004 = vst.msk [vmem:[#allocation5 + $0xb8] sm:$0xff] %vm916_vm3, %v6920_v45 }
 0x176   : > { %1005 = vst.msk [vmem:[#allocation5 + $0xc0] sm:$0xff] %vm916_vm3, %v6920_v45 }
 0x177   : > { %1006 = vst.msk [vmem:[#allocation5 + $0xc8] sm:$0xff] %vm916_vm3, %v6920_v45 }
 0x178   : > { %1007 = vst.msk [vmem:[#allocation5 + $0xd0] sm:$0xff] %vm916_vm3, %v6920_v45 }
 0x179   : > { %1008 = vst.msk [vmem:[#allocation5 + $0xd8] sm:$0xff] %vm916_vm3, %v6920_v45 }
 0x17a   : > { %1009 = vst.msk [vmem:[#allocation5 + $0xe0] sm:$0xff] %vm916_vm3, %v6920_v45 }
 0x17b   : > { %1010 = vst.msk [vmem:[#allocation5 + $0xe8] sm:$0xff] %vm916_vm3, %v6920_v45 }
 0x17c   : > { %1011 = vst.msk [vmem:[#allocation5 + $0xf0] sm:$0xff] %vm916_vm3, %v6920_v45 }
 0x17d   : > { %1012 = vst.msk [vmem:[#allocation5 + $0xf8] sm:$0xff] %vm916_vm3, %v6920_v45 }
 0x17e   : > { %1013 = vst.msk [vmem:[#allocation6] sm:$0xff] %vm916_vm3, %v6921_v46 }
 0x17f   : > { %1014 = vst.msk [vmem:[#allocation6 + $0x8] sm:$0xff] %vm916_vm3, %v6921_v46 }
 0x180   : > { %1015 = vst.msk [vmem:[#allocation6 + $0x10] sm:$0xff] %vm916_vm3, %v6921_v46 }
 0x181   : > { %1016 = vst.msk [vmem:[#allocation6 + $0x18] sm:$0xff] %vm916_vm3, %v6921_v46 }
 0x182   : > { %1017 = vst.msk [vmem:[#allocation6 + $0x20] sm:$0xff] %vm916_vm3, %v6921_v46 }
 0x183   : > { %1018 = vst.msk [vmem:[#allocation6 + $0x28] sm:$0xff] %vm916_vm3, %v6921_v46 }
 0x184   : > { %1019 = vst.msk [vmem:[#allocation6 + $0x30] sm:$0xff] %vm916_vm3, %v6921_v46 }
 0x185   : > { %1020 = vst.msk [vmem:[#allocation6 + $0x38] sm:$0xff] %vm916_vm3, %v6921_v46 }
 0x186   : > { %1021 = vst.msk [vmem:[#allocation6 + $0x40] sm:$0xff] %vm916_vm3, %v6921_v46 }
 0x187   : > { %1022 = vst.msk [vmem:[#allocation6 + $0x48] sm:$0xff] %vm916_vm3, %v6921_v46 }
 0x188   : > { %1023 = vst.msk [vmem:[#allocation6 + $0x50] sm:$0xff] %vm916_vm3, %v6921_v46 }
 0x189   : > { %1024 = vst.msk [vmem:[#allocation6 + $0x58] sm:$0xff] %vm916_vm3, %v6921_v46 }
 0x18a   : > { %1025 = vst.msk [vmem:[#allocation6 + $0x60] sm:$0xff] %vm916_vm3, %v6921_v46 }
 0x18b   : > { %1026 = vst.msk [vmem:[#allocation6 + $0x68] sm:$0xff] %vm916_vm3, %v6921_v46 }
 0x18c   : > { %1027 = vst.msk [vmem:[#allocation6 + $0x70] sm:$0xff] %vm916_vm3, %v6921_v46 }
 0x18d   : > { %1028 = vst.msk [vmem:[#allocation6 + $0x78] sm:$0xff] %vm916_vm3, %v6921_v46 }
 0x18e   : > { %1029 = vst.msk [vmem:[#allocation6 + $0x80] sm:$0xff] %vm916_vm3, %v6921_v46 }
 0x18f   : > { %1030 = vst.msk [vmem:[#allocation6 + $0x88] sm:$0xff] %vm916_vm3, %v6921_v46 }
 0x190   : > { %1031 = vst.msk [vmem:[#allocation6 + $0x90] sm:$0xff] %vm916_vm3, %v6921_v46 }
 0x191   : > { %1032 = vst.msk [vmem:[#allocation6 + $0x98] sm:$0xff] %vm916_vm3, %v6921_v46 }
 0x192   : > { %1033 = vst.msk [vmem:[#allocation6 + $0xa0] sm:$0xff] %vm916_vm3, %v6921_v46 }
 0x193   : > { %1034 = vst.msk [vmem:[#allocation6 + $0xa8] sm:$0xff] %vm916_vm3, %v6921_v46 }
 0x194   : > { %1035 = vst.msk [vmem:[#allocation6 + $0xb0] sm:$0xff] %vm916_vm3, %v6921_v46 }
 0x195   : > { %1036 = vst.msk [vmem:[#allocation6 + $0xb8] sm:$0xff] %vm916_vm3, %v6921_v46 }
 0x196   : > { %1037 = vst.msk [vmem:[#allocation6 + $0xc0] sm:$0xff] %vm916_vm3, %v6921_v46 }
 0x197   : > { %1038 = vst.msk [vmem:[#allocation6 + $0xc8] sm:$0xff] %vm916_vm3, %v6921_v46 }
 0x198   : > { %1039 = vst.msk [vmem:[#allocation6 + $0xd0] sm:$0xff] %vm916_vm3, %v6921_v46 }
 0x199   : > { %1040 = vst.msk [vmem:[#allocation6 + $0xd8] sm:$0xff] %vm916_vm3, %v6921_v46 }
 0x19a   : > { %1041 = vst.msk [vmem:[#allocation6 + $0xe0] sm:$0xff] %vm916_vm3, %v6921_v46 }
 0x19b   : > { %1042 = vst.msk [vmem:[#allocation6 + $0xe8] sm:$0xff] %vm916_vm3, %v6921_v46 }
 0x19c   : > { %1043 = vst.msk [vmem:[#allocation6 + $0xf0] sm:$0xff] %vm916_vm3, %v6921_v46 }
 0x19d   : > { %1044 = vst.msk [vmem:[#allocation6 + $0xf8] sm:$0xff] %vm916_vm3, %v6921_v46 }
 0x19e PF: > { %v6037_v47 = vld [vmem:[%s7060_s23 + $0x70] sm:$0xf]  ;;  %v6087_v48 = vld [vmem:[%s7060_s23 + $0x74] sm:$0xf0]  ;;  %v6086_v34 = vld [vmem:[%s7060_s23 + $0x74] sm:$0xf] }
 0x19f   : > { %v6038_v49 = vor.u32 %v6087_v48, %v6037_v47  ;;  %v6039_v31 = vld [vmem:[%s7060_s23 + $0x78] sm:$0xf0]  ;;  %v6029_v50 = vld [vmem:[%s7060_s23 + $0x60] sm:$0xf]  ;;  %v6085_v51 = vld [vmem:[%s7060_s23 + $0x64] sm:$0xf0] }
 0x1a0   : > { %v6042_v53 = vor.u32 %v6086_v34, %v6039_v31  ;;  %v6084_v54 = vld [vmem:[%s7060_s23 + $0x64] sm:$0xf]  ;;  %v6031_v55 = vld [vmem:[%s7060_s23 + $0x68] sm:$0xf0]  ;;  %v6030_v56 = vor.u32 %v6085_v51, %v6029_v50  ;;  %v6021_v58 = vld [vmem:[%s7060_s23 + $0x50] sm:$0xf] }
 0x1a1   : > { %1269 = vmatpush.bf16.msra.mxu0 %v6038_v49  ;;  %6183 = vmatpush.bf16.msra.mxu2 %v6038_v49  ;;  %v6034_v57 = vor.u32 %v6084_v54, %v6031_v55  ;;  %v6083_v59 = vld [vmem:[%s7060_s23 + $0x54] sm:$0xf0]  ;;  %v6082_v43 = vld [vmem:[%s7060_s23 + $0x54] sm:$0xf]  ;;  %v6023_v60 = vld [vmem:[%s7060_s23 + $0x58] sm:$0xf0] }
 0x1a2   : > { %1358 = vmatpush.bf16.msra.mxu1 %v6042_v53  ;;  %6191 = vmatpush.bf16.msra.mxu3 %v6042_v53  ;;  %v6022_v61 = vor.u32 %v6083_v59, %v6021_v58  ;;  %v6026_v62 = vor.u32 %v6082_v43, %v6023_v60  ;;  %v6013_v63 = vld [vmem:[%s7060_s23 + $0x40] sm:$0xf]  ;;  %v6081_v0 = vld [vmem:[%s7060_s23 + $0x44] sm:$0xf0]  ;;  %v6080_v1 = vld [vmem:[%s7060_s23 + $0x44] sm:$0xf] }
 0x1a3   : > { %v6015_v2 = vld [vmem:[%s7060_s23 + $0x48] sm:$0xf0]  ;;  %v6014_v3 = vor.u32 %v6081_v0, %v6013_v63  ;;  %v6005_v5 = vld [vmem:[%s7060_s23 + $0x30] sm:$0xf]  ;;  %v6079_v6 = vld [vmem:[%s7060_s23 + $0x34] sm:$0xf0] }
 0x1a4   : > { %v6018_v4 = vor.u32 %v6080_v1, %v6015_v2  ;;  %v6078_v7 = vld [vmem:[%s7060_s23 + $0x34] sm:$0xf]  ;;  %v6007_v8 = vld [vmem:[%s7060_s23 + $0x38] sm:$0xf0]  ;;  %v6006_v26 = vor.u32 %v6079_v6, %v6005_v5  ;;  %s6043_s28 = sshll.u32 %s6997_s13, 8  ;;  %v7613_v19 = vld [vmem:[%s10495_s3 + $0x10] sm:$0xff] }
 0x1a5   : > { %1270 = vmatpush.bf16.msra.mxu0 %v6030_v56  ;;  %6184 = vmatpush.bf16.msra.mxu2 %v6030_v56  ;;  %v6010_v10 = vor.u32 %v6078_v7, %v6007_v8  ;;  %v5997_v11 = vld [vmem:[%s7060_s23 + $0x20] sm:$0xf]  ;;  %v6077_v12 = vld [vmem:[%s7060_s23 + $0x24] sm:$0xf0]  ;;  %v6076_v13 = vld [vmem:[%s7060_s23 + $0x24] sm:$0xf]  ;;  %v7601_v15 = vstv %s6043_s28 }
 0x1a6   : > { %1359 = vmatpush.bf16.msra.mxu1 %v6034_v57  ;;  %6192 = vmatpush.bf16.msra.mxu3 %v6034_v57  ;;  %v5999_v14 = vld [vmem:[%s7060_s23 + $0x28] sm:$0xf0]  ;;  %10919 = vst [vmem:[#allocation23_spill] sm:$0xff] %v7601_v15  ;;  %v7606_v16 = vld [vmem:[%s10495_s3 + $0x8] sm:$0xff]  ;;  %v5998_v17 = vor.u32 %v6077_v12, %v5997_v11  ;;  %v5989_v21 = vld [vmem:[%s7060_s23 + $0x10] sm:$0xf]  ;;  %v3121_v23 = vsub.s32 %v7613_v19, %v7601_v15 }
 0x1a7   : > { %10920 = vst [vmem:[#allocation24_spill] sm:$0xff] %v7606_v16  ;;  %v3120_v18 = vsub.s32 %v7606_v16, %v7601_v15  ;;  %v6002_v20 = vor.u32 %v6076_v13, %v5999_v14  ;;  %v6075_v22 = vld [vmem:[%s7060_s23 + $0x14] sm:$0xf0]  ;;  %v6074_v24 = vld [vmem:[%s7060_s23 + $0x14] sm:$0xf]  ;;  %v6922_v27 = vmov 0  }
 0x1a8   : > { %10921 = vst [vmem:[#allocation25_spill] sm:$0xff] %v7613_v19  ;;  %v5991_v25 = vld [vmem:[%s7060_s23 + $0x18] sm:$0xf0]  ;;  %6469 = vset.pattern.permute.xlu0 %v6922_v27  ;;  %6470 = vset.pattern.permute.xlu1 %v6922_v27  ;;  %v5990_v28 = vor.u32 %v6075_v22, %v5989_v21  ;;  %v5981_v30 = vld [vmem:[%s7060_s23] sm:$0xf]  ;;  %v6056_v38 = vld [vmem:[#allocation2 + $0x30] sm:$0xff] }
 0x1a9   : > { %1271 = vmatpush.bf16.msra.mxu0 %v6022_v61  ;;  %6185 = vmatpush.bf16.msra.mxu2 %v6022_v61  ;;  %v5994_v29 = vor.u32 %v6074_v24, %v5991_v25  ;;  %v6073_v32 = vld [vmem:[%s7060_s23 + $0x4] sm:$0xf0]  ;;  %v6072_v33 = vld [vmem:[%s7060_s23 + $0x4] sm:$0xf]  ;;  %v5983_v35 = vld [vmem:[%s7060_s23 + $0x8] sm:$0xf0] }
 0x1aa   : > { %1360 = vmatpush.bf16.msra.mxu1 %v6026_v62  ;;  %6193 = vmatpush.bf16.msra.mxu3 %v6026_v62  ;;  %v5982_v36 = vor.u32 %v6073_v32, %v5981_v30  ;;  %v5986_v37 = vor.u32 %v6072_v33, %v5983_v35  ;;  %v6064_v39 = vld [vmem:[#allocation2 + $0x40] sm:$0xff]  ;;  %v7628_v9 = vld [vmem:[%s10495_s3 + $0x18] sm:$0xff]  ;;  %v7635_v41 = vld [vmem:[%s10495_s3] sm:$0xff]  ;;  %vm10904_vm4 = vcmask 7168   ;;  %p6044_p1 = scmp.ne.s32.totalorder %s6997_s13, 1 }
 0x1ab   : > { %3155 = vperm.xlu0 %6469, %v3120_v18   ;;  %3158 = vperm.xlu1 %6470, %v3121_v23   ;;  %10922 = vst [vmem:[#allocation26_spill] sm:$0xff] %v7628_v9  ;;  %v3122_v40 = vsub.s32 %v7628_v9, %v7601_v15  ;;  %v3119_v52 = vsub.s32 %v7635_v41, %v7601_v15  ;;  %v6057_v42 = vld [vmem:[#allocation2] sm:$0xff]  ;;  %v7649_v47 = vld [vmem:[%s10495_s3 + $0x30] sm:$0xff]  ;;  %v6058_v34 = vld [vmem:[#allocation2 + $0x58] sm:$0xff] }
 0x1ac   : > { %6468 = vset.pattern.permute.xlu2 %v6922_v27  ;;  %10923 = vst [vmem:[#allocation27_spill] sm:$0xff] %v7635_v41  ;;  %v6065_v44 = vld [vmem:[#allocation2 + $0x20] sm:$0xff]  ;;  %v3125_v48 = vsub.s32 %v7649_v47, %v7601_v15  ;;  %v6066_v49 = vld [vmem:[#allocation2 + $0x10] sm:$0xff]  ;;  %v7656_v31 = vld [vmem:[%s10495_s3 + $0x40] sm:$0xff] }
 0x1ad   : > { %1272 = vmatpush.bf16.msra.mxu0 %v6014_v3  ;;  %6186 = vmatpush.bf16.msra.mxu2 %v6014_v3  ;;  %v7642_v45 = vld [vmem:[%s10495_s3 + $0x28] sm:$0xff]  ;;  %10925 = vst [vmem:[#allocation29_spill] sm:$0xff] %v7649_v47  ;;  %v7661_v50 = vld [vmem:[%s10495_s3 + $0x20] sm:$0xff]  ;;  %v3127_v51 = vsub.s32 %v7656_v31, %v7601_v15  ;;  %v7670_v54 = vld [vmem:[%s10495_s3 + $0x58] sm:$0xff] }
 0x1ae   : > { %1361 = vmatpush.bf16.msra.mxu1 %v6018_v4  ;;  %6194 = vmatpush.bf16.msra.mxu3 %v6018_v4  ;;  %10924 = vst [vmem:[#allocation28_spill] sm:$0xff] %v7642_v45  ;;  %v3124_v46 = vsub.s32 %v7642_v45, %v7601_v15  ;;  %v3123_v53 = vsub.s32 %v7661_v50, %v7601_v15  ;;  %v6059_v56 = vld [vmem:[#allocation2 + $0x18] sm:$0xff]  ;;  %v7677_v58 = vld [vmem:[%s10495_s3 + $0x48] sm:$0xff]  ;;  %v7684_v43 = vld [vmem:[%s10495_s3 + $0x38] sm:$0xff] }
 0x1af   : > { %3152 = vperm.xlu2 %6468, %v3119_v52   ;;  %10926 = vst [vmem:[#allocation30_spill] sm:$0xff] %v7656_v31  ;;  %v3130_v55 = vsub.s32 %v7670_v54, %v7601_v15  ;;  %v6067_v57 = vld [vmem:[#allocation2 + $0x38] sm:$0xff]  ;;  %v3128_v59 = vsub.s32 %v7677_v58, %v7601_v15  ;;  %v3126_v60 = vsub.s32 %v7684_v43, %v7601_v15  ;;  %v6060_v61 = vld [vmem:[#allocation2 + $0x50] sm:$0xff]  ;;  %v6068_v62 = vld [vmem:[#allocation2 + $0x60] sm:$0xff] }
 0x1b0   : > { %10927 = vst [vmem:[#allocation31_spill] sm:$0xff] %v7661_v50  ;;  %v7691_v63 = vld [vmem:[%s10495_s3 + $0x50] sm:$0xff]  ;;  %v6069_v2 = vld [vmem:[#allocation2 + $0x70] sm:$0xff]  ;;  %v6070_v4 = vld [vmem:[#allocation2 + $0x78] sm:$0xff] }
 0x1b1   : > { %1273 = vmatpush.bf16.msra.mxu0 %v6006_v26  ;;  %6187 = vmatpush.bf16.msra.mxu2 %v6006_v26  ;;  %10928 = vst [vmem:[#allocation32_spill] sm:$0xff] %v7670_v54  ;;  %v3129_v0 = vsub.s32 %v7691_v63, %v7601_v15  ;;  %v6061_v1 = vld [vmem:[#allocation2 + $0x68] sm:$0xff] }
 0x1b2   : > { %1362 = vmatpush.bf16.msra.mxu1 %v6010_v10  ;;  %6195 = vmatpush.bf16.msra.mxu3 %v6010_v10  ;;  %10929 = vst [vmem:[#allocation33_spill] sm:$0xff] %v7677_v58  ;;  %v6062_v3 = vld [vmem:[#allocation2 + $0x8] sm:$0xff] }
 0x1b3   : > { %3161 = vperm.xlu0 %6469, %v3122_v40   ;;  %3167 = vperm.xlu1 %6470, %v3124_v46   ;;  %10930 = vst [vmem:[#allocation34_spill] sm:$0xff] %v7684_v43  ;;  %v6071_v5 = vld [vmem:[#allocation2 + $0x28] sm:$0xff] }
 0x1b4   : > { %10931 = vst [vmem:[#allocation35_spill] sm:$0xff] %v7691_v63  ;;  %v6063_v6 = vld [vmem:[#allocation2 + $0x48] sm:$0xff] }
 0x1b5   : > { %1274 = vmatpush.bf16.msra.mxu0 %v5998_v17  ;;  %6188 = vmatpush.bf16.msra.mxu2 %v5998_v17 }
 0x1b6   : > { %1363 = vmatpush.bf16.msra.mxu1 %v6002_v20  ;;  %6196 = vmatpush.bf16.msra.mxu3 %v6002_v20 }
 0x1b7   : > { %3164 = vperm.xlu2 %6468, %v3123_v53  }
 0x1b9   : > { %1275 = vmatpush.bf16.msra.mxu0 %v5990_v28  ;;  %6189 = vmatpush.bf16.msra.mxu2 %v5990_v28 }
 0x1ba   : > { %1364 = vmatpush.bf16.msra.mxu1 %v5994_v29  ;;  %6197 = vmatpush.bf16.msra.mxu3 %v5994_v29 }
 0x1bb   : > { %3170 = vperm.xlu0 %6469, %v3125_v48   ;;  %3176 = vperm.xlu1 %6470, %v3127_v51  }
 0x1bd   : > { %1276 = vmatpush.bf16.msra.mxu0 %v5982_v36  ;;  %6190 = vmatpush.bf16.msra.mxu2 %v5982_v36 }
 0x1be   : > { %1365 = vmatpush.bf16.msra.mxu1 %v5986_v37  ;;  %6198 = vmatpush.bf16.msra.mxu3 %v5986_v37 }
 0x1bf   : > { %3173 = vperm.xlu2 %6468, %v3126_v60  }
 0x1c0   : > { %1277 = vmatmul.bf16.vlgmr.msra.gmra.mxu0 %v6056_v38  ;;  %1317 = vmatmul.bf16.vlgmr.msra.gmra.mxu2 %v6064_v39 }
 0x1c1   : > { %1366 = vmatmul.bf16.vlgmr.msra.gmra.mxu1 %v6056_v38  ;;  %1406 = vmatmul.bf16.vlgmr.msra.gmra.mxu3 %v6064_v39 }
 0x1c3   : > { %3185 = vperm.xlu1 %6470, %v3130_v55   ;;  %3179 = vperm.xlu0 %6469, %v3128_v59  }
 0x1c7   : > { %3182 = vperm.xlu2 %6468, %v3129_v0  }
 0x1d0   : > { %1282 = vmatmul.bf16.gmra.mxu0 %v6057_v42  ;;  %1322 = vmatmul.bf16.gmra.mxu2 %v6065_v44 }
 0x1d1   : > { %1371 = vmatmul.bf16.gmra.mxu1 %v6057_v42  ;;  %1411 = vmatmul.bf16.gmra.mxu3 %v6065_v44 }
 0x1e0   : > { %1287 = vmatmul.bf16.gmra.mxu0 %v6058_v34  ;;  %1327 = vmatmul.bf16.gmra.mxu2 %v6066_v49 }
 0x1e1   : > { %1376 = vmatmul.bf16.gmra.mxu1 %v6058_v34  ;;  %1416 = vmatmul.bf16.gmra.mxu3 %v6066_v49 }
 0x1f0   : > { %1292 = vmatmul.bf16.gmra.mxu0 %v6059_v56  ;;  %1332 = vmatmul.bf16.gmra.mxu2 %v6067_v57 }
 0x1f1   : > { %1381 = vmatmul.bf16.gmra.mxu1 %v6059_v56  ;;  %1421 = vmatmul.bf16.gmra.mxu3 %v6067_v57 }
 0x200   : > { %1297 = vmatmul.bf16.gmra.mxu0 %v6060_v61  ;;  %1337 = vmatmul.bf16.gmra.mxu2 %v6068_v62 }
 0x201   : > { %1386 = vmatmul.bf16.gmra.mxu1 %v6060_v61  ;;  %1426 = vmatmul.bf16.gmra.mxu3 %v6068_v62 }
 0x210   : > { %1302 = vmatmul.bf16.gmra.mxu0 %v6061_v1  ;;  %1342 = vmatmul.bf16.gmra.mxu2 %v6069_v2 }
 0x211   : > { %1391 = vmatmul.bf16.gmra.mxu1 %v6061_v1  ;;  %1431 = vmatmul.bf16.gmra.mxu3 %v6069_v2 }
 0x220   : > { %1307 = vmatmul.bf16.gmra.mxu0 %v6062_v3  ;;  %1347 = vmatmul.bf16.gmra.mxu2 %v6070_v4 }
 0x221   : > { %1396 = vmatmul.bf16.gmra.mxu1 %v6062_v3  ;;  %1436 = vmatmul.bf16.gmra.mxu3 %v6070_v4 }
 0x230   : > { %1352 = vmatmul.bf16.gmra.mxu2 %v6071_v5  ;;  %1312 = vmatmul.bf16.gmra.mxu0 %v6063_v6 }
 0x231   : > { %1441 = vmatmul.bf16.gmra.mxu3 %v6071_v5  ;;  %1401 = vmatmul.bf16.gmra.mxu1 %v6063_v6 }
 0x23d   : > { %v7695_v7 = vpop.f32.mrf.mxu0 }
 0x23e   : > { %10932 = vst [vmem:[#allocation36_spill] sm:$0xff] %v7695_v7  ;;  %v7697_v8 = vpop.f32.mrf.mxu1 }
 0x23f   : > { %10933 = vst [vmem:[#allocation37_spill] sm:$0xff] %v7697_v8  ;;  %v1451_v26 = vmax.f32 %v7695_v7, %v7697_v8 }
 0x241   : > { %1452 = vmax.xlane.f32.xlu0 %v1451_v26 }
 0x243   : > { %v7701_v10 = vpop.f32.mrf.mxu2 }
 0x244   : > { %10934 = vst [vmem:[#allocation38_spill] sm:$0xff] %v7701_v10  ;;  %v7703_v11 = vpop.f32.mrf.mxu3 }
 0x245   : > { %10935 = vst [vmem:[#allocation39_spill] sm:$0xff] %v7703_v11  ;;  %v7705_v12 = vpop.f32.mrf.mxu0  ;;  %v1499_v13 = vmax.f32 %v7701_v10, %v7703_v11 }
 0x246   : > { %10936 = vst [vmem:[#allocation40_spill] sm:$0xff] %v7705_v12  ;;  %v7709_v14 = vpop.f32.mrf.mxu1 }
 0x247   : > { %10937 = vst [vmem:[#allocation41_spill] sm:$0xff] %v7709_v14  ;;  %1500 = vmax.xlane.f32.xlu1 %v1499_v13  ;;  %v1454_v17 = vmax.f32 %v7705_v12, %v7709_v14 }
 0x249   : > { %1455 = vmax.xlane.f32.xlu0 %v1454_v17 }
 0x24b   : > { %v7713_v18 = vpop.f32.mrf.mxu2 }
 0x24c   : > { %10938 = vst [vmem:[#allocation42_spill] sm:$0xff] %v7713_v18  ;;  %v7715_v20 = vpop.f32.mrf.mxu3 }
 0x24d   : > { %10939 = vst [vmem:[#allocation43_spill] sm:$0xff] %v7715_v20  ;;  %v7717_v21 = vpop.f32.mrf.mxu0  ;;  %v1502_v22 = vmax.f32 %v7713_v18, %v7715_v20 }
 0x24e   : > { %10940 = vst [vmem:[#allocation44_spill] sm:$0xff] %v7717_v21  ;;  %v7721_v23 = vpop.f32.mrf.mxu1 }
 0x24f   : > { %10941 = vst [vmem:[#allocation45_spill] sm:$0xff] %v7721_v23  ;;  %1503 = vmax.xlane.f32.xlu2 %v1502_v22  ;;  %v1457_v24 = vmax.f32 %v7717_v21, %v7721_v23 }
 0x251   : > { %1458 = vmax.xlane.f32.xlu1 %v1457_v24 }
 0x253   : > { %v7725_v25 = vpop.f32.mrf.mxu2 }
 0x254   : > { %10942 = vst [vmem:[#allocation46_spill] sm:$0xff] %v7725_v25  ;;  %v7727_v27 = vpop.f32.mrf.mxu3 }
 0x255   : > { %10943 = vst [vmem:[#allocation47_spill] sm:$0xff] %v7727_v27  ;;  %v7729_v28 = vpop.f32.mrf.mxu0  ;;  %v1505_v29 = vmax.f32 %v7725_v25, %v7727_v27 }
 0x256   : > { %10944 = vst [vmem:[#allocation48_spill] sm:$0xff] %v7729_v28  ;;  %v7733_v30 = vpop.f32.mrf.mxu1 }
 0x257   : > { %10945 = vst [vmem:[#allocation49_spill] sm:$0xff] %v7733_v30  ;;  %1506 = vmax.xlane.f32.xlu0 %v1505_v29  ;;  %v1460_v32 = vmax.f32 %v7729_v28, %v7733_v30 }
 0x259   : > { %1461 = vmax.xlane.f32.xlu1 %v1460_v32 }
 0x25b   : > { %v7737_v33 = vpop.f32.mrf.mxu2 }
 0x25c   : > { %10946 = vst [vmem:[#allocation50_spill] sm:$0xff] %v7737_v33  ;;  %v7739_v35 = vpop.f32.mrf.mxu3 }
 0x25d   : > { %10947 = vst [vmem:[#allocation51_spill] sm:$0xff] %v7739_v35  ;;  %v7741_v36 = vpop.f32.mrf.mxu0  ;;  %v1508_v38 = vmax.f32 %v7737_v33, %v7739_v35 }
 0x25e   : > { %10948 = vst [vmem:[#allocation52_spill] sm:$0xff] %v7741_v36  ;;  %v7743_v37 = vpop.f32.mrf.mxu1 }
 0x25f   : > { %10949 = vst [vmem:[#allocation53_spill] sm:$0xff] %v7743_v37  ;;  %v1463_v39 = vmax.f32 %v7741_v36, %v7743_v37 }
 0x261   : > { %1509 = vmax.xlane.f32.xlu1 %v1508_v38  ;;  %1464 = vmax.xlane.f32.xlu2 %v1463_v39 }
 0x263   : > { %v7749_v40 = vpop.f32.mrf.mxu2 }
 0x264   : > { %10950 = vst [vmem:[#allocation54_spill] sm:$0xff] %v7749_v40  ;;  %v7751_v52 = vpop.f32.mrf.mxu3 }
 0x265   : > { %10951 = vst [vmem:[#allocation55_spill] sm:$0xff] %v7751_v52  ;;  %v7753_v42 = vpop.f32.mrf.mxu0  ;;  %v1511_v46 = vmax.f32 %v7749_v40, %v7751_v52 }
 0x266   : > { %10952 = vst [vmem:[#allocation56_spill] sm:$0xff] %v7753_v42  ;;  %v7755_v44 = vpop.f32.mrf.mxu1 }
 0x267   : > { %10953 = vst [vmem:[#allocation57_spill] sm:$0xff] %v7755_v44  ;;  %v1466_v55 = vmax.f32 %v7753_v42, %v7755_v44 }
 0x269   : > { %1512 = vmax.xlane.f32.xlu2 %v1511_v46 }
 0x26b   : > { %v7759_v48 = vpop.f32.mrf.mxu2 }
 0x26c   : > { %10954 = vst [vmem:[#allocation58_spill] sm:$0xff] %v7759_v48  ;;  %v7761_v34 = vpop.f32.mrf.mxu3 }
 0x26d   : > { %10955 = vst [vmem:[#allocation59_spill] sm:$0xff] %v7761_v34  ;;  %v7763_v49 = vpop.f32.mrf.mxu0  ;;  %v1514_v51 = vmax.f32 %v7759_v48, %v7761_v34 }
 0x26e   : > { %10956 = vst [vmem:[#allocation60_spill] sm:$0xff] %v7763_v49  ;;  %v7767_v53 = vpop.f32.mrf.mxu1 }
 0x26f   : > { %10957 = vst [vmem:[#allocation61_spill] sm:$0xff] %v7767_v53  ;;  %1515 = vmax.xlane.f32.xlu0 %v1514_v51  ;;  %v1469_v57 = vmax.f32 %v7763_v49, %v7767_v53  ;;  %v8105_v53 = vld [vmem:[#allocation3 + $0x38] sm:$0xff]  ;;  %v8127_v49 = vld [vmem:[#allocation3 + $0xc0] sm:$0xff] }
 0x270   : > { %11057 = vst [vmem:[#allocation161_spill] sm:$0xff] %v8105_v53 }
 0x271   : > { %1467 = vmax.xlane.f32.xlu2 %v1466_v55  ;;  %11064 = vst [vmem:[#allocation168_spill] sm:$0xff] %v8127_v49 }
 0x273   : > { %v7771_v56 = vpop.f32.mrf.mxu2 }
 0x274   : > { %10958 = vst [vmem:[#allocation62_spill] sm:$0xff] %v7771_v56  ;;  %v7775_v59 = vpop.f32.mrf.mxu3 }
 0x275   : > { %10959 = vst [vmem:[#allocation63_spill] sm:$0xff] %v7775_v59  ;;  %v7777_v60 = vpop.f32.mrf.mxu0  ;;  %v1517_v61 = vmax.f32 %v7771_v56, %v7775_v59 }
 0x276   : > { %10960 = vst [vmem:[#allocation64_spill] sm:$0xff] %v7777_v60  ;;  %v7781_v62 = vpop.f32.mrf.mxu1 }
 0x277   : > { %10961 = vst [vmem:[#allocation65_spill] sm:$0xff] %v7781_v62  ;;  %1518 = vmax.xlane.f32.xlu1 %v1517_v61  ;;  %1470 = vmax.xlane.f32.xlu0 %v1469_v57  ;;  %v1472_v4 = vmax.f32 %v7777_v60, %v7781_v62  ;;  %v7823_v61 = vpop.permute.xlu0 %3155 }
 0x278   : > { %10975 = vst [vmem:[#allocation79_spill] sm:$0xff] %v7823_v61 }
 0x27b   : > { %v7783_v0 = vpop.f32.mrf.mxu2 }
 0x27c   : > { %10962 = vst [vmem:[#allocation66_spill] sm:$0xff] %v7783_v0  ;;  %v7785_v1 = vpop.f32.mrf.mxu3 }
 0x27d   : > { %10963 = vst [vmem:[#allocation67_spill] sm:$0xff] %v7785_v1  ;;  %v7787_v2 = vpop.f32.mrf.mxu0  ;;  %v1520_v3 = vmax.f32 %v7783_v0, %v7785_v1 }
 0x27e   : > { %10964 = vst [vmem:[#allocation68_spill] sm:$0xff] %v7787_v2  ;;  %v7793_v5 = vpop.f32.mrf.mxu1 }
 0x27f   : > { %10965 = vst [vmem:[#allocation69_spill] sm:$0xff] %v7793_v5  ;;  %1521 = vmax.xlane.f32.xlu2 %v1520_v3  ;;  %1473 = vmax.xlane.f32.xlu1 %v1472_v4  ;;  %v1475_v26 = vmax.f32 %v7787_v2, %v7793_v5  ;;  %v7837_v54 = vpop.permute.xlu0 %3161 }
 0x280   : > { %10981 = vst [vmem:[#allocation85_spill] sm:$0xff] %v7837_v54 }
 0x283   : > { %v7795_v6 = vpop.f32.mrf.mxu2 }
 0x284   : > { %10966 = vst [vmem:[#allocation70_spill] sm:$0xff] %v7795_v6  ;;  %v7799_v13 = vpop.f32.mrf.mxu3 }
 0x285   : > { %10967 = vst [vmem:[#allocation71_spill] sm:$0xff] %v7799_v13  ;;  %v7801_v17 = vpop.f32.mrf.mxu0  ;;  %v1523_v22 = vmax.f32 %v7795_v6, %v7799_v13  ;;  %v8036_v13 = vld [vmem:[#allocation3 + $0x28] sm:$0xff] }
 0x286   : > { %10968 = vst [vmem:[#allocation72_spill] sm:$0xff] %v7801_v17  ;;  %v7805_v24 = vpop.f32.mrf.mxu1 }
 0x287   : > { %10969 = vst [vmem:[#allocation73_spill] sm:$0xff] %v7805_v24  ;;  %1524 = vmax.xlane.f32.xlu0 %v1523_v22  ;;  %1476 = vmax.xlane.f32.xlu2 %v1475_v26  ;;  %v1478_v46 = vmax.f32 %v7801_v17, %v7805_v24  ;;  %v7857_v9 = vpop.permute.xlu0 %3170  ;;  %v10603_v17 = vlaneseq }
 0x288   : > { %10988 = vst [vmem:[#allocation92_spill] sm:$0xff] %v7857_v9 }
 0x289   : > { %11040 = vst [vmem:[#allocation144_spill] sm:$0xff] %v8036_v13 }
 0x28b   : > { %v7807_v29 = vpop.f32.mrf.mxu2 }
 0x28c   : > { %10970 = vst [vmem:[#allocation74_spill] sm:$0xff] %v7807_v29  ;;  %v7809_v32 = vpop.f32.mrf.mxu3 }
 0x28d   : > { %10971 = vst [vmem:[#allocation75_spill] sm:$0xff] %v7809_v32  ;;  %v7811_v38 = vpop.f32.mrf.mxu0  ;;  %v1526_v39 = vmax.f32 %v7807_v29, %v7809_v32 }
 0x28e   : > { %10972 = vst [vmem:[#allocation76_spill] sm:$0xff] %v7811_v38  ;;  %v7817_v51 = vpop.f32.mrf.mxu1 }
 0x28f   : > { %10973 = vst [vmem:[#allocation77_spill] sm:$0xff] %v7817_v51  ;;  %1527 = vmax.xlane.f32.xlu1 %v1526_v39  ;;  %1479 = vmax.xlane.f32.xlu0 %v1478_v46  ;;  %v1481_v57 = vmax.f32 %v7811_v38, %v7817_v51  ;;  %v7833_v39 = vpop.permute.xlu1 %3158 }
 0x290   : > { %10979 = vst [vmem:[#allocation83_spill] sm:$0xff] %v7833_v39 }
 0x293   : > { %v7819_v55 = vpop.f32.mrf.mxu2 }
 0x294   : > { %10974 = vst [vmem:[#allocation78_spill] sm:$0xff] %v7819_v55  ;;  %v7825_v3 = vpop.f32.mrf.mxu3 }
 0x295   : > { %10976 = vst [vmem:[#allocation80_spill] sm:$0xff] %v7825_v3  ;;  %v7827_v4 = vpop.f32.mrf.mxu0  ;;  %v1529_v26 = vmax.f32 %v7819_v55, %v7825_v3  ;;  %v8007_v3 = vld [vmem:[#allocation3 + $0xa0] sm:$0xff] }
 0x296   : > { %10977 = vst [vmem:[#allocation81_spill] sm:$0xff] %v7827_v4  ;;  %v7831_v22 = vpop.f32.mrf.mxu1 }
 0x297   : > { %10978 = vst [vmem:[#allocation82_spill] sm:$0xff] %v7831_v22  ;;  %1530 = vmax.xlane.f32.xlu2 %v1529_v26  ;;  %1482 = vmax.xlane.f32.xlu1 %v1481_v57  ;;  %v1484_v43 = vmax.f32 %v7827_v4, %v7831_v22  ;;  %v7849_v57 = vpop.permute.xlu1 %3167  ;;  %v7851_v26 = vpop.permute.xlu2 %3152  ;;  %v7945_v22 = vld [vmem:[#allocation3 + $0x10] sm:$0xff] }
 0x298   : > { %10985 = vst [vmem:[#allocation89_spill] sm:$0xff] %v7849_v57 }
 0x299   : > { %10986 = vst [vmem:[#allocation90_spill] sm:$0xff] %v7851_v26  ;;  %v7873_v26 = vpop.permute.xlu0 %3179 }
 0x29a   : > { %10995 = vst [vmem:[#allocation99_spill] sm:$0xff] %v7873_v26 }
 0x29b   : > { %v7835_v46 = vpop.f32.mrf.mxu2  ;;  %11017 = vst [vmem:[#allocation121_spill] sm:$0xff] %v7945_v22 }
 0x29c   : > { %10980 = vst [vmem:[#allocation84_spill] sm:$0xff] %v7835_v46  ;;  %v7839_v63 = vpop.f32.mrf.mxu3 }
 0x29d   : > { %10982 = vst [vmem:[#allocation86_spill] sm:$0xff] %v7839_v63  ;;  %v7841_v58 = vpop.f32.mrf.mxu0  ;;  %v1532_v31 = vmax.f32 %v7835_v46, %v7839_v63 }
 0x29e   : > { %10983 = vst [vmem:[#allocation87_spill] sm:$0xff] %v7841_v58  ;;  %v7847_v47 = vpop.f32.mrf.mxu1 }
 0x29f   : > { %10984 = vst [vmem:[#allocation88_spill] sm:$0xff] %v7847_v47  ;;  %1533 = vmax.xlane.f32.xlu0 %v1532_v31  ;;  %1485 = vmax.xlane.f32.xlu2 %v1484_v43  ;;  %v1487_v50 = vmax.f32 %v7841_v58, %v7847_v47  ;;  %v7867_v43 = vpop.permute.xlu1 %3176  ;;  %v7869_v54 = vpop.permute.xlu2 %3164 }
 0x2a0   : > { %10992 = vst [vmem:[#allocation96_spill] sm:$0xff] %v7867_v43 }
 0x2a1   : > { %10993 = vst [vmem:[#allocation97_spill] sm:$0xff] %v7869_v54  ;;  %v7889_v54 = vld [vmem:[#allocation3] sm:$0xff] }
 0x2a2   : > { %11001 = vst [vmem:[#allocation105_spill] sm:$0xff] %v7889_v54 }
 0x2a3   : > { %v7853_v45 = vpop.f32.mrf.mxu2  ;;  %11034 = vst [vmem:[#allocation138_spill] sm:$0xff] %v8007_v3 }
 0x2a4   : > { %10987 = vst [vmem:[#allocation91_spill] sm:$0xff] %v7853_v45  ;;  %v7859_v19 = vpop.f32.mrf.mxu3 }
 0x2a5   : > { %10989 = vst [vmem:[#allocation93_spill] sm:$0xff] %v7859_v19  ;;  %v1535_v16 = vmax.f32 %v7853_v45, %v7859_v19  ;;  %v7863_v41 = vpop.f32.mrf.mxu0 }
 0x2a6   : > { %10990 = vst [vmem:[#allocation94_spill] sm:$0xff] %v7863_v41  ;;  %v7865_v31 = vpop.f32.mrf.mxu1 }
 0x2a7   : > { %10991 = vst [vmem:[#allocation95_spill] sm:$0xff] %v7865_v31  ;;  %1536 = vmax.xlane.f32.xlu1 %v1535_v16  ;;  %1488 = vmax.xlane.f32.xlu0 %v1487_v50  ;;  %v1490_v61 = vmax.f32 %v7863_v41, %v7865_v31  ;;  %v7885_v50 = vpop.permute.xlu2 %3173  ;;  %v7887_v43 = vpop.permute.xlu1 %3185  ;;  %v7985_v41 = vld [vmem:[#allocation3 + $0x20] sm:$0xff] }
 0x2a8   : > { %10999 = vst [vmem:[#allocation103_spill] sm:$0xff] %v7885_v50 }
 0x2a9   : > { %11000 = vst [vmem:[#allocation104_spill] sm:$0xff] %v7887_v43 }
 0x2aa   : > { %11028 = vst [vmem:[#allocation132_spill] sm:$0xff] %v7985_v41 }
 0x2ab   : > { %v7871_v57 = vpop.f32.mrf.mxu2 }
 0x2ac   : > { %10994 = vst [vmem:[#allocation98_spill] sm:$0xff] %v7871_v57  ;;  %v7875_v9 = vpop.f32.mrf.mxu3 }
 0x2ad   : > { %10996 = vst [vmem:[#allocation100_spill] sm:$0xff] %v7875_v9  ;;  %v1538_v39 = vmax.f32 %v7871_v57, %v7875_v9  ;;  %v7883_v16 = vpop.f32.mrf.mxu0 }
 0x2ae   : > { %v7881_v47 = vpop.f32.mrf.mxu1  ;;  %10998 = vst [vmem:[#allocation102_spill] sm:$0xff] %v7883_v16 }
 0x2af   : > { %10997 = vst [vmem:[#allocation101_spill] sm:$0xff] %v7881_v47  ;;  %1539 = vmax.xlane.f32.xlu2 %v1538_v39  ;;  %1491 = vmax.xlane.f32.xlu1 %v1490_v61  ;;  %v1493_v58 = vmax.f32 %v7883_v16, %v7881_v47  ;;  %v7913_v16 = vld [vmem:[#allocation3 + $0x80] sm:$0xff]  ;;  %v7915_v63 = vpop.permute.xlu2 %3182 }
 0x2b0   : > { %11008 = vst [vmem:[#allocation112_spill] sm:$0xff] %v7913_v16 }
 0x2b1   : > { %11009 = vst [vmem:[#allocation113_spill] sm:$0xff] %v7915_v63 }
 0x2b3   : > { %v7891_v26 = vpop.f32.mrf.mxu2 }
 0x2b4   : > { %11002 = vst [vmem:[#allocation106_spill] sm:$0xff] %v7891_v26  ;;  %v7895_v9 = vpop.f32.mrf.mxu3  ;;  %v7897_v57 = vpop.xlane.xlu0 %1452 }
 0x2b5   : > { %11003 = vst [vmem:[#allocation107_spill] sm:$0xff] %v7895_v9  ;;  %v1541_v39 = vmax.f32 %v7891_v26, %v7895_v9  ;;  %v7903_v61 = vmax.f32 %v7889_v54, %v7897_v57  ;;  %v7911_v47 = vpop.f32.mrf.mxu0  ;;  %v7919_v26 = vld [vmem:[#allocation3 + $0x8] sm:$0xff]  ;;  %vm2284_vm5 = vcmp.eq.f32.partialorder %v7695_v7, %v7897_v57  ;;  %vm2285_vm6 = vcmp.eq.f32.partialorder %v7697_v8, %v7897_v57 }
 0x2b6   : > { %11004 = vst [vmem:[#allocation108_spill] sm:$0xff] %v7897_v57  ;;  %v7909_v50 = vpop.f32.mrf.mxu1  ;;  %v8060_v57 = vld [vmem:[#allocation3 + $0xb0] sm:$0xff] }
 0x2b7   : > { %11005 = vst [vmem:[#allocation109_spill] sm:$0xff] %v7903_v61  ;;  %1542 = vmax.xlane.f32.xlu0 %v1541_v39  ;;  %1494 = vmax.xlane.f32.xlu2 %v1493_v58  ;;  %v1496_v58 = vmax.f32 %v7911_v47, %v7909_v50 }
 0x2b8   : > { %3055 = vst.msk [vmem:[#allocation3] sm:$0xff] %vm10904_vm4, %v7903_v61 }
 0x2b9   : > { %11006 = vst [vmem:[#allocation110_spill] sm:$0xff] %v7909_v50  ;;  %v7962_v50 = vld [vmem:[#allocation3 + $0x90] sm:$0xff] }
 0x2ba   : > { %11007 = vst [vmem:[#allocation111_spill] sm:$0xff] %v7911_v47  ;;  %v7917_v9 = vpop.xlane.xlu1 %1500  ;;  %v7941_v47 = vld [vmem:[#allocation3 + $0x88] sm:$0xff] }
 0x2bb   : > { %11010 = vst [vmem:[#allocation114_spill] sm:$0xff] %v7917_v9  ;;  %v7925_v39 = vmax.f32 %v7913_v16, %v7917_v9  ;;  %vm2316_vm10 = vcmp.eq.f32.partialorder %v7701_v10, %v7917_v9  ;;  %vm2317_vm11 = vcmp.eq.f32.partialorder %v7703_v11, %v7917_v9  ;;  %v8093_v11 = vld [vmem:[#allocation3 + $0xb8] sm:$0xff] }
 0x2bc   : > { %11011 = vst [vmem:[#allocation115_spill] sm:$0xff] %v7919_v26  ;;  %v7927_v43 = vpop.xlane.xlu0 %1455 }
 0x2bd   : > { %11012 = vst [vmem:[#allocation116_spill] sm:$0xff] %v7925_v39  ;;  %v7935_v63 = vmax.f32 %v7919_v26, %v7927_v43  ;;  %vm2286_vm0 = vcmp.eq.f32.partialorder %v7705_v12, %v7927_v43  ;;  %vm2287_vm1 = vcmp.eq.f32.partialorder %v7709_v14, %v7927_v43 }
 0x2be   : > { %11013 = vst [vmem:[#allocation117_spill] sm:$0xff] %v7927_v43 }
 0x2bf   : > { %3071 = vst.msk [vmem:[#allocation3 + $0x80] sm:$0xff] %vm10904_vm4, %v7925_v39  ;;  %1497 = vmax.xlane.f32.xlu0 %v1496_v58 }
 0x2c0   : > { %11014 = vst [vmem:[#allocation118_spill] sm:$0xff] %v7935_v63 }
 0x2c1   : > { %3056 = vst.msk [vmem:[#allocation3 + $0x8] sm:$0xff] %vm10904_vm4, %v7935_v63 }
 0x2c2   : > { %11015 = vst [vmem:[#allocation119_spill] sm:$0xff] %v7941_v47  ;;  %v7943_v46 = vpop.xlane.xlu2 %1503 }
 0x2c3   : > { %11016 = vst [vmem:[#allocation120_spill] sm:$0xff] %v7943_v46  ;;  %v7949_v54 = vmax.f32 %v7941_v47, %v7943_v46  ;;  %v7966_v47 = vld [vmem:[#allocation3 + $0x18] sm:$0xff]  ;;  %vm2318_vm8 = vcmp.eq.f32.partialorder %v7713_v18, %v7943_v46  ;;  %vm2319_vm9 = vcmp.eq.f32.partialorder %v7715_v20, %v7943_v46 }
 0x2c4   : > { %v7951_v16 = vpop.xlane.xlu1 %1458  ;;  %11021 = vst [vmem:[#allocation125_spill] sm:$0xff] %v7962_v50 }
 0x2c5   : > { %11018 = vst [vmem:[#allocation122_spill] sm:$0xff] %v7949_v54  ;;  %v7957_v58 = vmax.f32 %v7945_v22, %v7951_v16  ;;  %vm2288_vm14 = vcmp.eq.f32.partialorder %v7717_v21, %v7951_v16  ;;  %vm2289_vm15 = vcmp.eq.f32.partialorder %v7721_v23, %v7951_v16 }
 0x2c6   : > { %11019 = vst [vmem:[#allocation123_spill] sm:$0xff] %v7951_v16 }
 0x2c7   : > { %3072 = vst.msk [vmem:[#allocation3 + $0x88] sm:$0xff] %vm10904_vm4, %v7949_v54 }
 0x2c8   : > { %11020 = vst [vmem:[#allocation124_spill] sm:$0xff] %v7957_v58  ;;  %1853 = vperm.xlu1 %6470, %v7925_v39   ;;  %v7983_v39 = vld [vmem:[#allocation3 + $0x98] sm:$0xff] }
 0x2c9   : > { %3057 = vst.msk [vmem:[#allocation3 + $0x10] sm:$0xff] %vm10904_vm4, %v7957_v58 }
 0x2ca   : > { %v7964_v26 = vpop.xlane.xlu0 %1506  ;;  %11023 = vst [vmem:[#allocation127_spill] sm:$0xff] %v7966_v47 }
 0x2cb   : > { %11022 = vst [vmem:[#allocation126_spill] sm:$0xff] %v7964_v26  ;;  %v7970_v4 = vmax.f32 %v7962_v50, %v7964_v26  ;;  %vm2320_vm2 = vcmp.eq.f32.partialorder %v7725_v25, %v7964_v26  ;;  %vm2321_vm3 = vcmp.eq.f32.partialorder %v7727_v27, %v7964_v26  ;;  %v8285_v26 = vld [vmem:[#allocation3 + $0x78] sm:$0xff] }
 0x2cc   : > { %v7972_v31 = vpop.xlane.xlu1 %1461  ;;  %11027 = vst [vmem:[#allocation131_spill] sm:$0xff] %v7983_v39 }
 0x2cd   : > { %11024 = vst [vmem:[#allocation128_spill] sm:$0xff] %v7970_v4  ;;  %v7978_v22 = vmax.f32 %v7966_v47, %v7972_v31 }
 0x2ce   : > { %11025 = vst [vmem:[#allocation129_spill] sm:$0xff] %v7972_v31 }
 0x2cf   : > { %3073 = vst.msk [vmem:[#allocation3 + $0x90] sm:$0xff] %vm10904_vm4, %v7970_v4  ;;  %1773 = vperm.xlu2 %6468, %v7903_v61  }
 0x2d0   : > { %11026 = vst [vmem:[#allocation130_spill] sm:$0xff] %v7978_v22 }
 0x2d1   : > { %3058 = vst.msk [vmem:[#allocation3 + $0x18] sm:$0xff] %vm10904_vm4, %v7978_v22 }
 0x2d2   : > { %11045 = vst [vmem:[#allocation149_spill] sm:$0xff] %v8060_v57 }
 0x2d3   : > { %1778 = vperm.xlu0 %6469, %v7935_v63   ;;  %v8005_v63 = vand.u32 127, %v10603_v17  ;;  %v8032_v17 = vld [vmem:[#allocation3 + $0xa8] sm:$0xff]  ;;  %11053 = vst [vmem:[#allocation157_spill] sm:$0xff] %v8093_v11 }
 0x2d4   : > { %v7988_v50 = vpop.xlane.xlu1 %1509  ;;  %v7990_v24 = vpop.xlane.xlu2 %1464  ;;  %11038 = vst [vmem:[#allocation142_spill] sm:$0xff] %v8032_v17 }
 0x2d5   : > { %11029 = vst [vmem:[#allocation133_spill] sm:$0xff] %v7988_v50  ;;  %v7994_v47 = vmax.f32 %v7983_v39, %v7988_v50  ;;  %v7998_v61 = vmax.f32 %v7985_v41, %v7990_v24  ;;  %v8012_v39 = vadd.s32 128, %v8005_v63  ;;  %v8020_v19 = vadd.s32 %v7601_v15, %v8005_v63 }
 0x2d6   : > { %11030 = vst [vmem:[#allocation134_spill] sm:$0xff] %v7990_v24 }
 0x2d7   : > { %11031 = vst [vmem:[#allocation135_spill] sm:$0xff] %v7994_v47  ;;  %v8024_v45 = vadd.s32 %v7601_v15, %v8012_v39  ;;  %v2383_v18 = vsel %vm2316_vm10, %v8020_v19, 2147483647  ;;  %v2355_v21 = vsel %vm2288_vm14, %v8020_v19, 2147483647  ;;  %vm2293_vm14 = vcmp.eq.f32.partialorder %v7743_v37, %v7990_v24 }
 0x2d8   : > { %11032 = vst [vmem:[#allocation136_spill] sm:$0xff] %v7998_v61  ;;  %v2353_v43 = vsel %vm2286_vm0, %v8020_v19, 2147483647  ;;  %v2387_v14 = vsel %vm2320_vm2, %v8020_v19, 2147483647 }
 0x2d9   : > { %3074 = vst.msk [vmem:[#allocation3 + $0x98] sm:$0xff] %vm10904_vm4, %v7994_v47  ;;  %v2386_v5 = vsel %vm2319_vm9, %v8024_v45, 2147483647  ;;  %v2384_v46 = vsel %vm2317_vm11, %v8024_v45, 2147483647  ;;  %vm2323_vm9 = vcmp.eq.f32.partialorder %v7739_v35, %v7988_v50  ;;  %vm2290_vm11 = vcmp.eq.f32.partialorder %v7729_v28, %v7972_v31 }
 0x2da   : > { %3059 = vst.msk [vmem:[#allocation3 + $0x20] sm:$0xff] %vm10904_vm4, %v7998_v61  ;;  %vm2671_vm13 = vcmp.lt.s32.totalorder %v2383_v18, %v2384_v46  ;;  %v2354_v16 = vsel %vm2287_vm1, %v8024_v45, 2147483647  ;;  %v2388_v12 = vsel %vm2321_vm3, %v8024_v45, 2147483647 }
 0x2db   : > { %11033 = vst [vmem:[#allocation137_spill] sm:$0xff] %v8005_v63  ;;  %v2351_v63 = vsel %vm2284_vm5, %v8020_v19, 2147483647 }
 0x2dc   : > { %v8009_v55 = vpop.xlane.xlu2 %1512  ;;  %11036 = vst [vmem:[#allocation140_spill] sm:$0xff] %v8012_v39  ;;  %v2352_v39 = vsel %vm2285_vm6, %v8024_v45, 2147483647  ;;  %vm2431_vm6 = vcmp.lt.s32.totalorder %v2353_v43, %v2354_v16 }
 0x2dd   : > { %11035 = vst [vmem:[#allocation139_spill] sm:$0xff] %v8009_v55  ;;  %v8016_v41 = vmax.f32 %v8007_v3, %v8009_v55  ;;  %vm2415_vm7 = vcmp.lt.s32.totalorder %v2351_v63, %v2352_v39  ;;  %v8293_v27 = vsel %vm2431_vm6, %v2353_v43, %v2354_v16  ;;  %vm2325_vm0 = vcmp.eq.f32.partialorder %v7751_v52, %v8009_v55 }
 0x2de   : > { %v8062_v8 = vsel %vm2415_vm7, %v2351_v63, %v2352_v39  ;;  %11104 = vst [vmem:[#allocation208_spill] sm:$0xff] %v8285_v26  ;;  %vm2703_vm7 = vcmp.lt.s32.totalorder %v2387_v14, %v2388_v12 }
 0x2df   : > { %11037 = vst [vmem:[#allocation141_spill] sm:$0xff] %v8016_v41  ;;  %v2418_v39 = vshra.s32 %v8062_v8, 16 }
 0x2e0   : > { %3075 = vst.msk [vmem:[#allocation3 + $0xa0] sm:$0xff] %vm10904_vm4, %v8016_v41 }
 0x2e1   : > { %11046 = vst [vmem:[#allocation150_spill] sm:$0xff] %v8062_v8 }
 0x2e2   : > { %v8034_v3 = vpop.xlane.xlu0 %1515  ;;  %11106 = vst [vmem:[#allocation210_spill] sm:$0xff] %v8293_v27 }
 0x2e3   : > { %11039 = vst [vmem:[#allocation143_spill] sm:$0xff] %v8034_v3  ;;  %v8042_v15 = vmax.f32 %v8032_v17, %v8034_v3  ;;  %v8058_v17 = vld [vmem:[#allocation3 + $0x30] sm:$0xff] }
 0x2e4   : > { %v8044_v6 = vpop.xlane.xlu2 %1467  ;;  %11044 = vst [vmem:[#allocation148_spill] sm:$0xff] %v8058_v17 }
 0x2e5   : > { %11041 = vst [vmem:[#allocation145_spill] sm:$0xff] %v8042_v15  ;;  %v8048_v7 = vmax.f32 %v8036_v13, %v8044_v6  ;;  %v2385_v13 = vsel %vm2318_vm8, %v8020_v19, 2147483647  ;;  %vm2322_vm8 = vcmp.eq.f32.partialorder %v7737_v33, %v7988_v50  ;;  %v2434_v33 = vshra.s32 %v8293_v27, 16 }
 0x2e6   : > { %11042 = vst [vmem:[#allocation146_spill] sm:$0xff] %v8044_v6  ;;  %vm2687_vm12 = vcmp.lt.s32.totalorder %v2385_v13, %v2386_v5 }
 0x2e7   : > { %11043 = vst [vmem:[#allocation147_spill] sm:$0xff] %v8048_v7  ;;  %v8089_v9 = vsel %vm2687_vm12, %v2385_v13, %v2386_v5  ;;  %v8107_v5 = vsel %vm2671_vm13, %v2383_v18, %v2384_v46  ;;  %v8109_v13 = vpop.f32.mrf.mxu2  ;;  %v8125_v46 = vld [vmem:[#allocation3 + $0x40] sm:$0xff]  ;;  %v8311_v16 = vcvt.s32.f32 %v2434_v33  ;;  %vm2291_vm12 = vcmp.eq.f32.partialorder %v7733_v30, %v7972_v31 }
 0x2e8   : > { %3076 = vst.msk [vmem:[#allocation3 + $0xa8] sm:$0xff] %vm10904_vm4, %v8042_v15  ;;  %v2690_v8 = vshra.s32 %v8089_v9, 16  ;;  %vm2292_vm13 = vcmp.eq.f32.partialorder %v7741_v36, %v7990_v24  ;;  %v2392_v24 = vsel %vm2325_vm0, %v8024_v45, 2147483647 }
 0x2e9   : > { %3060 = vst.msk [vmem:[#allocation3 + $0x28] sm:$0xff] %vm10904_vm4, %v8048_v7  ;;  %v2359_v31 = vsel %vm2292_vm13, %v8020_v19, 2147483647 }
 0x2ea   : > { %v8066_v2 = vpop.xlane.xlu1 %1518  ;;  %v8068_v51 = vpop.xlane.xlu0 %1470  ;;  %11051 = vst [vmem:[#allocation155_spill] sm:$0xff] %v8089_v9 }
 0x2eb   : > { %11047 = vst [vmem:[#allocation151_spill] sm:$0xff] %v8066_v2  ;;  %v8076_v20 = vmax.f32 %v8058_v17, %v8068_v51  ;;  %v8080_v63 = vmax.f32 %v8060_v57, %v8066_v2  ;;  %v8091_v17 = vcvt.s32.f32 %v2418_v39  ;;  %v8111_v39 = vpop.f32.mrf.mxu3  ;;  %vm2329_vm6 = vcmp.eq.f32.partialorder %v7775_v59, %v8066_v2 }
 0x2ec   : > { %11048 = vst [vmem:[#allocation152_spill] sm:$0xff] %v8068_v51  ;;  %v1544_v18 = vmax.f32 %v8109_v13, %v8111_v39  ;;  %v2396_v30 = vsel %vm2329_vm6, %v8024_v45, 2147483647 }
 0x2ed   : > { %11049 = vst [vmem:[#allocation153_spill] sm:$0xff] %v8076_v20 }
 0x2ee   : > { %11050 = vst [vmem:[#allocation154_spill] sm:$0xff] %v8080_v63 }
 0x2ef   : > { %3061 = vst.msk [vmem:[#allocation3 + $0x30] sm:$0xff] %vm10904_vm4, %v8076_v20 }
 0x2f0   : > { %3077 = vst.msk [vmem:[#allocation3 + $0xb0] sm:$0xff] %vm10904_vm4, %v8080_v63 }
 0x2f1   : > { %11052 = vst [vmem:[#allocation156_spill] sm:$0xff] %v8091_v17 }
 0x2f2   : > { %v8095_v57 = vpop.xlane.xlu2 %1521  ;;  %2421 = vmin.xlane.f32.xlu1 %v8091_v17  ;;  %v8099_v10 = vpop.xlane.xlu1 %1473  ;;  %11058 = vst [vmem:[#allocation162_spill] sm:$0xff] %v8107_v5  ;;  %v8115_v17 = vcvt.s32.f32 %v2690_v8 }
 0x2f3   : > { %11054 = vst [vmem:[#allocation158_spill] sm:$0xff] %v8095_v57  ;;  %v8103_v38 = vmax.f32 %v8093_v11, %v8095_v57  ;;  %v8119_v9 = vmax.f32 %v8105_v53, %v8099_v10  ;;  %v2674_v11 = vshra.s32 %v8107_v5, 16  ;;  %vm2299_vm13 = vcmp.eq.f32.partialorder %v7781_v62, %v8099_v10 }
 0x2f4   : > { %11055 = vst [vmem:[#allocation159_spill] sm:$0xff] %v8099_v10 }
 0x2f5   : > { %11056 = vst [vmem:[#allocation160_spill] sm:$0xff] %v8103_v38  ;;  %v8135_v53 = vcvt.s32.f32 %v2674_v11  ;;  %v8152_v11 = vld [vmem:[#allocation3 + $0xc8] sm:$0xff] }
 0x2f6   : > { %11059 = vst [vmem:[#allocation163_spill] sm:$0xff] %v8109_v13  ;;  %v8170_v13 = vld [vmem:[#allocation3 + $0xd0] sm:$0xff] }
 0x2f7   : > { %11060 = vst [vmem:[#allocation164_spill] sm:$0xff] %v8111_v39  ;;  %v8150_v39 = vld [vmem:[#allocation3 + $0x48] sm:$0xff] }
 0x2f8   : > { %3078 = vst.msk [vmem:[#allocation3 + $0xb8] sm:$0xff] %vm10904_vm4, %v8103_v38  ;;  %2693 = vmin.xlane.f32.xlu2 %v8115_v17 }
 0x2f9   : > { %11061 = vst [vmem:[#allocation165_spill] sm:$0xff] %v8115_v17 }
 0x2fa   : > { %11062 = vst [vmem:[#allocation166_spill] sm:$0xff] %v8119_v9  ;;  %v8131_v8 = vpop.xlane.xlu0 %1524  ;;  %v8133_v51 = vpop.xlane.xlu2 %1476  ;;  %1545 = vmax.xlane.f32.xlu1 %v1544_v18 }
 0x2fb   : > { %11063 = vst [vmem:[#allocation167_spill] sm:$0xff] %v8125_v46  ;;  %v8139_v5 = vmax.f32 %v8125_v46, %v8133_v51  ;;  %v8143_v17 = vmax.f32 %v8127_v49, %v8131_v8 }
 0x2fc   : > { %3062 = vst.msk [vmem:[#allocation3 + $0x38] sm:$0xff] %vm10904_vm4, %v8119_v9 }
 0x2fd   : > { %11065 = vst [vmem:[#allocation169_spill] sm:$0xff] %v8131_v8  ;;  %2677 = vmin.xlane.f32.xlu0 %v8135_v53 }
 0x2fe   : > { %11066 = vst [vmem:[#allocation170_spill] sm:$0xff] %v8133_v51 }
 0x2ff   : > { %11067 = vst [vmem:[#allocation171_spill] sm:$0xff] %v8135_v53 }
 0x300   : > { %11068 = vst [vmem:[#allocation172_spill] sm:$0xff] %v8139_v5 }
 0x301   : > { %11069 = vst [vmem:[#allocation173_spill] sm:$0xff] %v8143_v17 }
 0x302   : > { %3063 = vst.msk [vmem:[#allocation3 + $0x40] sm:$0xff] %vm10904_vm4, %v8139_v5  ;;  %v8154_v18 = vpop.xlane.xlu1 %1527  ;;  %v8156_v46 = vpop.xlane.xlu0 %1479 }
 0x303   : > { %3079 = vst.msk [vmem:[#allocation3 + $0xc0] sm:$0xff] %vm10904_vm4, %v8143_v17  ;;  %v8160_v49 = vmax.f32 %v8150_v39, %v8156_v46  ;;  %v8164_v53 = vmax.f32 %v8152_v11, %v8154_v18 }
 0x304   : > { %11070 = vst [vmem:[#allocation174_spill] sm:$0xff] %v8150_v39 }
 0x305   : > { %11071 = vst [vmem:[#allocation175_spill] sm:$0xff] %v8152_v11 }
 0x306   : > { %11072 = vst [vmem:[#allocation176_spill] sm:$0xff] %v8154_v18 }
 0x307   : > { %11073 = vst [vmem:[#allocation177_spill] sm:$0xff] %v8156_v46  ;;  %v8180_v46 = vld [vmem:[#allocation3 + $0x50] sm:$0xff] }
 0x308   : > { %11074 = vst [vmem:[#allocation178_spill] sm:$0xff] %v8160_v49 }
 0x309   : > { %11075 = vst [vmem:[#allocation179_spill] sm:$0xff] %v8164_v53 }
 0x30a   : > { %3064 = vst.msk [vmem:[#allocation3 + $0x48] sm:$0xff] %vm10904_vm4, %v8160_v49  ;;  %v8172_v8 = vpop.xlane.xlu2 %1530  ;;  %v8174_v51 = vpop.xlane.xlu1 %1482  ;;  %v8191_v49 = vld [vmem:[#allocation3 + $0xd8] sm:$0xff] }
 0x30b   : > { %3080 = vst.msk [vmem:[#allocation3 + $0xc8] sm:$0xff] %vm10904_vm4, %v8164_v53  ;;  %v8178_v39 = vmax.f32 %v8170_v13, %v8172_v8  ;;  %v8186_v11 = vmax.f32 %v8180_v46, %v8174_v51  ;;  %v8189_v53 = vld [vmem:[#allocation3 + $0x58] sm:$0xff] }
 0x30c   : > { %11076 = vst [vmem:[#allocation180_spill] sm:$0xff] %v8170_v13 }
 0x30d   : > { %11077 = vst [vmem:[#allocation181_spill] sm:$0xff] %v8172_v8 }
 0x30e   : > { %11078 = vst [vmem:[#allocation182_spill] sm:$0xff] %v8174_v51 }
 0x30f   : > { %11079 = vst [vmem:[#allocation183_spill] sm:$0xff] %v8178_v39 }
 0x310   : > { %11080 = vst [vmem:[#allocation184_spill] sm:$0xff] %v8180_v46  ;;  %1863 = vperm.xlu2 %6468, %v7970_v4  }
 0x311   : > { %3081 = vst.msk [vmem:[#allocation3 + $0xd0] sm:$0xff] %vm10904_vm4, %v8178_v39  ;;  %1858 = vperm.xlu0 %6469, %v7949_v54   ;;  %v8213_v54 = vld [vmem:[#allocation3 + $0x60] sm:$0xff] }
 0x312   : > { %11081 = vst [vmem:[#allocation185_spill] sm:$0xff] %v8186_v11  ;;  %v8196_v13 = vpop.xlane.xlu0 %1533  ;;  %v8198_v8 = vpop.xlane.xlu2 %1485 }
 0x313   : > { %11082 = vst [vmem:[#allocation186_spill] sm:$0xff] %v8189_v53  ;;  %1783 = vperm.xlu1 %6470, %v7957_v58   ;;  %v8203_v46 = vmax.f32 %v8189_v53, %v8198_v8  ;;  %v8207_v4 = vmax.f32 %v8191_v49, %v8196_v13 }
 0x314   : > { %11083 = vst [vmem:[#allocation187_spill] sm:$0xff] %v8191_v49 }
 0x315   : > { %3065 = vst.msk [vmem:[#allocation3 + $0x50] sm:$0xff] %vm10904_vm4, %v8186_v11  ;;  %v8215_v11 = vld [vmem:[#allocation3 + $0xe0] sm:$0xff] }
 0x316   : > { %11084 = vst [vmem:[#allocation188_spill] sm:$0xff] %v8196_v13  ;;  %v8233_v13 = vld [vmem:[#allocation3 + $0xe8] sm:$0xff] }
 0x317   : > { %11085 = vst [vmem:[#allocation189_spill] sm:$0xff] %v8198_v8 }
 0x318   : > { %11086 = vst [vmem:[#allocation190_spill] sm:$0xff] %v8203_v46 }
 0x319   : > { %11087 = vst [vmem:[#allocation191_spill] sm:$0xff] %v8207_v4 }
 0x31a   : > { %3066 = vst.msk [vmem:[#allocation3 + $0x58] sm:$0xff] %vm10904_vm4, %v8203_v46  ;;  %v8217_v51 = vpop.xlane.xlu1 %1536  ;;  %v8219_v58 = vpop.xlane.xlu0 %1488 }
 0x31b   : > { %3082 = vst.msk [vmem:[#allocation3 + $0xd8] sm:$0xff] %vm10904_vm4, %v8207_v4  ;;  %v8223_v53 = vmax.f32 %v8213_v54, %v8219_v58  ;;  %v8227_v49 = vmax.f32 %v8215_v11, %v8217_v51 }
 0x31c   : > { %11088 = vst [vmem:[#allocation192_spill] sm:$0xff] %v8213_v54 }
 0x31d   : > { %11089 = vst [vmem:[#allocation193_spill] sm:$0xff] %v8215_v11 }
 0x31e   : > { %11090 = vst [vmem:[#allocation194_spill] sm:$0xff] %v8217_v51 }
 0x31f   : > { %11091 = vst [vmem:[#allocation195_spill] sm:$0xff] %v8219_v58  ;;  %v8243_v58 = vld [vmem:[#allocation3 + $0x68] sm:$0xff] }
 0x320   : > { %11092 = vst [vmem:[#allocation196_spill] sm:$0xff] %v8223_v53 }
 0x321   : > { %11093 = vst [vmem:[#allocation197_spill] sm:$0xff] %v8227_v49 }
 0x322   : > { %3067 = vst.msk [vmem:[#allocation3 + $0x60] sm:$0xff] %vm10904_vm4, %v8223_v53  ;;  %v8235_v8 = vpop.xlane.xlu2 %1539  ;;  %v8237_v4 = vpop.xlane.xlu1 %1491  ;;  %v2390_v53 = vsel %vm2323_vm9, %v8024_v45, 2147483647  ;;  %vm2327_vm9 = vcmp.eq.f32.partialorder %v7761_v34, %v8034_v3 }
 0x323   : > { %3083 = vst.msk [vmem:[#allocation3 + $0xe0] sm:$0xff] %vm10904_vm4, %v8227_v49  ;;  %v8241_v54 = vmax.f32 %v8233_v13, %v8235_v8  ;;  %v8249_v11 = vmax.f32 %v8243_v58, %v8237_v4  ;;  %v8255_v49 = vld [vmem:[#allocation3 + $0x70] sm:$0xff] }
 0x324   : > { %11094 = vst [vmem:[#allocation198_spill] sm:$0xff] %v8233_v13 }
 0x325   : > { %11095 = vst [vmem:[#allocation199_spill] sm:$0xff] %v8235_v8  ;;  %v2356_v8 = vsel %vm2289_vm15, %v8024_v45, 2147483647  ;;  %vm2324_vm15 = vcmp.eq.f32.partialorder %v7749_v40, %v8009_v55 }
 0x326   : > { %11096 = vst [vmem:[#allocation200_spill] sm:$0xff] %v8237_v4  ;;  %vm2447_vm5 = vcmp.lt.s32.totalorder %v2355_v21, %v2356_v8 }
 0x327   : > { %11097 = vst [vmem:[#allocation201_spill] sm:$0xff] %v8241_v54  ;;  %v8283_v25 = vsel %vm2447_vm5, %v2355_v21, %v2356_v8  ;;  %v8300_v21 = vsel %vm2703_vm7, %v2387_v14, %v2388_v12  ;;  %v2389_v8 = vsel %vm2322_vm8, %v8020_v19, 2147483647  ;;  %vm2328_vm5 = vcmp.eq.f32.partialorder %v7771_v56, %v8066_v2 }
 0x328   : > { %11098 = vst [vmem:[#allocation202_spill] sm:$0xff] %v8243_v58  ;;  %v2706_v43 = vshra.s32 %v8300_v21, 16  ;;  %vm2719_vm10 = vcmp.lt.s32.totalorder %v2389_v8, %v2390_v53  ;;  %vm2326_vm8 = vcmp.eq.f32.partialorder %v7759_v48, %v8034_v3 }
 0x329   : > { %3084 = vst.msk [vmem:[#allocation3 + $0xe8] sm:$0xff] %vm10904_vm4, %v8241_v54  ;;  %v8313_v12 = vsel %vm2719_vm10, %v2389_v8, %v2390_v53  ;;  %v8339_v8 = vld [vmem:[#allocation3 + $0xf8] sm:$0xff]  ;;  %vm2294_vm10 = vcmp.eq.f32.partialorder %v7753_v42, %v8044_v6 }
 0x32a   : > { %11099 = vst [vmem:[#allocation203_spill] sm:$0xff] %v8249_v11  ;;  %v8263_v13 = vpop.xlane.xlu0 %1542  ;;  %v8265_v58 = vpop.xlane.xlu2 %1494  ;;  %v8316_v14 = vcvt.s32.f32 %v2706_v43 }
 0x32b   : > { %11100 = vst [vmem:[#allocation204_spill] sm:$0xff] %v8255_v49  ;;  %v8275_v23 = vmax.f32 %v8255_v49, %v8265_v58 }
 0x32c   : > { %3068 = vst.msk [vmem:[#allocation3 + $0x68] sm:$0xff] %vm10904_vm4, %v8249_v11 }
 0x32d   : > { %11101 = vst [vmem:[#allocation205_spill] sm:$0xff] %v8263_v13 }
 0x32e   : > { %11102 = vst [vmem:[#allocation206_spill] sm:$0xff] %v8265_v58  ;;  %v2450_v58 = vshra.s32 %v8283_v25, 16 }
 0x32f   : > { %11103 = vst [vmem:[#allocation207_spill] sm:$0xff] %v8275_v23 }
 0x330   : > { %3069 = vst.msk [vmem:[#allocation3 + $0x70] sm:$0xff] %vm10904_vm4, %v8275_v23  ;;  %v8307_v50 = vcvt.s32.f32 %v2450_v58  ;;  %v8323_v58 = vld [vmem:[#allocation3 + $0xf0] sm:$0xff] }
 0x331   : > { %11108 = vst [vmem:[#allocation212_spill] sm:$0xff] %v8300_v21  ;;  %v8327_v33 = vmax.f32 %v8323_v58, %v8263_v13 }
 0x332   : > { %v8291_v49 = vpop.xlane.xlu0 %1497  ;;  %11109 = vst [vmem:[#allocation213_spill] sm:$0xff] %v8311_v16 }
 0x333   : > { %11105 = vst [vmem:[#allocation209_spill] sm:$0xff] %v8291_v49  ;;  %v8298_v11 = vmax.f32 %v8285_v26, %v8291_v49  ;;  %v2722_v26 = vshra.s32 %v8313_v12, 16 }
 0x334   : > { %11110 = vst [vmem:[#allocation214_spill] sm:$0xff] %v8313_v12 }
 0x335   : > { %11107 = vst [vmem:[#allocation211_spill] sm:$0xff] %v8298_v11  ;;  %v8320_v27 = vcvt.s32.f32 %v2722_v26 }
 0x336   : > { %3070 = vst.msk [vmem:[#allocation3 + $0x78] sm:$0xff] %vm10904_vm4, %v8298_v11 }
 0x337   : > { %11111 = vst [vmem:[#allocation215_spill] sm:$0xff] %v8316_v14 }
 0x338   : > { %11112 = vst [vmem:[#allocation216_spill] sm:$0xff] %v8320_v27 }
 0x339   : > { %2453 = vmin.xlane.f32.xlu2 %v8307_v50  ;;  %11113 = vst [vmem:[#allocation217_spill] sm:$0xff] %v8323_v58 }
 0x33a   : > { %11114 = vst [vmem:[#allocation218_spill] sm:$0xff] %v8327_v33  ;;  %v8335_v53 = vpop.permute.xlu1 %1853 }
 0x33b   : > { %2437 = vmin.xlane.f32.xlu0 %v8311_v16  ;;  %3085 = vst.msk [vmem:[#allocation3 + $0xf0] sm:$0xff] %vm10904_vm4, %v8327_v33  ;;  %v2395_v16 = vsel %vm2328_vm5, %v8020_v19, 2147483647  ;;  %vm2335_vm5 = vcmp.eq.f32.partialorder %v7809_v32, %v8154_v18 }
 0x33c   : > { %11116 = vst [vmem:[#allocation220_spill] sm:$0xff] %v8339_v8  ;;  %vm2767_vm7 = vcmp.lt.s32.totalorder %v2395_v16, %v2396_v30 }
 0x33d   : > { %2709 = vmin.xlane.f32.xlu1 %v8316_v14 }
 0x343   : > { %2725 = vmin.xlane.f32.xlu0 %v8320_v27  ;;  %v2391_v27 = vsel %vm2324_vm15, %v8020_v19, 2147483647 }
 0x344   : > { %vm2735_vm3 = vcmp.lt.s32.totalorder %v2391_v27, %v2392_v24 }
 0x345   : > { %v8375_v12 = vsel %vm2735_vm3, %v2391_v27, %v2392_v24  ;;  %v8389_v27 = vsel %vm2767_vm7, %v2395_v16, %v2396_v30  ;;  %v2394_v30 = vsel %vm2327_vm9, %v8024_v45, 2147483647  ;;  %vm2334_vm3 = vcmp.eq.f32.partialorder %v7807_v29, %v8154_v18 }
 0x346   : > { %11123 = vst [vmem:[#allocation227_spill] sm:$0xff] %v8389_v27  ;;  %v2770_v24 = vshra.s32 %v8389_v27, 16 }
 0x351   : > { %1788 = vperm.xlu2 %6468, %v7978_v22   ;;  %v2360_v22 = vsel %vm2293_vm14, %v8024_v45, 2147483647 }
 0x352   : > { %vm2479_vm2 = vcmp.lt.s32.totalorder %v2359_v31, %v2360_v22 }
 0x353   : > { %v8373_v52 = vsel %vm2479_vm2, %v2359_v31, %v2360_v22  ;;  %v8394_v31 = vcvt.s32.f32 %v2770_v24  ;;  %v2366_v24 = vsel %vm2299_vm13, %v8024_v45, 2147483647  ;;  %vm2331_vm2 = vcmp.eq.f32.partialorder %v7785_v1, %v8095_v57 }
 0x354   : > { %11120 = vst [vmem:[#allocation224_spill] sm:$0xff] %v8373_v52  ;;  %v2482_v28 = vshra.s32 %v8373_v52, 16 }
 0x355   : > { %11124 = vst [vmem:[#allocation228_spill] sm:$0xff] %v8394_v31 }
 0x356   : > { %1868 = vperm.xlu1 %6470, %v7994_v47   ;;  %v8384_v14 = vcvt.s32.f32 %v2482_v28  ;;  %v2393_v28 = vsel %vm2326_vm8, %v8020_v19, 2147483647 }
 0x357   : > { %1873 = vperm.xlu0 %6469, %v8016_v41   ;;  %v2357_v41 = vsel %vm2290_vm11, %v8020_v19, 2147483647  ;;  %vm2295_vm11 = vcmp.eq.f32.partialorder %v7755_v44, %v8044_v6  ;;  %vm2751_vm14 = vcmp.lt.s32.totalorder %v2393_v28, %v2394_v30 }
 0x358   : > { %11122 = vst [vmem:[#allocation226_spill] sm:$0xff] %v8384_v14  ;;  %v2362_v16 = vsel %vm2295_vm11, %v8024_v45, 2147483647  ;;  %v8418_v2 = vsel %vm2751_vm14, %v2393_v28, %v2394_v30 }
 0x359   : > { %1793 = vperm.xlu2 %6468, %v7998_v61   ;;  %11125 = vst [vmem:[#allocation229_spill] sm:$0xff] %v8418_v2 }
 0x365   : > { %v8337_v26 = vpop.xlane.xlu1 %2421 }
 0x366   : > { %11115 = vst [vmem:[#allocation219_spill] sm:$0xff] %v8337_v26 }
 0x36d   : > { %v8341_v43 = vpop.xlane.xlu1 %1545 }
 0x36e   : > { %11117 = vst [vmem:[#allocation221_spill] sm:$0xff] %v8341_v43  ;;  %v8349_v58 = vmax.f32 %v8339_v8, %v8341_v43  ;;  %v2358_v8 = vsel %vm2291_vm12, %v8024_v45, 2147483647  ;;  %vm2298_vm12 = vcmp.eq.f32.partialorder %v7777_v60, %v8099_v10 }
 0x36f   : > { %vm2463_vm1 = vcmp.lt.s32.totalorder %v2357_v41, %v2358_v8 }
 0x370   : > { %11118 = vst [vmem:[#allocation222_spill] sm:$0xff] %v8349_v58  ;;  %v8367_v40 = vsel %vm2463_vm1, %v2357_v41, %v2358_v8  ;;  %v2738_v41 = vshra.s32 %v8375_v12, 16  ;;  %vm2330_vm1 = vcmp.eq.f32.partialorder %v7783_v0, %v8095_v57 }
 0x371   : > { %3086 = vst.msk [vmem:[#allocation3 + $0xf8] sm:$0xff] %vm10904_vm4, %v8349_v58  ;;  %v2466_v55 = vshra.s32 %v8367_v40, 16  ;;  %v2397_v30 = vsel %vm2330_vm1, %v8020_v19, 2147483647 }
 0x372   : > { %11119 = vst [vmem:[#allocation223_spill] sm:$0xff] %v8367_v40  ;;  %v8387_v22 = vcvt.s32.f32 %v2738_v41  ;;  %v2365_v41 = vsel %vm2298_vm12, %v8020_v19, 2147483647 }
 0x373   : > { %v8382_v8 = vcvt.s32.f32 %v2466_v55  ;;  %v2361_v55 = vsel %vm2294_vm10, %v8020_v19, 2147483647  ;;  %vm2527_vm0 = vcmp.lt.s32.totalorder %v2365_v41, %v2366_v24 }
 0x374   : > { %vm2495_vm15 = vcmp.lt.s32.totalorder %v2361_v55, %v2362_v16 }
 0x375   : > { %11121 = vst [vmem:[#allocation225_spill] sm:$0xff] %v8382_v8 }
 0x380   : > { %2469 = vmin.xlane.f32.xlu1 %v8382_v8  ;;  %v11175_v8 = vld [vmem:[#allocation95_spill] sm:$0xff] }
 0x381   : > { %2485 = vmin.xlane.f32.xlu0 %v8384_v14 }
 0x382   : > { %2741 = vmin.xlane.f32.xlu2 %v8387_v22 }
 0x389   : > { %2773 = vmin.xlane.f32.xlu0 %v8394_v31 }
 0x399   : > { %1798 = vperm.xlu1 %6470, %v8048_v7   ;;  %v2754_v7 = vshra.s32 %v8418_v2, 16 }
 0x39a   : > { %1878 = vperm.xlu2 %6468, %v8042_v15   ;;  %v8424_v15 = vsel %vm2527_vm0, %v2365_v41, %v2366_v24  ;;  %v2402_v41 = vsel %vm2335_vm5, %v8024_v45, 2147483647 }
 0x39b   : > { %11126 = vst [vmem:[#allocation230_spill] sm:$0xff] %v8424_v15  ;;  %v8426_v31 = vcvt.s32.f32 %v2754_v7  ;;  %v2530_v27 = vshra.s32 %v8424_v15, 16  ;;  %v11129_v7 = vld [vmem:[#allocation152_spill] sm:$0xff] }
 0x39d   : > { %1888 = vperm.xlu0 %6469, %v8103_v38   ;;  %v8420_v38 = vsel %vm2495_vm15, %v2361_v55, %v2362_v16  ;;  %11127 = vst [vmem:[#allocation231_spill] sm:$0xff] %v8426_v31  ;;  %v8433_v28 = vcvt.s32.f32 %v2530_v27  ;;  %v11131_v27 = vld [vmem:[#allocation61_spill] sm:$0xff]  ;;  %v2398_v55 = vsel %vm2331_vm2, %v8024_v45, 2147483647  ;;  %v2401_v16 = vsel %vm2334_vm3, %v8020_v19, 2147483647 }
 0x39e   : > { %v2498_v3 = vshra.s32 %v8420_v38, 16  ;;  %vm2297_vm7 = vcmp.eq.f32.partialorder %v11131_v27, %v11129_v7  ;;  %vm2783_vm8 = vcmp.lt.s32.totalorder %v2397_v30, %v2398_v55  ;;  %vm2815_vm9 = vcmp.lt.s32.totalorder %v2401_v16, %v2402_v41  ;;  %v11144_v27 = vld [vmem:[#allocation169_spill] sm:$0xff] }
 0x39f   : > { %11128 = vst [vmem:[#allocation232_spill] sm:$0xff] %v8433_v28  ;;  %v8457_v18 = vsel %vm2783_vm8, %v2397_v30, %v2398_v55  ;;  %v11137_v30 = vld [vmem:[#allocation182_spill] sm:$0xff]  ;;  %v11138_v55 = vld [vmem:[#allocation76_spill] sm:$0xff] }
 0x3a0   : > { %v8428_v10 = vcvt.s32.f32 %v2498_v3  ;;  %v11130_v3 = vld [vmem:[#allocation60_spill] sm:$0xff]  ;;  %vm2304_vm11 = vcmp.eq.f32.partialorder %v11138_v55, %v11137_v30 }
 0x3a1   : > { %vm2296_vm6 = vcmp.eq.f32.partialorder %v11130_v3, %v11129_v7 }
 0x3a2   : > { %v2363_v24 = vsel %vm2296_vm6, %v8020_v19, 2147483647 }
 0x3c3   : > { %2757 = vmin.xlane.f32.xlu1 %v8426_v31  ;;  %2501 = vmin.xlane.f32.xlu2 %v8428_v10 }
 0x3c7   : > { %2533 = vmin.xlane.f32.xlu0 %v8433_v28  ;;  %v2786_v28 = vshra.s32 %v8457_v18, 16 }
 0x3c9   : > { %v8466_v0 = vcvt.s32.f32 %v2786_v28 }
 0x3db   : > { %1803 = vperm.xlu2 %6468, %v8076_v20   ;;  %1813 = vperm.xlu0 %6469, %v8139_v5   ;;  %v2364_v5 = vsel %vm2297_vm7, %v8024_v45, 2147483647  ;;  %v8459_v20 = vsel %vm2815_vm9, %v2401_v16, %v2402_v41  ;;  %v11140_v16 = vld [vmem:[#allocation170_spill] sm:$0xff]  ;;  %v11141_v41 = vld [vmem:[#allocation68_spill] sm:$0xff] }
 0x3dc   : > { %1883 = vperm.xlu1 %6470, %v8080_v63   ;;  %vm2511_vm10 = vcmp.lt.s32.totalorder %v2363_v24, %v2364_v5  ;;  %v2818_v15 = vshra.s32 %v8459_v20, 16  ;;  %vm2300_vm13 = vcmp.eq.f32.partialorder %v11141_v41, %v11140_v16  ;;  %v11164_v63 = vld [vmem:[#allocation72_spill] sm:$0xff] }
 0x3dd   : > { %v8461_v7 = vsel %vm2511_vm10, %v2363_v24, %v2364_v5  ;;  %v8476_v5 = vpop.permute.xlu0 %1778  ;;  %v11142_v24 = vld [vmem:[#allocation69_spill] sm:$0xff]  ;;  %v2367_v42 = vsel %vm2300_vm13, %v8020_v19, 2147483647 }
 0x3de   : > { %11132 = vst [vmem:[#allocation233_spill] sm:$0xff] %v8461_v7  ;;  %v2514_v1 = vshra.s32 %v8461_v7, 16  ;;  %v8468_v57 = vcvt.s32.f32 %v2818_v15  ;;  %vm2301_vm14 = vcmp.eq.f32.partialorder %v11142_v24, %v11140_v16 }
 0x3df   : > { %11134 = vst [vmem:[#allocation235_spill] sm:$0xff] %v8476_v5  ;;  %v2368_v52 = vsel %vm2301_vm14, %v8024_v45, 2147483647 }
 0x3e0   : > { %v8471_v44 = vcvt.s32.f32 %v2514_v1  ;;  %v11139_v1 = vld [vmem:[#allocation77_spill] sm:$0xff]  ;;  %vm2543_vm2 = vcmp.lt.s32.totalorder %v2367_v42, %v2368_v52 }
 0x3e1   : > { %vm2305_vm12 = vcmp.eq.f32.partialorder %v11139_v1, %v11137_v30  ;;  %v11146_v30 = vld [vmem:[#allocation71_spill] sm:$0xff]  ;;  %v8506_v3 = vsel %vm2543_vm2, %v2367_v42, %v2368_v52 }
 0x3e2   : > { %11133 = vst [vmem:[#allocation234_spill] sm:$0xff] %v8471_v44  ;;  %v2372_v14 = vsel %vm2305_vm12, %v8024_v45, 2147483647  ;;  %vm2333_vm1 = vcmp.eq.f32.partialorder %v11146_v30, %v11144_v27  ;;  %v2546_v31 = vshra.s32 %v8506_v3, 16 }
 0x3e3   : > { %v2400_v16 = vsel %vm2333_vm1, %v8024_v45, 2147483647 }
 0x3e5   : > { %v8480_v28 = vpop.xlane.xlu0 %2677 }
 0x3e6   : > { %11135 = vst [vmem:[#allocation236_spill] sm:$0xff] %v8480_v28  ;;  %v11178_v28 = vld [vmem:[#allocation81_spill] sm:$0xff] }
 0x3ed   : > { %v8482_v15 = vpop.permute.xlu0 %1858 }
 0x3ee   : > { %11136 = vst [vmem:[#allocation237_spill] sm:$0xff] %v8482_v15 }
 0x404   : > { %2789 = vmin.xlane.f32.xlu2 %v8466_v0 }
 0x405   : > { %2821 = vmin.xlane.f32.xlu0 %v8468_v57 }
 0x406   : > { %2517 = vmin.xlane.f32.xlu1 %v8471_v44  ;;  %v11145_v44 = vld [vmem:[#allocation70_spill] sm:$0xff] }
 0x407   : > { %vm2332_vm0 = vcmp.eq.f32.partialorder %v11145_v44, %v11144_v27 }
 0x408   : > { %v2399_v24 = vsel %vm2332_vm0, %v8020_v19, 2147483647  ;;  %vm2311_vm0 = vcmp.eq.f32.partialorder %v11175_v8, %v8237_v4 }
 0x409   : > { %vm2799_vm3 = vcmp.lt.s32.totalorder %v2399_v24, %v2400_v16 }
 0x40a   : > { %v8512_v44 = vsel %vm2799_vm3, %v2399_v24, %v2400_v16  ;;  %v11151_v16 = vld [vmem:[#allocation178_spill] sm:$0xff]  ;;  %v11153_v24 = vld [vmem:[#allocation179_spill] sm:$0xff] }
 0x40b   : > { %v2801_v15 = vand.u32 65535, %v8512_v44 }
 0x419   : > { %1903 = vperm.xlu0 %6469, %v8178_v39   ;;  %v8492_v39 = vpop.xlane.xlu0 %2437 }
 0x41a   : > { %11143 = vst [vmem:[#allocation238_spill] sm:$0xff] %v8492_v39 }
 0x41c   : > { %1893 = vperm.xlu2 %6468, %v8143_v17   ;;  %v2371_v17 = vsel %vm2304_vm11, %v8020_v19, 2147483647 }
 0x41d   : > { %vm2575_vm15 = vcmp.lt.s32.totalorder %v2371_v17, %v2372_v14 }
 0x41e   : > { %v8502_v41 = vsel %vm2575_vm15, %v2371_v17, %v2372_v14  ;;  %v8517_v17 = vcvt.s32.f32 %v2546_v31  ;;  %v2802_v14 = vshra.s32 %v8512_v44, 16 }
 0x41f   : > { %1808 = vperm.xlu1 %6470, %v8119_v9   ;;  %v2578_v7 = vshra.s32 %v8502_v41, 16 }
 0x420   : > { %v8523_v42 = vcvt.s32.f32 %v2802_v14  ;;  %v11156_v14 = vld [vmem:[#allocation93_spill] sm:$0xff] }
 0x421   : > { %v8509_v34 = vpop.xlane.xlu0 %2725  ;;  %v8514_v48 = vcvt.s32.f32 %v2578_v7  ;;  %vm2341_vm6 = vcmp.eq.f32.partialorder %v11156_v14, %v8217_v51 }
 0x422   : > { %11147 = vst [vmem:[#allocation239_spill] sm:$0xff] %v8509_v34  ;;  %v11155_v34 = vld [vmem:[#allocation91_spill] sm:$0xff] }
 0x423   : > { %vm2340_vm5 = vcmp.eq.f32.partialorder %v11155_v34, %v8217_v51 }
 0x429   : > { %v8521_v52 = vpop.permute.xlu0 %1873 }
 0x42a   : > { %11148 = vst [vmem:[#allocation240_spill] sm:$0xff] %v8521_v52 }
 0x431   : > { %v8526_v27 = vpop.xlane.xlu0 %2485 }
 0x432   : > { %11149 = vst [vmem:[#allocation241_spill] sm:$0xff] %v8526_v27  ;;  %v8545_v27 = vpop.permute.xlu1 %1783 }
 0x433   : > { %11158 = vst [vmem:[#allocation246_spill] sm:$0xff] %v8545_v27 }
 0x439   : > { %v8529_v7 = vpop.xlane.xlu0 %2773 }
 0x43a   : > { %11150 = vst [vmem:[#allocation242_spill] sm:$0xff] %v8529_v7  ;;  %v2408_v7 = vsel %vm2341_vm6, %v8024_v45, 2147483647  ;;  %v8567_v39 = vpop.xlane.xlu1 %2709 }
 0x43b   : > { %11167 = vst [vmem:[#allocation249_spill] sm:$0xff] %v8567_v39 }
 0x441   : > { %v8532_v31 = vpop.permute.xlu0 %1888 }
 0x442   : > { %11152 = vst [vmem:[#allocation243_spill] sm:$0xff] %v8532_v31  ;;  %v11159_v31 = vld [vmem:[#allocation181_spill] sm:$0xff] }
 0x443   : > { %2581 = vmin.xlane.f32.xlu0 %v8514_v48 }
 0x445   : > { %2549 = vmin.xlane.f32.xlu2 %v8517_v17 }
 0x449   : > { %2805 = vmin.xlane.f32.xlu1 %v8523_v42  ;;  %v8535_v30 = vpop.xlane.xlu0 %2533 }
 0x44a   : > { %11154 = vst [vmem:[#allocation244_spill] sm:$0xff] %v8535_v30  ;;  %v11161_v30 = vld [vmem:[#allocation80_spill] sm:$0xff] }
 0x44b   : > { %vm2337_vm8 = vcmp.eq.f32.partialorder %v11161_v30, %v11159_v31 }
 0x44c   : > { %v2404_v51 = vsel %vm2337_vm8, %v8024_v45, 2147483647 }
 0x451   : > { %v8541_v52 = vpop.permute.xlu0 %1813 }
 0x452   : > { %11157 = vst [vmem:[#allocation245_spill] sm:$0xff] %v8541_v52 }
 0x457   : > { %1828 = vperm.xlu0 %6469, %v8203_v46   ;;  %v2407_v46 = vsel %vm2340_vm5, %v8020_v19, 2147483647 }
 0x458   : > { %vm2863_vm9 = vcmp.lt.s32.totalorder %v2407_v46, %v2408_v7 }
 0x459   : > { %v8556_v2 = vsel %vm2863_vm9, %v2407_v46, %v2408_v7 }
 0x45d   : > { %1818 = vperm.xlu2 %6468, %v11151_v16   ;;  %v2817_v16 = vand.u32 65535, %v8459_v20  ;;  %v11163_v20 = vld [vmem:[#allocation177_spill] sm:$0xff] }
 0x45e   : > { %vm2302_vm12 = vcmp.eq.f32.partialorder %v11164_v63, %v11163_v20 }
 0x45f   : > { %v2819_v9 = vcvt.s32.f32 %v2817_v16  ;;  %v2369_v46 = vsel %vm2302_vm12, %v8020_v19, 2147483647 }
 0x462   : > { %1898 = vperm.xlu1 %6470, %v11153_v24   ;;  %v11160_v24 = vld [vmem:[#allocation78_spill] sm:$0xff] }
 0x463   : > { %vm2336_vm7 = vcmp.eq.f32.partialorder %v11160_v24, %v11159_v31  ;;  %v11165_v24 = vld [vmem:[#allocation73_spill] sm:$0xff]  ;;  %v2866_v31 = vshra.s32 %v8556_v2, 16 }
 0x464   : > { %v2403_v6 = vsel %vm2336_vm7, %v8020_v19, 2147483647  ;;  %vm2303_vm13 = vcmp.eq.f32.partialorder %v11165_v24, %v11163_v20  ;;  %v11172_v24 = vld [vmem:[#allocation185_spill] sm:$0xff] }
 0x465   : > { %vm2831_vm11 = vcmp.lt.s32.totalorder %v2403_v6, %v2404_v51  ;;  %v2370_v7 = vsel %vm2303_vm13, %v8024_v45, 2147483647 }
 0x466   : > { %v8569_v27 = vsel %vm2831_vm11, %v2403_v6, %v2404_v51  ;;  %vm2559_vm14 = vcmp.lt.s32.totalorder %v2369_v46, %v2370_v7 }
 0x467   : > { %v2834_v16 = vshra.s32 %v8569_v27, 16 }
 0x469   : > { %v8581_v20 = vcvt.s32.f32 %v2834_v16 }
 0x478   : > { %v8554_v52 = vpop.xlane.xlu0 %2821 }
 0x479   : > { %11162 = vst [vmem:[#allocation247_spill] sm:$0xff] %v8554_v52  ;;  %vm2823_vm10 = vcmp.eq.f32.partialorder %v8468_v57, %v8554_v52  ;;  %v8573_v57 = vcvt.s32.f32 %v2866_v31  ;;  %v8577_v52 = vsel %vm2559_vm14, %v2369_v46, %v2370_v7  ;;  %v11171_v7 = vld [vmem:[#allocation191_spill] sm:$0xff] }
 0x47a   : > { %v8564_v30 = vsel %vm2823_vm10, %v2819_v9, inf  ;;  %v8579_v9 = vpop.permute.xlu1 %1868  ;;  %v2562_v6 = vshra.s32 %v8577_v52, 16 }
 0x47b   : > { %11166 = vst [vmem:[#allocation248_spill] sm:$0xff] %v8564_v30 }
 0x47c   : > { %v8585_v51 = vcvt.s32.f32 %v2562_v6  ;;  %v11174_v6 = vld [vmem:[#allocation94_spill] sm:$0xff] }
 0x47d   : > { %vm2310_vm15 = vcmp.eq.f32.partialorder %v11174_v6, %v8237_v4 }
 0x481   : > { %2869 = vmin.xlane.f32.xlu0 %v8573_v57 }
 0x482   : > { %v8587_v30 = vpop.xlane.xlu1 %2469 }
 0x483   : > { %11168 = vst [vmem:[#allocation250_spill] sm:$0xff] %v8587_v30 }
 0x486   : > { %2837 = vmin.xlane.f32.xlu2 %v8581_v20 }
 0x48a   : > { %v8590_v31 = vpop.permute.xlu1 %1798 }
 0x48b   : > { %11169 = vst [vmem:[#allocation251_spill] sm:$0xff] %v8590_v31  ;;  %v8605_v30 = vpop.permute.xlu0 %1903  ;;  %v2378_v31 = vsel %vm2311_vm0, %v8024_v45, 2147483647 }
 0x48c   : > { %2565 = vmin.xlane.f32.xlu1 %v8585_v51  ;;  %11176 = vst [vmem:[#allocation254_spill] sm:$0xff] %v8605_v30 }
 0x492   : > { %v8593_v46 = vpop.xlane.xlu1 %2757 }
 0x493   : > { %11170 = vst [vmem:[#allocation252_spill] sm:$0xff] %v8593_v46 }
 0x495   : > { %1918 = vperm.xlu0 %6469, %v8241_v54   ;;  %v2377_v54 = vsel %vm2310_vm15, %v8020_v19, 2147483647 }
 0x496   : > { %vm2623_vm1 = vcmp.lt.s32.totalorder %v2377_v54, %v2378_v31 }
 0x497   : > { %v8618_v4 = vsel %vm2623_vm1, %v2377_v54, %v2378_v31  ;;  %v11183_v31 = vld [vmem:[#allocation188_spill] sm:$0xff] }
 0x49a   : > { %v8596_v16 = vpop.permute.xlu1 %1883 }
 0x49e   : > { %1908 = vperm.xlu2 %6468, %v11171_v7   ;;  %v2577_v7 = vand.u32 65535, %v8502_v41 }
 0x4a0   : > { %v2579_v30 = vcvt.s32.f32 %v2577_v7  ;;  %v11184_v7 = vld [vmem:[#allocation84_spill] sm:$0xff] }
 0x4a1   : > { %vm2338_vm7 = vcmp.eq.f32.partialorder %v11184_v7, %v11183_v31 }
 0x4a2   : > { %v8599_v63 = vpop.xlane.xlu1 %2517 }
 0x4a3   : > { %11173 = vst [vmem:[#allocation253_spill] sm:$0xff] %v8599_v63  ;;  %v11179_v63 = vld [vmem:[#allocation82_spill] sm:$0xff] }
 0x4a5   : > { %1823 = vperm.xlu1 %6470, %v11172_v24   ;;  %v11177_v24 = vld [vmem:[#allocation189_spill] sm:$0xff] }
 0x4a6   : > { %vm2306_vm2 = vcmp.eq.f32.partialorder %v11178_v28, %v11177_v24  ;;  %vm2307_vm3 = vcmp.eq.f32.partialorder %v11179_v63, %v11177_v24  ;;  %v2626_v28 = vshra.s32 %v8618_v4, 16  ;;  %v2803_v24 = vcvt.s32.f32 %v2801_v15 }
 0x4a7   : > { %v2373_v8 = vsel %vm2306_vm2, %v8020_v19, 2147483647  ;;  %v2374_v41 = vsel %vm2307_vm3, %v8024_v45, 2147483647 }
 0x4a8   : > { %vm2591_vm6 = vcmp.lt.s32.totalorder %v2373_v8, %v2374_v41  ;;  %v8630_v54 = vcvt.s32.f32 %v2626_v28 }
 0x4a9   : > { %v8638_v44 = vsel %vm2591_vm6, %v2373_v8, %v2374_v41  ;;  %v1774_v41 = vpop.permute.xlu2 %1773 }
 0x4aa   : > { %v8610_v46 = vpop.permute.xlu1 %1808  ;;  %v2594_v15 = vshra.s32 %v8638_v44, 16 }
 0x4b1   : > { %v8662_v21 = vpop.xlane.xlu2 %2693 }
 0x4b6   : > { %v8616_v6 = vpop.xlane.xlu0 %2581 }
 0x4b7   : > { %11180 = vst [vmem:[#allocation255_spill] sm:$0xff] %v8616_v6  ;;  %vm2583_vm5 = vcmp.eq.f32.partialorder %v8514_v48, %v8616_v6  ;;  %v11185_v48 = vld [vmem:[#allocation86_spill] sm:$0xff]  ;;  %v2405_v6 = vsel %vm2338_vm7, %v8020_v19, 2147483647 }
 0x4b8   : > { %v8625_v40 = vsel %vm2583_vm5, %v2579_v30, inf  ;;  %vm2339_vm8 = vcmp.eq.f32.partialorder %v11185_v48, %v11183_v31  ;;  %v11189_v31 = vld [vmem:[#allocation197_spill] sm:$0xff] }
 0x4b9   : > { %11181 = vst [vmem:[#allocation256_spill] sm:$0xff] %v8625_v40  ;;  %v2406_v28 = vsel %vm2339_vm8, %v8024_v45, 2147483647  ;;  %v8646_v40 = vcvt.s32.f32 %v2594_v15  ;;  %v11191_v48 = vld [vmem:[#allocation37_spill] sm:$0xff] }
 0x4ba   : > { %vm2847_vm10 = vcmp.lt.s32.totalorder %v2405_v6, %v2406_v28 }
 0x4bb   : > { %11187 = vst [vmem:[#allocation259_spill] sm:$0xff] %v8646_v40  ;;  %v8648_v7 = vsel %vm2847_vm10, %v2405_v6, %v2406_v28  ;;  %v1932_v6 = vsub.f32 %v11191_v48, %v1774_v41 }
 0x4bc   : > { %v8628_v63 = vpop.xlane.xlu1 %2805  ;;  %v2850_v8 = vshra.s32 %v8648_v7, 16 }
 0x4bd   : > { %11182 = vst [vmem:[#allocation257_spill] sm:$0xff] %v8628_v63  ;;  %vm2807_vm9 = vcmp.eq.f32.partialorder %v8523_v42, %v8628_v63  ;;  %v11190_v63 = vld [vmem:[#allocation36_spill] sm:$0xff]  ;;  %v1997_v39 = vmul.f32 1.442695, %v1932_v6 }
 0x4be   : > { %v8640_v30 = vsel %vm2807_vm9, %v2803_v24, inf  ;;  %v8652_v42 = vcvt.s32.f32 %v2850_v8  ;;  %v11188_v24 = vld [vmem:[#allocation196_spill] sm:$0xff]  ;;  %v1931_v15 = vsub.f32 %v11190_v63, %v1774_v41  ;;  %v2865_v8 = vand.u32 65535, %v8556_v2  ;;  %v11196_v41 = vld [vmem:[#allocation199_spill] sm:$0xff] }
 0x4bf   : > { %11186 = vst [vmem:[#allocation258_spill] sm:$0xff] %v8640_v30  ;;  %2629 = vmin.xlane.f32.xlu0 %v8630_v54 }
 0x4c0   : > { %v1995_v30 = vmul.f32 1.442695, %v1931_v15  ;;  %v2867_v63 = vcvt.s32.f32 %v2865_v8  ;;  %v11197_v15 = vld [vmem:[#allocation98_spill] sm:$0xff]  ;;  %v8683_v8 = vpop.permute.xlu2 %1863 }
 0x4c1   : > { %vm2342_vm14 = vcmp.eq.f32.partialorder %v11197_v15, %v11196_v41  ;;  %11200 = vst [vmem:[#allocation263_spill] sm:$0xff] %v8683_v8 }
 0x4c2   : > { %6471 = vpow2.f32 %v1995_v30  ;;  %v2409_v15 = vsel %vm2342_vm14, %v8020_v19, 2147483647 }
 0x4c3   : > { %6473 = vpow2.f32 %v1997_v39  ;;  %v11198_v39 = vld [vmem:[#allocation100_spill] sm:$0xff] }
 0x4c4   : > { %vm2343_vm15 = vcmp.eq.f32.partialorder %v11198_v39, %v11196_v41 }
 0x4c7   : > { %2597 = vmin.xlane.f32.xlu2 %v8646_v40  ;;  %v11204_v40 = vld [vmem:[#allocation195_spill] sm:$0xff] }
 0x4c8   : > { %v6472_v48 = vpop.eup %6471  ;;  %v8699_v5 = vpop.xlane.xlu2 %2453 }
 0x4c9   : > { %v8660_v28 = vpop.permute.xlu0 %1828  ;;  %vm2455_vm8 = vcmp.eq.f32.partialorder %v8307_v50, %v8699_v5 }
 0x4ca   : > { %11192 = vst [vmem:[#allocation260_spill] sm:$0xff] %v8660_v28  ;;  %v6474_v28 = vpop.eup %6473 }
 0x4cb   : > { %v2123_v41 = vadd.f32 %v6474_v28, %v6472_v48 }
 0x4cf   : > { %2853 = vmin.xlane.f32.xlu1 %v8652_v42 }
 0x4d3   : > { %1843 = vperm.xlu0 %6469, %v8275_v23   ;;  %v11193_v23 = vld [vmem:[#allocation163_spill] sm:$0xff] }
 0x4d4   : > { %vm2346_vm11 = vcmp.eq.f32.partialorder %v11193_v23, %v8341_v43  ;;  %v11202_v23 = vld [vmem:[#allocation39_spill] sm:$0xff] }
 0x4d5   : > { %v2413_v6 = vsel %vm2346_vm11, %v8020_v19, 2147483647  ;;  %v1964_v61 = vsub.f32 %v11202_v23, %v8335_v53 }
 0x4d7   : > { %v2061_v8 = vmul.f32 1.442695, %v1964_v61 }
 0x4df   : > { %1833 = vperm.xlu2 %6468, %v11188_v24   ;;  %v11194_v24 = vld [vmem:[#allocation164_spill] sm:$0xff] }
 0x4e0   : > { %vm2347_vm12 = vcmp.eq.f32.partialorder %v11194_v24, %v8341_v43  ;;  %v8681_v43 = vpop.permute.xlu1 %1898  ;;  %v2410_v24 = vsel %vm2343_vm15, %v8024_v45, 2147483647 }
 0x4e1   : > { %v2414_v2 = vsel %vm2347_vm12, %v8024_v45, 2147483647  ;;  %vm2879_vm1 = vcmp.lt.s32.totalorder %v2409_v15, %v2410_v24 }
 0x4e2   : > { %vm2911_vm0 = vcmp.lt.s32.totalorder %v2413_v6, %v2414_v2  ;;  %v8697_v49 = vsel %vm2879_vm1, %v2409_v15, %v2410_v24 }
 0x4e8   : > { %1913 = vperm.xlu1 %6470, %v11189_v31  }
 0x4f4   : > { %v8669_v31 = vpop.xlane.xlu0 %2869 }
 0x4f5   : > { %11195 = vst [vmem:[#allocation261_spill] sm:$0xff] %v8669_v31  ;;  %vm2871_vm13 = vcmp.eq.f32.partialorder %v8573_v57, %v8669_v31  ;;  %v11201_v57 = vld [vmem:[#allocation38_spill] sm:$0xff] }
 0x4f6   : > { %v8679_v30 = vsel %vm2871_vm13, %v2867_v63, inf  ;;  %v1963_v31 = vsub.f32 %v11201_v57, %v8335_v53  ;;  %v2561_v63 = vand.u32 65535, %v8577_v52  ;;  %v11205_v53 = vld [vmem:[#allocation87_spill] sm:$0xff]  ;;  %v11206_v52 = vld [vmem:[#allocation88_spill] sm:$0xff] }
 0x4f7   : > { %11199 = vst [vmem:[#allocation262_spill] sm:$0xff] %v8679_v30  ;;  %v8692_v30 = vsel %vm2911_vm0, %v2413_v6, %v2414_v2  ;;  %vm2308_vm2 = vcmp.eq.f32.partialorder %v11205_v53, %v11204_v40  ;;  %vm2309_vm3 = vcmp.eq.f32.partialorder %v11206_v52, %v11204_v40  ;;  %v11209_v40 = vld [vmem:[#allocation165_spill] sm:$0xff] }
 0x4f8   : > { %v2059_v39 = vmul.f32 1.442695, %v1963_v31  ;;  %v2914_v57 = vshra.s32 %v8692_v30, 16  ;;  %v2563_v47 = vcvt.s32.f32 %v2561_v63  ;;  %v2882_v31 = vshra.s32 %v8697_v49, 16 }
 0x4f9   : > { %v2375_v24 = vsel %vm2308_vm2, %v8020_v19, 2147483647  ;;  %v2376_v28 = vsel %vm2309_vm3, %v8024_v45, 2147483647  ;;  %vm2695_vm7 = vcmp.eq.f32.partialorder %v11209_v40, %v8662_v21 }
 0x4fa   : > { %6475 = vpow2.f32 %v2059_v39  ;;  %v8710_v48 = vcvt.s32.f32 %v2914_v57  ;;  %vm2607_vm6 = vcmp.lt.s32.totalorder %v2375_v24, %v2376_v28 }
 0x4fb   : > { %6477 = vpow2.f32 %v2061_v8  ;;  %v11207_v8 = vld [vmem:[#allocation155_spill] sm:$0xff] }
 0x4fc   : > { %v2689_v57 = vand.u32 65535, %v11207_v8 }
 0x4fd   : > { %2124 = vadd.xlane.f32.xlu0 %v2123_v41  ;;  %v8715_v41 = vcvt.s32.f32 %v2882_v31  ;;  %v11208_v31 = vld [vmem:[#allocation50_spill] sm:$0xff] }
 0x4fe   : > { %v1969_v23 = vsub.f32 %v11208_v31, %v8579_v9 }
 0x4ff   : > { %v8694_v26 = vpop.xlane.xlu1 %2565 }
 0x500   : > { %11203 = vst [vmem:[#allocation264_spill] sm:$0xff] %v8694_v26  ;;  %vm2567_vm5 = vcmp.eq.f32.partialorder %v8585_v51, %v8694_v26  ;;  %v6476_v15 = vpop.eup %6475  ;;  %v8720_v51 = vpop.permute.xlu2 %1788  ;;  %v2071_v26 = vmul.f32 1.442695, %v1969_v23 }
 0x501   : > { %v8707_v61 = vsel %vm2567_vm5, %v2563_v47, inf  ;;  %v6478_v6 = vpop.eup %6477  ;;  %v8718_v47 = vsel %vm2607_vm6, %v2375_v24, %v2376_v28  ;;  %v1970_v24 = vsub.f32 %v7739_v35, %v8579_v9  ;;  %v2691_v28 = vcvt.s32.f32 %v2689_v57 }
 0x502   : > { %v2171_v2 = vadd.f32 %v6478_v6, %v6476_v15  ;;  %v2610_v39 = vshra.s32 %v8718_v47, 16  ;;  %6479 = vpow2.f32 %v2071_v26 }
 0x503   : > { %v2696_v6 = vsel %vm2695_vm7, %v2691_v28, inf }
 0x504   : > { %v8724_v63 = vcvt.s32.f32 %v2610_v39  ;;  %v2449_v39 = vand.u32 65535, %v8283_v25 }
 0x505   : > { %2917 = vmin.xlane.f32.xlu0 %v8710_v48 }
 0x506   : > { %v2451_v9 = vcvt.s32.f32 %v2449_v39 }
 0x508   : > { %2885 = vmin.xlane.f32.xlu2 %v8715_v41  ;;  %v1794_v15 = vpop.permute.xlu2 %1793  ;;  %v2456_v57 = vsel %vm2455_vm8, %v2451_v9, inf  ;;  %v6480_v28 = vpop.eup %6479  ;;  %v2737_v9 = vand.u32 65535, %v8375_v12 }
 0x509   : > { %v1939_v8 = vsub.f32 %v7741_v36, %v1794_v15  ;;  %v1940_v40 = vsub.f32 %v7743_v37, %v1794_v15 }
 0x50b   : > { %v2011_v31 = vmul.f32 1.442695, %v1939_v8  ;;  %v2013_v23 = vmul.f32 1.442695, %v1940_v40  ;;  %v2625_v40 = vand.u32 65535, %v8618_v4 }
 0x50d   : > { %2172 = vadd.xlane.f32.xlu0 %v2171_v2  ;;  %v2073_v2 = vmul.f32 1.442695, %v1970_v24 }
 0x50f   : > { %6481 = vpow2.f32 %v2073_v2  ;;  %v11210_v2 = vld [vmem:[#allocation203_spill] sm:$0xff] }
 0x510   : > { %v8738_v35 = vpop.xlane.xlu2 %2741  ;;  %6483 = vpow2.f32 %v2011_v31  ;;  %v1975_v31 = vsub.f32 %v7771_v56, %v8596_v16 }
 0x511   : > { %6485 = vpow2.f32 %v2013_v23  ;;  %vm2743_vm9 = vcmp.eq.f32.partialorder %v8387_v22, %v8738_v35  ;;  %v11214_v22 = vld [vmem:[#allocation102_spill] sm:$0xff] }
 0x512   : > { %2613 = vmin.xlane.f32.xlu1 %v8724_v63  ;;  %v2083_v12 = vmul.f32 1.442695, %v1975_v31 }
 0x514   : > { %6487 = vpow2.f32 %v2083_v12  ;;  %v2849_v12 = vand.u32 65535, %v8648_v7 }
 0x515   : > { %2697 = vmin.xlane.f32.xlu0 %v2696_v6  ;;  %v6482_v24 = vpop.eup %6481  ;;  %v8743_v6 = vpop.permute.xlu0 %1918 }
 0x516   : > { %v2180_v25 = vadd.f32 %v6482_v24, %v6480_v28  ;;  %v6484_v50 = vpop.eup %6483  ;;  %v2739_v28 = vcvt.s32.f32 %v2737_v9  ;;  %v2627_v24 = vcvt.s32.f32 %v2625_v40 }
 0x517   : > { %v6486_v15 = vpop.eup %6485  ;;  %v1824_v9 = vpop.permute.xlu1 %1823 }
 0x518   : > { %v8741_v26 = vpop.permute.xlu2 %1878  ;;  %v2135_v39 = vadd.f32 %v6486_v15, %v6484_v50  ;;  %v2497_v50 = vand.u32 65535, %v8420_v38  ;;  %v1946_v38 = vsub.f32 %v7781_v62, %v8610_v46 }
 0x51a   : > { %v2499_v40 = vcvt.s32.f32 %v2497_v50  ;;  %v6488_v50 = vpop.eup %6487 }
 0x51d   : > { %2457 = vmin.xlane.f32.xlu0 %v2456_v57  ;;  %v1976_v57 = vsub.f32 %v7775_v59, %v8596_v16  ;;  %v11215_v16 = vld [vmem:[#allocation101_spill] sm:$0xff] }
 0x51f   : > { %v2085_v15 = vmul.f32 1.442695, %v1976_v57 }
 0x520   : > { %1923 = vperm.xlu2 %6468, %v8327_v33   ;;  %v8746_v8 = vpop.xlane.xlu2 %2501  ;;  %v1982_v33 = vsub.f32 %v7809_v32, %v8681_v43 }
 0x521   : > { %vm2503_vm13 = vcmp.eq.f32.partialorder %v8428_v10, %v8746_v8  ;;  %6489 = vpow2.f32 %v2085_v15  ;;  %v11217_v15 = vld [vmem:[#allocation106_spill] sm:$0xff] }
 0x522   : > { %vm2344_vm15 = vcmp.eq.f32.partialorder %v11217_v15, %v8263_v13 }
 0x525   : > { %2181 = vadd.xlane.f32.xlu0 %v2180_v25  ;;  %v2744_v25 = vsel %vm2743_vm9, %v2739_v28, inf  ;;  %v2504_v28 = vsel %vm2503_vm13, %v2499_v40, inf  ;;  %v2851_v40 = vcvt.s32.f32 %v2849_v12 }
 0x527   : > { %v6490_v56 = vpop.eup %6489 }
 0x528   : > { %v8767_v59 = vpop.permute.xlu2 %1803 }
 0x52b   : > { %1838 = vperm.xlu1 %6470, %v11210_v2  }
 0x52d   : > { %2136 = vadd.xlane.f32.xlu0 %v2135_v39  ;;  %v11213_v39 = vld [vmem:[#allocation206_spill] sm:$0xff] }
 0x52e   : > { %vm2312_vm11 = vcmp.eq.f32.partialorder %v11214_v22, %v11213_v39  ;;  %vm2313_vm12 = vcmp.eq.f32.partialorder %v11215_v16, %v11213_v39  ;;  %v11263_v39 = vld [vmem:[#allocation250_spill] sm:$0xff] }
 0x52f   : > { %v2379_v31 = vsel %vm2312_vm11, %v8020_v19, 2147483647  ;;  %v2380_v57 = vsel %vm2313_vm12, %v8024_v45, 2147483647 }
 0x530   : > { %vm2639_vm14 = vcmp.lt.s32.totalorder %v2379_v31, %v2380_v57 }
 0x531   : > { %v8780_v10 = vsel %vm2639_vm14, %v2379_v31, %v2380_v57  ;;  %v2411_v31 = vsel %vm2344_vm15, %v8020_v19, 2147483647 }
 0x532   : > { %v8756_v23 = vpop.xlane.xlu0 %2629  ;;  %v2642_v7 = vshra.s32 %v8780_v10, 16 }
 0x533   : > { %11211 = vst [vmem:[#allocation87_spill] sm:$0xff] %v8756_v23  ;;  %vm2631_vm10 = vcmp.eq.f32.partialorder %v8630_v54, %v8756_v23  ;;  %v1945_v54 = vsub.f32 %v7777_v60, %v8610_v46  ;;  %v8778_v23 = vpop.xlane.xlu2 %2789  ;;  %v11234_v60 = vld [vmem:[#allocation131_spill] sm:$0xff] }
 0x534   : > { %v8760_v4 = vsel %vm2631_vm10, %v2627_v24, inf  ;;  %vm2791_vm3 = vcmp.eq.f32.partialorder %v8466_v0, %v8778_v23  ;;  %v1952_v0 = vsub.f32 %v11139_v1, %v1824_v9  ;;  %v2913_v1 = vand.u32 65535, %v8692_v30 }
 0x535   : > { %11212 = vst [vmem:[#allocation88_spill] sm:$0xff] %v8760_v4  ;;  %2745 = vmin.xlane.f32.xlu0 %v2744_v25  ;;  %v2023_v24 = vmul.f32 1.442695, %v1945_v54  ;;  %v2025_v25 = vmul.f32 1.442695, %v1946_v38  ;;  %v2189_v54 = vadd.f32 %v6490_v56, %v6488_v50  ;;  %v11218_v38 = vld [vmem:[#allocation107_spill] sm:$0xff] }
 0x536   : > { %vm2345_vm1 = vcmp.eq.f32.partialorder %v11218_v38, %v8263_v13  ;;  %v1981_v13 = vsub.f32 %v7807_v29, %v8681_v43 }
 0x537   : > { %6491 = vpow2.f32 %v2023_v24  ;;  %v2412_v57 = vsel %vm2345_vm1, %v8024_v45, 2147483647 }
 0x538   : > { %6493 = vpow2.f32 %v2025_v25  ;;  %v8795_v25 = vcvt.s32.f32 %v2642_v7  ;;  %vm2895_vm2 = vcmp.lt.s32.totalorder %v2411_v31, %v2412_v57 }
 0x539   : > { %v8800_v50 = vsel %vm2895_vm2, %v2411_v31, %v2412_v57  ;;  %v2095_v57 = vmul.f32 1.442695, %v1981_v13 }
 0x53b   : > { %v8798_v56 = vpop.permute.xlu2 %1893  ;;  %6495 = vpow2.f32 %v2095_v57  ;;  %v11220_v57 = vld [vmem:[#allocation109_spill] sm:$0xff] }
 0x53d   : > { %2505 = vmin.xlane.f32.xlu0 %v2504_v28  ;;  %v6492_v24 = vpop.eup %6491 }
 0x53e   : > { %v6494_v12 = vpop.eup %6493 }
 0x542   : > { %v8782_v46 = vpop.xlane.xlu1 %2853 }
 0x543   : > { %11216 = vst [vmem:[#allocation155_spill] sm:$0xff] %v8782_v46  ;;  %vm2855_vm0 = vcmp.eq.f32.partialorder %v8652_v42, %v8782_v46  ;;  %v2144_v42 = vadd.f32 %v6494_v12, %v6492_v24  ;;  %v8808_v7 = vpop.xlane.xlu2 %2549  ;;  %v2545_v12 = vand.u32 65535, %v8506_v3  ;;  %v11219_v3 = vld [vmem:[#allocation105_spill] sm:$0xff] }
 0x544   : > { %v8791_v28 = vsel %vm2855_vm0, %v2851_v40, inf  ;;  %v2785_v40 = vand.u32 65535, %v8457_v18  ;;  %v2097_v18 = vmul.f32 1.442695, %v1982_v33  ;;  %vm2551_vm5 = vcmp.eq.f32.partialorder %v8517_v17, %v8808_v7 }
 0x545   : > { %2190 = vadd.xlane.f32.xlu0 %v2189_v54  ;;  %v2898_v54 = vshra.s32 %v8800_v50, 16  ;;  %v2547_v43 = vcvt.s32.f32 %v2545_v12  ;;  %v11221_v32 = vsub.f32 %v11219_v3, %v11220_v57 }
 0x546   : > { %v2787_v62 = vcvt.s32.f32 %v2785_v40  ;;  %6497 = vpow2.f32 %v2097_v18 }
 0x547   : > { %v8812_v24 = vcvt.s32.f32 %v2898_v54  ;;  %v2037_v54 = vmul.f32 1.442695, %v1952_v0  ;;  %v1675_v29 = vmul.f32 1.442695, %v11221_v32 }
 0x548   : > { %v2792_v31 = vsel %vm2791_vm3, %v2787_v62, inf  ;;  %v2552_v62 = vsel %vm2551_vm5, %v2547_v43, inf }
 0x549   : > { %2645 = vmin.xlane.f32.xlu2 %v8795_v25 }
 0x54b   : > { %v8820_v40 = vpop.permute.xlu2 %1818 }
 0x54d   : > { %2145 = vadd.xlane.f32.xlu0 %v2144_v42  ;;  %v1951_v42 = vsub.f32 %v11138_v55, %v1824_v9 }
 0x54f   : > { %v2035_v13 = vmul.f32 1.442695, %v1951_v42  ;;  %v8828_v42 = vpop.permute.xlu0 %1843 }
 0x550   : > { %11222 = vst [vmem:[#allocation165_spill] sm:$0xff] %v8828_v42 }
 0x551   : > { %6499 = vpow2.f32 %v2035_v13  ;;  %v2833_v13 = vand.u32 65535, %v8569_v27 }
 0x552   : > { %6501 = vpow2.f32 %v2037_v54 }
 0x553   : > { %v8826_v18 = vpop.xlane.xlu2 %2837  ;;  %6503 = vpow2.f32 %v1675_v29  ;;  %v2835_v27 = vcvt.s32.f32 %v2833_v13 }
 0x554   : > { %vm2839_vm6 = vcmp.eq.f32.partialorder %v8581_v20, %v8826_v18 }
 0x555   : > { %2901 = vmin.xlane.f32.xlu1 %v8812_v24  ;;  %2793 = vmin.xlane.f32.xlu0 %v2792_v31  ;;  %v6496_v31 = vpop.eup %6495  ;;  %v2840_v55 = vsel %vm2839_vm6, %v2835_v27, inf }
 0x556   : > { %v6498_v33 = vpop.eup %6497 }
 0x557   : > { %v2198_v17 = vadd.f32 %v6498_v33, %v6496_v31  ;;  %v6500_v9 = vpop.eup %6499  ;;  %v11223_v33 = vld [vmem:[#allocation112_spill] sm:$0xff] }
 0x558   : > { %v6502_v12 = vpop.eup %6501 }
 0x559   : > { %v2153_v0 = vadd.f32 %v6502_v12, %v6500_v9  ;;  %v6504_v43 = vpop.eup %6503 }
 0x55a   : > { %v1914_v57 = vpop.permute.xlu1 %1913 }
 0x55b   : > { %v1987_v29 = vsub.f32 %v11155_v34, %v1914_v57 }
 0x55d   : > { %2553 = vmin.xlane.f32.xlu0 %v2552_v62  ;;  %v1611_v62 = vld [vmem:[#allocation4] sm:$0xff] }
 0x55e   : > { %v1739_v32 = vmul.f32 %v6504_v43, %v1611_v62  ;;  %v2107_v43 = vmul.f32 1.442695, %v1987_v29  ;;  %v2593_v62 = vand.u32 65535, %v8638_v44  ;;  %v11229_v29 = vld [vmem:[#allocation235_spill] sm:$0xff] }
 0x560   : > { %v2595_v30 = vcvt.s32.f32 %v2593_v62 }
 0x561   : > { %1848 = vperm.xlu2 %6468, %v8298_v11   ;;  %v8831_v11 = vpop.permute.xlu2 %1908 }
 0x565   : > { %2199 = vadd.xlane.f32.xlu0 %v2198_v17  ;;  %v11224_v17 = vld [vmem:[#allocation116_spill] sm:$0xff] }
 0x566   : > { %v11225_v9 = vsub.f32 %v11223_v33, %v11224_v17  ;;  %v11227_v17 = vld [vmem:[#allocation259_spill] sm:$0xff] }
 0x568   : > { %v1707_v12 = vmul.f32 1.442695, %v11225_v9 }
 0x569   : > { %v8844_v20 = vpop.xlane.xlu2 %2597 }
 0x56a   : > { %6505 = vpow2.f32 %v1707_v12  ;;  %vm2599_vm7 = vcmp.eq.f32.partialorder %v11227_v17, %v8844_v20 }
 0x56b   : > { %6507 = vpow2.f32 %v2107_v43  ;;  %v2600_v44 = vsel %vm2599_vm7, %v2595_v30, inf }
 0x56d   : > { %2154 = vadd.xlane.f32.xlu0 %v2153_v0  ;;  %v1988_v0 = vsub.f32 %v11156_v14, %v1914_v57  ;;  %v1627_v57 = vld [vmem:[#allocation4 + $0x80] sm:$0xff] }
 0x56e   : > { %1928 = vperm.xlu1 %6470, %v8349_v58   ;;  %v11232_v14 = vld [vmem:[#allocation150_spill] sm:$0xff]  ;;  %v2700_v58 = vcvt.f32.s32 %v8662_v21 }
 0x56f   : > { %v2109_v34 = vmul.f32 1.442695, %v1988_v0 }
 0x570   : > { %v2125_v54 = vpop.xlane.xlu0 %2124 }
 0x571   : > { %v2219_v31 = vadd.f32 %v2125_v54, %v1739_v32  ;;  %v2915_v54 = vcvt.s32.f32 %v2913_v1  ;;  %6509 = vpow2.f32 %v2109_v34  ;;  %v11231_v1 = vld [vmem:[#allocation41_spill] sm:$0xff] }
 0x572   : > { %v1934_v0 = vsub.f32 %v11231_v1, %v11229_v29  ;;  %v11246_v1 = vld [vmem:[#allocation121_spill] sm:$0xff] }
 0x573   : > { %2252 = vst.msk [vmem:[#allocation4] sm:$0xff] %vm10904_vm4, %v2219_v31  ;;  %v11230_v31 = vld [vmem:[#allocation40_spill] sm:$0xff] }
 0x574   : > { %v1933_v9 = vsub.f32 %v11230_v31, %v11229_v29  ;;  %v11238_v29 = vld [vmem:[#allocation219_spill] sm:$0xff] }
 0x575   : > { %2841 = vmin.xlane.f32.xlu0 %v2840_v55  ;;  %v6506_v55 = vpop.eup %6505 }
 0x576   : > { %v6508_v12 = vpop.eup %6507  ;;  %v1755_v27 = vmul.f32 %v6506_v55, %v1627_v57  ;;  %v1999_v62 = vmul.f32 1.442695, %v1933_v9  ;;  %v11236_v55 = vld [vmem:[#allocation209_spill] sm:$0xff]  ;;  %v11237_v57 = vld [vmem:[#allocation111_spill] sm:$0xff]  ;;  %v11239_v9 = vld [vmem:[#allocation156_spill] sm:$0xff] }
 0x577   : > { %v6510_v43 = vpop.eup %6509  ;;  %vm2314_vm9 = vcmp.eq.f32.partialorder %v11237_v57, %v11236_v55  ;;  %vm2423_vm11 = vcmp.eq.f32.partialorder %v11239_v9, %v11238_v29  ;;  %v11241_v9 = vld [vmem:[#allocation119_spill] sm:$0xff] }
 0x578   : > { %v8846_v32 = vpop.xlane.xlu0 %2917  ;;  %v2207_v30 = vadd.f32 %v6510_v43, %v6508_v12  ;;  %6511 = vpow2.f32 %v1999_v62 }
 0x579   : > { %11226 = vst [vmem:[#allocation203_spill] sm:$0xff] %v8846_v32  ;;  %vm2919_vm8 = vcmp.eq.f32.partialorder %v8710_v48, %v8846_v32  ;;  %v2609_v48 = vand.u32 65535, %v8718_v47  ;;  %v11233_v32 = vld [vmem:[#allocation135_spill] sm:$0xff] }
 0x57a   : > { %v8852_v13 = vsel %vm2919_vm8, %v2915_v54, inf  ;;  %v2001_v54 = vmul.f32 1.442695, %v1934_v0  ;;  %v1662_v46 = vsub.f32 %v11234_v60, %v11233_v32  ;;  %v2381_v0 = vsel %vm2314_vm9, %v8020_v19, 2147483647  ;;  %v11244_v19 = vld [vmem:[#allocation132_spill] sm:$0xff] }
 0x57b   : > { %11228 = vst [vmem:[#allocation106_spill] sm:$0xff] %v8852_v13  ;;  %v2611_v47 = vcvt.s32.f32 %v2609_v48 }
 0x57c   : > { %6513 = vpow2.f32 %v2001_v54 }
 0x57d   : > { %2601 = vmin.xlane.f32.xlu0 %v2600_v44  ;;  %v2417_v44 = vand.u32 65535, %v11232_v14  ;;  %v11240_v14 = vld [vmem:[#allocation110_spill] sm:$0xff] }
 0x57e   : > { %vm2315_vm12 = vcmp.eq.f32.partialorder %v11240_v14, %v11236_v55  ;;  %v11243_v55 = vld [vmem:[#allocation136_spill] sm:$0xff] }
 0x57f   : > { %v2419_v32 = vcvt.s32.f32 %v2417_v44  ;;  %v2382_v48 = vsel %vm2315_vm12, %v8024_v45, 2147483647  ;;  %v2460_v44 = vcvt.f32.s32 %v8699_v5  ;;  %v11245_v5 = vld [vmem:[#allocation212_spill] sm:$0xff] }
 0x580   : > { %v2173_v17 = vpop.xlane.xlu0 %2172  ;;  %vm2655_vm14 = vcmp.lt.s32.totalorder %v2381_v0, %v2382_v48 }
 0x581   : > { %v2235_v34 = vadd.f32 %v2173_v17, %v1755_v27  ;;  %v2701_v27 = vshll.u32 %v2700_v58, 16  ;;  %v2424_v17 = vsel %vm2423_vm11, %v2419_v32, inf  ;;  %v1647_v58 = vsub.f32 %v11244_v19, %v11243_v55  ;;  %v11247_v55 = vld [vmem:[#allocation123_spill] sm:$0xff]  ;;  %v11256_v19 = vld [vmem:[#allocation42_spill] sm:$0xff] }
 0x582   : > { %v8884_v45 = vsel %vm2655_vm14, %v2381_v0, %v2382_v48  ;;  %vm2929_vm15 = vcmp.gt.f32.partialorder %v11247_v55, %v11246_v1  ;;  %v11249_v0 = vld [vmem:[#allocation46_spill] sm:$0xff] }
 0x583   : > { %2268 = vst.msk [vmem:[#allocation4 + $0x80] sm:$0xff] %vm10904_vm4, %v2235_v34  ;;  %v1713_v34 = vmul.f32 1.442695, %v1662_v46 }
 0x585   : > { %v8864_v37 = vpop.xlane.xlu1 %2613  ;;  %2208 = vadd.xlane.f32.xlu0 %v2207_v30  ;;  %v6512_v30 = vpop.eup %6511  ;;  %6515 = vpow2.f32 %v1713_v34  ;;  %v11248_v34 = vld [vmem:[#allocation263_spill] sm:$0xff] }
 0x586   : > { %11235 = vst [vmem:[#allocation107_spill] sm:$0xff] %v8864_v37  ;;  %vm2615_vm10 = vcmp.eq.f32.partialorder %v8724_v63, %v8864_v37  ;;  %v2976_v63 = vld [vmem:[#allocation6 + $0x88] sm:$0xff]  ;;  %v6514_v54 = vpop.eup %6513  ;;  %v1967_v48 = vsub.f32 %v11249_v0, %v11248_v34 }
 0x587   : > { %v8874_v21 = vsel %vm2615_vm10, %v2611_v47, inf  ;;  %v11242_v37 = vld [vmem:[#allocation120_spill] sm:$0xff]  ;;  %v2126_v32 = vadd.f32 %v6514_v54, %v6512_v30  ;;  %v11250_v54 = vld [vmem:[#allocation249_spill] sm:$0xff] }
 0x588   : > { %v2698_v12 = vpop.xlane.xlu0 %2697  ;;  %vm2944_vm13 = vcmp.gt.f32.partialorder %v11242_v37, %v11241_v9  ;;  %v2658_v37 = vshra.s32 %v8884_v45, 16  ;;  %v2067_v0 = vmul.f32 1.442695, %v1967_v48 }
 0x589   : > { %v2699_v43 = vcvt.f32.s32 %v2698_v12  ;;  %v2461_v12 = vshll.u32 %v2460_v44, 16  ;;  %v11251_v44 = vld [vmem:[#allocation215_spill] sm:$0xff] }
 0x58a   : > { %2425 = vmin.xlane.f32.xlu2 %v2424_v17  ;;  %v2961_v17 = vld [vmem:[#allocation6 + $0x10] sm:$0xff]  ;;  %v8893_v30 = vcvt.s32.f32 %v2658_v37  ;;  %vm2711_vm0 = vcmp.eq.f32.partialorder %v11251_v44, %v11250_v54 }
 0x58b   : > { %v2702_v62 = vadd.s32 %v2701_v27, %v2699_v43  ;;  %v1683_v43 = vmul.f32 1.442695, %v1647_v58  ;;  %v11252_v58 = vld [vmem:[#allocation47_spill] sm:$0xff]  ;;  %v11255_v44 = vld [vmem:[#allocation237_spill] sm:$0xff] }
 0x58d   : > { %v3008_v47 = vsel %vm2944_vm13, %v2702_v62, %v2976_v63  ;;  %v2705_v63 = vand.u32 65535, %v11245_v5  ;;  %v6516_v62 = vpop.eup %6515  ;;  %6517 = vpow2.f32 %v1683_v43  ;;  %v11253_v5 = vld [vmem:[#allocation162_spill] sm:$0xff] }
 0x58e   : > { %3040 = vst.msk [vmem:[#allocation6 + $0x88] sm:$0xff] %vm10904_vm4, %v3008_v47  ;;  %v1630_v47 = vld [vmem:[#allocation4 + $0x98] sm:$0xff]  ;;  %v2673_v55 = vand.u32 65535, %v11253_v5  ;;  %6519 = vpow2.f32 %v2067_v0  ;;  %v11259_v5 = vld [vmem:[#allocation43_spill] sm:$0xff] }
 0x58f   : > { %v1966_v48 = vsub.f32 %v11259_v5, %v11255_v44 }
 0x590   : > { %v2458_v46 = vpop.xlane.xlu0 %2457 }
 0x591   : > { %v2459_v27 = vcvt.f32.s32 %v2458_v46  ;;  %v1968_v46 = vsub.f32 %v11252_v58, %v11248_v34  ;;  %v1965_v34 = vsub.f32 %v11256_v19, %v11255_v44  ;;  %v11262_v58 = vld [vmem:[#allocation95_spill] sm:$0xff]  ;;  %v11264_v19 = vld [vmem:[#allocation225_spill] sm:$0xff]  ;;  %v2065_v22 = vmul.f32 1.442695, %v1966_v48 }
 0x592   : > { %2127 = vadd.xlane.f32.xlu2 %v2126_v32  ;;  %v1758_v32 = vmul.f32 %v6516_v62, %v1630_v47  ;;  %v11257_v62 = vld [vmem:[#allocation236_spill] sm:$0xff]  ;;  %v1615_v47 = vld [vmem:[#allocation4 + $0x20] sm:$0xff]  ;;  %vm2471_vm2 = vcmp.eq.f32.partialorder %v11264_v19, %v11263_v39 }
 0x593   : > { %v2462_v36 = vadd.s32 %v2461_v12, %v2459_v27  ;;  %v2707_v12 = vcvt.s32.f32 %v2705_v63  ;;  %v2069_v13 = vmul.f32 1.442695, %v1968_v46  ;;  %v6518_v43 = vpop.eup %6517  ;;  %v11258_v63 = vld [vmem:[#allocation171_spill] sm:$0xff]  ;;  %v2063_v44 = vmul.f32 1.442695, %v1965_v34  ;;  %v11270_v34 = vld [vmem:[#allocation213_spill] sm:$0xff] }
 0x594   : > { %vm2679_vm1 = vcmp.eq.f32.partialorder %v11258_v63, %v11257_v62  ;;  %v11265_v63 = vld [vmem:[#allocation49_spill] sm:$0xff]  ;;  %v1743_v16 = vmul.f32 %v6518_v43, %v1615_v47  ;;  %v11269_v43 = vld [vmem:[#allocation238_spill] sm:$0xff] }
 0x595   : > { %v2993_v31 = vsel %vm2929_vm15, %v2462_v36, %v2961_v17  ;;  %v2712_v17 = vsel %vm2711_vm0, %v2707_v12, inf  ;;  %v2675_v12 = vcvt.s32.f32 %v2673_v55  ;;  %6521 = vpow2.f32 %v2069_v13  ;;  %v6520_v13 = vpop.eup %6519  ;;  %v11271_v47 = vld [vmem:[#allocation45_spill] sm:$0xff] }
 0x596   : > { %3025 = vst.msk [vmem:[#allocation6 + $0x10] sm:$0xff] %vm10904_vm4, %v2993_v31  ;;  %v11254_v31 = vld [vmem:[#allocation223_spill] sm:$0xff]  ;;  %v1938_v0 = vsub.f32 %v11265_v63, %v8720_v51  ;;  %vm2439_vm3 = vcmp.eq.f32.partialorder %v11270_v34, %v11269_v43 }
 0x597   : > { %v2465_v37 = vand.u32 65535, %v11254_v31  ;;  %v11261_v31 = vld [vmem:[#allocation94_spill] sm:$0xff]  ;;  %v2680_v4 = vsel %vm2679_vm1, %v2675_v12, inf }
 0x598   : > { %2661 = vmin.xlane.f32.xlu1 %v8893_v30  ;;  %v2182_v27 = vpop.xlane.xlu0 %2181  ;;  %v2009_v19 = vmul.f32 1.442695, %v1938_v0  ;;  %v11272_v12 = vld [vmem:[#allocation154_spill] sm:$0xff] }
 0x599   : > { %v2238_v36 = vadd.f32 %v2182_v27, %v1758_v32  ;;  %v2467_v27 = vcvt.s32.f32 %v2465_v37 }
 0x59a   : > { %2713 = vmin.xlane.f32.xlu2 %v2712_v17  ;;  %v11260_v17 = vld [vmem:[#allocation48_spill] sm:$0xff] }
 0x59b   : > { %2271 = vst.msk [vmem:[#allocation4 + $0x98] sm:$0xff] %vm10904_vm4, %v2238_v36  ;;  %v1937_v46 = vsub.f32 %v11260_v17, %v8720_v51  ;;  %v2472_v42 = vsel %vm2471_vm2, %v2467_v27, inf  ;;  %v11267_v51 = vld [vmem:[#allocation246_spill] sm:$0xff]  ;;  %v11273_v27 = vld [vmem:[#allocation149_spill] sm:$0xff] }
 0x59c   : > { %v1936_v48 = vsub.f32 %v11271_v47, %v11267_v51 }
 0x59d   : > { %v1839_v32 = vpop.permute.xlu1 %1838 }
 0x59e   : > { %v1957_v36 = vsub.f32 %v11261_v31, %v1839_v32  ;;  %v1958_v60 = vsub.f32 %v11262_v58, %v1839_v32  ;;  %v11266_v31 = vld [vmem:[#allocation210_spill] sm:$0xff]  ;;  %v2007_v32 = vmul.f32 1.442695, %v1937_v46  ;;  %v8918_v58 = vpop.permute.xlu2 %1833  ;;  %v1665_v46 = vsub.f32 %v11273_v27, %v11272_v12 }
 0x59f   : > { %v2433_v14 = vand.u32 65535, %v11266_v31  ;;  %v2982_v27 = vld [vmem:[#allocation6 + $0xb8] sm:$0xff] }
 0x5a0   : > { %v2047_v5 = vmul.f32 1.442695, %v1957_v36  ;;  %v2049_v55 = vmul.f32 1.442695, %v1958_v60  ;;  %2681 = vmin.xlane.f32.xlu1 %v2680_v4  ;;  %v2137_v37 = vpop.xlane.xlu0 %2136  ;;  %v11268_v60 = vld [vmem:[#allocation44_spill] sm:$0xff] }
 0x5a1   : > { %v2223_v17 = vadd.f32 %v2137_v37, %v1743_v16  ;;  %v1935_v4 = vsub.f32 %v11268_v60, %v11267_v51  ;;  %v6522_v16 = vpop.eup %6521  ;;  %v2005_v37 = vmul.f32 1.442695, %v1936_v48  ;;  %v1719_v51 = vmul.f32 1.442695, %v1665_v46  ;;  %v11276_v46 = vld [vmem:[#allocation166_spill] sm:$0xff]  ;;  %v11296_v60 = vld [vmem:[#allocation224_spill] sm:$0xff] }
 0x5a2   : > { %6523 = vpow2.f32 %v2047_v5  ;;  %2473 = vmin.xlane.f32.xlu2 %v2472_v42  ;;  %v2748_v5 = vcvt.f32.s32 %v8738_v35  ;;  %v2435_v42 = vcvt.s32.f32 %v2433_v14  ;;  %v2979_v35 = vld [vmem:[#allocation6 + $0xa0] sm:$0xff]  ;;  %v2881_v48 = vand.u32 65535, %v8697_v49  ;;  %v2964_v49 = vld [vmem:[#allocation6 + $0x28] sm:$0xff] }
 0x5a3   : > { %6525 = vpow2.f32 %v2049_v55  ;;  %2256 = vst.msk [vmem:[#allocation4 + $0x20] sm:$0xff] %vm10904_vm4, %v2223_v17  ;;  %v2003_v36 = vmul.f32 1.442695, %v1935_v4  ;;  %v11275_v4 = vld [vmem:[#allocation139_spill] sm:$0xff] }
 0x5a4   : > { %6527 = vpow2.f32 %v2063_v44  ;;  %v2440_v17 = vsel %vm2439_vm3, %v2435_v42, inf  ;;  %v2177_v44 = vadd.f32 %v6522_v16, %v6520_v13  ;;  %v11274_v42 = vld [vmem:[#allocation138_spill] sm:$0xff]  ;;  %v2508_v16 = vcvt.f32.s32 %v8746_v8 }
 0x5a5   : > { %6529 = vpow2.f32 %v2065_v22  ;;  %v2749_v22 = vshll.u32 %v2748_v5, 16  ;;  %vm2947_vm5 = vcmp.gt.f32.partialorder %v11275_v4, %v11274_v42  ;;  %v11278_v4 = vld [vmem:[#allocation229_spill] sm:$0xff] }
 0x5a6   : > { %6531 = vpow2.f32 %v2007_v32  ;;  %v8930_v47 = vpop.xlane.xlu2 %2885 }
 0x5a7   : > { %6533 = vpow2.f32 %v2009_v19  ;;  %vm2887_vm6 = vcmp.eq.f32.partialorder %v8715_v41, %v8930_v47  ;;  %v11280_v41 = vld [vmem:[#allocation146_spill] sm:$0xff] }
 0x5a8   : > { %v6524_v31 = vpop.eup %6523  ;;  %2441 = vmin.xlane.f32.xlu1 %v2440_v17  ;;  %v2746_v0 = vpop.xlane.xlu0 %2745  ;;  %6535 = vpow2.f32 %v2003_v36  ;;  %v11277_v17 = vld [vmem:[#allocation161_spill] sm:$0xff] }
 0x5a9   : > { %v6526_v55 = vpop.eup %6525  ;;  %v2747_v34 = vcvt.f32.s32 %v2746_v0  ;;  %6537 = vpow2.f32 %v2005_v37  ;;  %v1650_v0 = vsub.f32 %v11277_v17, %v11276_v46  ;;  %v2481_v17 = vand.u32 65535, %v11296_v60 }
 0x5aa   : > { %v6528_v63 = vpop.eup %6527  ;;  %2178 = vadd.xlane.f32.xlu2 %v2177_v44  ;;  %v2162_v14 = vadd.f32 %v6526_v55, %v6524_v31  ;;  %6539 = vpow2.f32 %v1719_v51  ;;  %v2509_v55 = vshll.u32 %v2508_v16, 16  ;;  %v11281_v16 = vld [vmem:[#allocation58_spill] sm:$0xff]  ;;  %v2796_v60 = vcvt.f32.s32 %v8778_v23 }
 0x5ab   : > { %v6530_v32 = vpop.eup %6529  ;;  %v2750_v12 = vadd.s32 %v2749_v22, %v2747_v34  ;;  %v2883_v22 = vcvt.s32.f32 %v2881_v48  ;;  %v1689_v34 = vmul.f32 1.442695, %v1650_v0  ;;  %v1973_v48 = vsub.f32 %v11281_v16, %v8741_v26  ;;  %v11282_v0 = vld [vmem:[#allocation252_spill] sm:$0xff]  ;;  %v11286_v16 = vld [vmem:[#allocation233_spill] sm:$0xff] }
 0x5ac   : > { %v6532_v19 = vpop.eup %6531  ;;  %2163 = vadd.xlane.f32.xlu0 %v2162_v14  ;;  %v2174_v31 = vadd.f32 %v6530_v32, %v6528_v63  ;;  %v11279_v32 = vld [vmem:[#allocation144_spill] sm:$0xff] }
 0x5ad   : > { %v6534_v13 = vpop.eup %6533  ;;  %v3011_v5 = vsel %vm2947_vm5, %v2750_v12, %v2979_v35  ;;  %v2888_v12 = vsel %vm2887_vm6, %v2883_v22, inf  ;;  %vm2932_vm7 = vcmp.gt.f32.partialorder %v11280_v41, %v11279_v32  ;;  %6541 = vpow2.f32 %v1689_v34 }
 0x5ae   : > { %3043 = vst.msk [vmem:[#allocation6 + $0xa0] sm:$0xff] %vm10904_vm4, %v3011_v5  ;;  %v2132_v44 = vadd.f32 %v6534_v13, %v6532_v19  ;;  %v6536_v8 = vpop.eup %6535  ;;  %v2753_v5 = vand.u32 65535, %v11278_v4  ;;  %v8942_v51 = vpop.permute.xlu2 %1923  ;;  %v1633_v19 = vld [vmem:[#allocation4 + $0xb0] sm:$0xff]  ;;  %v2641_v22 = vand.u32 65535, %v8780_v10  ;;  %v11285_v4 = vld [vmem:[#allocation214_spill] sm:$0xff] }
 0x5af   : > { %v6538_v35 = vpop.eup %6537  ;;  %v2721_v41 = vand.u32 65535, %v11285_v4  ;;  %v11293_v4 = vld [vmem:[#allocation253_spill] sm:$0xff] }
 0x5b0   : > { %2175 = vadd.xlane.f32.xlu1 %v2174_v31  ;;  %v2506_v36 = vpop.xlane.xlu0 %2505  ;;  %v6540_v63 = vpop.eup %6539  ;;  %v2129_v46 = vadd.f32 %v6538_v35, %v6536_v8  ;;  %v11283_v31 = vld [vmem:[#allocation231_spill] sm:$0xff]  ;;  %v2079_v8 = vmul.f32 1.442695, %v1973_v48  ;;  %v2643_v10 = vcvt.s32.f32 %v2641_v22  ;;  %v11295_v22 = vld [vmem:[#allocation61_spill] sm:$0xff] }
 0x5b1   : > { %v2507_v37 = vcvt.f32.s32 %v2506_v36  ;;  %vm2759_vm8 = vcmp.eq.f32.partialorder %v11283_v31, %v11282_v0  ;;  %v11284_v36 = vld [vmem:[#allocation59_spill] sm:$0xff]  ;;  %v11287_v31 = vld [vmem:[#allocation240_spill] sm:$0xff] }
 0x5b2   : > { %2133 = vadd.xlane.f32.xlu2 %v2132_v44  ;;  %v1974_v44 = vsub.f32 %v11284_v36, %v8741_v26  ;;  %v11288_v26 = vld [vmem:[#allocation54_spill] sm:$0xff]  ;;  %6543 = vpow2.f32 %v2079_v8 }
 0x5b3   : > { %v2510_v14 = vadd.s32 %v2509_v55, %v2507_v37  ;;  %v1761_v55 = vmul.f32 %v6540_v63, %v1633_v19  ;;  %v2755_v37 = vcvt.s32.f32 %v2753_v5  ;;  %v6542_v34 = vpop.eup %6541  ;;  %v1971_v63 = vsub.f32 %v11288_v26, %v11287_v31  ;;  %v11289_v19 = vld [vmem:[#allocation239_spill] sm:$0xff]  ;;  %v11294_v36 = vld [vmem:[#allocation234_spill] sm:$0xff] }
 0x5b4   : > { %2889 = vmin.xlane.f32.xlu0 %v2888_v12  ;;  %v2081_v35 = vmul.f32 1.442695, %v1974_v44  ;;  %v11292_v44 = vld [vmem:[#allocation60_spill] sm:$0xff]  ;;  %vm2519_vm11 = vcmp.eq.f32.partialorder %v11294_v36, %v11293_v4 }
 0x5b5   : > { %v2996_v13 = vsel %vm2932_vm7, %v2510_v14, %v2964_v49  ;;  %v2760_v14 = vsel %vm2759_vm8, %v2755_v37, inf  ;;  %v11291_v37 = vld [vmem:[#allocation55_spill] sm:$0xff] }
 0x5b6   : > { %3028 = vst.msk [vmem:[#allocation6 + $0x28] sm:$0xff] %vm10904_vm4, %v2996_v13  ;;  %v2513_v13 = vand.u32 65535, %v11286_v16  ;;  %v2723_v16 = vcvt.s32.f32 %v2721_v41  ;;  %6545 = vpow2.f32 %v2081_v35  ;;  %v11297_v35 = vld [vmem:[#allocation251_spill] sm:$0xff] }
 0x5b8   : > { %2130 = vadd.xlane.f32.xlu1 %v2129_v46  ;;  %v2191_v12 = vpop.xlane.xlu0 %2190  ;;  %v11290_v46 = vld [vmem:[#allocation216_spill] sm:$0xff]  ;;  %v2515_v48 = vcvt.s32.f32 %v2513_v13  ;;  %v6544_v36 = vpop.eup %6543 }
 0x5b9   : > { %v2241_v49 = vadd.f32 %v2191_v12, %v1761_v55  ;;  %vm2727_vm9 = vcmp.eq.f32.partialorder %v11290_v46, %v11289_v19  ;;  %v1618_v55 = vld [vmem:[#allocation4 + $0x38] sm:$0xff]  ;;  %v1972_v12 = vsub.f32 %v11291_v37, %v11287_v31  ;;  %v1944_v46 = vsub.f32 %v11295_v22, %v8767_v59 }
 0x5ba   : > { %2761 = vmin.xlane.f32.xlu2 %v2760_v14  ;;  %v2728_v26 = vsel %vm2727_vm9, %v2723_v16, inf  ;;  %v1746_v31 = vmul.f32 %v6542_v34, %v1618_v55  ;;  %v2075_v37 = vmul.f32 1.442695, %v1971_v63  ;;  %v2520_v8 = vsel %vm2519_vm11, %v2515_v48, inf  ;;  %v11299_v16 = vld [vmem:[#allocation241_spill] sm:$0xff]  ;;  %v11300_v34 = vld [vmem:[#allocation226_spill] sm:$0xff] }
 0x5bb   : > { %2274 = vst.msk [vmem:[#allocation4 + $0xb0] sm:$0xff] %vm10904_vm4, %v2241_v49  ;;  %v1943_v49 = vsub.f32 %v11292_v44, %v8767_v59  ;;  %v2077_v41 = vmul.f32 1.442695, %v1972_v12  ;;  %v11298_v59 = vld [vmem:[#allocation56_spill] sm:$0xff]  ;;  %vm2487_vm12 = vcmp.eq.f32.partialorder %v11300_v34, %v11299_v16  ;;  %v11301_v63 = vld [vmem:[#allocation57_spill] sm:$0xff]  ;;  %v2483_v12 = vcvt.s32.f32 %v2481_v17  ;;  %v11302_v48 = vld [vmem:[#allocation179_spill] sm:$0xff] }
 0x5bc   : > { %v8959_v5 = vpop.xlane.xlu2 %2645  ;;  %6547 = vpow2.f32 %v2075_v37  ;;  %v1942_v55 = vsub.f32 %v11301_v63, %v11297_v35  ;;  %v2797_v34 = vshll.u32 %v2796_v60, 16  ;;  %v11305_v63 = vld [vmem:[#allocation158_spill] sm:$0xff]  ;;  %v11308_v60 = vld [vmem:[#allocation184_spill] sm:$0xff] }
 0x5bd   : > { %vm2647_vm10 = vcmp.eq.f32.partialorder %v8795_v25, %v8959_v5  ;;  %v2019_v44 = vmul.f32 1.442695, %v1943_v49  ;;  %6549 = vpow2.f32 %v2077_v41  ;;  %v11303_v49 = vld [vmem:[#allocation175_spill] sm:$0xff]  ;;  %v2488_v37 = vsel %vm2487_vm12, %v2483_v12, inf }
 0x5be   : > { %v2648_v14 = vsel %vm2647_vm10, %v2643_v10, inf  ;;  %v2021_v10 = vmul.f32 1.442695, %v1944_v46  ;;  %v1668_v46 = vsub.f32 %v11303_v49, %v11302_v48  ;;  %v11309_v48 = vld [vmem:[#allocation23_spill] sm:$0xff] }
 0x5bf   : > { %2649 = vmin.xlane.f32.xlu0 %v2648_v14  ;;  %v1941_v14 = vsub.f32 %v11298_v59, %v11297_v35  ;;  %6551 = vpow2.f32 %v2019_v44  ;;  %v11304_v44 = vld [vmem:[#allocation157_spill] sm:$0xff] }
 0x5c0   : > { %2729 = vmin.xlane.f32.xlu1 %v2728_v26  ;;  %v2146_v25 = vpop.xlane.xlu0 %2145  ;;  %v6546_v26 = vpop.eup %6545  ;;  %6553 = vpow2.f32 %v2021_v10  ;;  %v1725_v59 = vmul.f32 1.442695, %v1668_v46  ;;  %vm2950_vm13 = vcmp.gt.f32.partialorder %v11305_v63, %v11304_v44  ;;  %v8989_v10 = vld [vmem:[%s10495_s3 + $0x60] sm:$0xff] }
 0x5c1   : > { %v2226_v13 = vadd.f32 %v2146_v25, %v1746_v31  ;;  %v2015_v31 = vmul.f32 1.442695, %v1941_v14  ;;  %11306 = vst [vmem:[#allocation105_spill] sm:$0xff] %v8989_v10  ;;  %v2556_v14 = vcvt.f32.s32 %v8808_v7  ;;  %v3131_v63 = vsub.s32 %v8989_v10, %v11309_v48 }
 0x5c2   : > { %2521 = vmin.xlane.f32.xlu2 %v2520_v8  ;;  %v2017_v8 = vmul.f32 1.442695, %v1942_v55  ;;  %v6548_v41 = vpop.eup %6547  ;;  %v11307_v55 = vld [vmem:[#allocation185_spill] sm:$0xff] }
 0x5c3   : > { %2259 = vst.msk [vmem:[#allocation4 + $0x38] sm:$0xff] %vm10904_vm4, %v2226_v13  ;;  %v2186_v13 = vadd.f32 %v6546_v26, %v6544_v36  ;;  %v6550_v35 = vpop.eup %6549  ;;  %6555 = vpow2.f32 %v2015_v31  ;;  %v1653_v12 = vsub.f32 %v11308_v60, %v11307_v55  ;;  %v2557_v31 = vshll.u32 %v2556_v14, 16  ;;  %v11310_v55 = vld [vmem:[#allocation167_spill] sm:$0xff] }
 0x5c4   : > { %6557 = vpow2.f32 %v2017_v8 }
 0x5c5   : > { %v6552_v17 = vpop.eup %6551  ;;  %6559 = vpow2.f32 %v1725_v59  ;;  %v1695_v8 = vmul.f32 1.442695, %v1653_v12  ;;  %v1636_v59 = vld [vmem:[#allocation4 + $0xc8] sm:$0xff] }
 0x5c6   : > { %v6554_v36 = vpop.eup %6553  ;;  %v11314_v12 = vld [vmem:[#allocation71_spill] sm:$0xff] }
 0x5c7   : > { %6561 = vpow2.f32 %v1695_v8  ;;  %v11317_v8 = vld [vmem:[#allocation243_spill] sm:$0xff] }
 0x5c8   : > { %2489 = vmin.xlane.f32.xlu1 %v2488_v37  ;;  %v2794_v25 = vpop.xlane.xlu0 %2793  ;;  %v2141_v37 = vadd.f32 %v6554_v36, %v6552_v17  ;;  %v11313_v17 = vld [vmem:[#allocation70_spill] sm:$0xff] }
 0x5c9   : > { %v2795_v22 = vcvt.f32.s32 %v2794_v25  ;;  %v1979_v36 = vsub.f32 %v11313_v17, %v8798_v56 }
 0x5ca   : > { %2187 = vadd.xlane.f32.xlu2 %v2186_v13  ;;  %v6556_v13 = vpop.eup %6555 }
 0x5cb   : > { %v2798_v23 = vadd.s32 %v2797_v34, %v2795_v22  ;;  %v2183_v22 = vadd.f32 %v6550_v35, %v6548_v41  ;;  %v2967_v34 = vld [vmem:[#allocation6 + $0x40] sm:$0xff]  ;;  %v6558_v7 = vpop.eup %6557  ;;  %v9002_v41 = vld [vmem:[%s10495_s3 + $0x78] sm:$0xff] }
 0x5cc   : > { %11312 = vst [vmem:[#allocation109_spill] sm:$0xff] %v9002_v41  ;;  %v2138_v14 = vadd.f32 %v6558_v7, %v6556_v13  ;;  %v11318_v7 = vld [vmem:[#allocation66_spill] sm:$0xff] }
 0x5cd   : > { %v3014_v26 = vsel %vm2950_vm13, %v2798_v23, %v2982_v27  ;;  %v6560_v23 = vpop.eup %6559 }
 0x5ce   : > { %3046 = vst.msk [vmem:[#allocation6 + $0xb8] sm:$0xff] %vm10904_vm4, %v3014_v26  ;;  %v11311_v26 = vld [vmem:[#allocation170_spill] sm:$0xff]  ;;  %v6562_v13 = vpop.eup %6561 }
 0x5cf   : > { %vm2935_vm14 = vcmp.gt.f32.partialorder %v11311_v26, %v11310_v55 }
 0x5d0   : > { %2184 = vadd.xlane.f32.xlu1 %v2183_v22  ;;  %v2554_v46 = vpop.xlane.xlu0 %2553  ;;  %v1980_v22 = vsub.f32 %v11314_v12, %v8798_v56  ;;  %v1977_v56 = vsub.f32 %v11318_v7, %v11317_v8  ;;  %v11324_v7 = vld [vmem:[#allocation230_spill] sm:$0xff] }
 0x5d1   : > { %v2555_v25 = vcvt.f32.s32 %v2554_v46  ;;  %v3134_v46 = vsub.s32 %v9002_v41, %v11309_v48  ;;  %v2529_v60 = vand.u32 65535, %v11324_v7  ;;  %v2844_v7 = vcvt.f32.s32 %v8826_v18 }
 0x5d2   : > { %2142 = vadd.xlane.f32.xlu2 %v2141_v37  ;;  %v2093_v10 = vmul.f32 1.442695, %v1980_v22  ;;  %v11323_v22 = vld [vmem:[#allocation73_spill] sm:$0xff]  ;;  %v2087_v41 = vmul.f32 1.442695, %v1977_v56 }
 0x5d3   : > { %v2558_v27 = vadd.s32 %v2557_v31, %v2555_v25  ;;  %3188 = vperm.xlu0 %6469, %v3131_v63   ;;  %v1764_v63 = vmul.f32 %v6560_v23, %v1636_v59  ;;  %v11315_v25 = vld [vmem:[#allocation227_spill] sm:$0xff]  ;;  %v11319_v23 = vld [vmem:[#allocation242_spill] sm:$0xff]  ;;  %v11320_v59 = vld [vmem:[#allocation228_spill] sm:$0xff] }
 0x5d4   : > { %v2769_v26 = vand.u32 65535, %v11315_v25  ;;  %vm2775_vm15 = vcmp.eq.f32.partialorder %v11320_v59, %v11319_v23 }
 0x5d5   : > { %v2999_v35 = vsel %vm2935_vm14, %v2558_v27, %v2967_v34  ;;  %v2091_v34 = vmul.f32 1.442695, %v1979_v36  ;;  %v11316_v27 = vld [vmem:[#allocation258_spill] sm:$0xff]  ;;  %v11322_v36 = vld [vmem:[#allocation72_spill] sm:$0xff] }
 0x5d6   : > { %3031 = vst.msk [vmem:[#allocation6 + $0x40] sm:$0xff] %vm10904_vm4, %v2999_v35  ;;  %v1621_v35 = vld [vmem:[#allocation4 + $0x50] sm:$0xff]  ;;  %v1949_v25 = vsub.f32 %v11322_v36, %v8820_v40 }
 0x5d7   : > { %6563 = vpow2.f32 %v2091_v34 }
 0x5d8   : > { %2139 = vadd.xlane.f32.xlu1 %v2138_v14  ;;  %v2200_v37 = vpop.xlane.xlu0 %2199  ;;  %v11321_v14 = vld [vmem:[#allocation67_spill] sm:$0xff]  ;;  %6565 = vpow2.f32 %v2093_v10  ;;  %v2031_v49 = vmul.f32 1.442695, %v1949_v25  ;;  %v11325_v10 = vld [vmem:[#allocation245_spill] sm:$0xff] }
 0x5d9   : > { %v2244_v31 = vadd.f32 %v2200_v37, %v1764_v63  ;;  %v1978_v63 = vsub.f32 %v11321_v14, %v11317_v8  ;;  %v2771_v37 = vcvt.s32.f32 %v2769_v26  ;;  %6567 = vpow2.f32 %v2087_v41  ;;  %v11326_v8 = vld [vmem:[#allocation68_spill] sm:$0xff]  ;;  %v11331_v25 = vld [vmem:[#allocation193_spill] sm:$0xff] }
 0x5da   : > { %2809 = vmin.xlane.f32.xlu2 %v11316_v27  ;;  %v1749_v27 = vmul.f32 %v6562_v13, %v1621_v35  ;;  %v11328_v13 = vld [vmem:[#allocation232_spill] sm:$0xff] }
 0x5db   : > { %2277 = vst.msk [vmem:[#allocation4 + $0xc8] sm:$0xff] %vm10904_vm4, %v2244_v31  ;;  %3197 = vperm.xlu0 %6469, %v3134_v46   ;;  %v1950_v46 = vsub.f32 %v11323_v22, %v8820_v40  ;;  %v2776_v31 = vsel %vm2775_vm15, %v2771_v37, inf  ;;  %v2089_v17 = vmul.f32 1.442695, %v1978_v63  ;;  %v1947_v40 = vsub.f32 %v11326_v8, %v11325_v10  ;;  %v11327_v37 = vld [vmem:[#allocation244_spill] sm:$0xff]  ;;  %v11333_v8 = vld [vmem:[#allocation181_spill] sm:$0xff] }
 0x5dc   : > { %vm2535_vm0 = vcmp.eq.f32.partialorder %v11328_v13, %v11327_v37  ;;  %v2531_v63 = vcvt.s32.f32 %v2529_v60 }
 0x5dd   : > { %v2033_v26 = vmul.f32 1.442695, %v1950_v46  ;;  %v6564_v34 = vpop.eup %6563  ;;  %6569 = vpow2.f32 %v2089_v17  ;;  %v2845_v17 = vshll.u32 %v2844_v7, 16 }
 0x5de   : > { %v6566_v56 = vpop.eup %6565  ;;  %6571 = vpow2.f32 %v2031_v49  ;;  %v2536_v41 = vsel %vm2535_vm0, %v2531_v63, inf }
 0x5df   : > { %6573 = vpow2.f32 %v2033_v26  ;;  %v2195_v13 = vadd.f32 %v6566_v56, %v6564_v34  ;;  %v6568_v36 = vpop.eup %6567 }
 0x5e0   : > { %2777 = vmin.xlane.f32.xlu1 %v2776_v31  ;;  %v2155_v12 = vpop.xlane.xlu0 %2154  ;;  %v9036_v31 = vpop.xlane.xlu1 %2901 }
 0x5e1   : > { %v2229_v59 = vadd.f32 %v2155_v12, %v1749_v27  ;;  %v11329_v12 = vld [vmem:[#allocation69_spill] sm:$0xff]  ;;  %v2027_v27 = vmul.f32 1.442695, %v1947_v40  ;;  %v2604_v40 = vcvt.f32.s32 %v8844_v20  ;;  %vm2903_vm6 = vcmp.eq.f32.partialorder %v8812_v24, %v9036_v31 }
 0x5e2   : > { %2569 = vmin.xlane.f32.xlu2 %v8707_v61  ;;  %v1948_v35 = vsub.f32 %v11329_v12, %v11325_v10  ;;  %v11330_v61 = vld [vmem:[#allocation197_spill] sm:$0xff] }
 0x5e3   : > { %2262 = vst.msk [vmem:[#allocation4 + $0x50] sm:$0xff] %vm10904_vm4, %v2229_v59  ;;  %v1671_v46 = vsub.f32 %v11331_v25, %v11330_v61  ;;  %v2985_v12 = vld [vmem:[#allocation6 + $0xd0] sm:$0xff]  ;;  %v6570_v18 = vpop.eup %6569  ;;  %6575 = vpow2.f32 %v2027_v27 }
 0x5e4   : > { %v2029_v14 = vmul.f32 1.442695, %v1948_v35  ;;  %v6572_v60 = vpop.eup %6571  ;;  %v11332_v61 = vld [vmem:[#allocation180_spill] sm:$0xff]  ;;  %v2192_v56 = vadd.f32 %v6570_v18, %v6568_v36  ;;  %v11337_v25 = vld [vmem:[#allocation189_spill] sm:$0xff]  ;;  %v1639_v36 = vld [vmem:[#allocation4 + $0xe0] sm:$0xff] }
 0x5e5   : > { %v1731_v10 = vmul.f32 1.442695, %v1671_v46  ;;  %vm2953_vm1 = vcmp.gt.f32.partialorder %v11333_v8, %v11332_v61  ;;  %v6574_v26 = vpop.eup %6573  ;;  %v2605_v46 = vshll.u32 %v2604_v40, 16 }
 0x5e6   : > { %6577 = vpow2.f32 %v2029_v14  ;;  %v2150_v7 = vadd.f32 %v6574_v26, %v6572_v60  ;;  %v11338_v26 = vld [vmem:[#allocation84_spill] sm:$0xff] }
 0x5e7   : > { %6579 = vpow2.f32 %v1731_v10  ;;  %v9046_v10 = vpop.permute.xlu2 %1848  ;;  %v1985_v40 = vsub.f32 %v11338_v26, %v8831_v11  ;;  %v11356_v26 = vld [vmem:[#allocation130_spill] sm:$0xff] }
 0x5e8   : > { %2537 = vmin.xlane.f32.xlu1 %v2536_v41  ;;  %v2842_v59 = vpop.xlane.xlu0 %2841  ;;  %v1929_v34 = vpop.permute.xlu1 %1928 }
 0x5e9   : > { %v2843_v22 = vcvt.f32.s32 %v2842_v59  ;;  %v6576_v59 = vpop.eup %6575 }
 0x5ea   : > { %2196 = vadd.xlane.f32.xlu2 %v2195_v13  ;;  %v11335_v13 = vld [vmem:[#allocation164_spill] sm:$0xff] }
 0x5eb   : > { %v2846_v49 = vadd.s32 %v2845_v17, %v2843_v22  ;;  %v11334_v22 = vld [vmem:[#allocation163_spill] sm:$0xff]  ;;  %v1994_v8 = vsub.f32 %v11335_v13, %v1929_v34  ;;  %v2970_v17 = vld [vmem:[#allocation6 + $0x58] sm:$0xff] }
 0x5ec   : > { %v1993_v41 = vsub.f32 %v11334_v22, %v1929_v34  ;;  %v6578_v14 = vpop.eup %6577 }
 0x5ed   : > { %v3017_v63 = vsel %vm2953_vm1, %v2846_v49, %v2985_v12  ;;  %v6580_v12 = vpop.eup %6579  ;;  %v11336_v49 = vld [vmem:[#allocation186_spill] sm:$0xff]  ;;  %v2147_v34 = vadd.f32 %v6578_v14, %v6576_v59 }
 0x5ee   : > { %3049 = vst.msk [vmem:[#allocation6 + $0xd0] sm:$0xff] %vm10904_vm4, %v3017_v63  ;;  %vm2938_vm2 = vcmp.gt.f32.partialorder %v11337_v25, %v11336_v49  ;;  %v2119_v18 = vmul.f32 1.442695, %v1993_v41  ;;  %v2121_v63 = vmul.f32 1.442695, %v1994_v8  ;;  %v1767_v25 = vmul.f32 %v6580_v12, %v1639_v36  ;;  %v11343_v59 = vld [vmem:[#allocation254_spill] sm:$0xff] }
 0x5ef   : > { %v11344_v14 = vld [vmem:[#allocation78_spill] sm:$0xff] }
 0x5f0   : > { %2193 = vadd.xlane.f32.xlu1 %v2192_v56  ;;  %v2602_v35 = vpop.xlane.xlu0 %2601  ;;  %v11339_v56 = vld [vmem:[#allocation115_spill] sm:$0xff]  ;;  %6581 = vpow2.f32 %v2119_v18 }
 0x5f1   : > { %v2603_v27 = vcvt.f32.s32 %v2602_v35  ;;  %v11340_v35 = vld [vmem:[#allocation118_spill] sm:$0xff]  ;;  %6583 = vpow2.f32 %v2121_v63 }
 0x5f2   : > { %2151 = vadd.xlane.f32.xlu2 %v2150_v7  ;;  %v11341_v7 = vsub.f32 %v11339_v56, %v11340_v35 }
 0x5f3   : > { %v2606_v20 = vadd.s32 %v2605_v46, %v2603_v27  ;;  %v11342_v27 = vld [vmem:[#allocation86_spill] sm:$0xff] }
 0x5f4   : > { %v1677_v46 = vmul.f32 1.442695, %v11341_v7  ;;  %v1986_v13 = vsub.f32 %v11342_v27, %v8831_v11  ;;  %v11345_v11 = vld [vmem:[#allocation80_spill] sm:$0xff] }
 0x5f5   : > { %v3002_v60 = vsel %vm2938_vm2, %v2606_v20, %v2970_v17  ;;  %v2428_v17 = vcvt.f32.s32 %v11238_v29  ;;  %v2103_v20 = vmul.f32 1.442695, %v1985_v40  ;;  %v1984_v12 = vsub.f32 %v11345_v11, %v11343_v59  ;;  %v11346_v7 = vld [vmem:[#allocation248_spill] sm:$0xff]  ;;  %v11357_v11 = vld [vmem:[#allocation127_spill] sm:$0xff] }
 0x5f6   : > { %3034 = vst.msk [vmem:[#allocation6 + $0x58] sm:$0xff] %vm10904_vm4, %v3002_v60  ;;  %v2105_v8 = vmul.f32 1.442695, %v1986_v13  ;;  %6585 = vpow2.f32 %v1677_v46  ;;  %v1983_v60 = vsub.f32 %v11344_v14, %v11343_v59  ;;  %v1955_v29 = vsub.f32 %v11205_v53, %v8918_v58  ;;  %v6582_v18 = vpop.eup %6581  ;;  %v2959_v13 = vld [vmem:[#allocation6] sm:$0xff] }
 0x5f7   : > { %6587 = vpow2.f32 %v2103_v20  ;;  %v6584_v40 = vpop.eup %6583 }
 0x5f8   : > { %2148 = vadd.xlane.f32.xlu1 %v2147_v34  ;;  %v2209_v22 = vpop.xlane.xlu0 %2208  ;;  %v2429_v34 = vshll.u32 %v2428_v17, 16  ;;  %6589 = vpow2.f32 %v2105_v8  ;;  %v2099_v63 = vmul.f32 1.442695, %v1983_v60  ;;  %v1612_v17 = vld [vmem:[#allocation4 + $0x8] sm:$0xff]  ;;  %v2043_v20 = vmul.f32 1.442695, %v1955_v29 }
 0x5f9   : > { %v2247_v41 = vadd.f32 %v2209_v22, %v1767_v25  ;;  %v2101_v25 = vmul.f32 1.442695, %v1984_v12  ;;  %v11348_v60 = vld [vmem:[#allocation260_spill] sm:$0xff]  ;;  %v11350_v12 = vld [vmem:[#allocation82_spill] sm:$0xff] }
 0x5fa   : > { %2857 = vmin.xlane.f32.xlu2 %v8791_v28  ;;  %v1956_v28 = vsub.f32 %v11206_v52, %v8918_v58  ;;  %v2216_v58 = vadd.f32 %v6584_v40, %v6582_v18  ;;  %6591 = vpow2.f32 %v2099_v63  ;;  %v11351_v18 = vld [vmem:[#allocation256_spill] sm:$0xff] }
 0x5fb   : > { %2280 = vst.msk [vmem:[#allocation4 + $0xe0] sm:$0xff] %vm10904_vm4, %v2247_v41  ;;  %v11347_v41 = vld [vmem:[#allocation108_spill] sm:$0xff]  ;;  %6593 = vpow2.f32 %v2101_v25 }
 0x5fc   : > { %v6586_v46 = vpop.eup %6585  ;;  %vm2927_vm3 = vcmp.gt.f32.partialorder %v11347_v41, %v11219_v3  ;;  %v2045_v8 = vmul.f32 1.442695, %v1956_v28  ;;  %v1954_v3 = vsub.f32 %v11350_v12, %v11348_v60  ;;  %6595 = vpow2.f32 %v2043_v20  ;;  %v11352_v25 = vld [vmem:[#allocation128_spill] sm:$0xff]  ;;  %v11353_v41 = vld [vmem:[#allocation125_spill] sm:$0xff] }
 0x5fd   : > { %v2426_v36 = vpop.xlane.xlu2 %2425 }
 0x5fe   : > { %v2427_v22 = vcvt.f32.s32 %v2426_v36  ;;  %v6588_v36 = vpop.eup %6587  ;;  %6597 = vpow2.f32 %v2045_v8  ;;  %v2041_v40 = vmul.f32 1.442695, %v1954_v3  ;;  %v11354_v8 = vld [vmem:[#allocation202_spill] sm:$0xff] }
 0x5ff   : > { %v6590_v27 = vpop.eup %6589 }
 0x600   : > { %v2430_v35 = vadd.s32 %v2429_v34, %v2427_v22  ;;  %2825 = vmin.xlane.f32.xlu1 %v11346_v7  ;;  %v11349_v34 = vld [vmem:[#allocation81_spill] sm:$0xff]  ;;  %v1740_v7 = vmul.f32 %v6586_v46, %v1612_v17  ;;  %v2204_v28 = vadd.f32 %v6590_v27, %v6588_v36  ;;  %v6592_v63 = vpop.eup %6591  ;;  %v1661_v17 = vsub.f32 %v11353_v41, %v11352_v25 }
 0x601   : > { %v1953_v22 = vsub.f32 %v11349_v34, %v11348_v60  ;;  %v6594_v46 = vpop.eup %6593 }
 0x602   : > { %v2991_v59 = vsel %vm2927_vm3, %v2430_v35, %v2959_v13  ;;  %2617 = vmin.xlane.f32.xlu2 %v8874_v21  ;;  %v2716_v35 = vcvt.f32.s32 %v11250_v54  ;;  %v6596_v20 = vpop.eup %6595  ;;  %v1711_v3 = vmul.f32 1.442695, %v1661_v17  ;;  %v11355_v54 = vld [vmem:[#allocation122_spill] sm:$0xff]  ;;  %v2897_v17 = vand.u32 65535, %v8800_v50 }
 0x603   : > { %3023 = vst.msk [vmem:[#allocation6] sm:$0xff] %vm10904_vm4, %v2991_v59  ;;  %v2039_v21 = vmul.f32 1.442695, %v1953_v22 }
 0x604   : > { %v6598_v60 = vpop.eup %6597  ;;  %v2717_v27 = vshll.u32 %v2716_v35, 16  ;;  %v11358_v35 = vld [vmem:[#allocation126_spill] sm:$0xff] }
 0x605   : > { %2217 = vadd.xlane.f32.xlu0 %v2216_v58  ;;  %v2128_v29 = vpop.xlane.xlu2 %2127  ;;  %6599 = vpow2.f32 %v2039_v21  ;;  %v1656_v58 = vsub.f32 %v11354_v8, %v11210_v2  ;;  %v2159_v21 = vadd.f32 %v6598_v60, %v6596_v20  ;;  %v1646_v2 = vsub.f32 %v11357_v11, %v11356_v26 }
 0x606   : > { %v2220_v13 = vadd.f32 %v2128_v29, %v1740_v7  ;;  %6601 = vpow2.f32 %v2041_v40  ;;  %v2201_v7 = vadd.f32 %v6594_v46, %v6592_v63  ;;  %v1660_v29 = vsub.f32 %v11241_v9, %v11355_v54  ;;  %v9096_v9 = vld [vmem:[%s10495_s3 + $0x90] sm:$0xff] }
 0x607   : > { %v2476_v40 = vcvt.f32.s32 %v11263_v39  ;;  %vm2945_vm5 = vcmp.gt.f32.partialorder %v11358_v35, %v11353_v41  ;;  %6603 = vpow2.f32 %v1711_v3  ;;  %v1681_v41 = vmul.f32 1.442695, %v1646_v2 }
 0x608   : > { %2253 = vst.msk [vmem:[#allocation4 + $0x8] sm:$0xff] %vm10904_vm4, %v2220_v13  ;;  %2585 = vmin.xlane.f32.xlu1 %v11351_v18  ;;  %v2977_v13 = vld [vmem:[#allocation6 + $0x90] sm:$0xff]  ;;  %v2684_v18 = vcvt.f32.s32 %v11257_v62  ;;  %v1709_v26 = vmul.f32 1.442695, %v1660_v29  ;;  %v2444_v2 = vcvt.f32.s32 %v11269_v43  ;;  %v1624_v43 = vld [vmem:[#allocation4 + $0x68] sm:$0xff] }
 0x609   : > { %v2477_v60 = vshll.u32 %v2476_v40, 16  ;;  %v11359_v29 = vld [vmem:[#allocation124_spill] sm:$0xff] }
 0x60a   : > { %2205 = vadd.xlane.f32.xlu2 %v2204_v28  ;;  %v1701_v28 = vmul.f32 1.442695, %v1656_v58  ;;  %v2685_v39 = vshll.u32 %v2684_v18, 16  ;;  %v1992_v18 = vsub.f32 %v11218_v38, %v8942_v51 }
 0x60b   : > { %v9081_v59 = vpop.xlane.xlu1 %2661  ;;  %v6600_v63 = vpop.eup %6599 }
 0x60c   : > { %v6602_v62 = vpop.eup %6601  ;;  %6605 = vpow2.f32 %v1701_v28  ;;  %v11360_v28 = vld [vmem:[#allocation114_spill] sm:$0xff]  ;;  %vm2663_vm9 = vcmp.eq.f32.partialorder %v8893_v30, %v9081_v59 }
 0x60d   : > { %v2714_v22 = vpop.xlane.xlu2 %2713  ;;  %v2156_v3 = vadd.f32 %v6602_v62, %v6600_v63  ;;  %vm2943_vm7 = vcmp.gt.f32.partialorder %v11360_v28, %v11223_v33  ;;  %v11361_v63 = vld [vmem:[#allocation129_spill] sm:$0xff]  ;;  %6607 = vpow2.f32 %v1709_v26  ;;  %v11362_v26 = vld [vmem:[#allocation98_spill] sm:$0xff] }
 0x60e   : > { %v2715_v36 = vcvt.f32.s32 %v2714_v22  ;;  %v1991_v22 = vsub.f32 %v11217_v15, %v8942_v51  ;;  %vm2930_vm8 = vcmp.gt.f32.partialorder %v11361_v63, %v11357_v11  ;;  %v1629_v33 = vld [vmem:[#allocation4 + $0x90] sm:$0xff]  ;;  %6609 = vpow2.f32 %v1681_v41 }
 0x60f   : > { %v2657_v11 = vand.u32 65535, %v8884_v45  ;;  %v1961_v45 = vsub.f32 %v11237_v57, %v9046_v10 }
 0x610   : > { %v2718_v25 = vadd.s32 %v2717_v27, %v2715_v36  ;;  %2202 = vadd.xlane.f32.xlu1 %v2201_v7  ;;  %v2975_v27 = vld [vmem:[#allocation6 + $0x80] sm:$0xff]  ;;  %v3137_v7 = vsub.s32 %v9096_v9, %v11309_v48 }
 0x612   : > { %v3009_v46 = vsel %vm2945_vm5, %v2718_v25, %v2977_v13  ;;  %2160 = vadd.xlane.f32.xlu2 %v2159_v21  ;;  %v1645_v13 = vsub.f32 %v11246_v1, %v11359_v29  ;;  %v2962_v25 = vld [vmem:[#allocation6 + $0x18] sm:$0xff]  ;;  %v2899_v21 = vcvt.s32.f32 %v2897_v17  ;;  %v9122_v17 = vld [vmem:[%s10495_s3 + $0xa8] sm:$0xff] }
 0x613   : > { %3041 = vst.msk [vmem:[#allocation6 + $0x90] sm:$0xff] %vm10904_vm4, %v3009_v46  ;;  %v2682_v20 = vpop.xlane.xlu1 %2681  ;;  %v6604_v46 = vpop.eup %6603  ;;  %v3140_v29 = vsub.s32 %v9122_v17, %v11309_v48 }
 0x614   : > { %v2683_v58 = vcvt.f32.s32 %v2682_v20  ;;  %v2115_v20 = vmul.f32 1.442695, %v1991_v22  ;;  %v2904_v1 = vsel %vm2903_vm6, %v2899_v21, inf  ;;  %v6606_v51 = vpop.eup %6605  ;;  %v1989_v22 = vsub.f32 %v11362_v26, %v8743_v6  ;;  %v11365_v21 = vld [vmem:[#allocation117_spill] sm:$0xff] }
 0x615   : > { %v2474_v36 = vpop.xlane.xlu2 %2473  ;;  %v1752_v41 = vmul.f32 %v6606_v51, %v1624_v43  ;;  %v6608_v28 = vpop.eup %6607  ;;  %vm2928_vm10 = vcmp.gt.f32.partialorder %v11365_v21, %v11339_v56  ;;  %v1614_v51 = vld [vmem:[#allocation4 + $0x18] sm:$0xff]  ;;  %v2055_v56 = vmul.f32 1.442695, %v1961_v45 }
 0x616   : > { %v2686_v50 = vadd.s32 %v2685_v39, %v2683_v58  ;;  %v2475_v54 = vcvt.f32.s32 %v2474_v36  ;;  %v1679_v39 = vmul.f32 1.442695, %v1645_v13  ;;  %v2117_v58 = vmul.f32 1.442695, %v1992_v18 }
 0x617   : > { %v1757_v36 = vmul.f32 %v6604_v46, %v1629_v33  ;;  %6611 = vpow2.f32 %v2115_v20  ;;  %v6610_v46 = vpop.eup %6609  ;;  %v2111_v20 = vmul.f32 1.442695, %v1989_v22  ;;  %v11366_v33 = vld [vmem:[#allocation262_spill] sm:$0xff] }
 0x618   : > { %v3007_v40 = vsel %vm2943_vm7, %v2686_v50, %v2975_v27  ;;  %v2478_v35 = vadd.s32 %v2477_v60, %v2475_v54  ;;  %2157 = vadd.xlane.f32.xlu1 %v2156_v3  ;;  %v2445_v60 = vshll.u32 %v2444_v2, 16  ;;  %v2960_v54 = vld [vmem:[#allocation6 + $0x8] sm:$0xff]  ;;  %6613 = vpow2.f32 %v2117_v58  ;;  %v9150_v58 = vld [vmem:[%s10495_s3 + $0xc0] sm:$0xff] }
 0x619   : > { %3039 = vst.msk [vmem:[#allocation6 + $0x80] sm:$0xff] %vm10904_vm4, %v3007_v40  ;;  %3206 = vperm.xlu0 %6469, %v3137_v7   ;;  %v11363_v7 = vld [vmem:[#allocation100_spill] sm:$0xff]  ;;  %v2659_v40 = vcvt.s32.f32 %v2657_v11  ;;  %6615 = vpow2.f32 %v1679_v39  ;;  %v1742_v22 = vmul.f32 %v6610_v46, %v1614_v51  ;;  %v2892_v39 = vcvt.f32.s32 %v8930_v47 }
 0x61a   : > { %v2994_v62 = vsel %vm2930_vm8, %v2478_v35, %v2962_v25  ;;  %2905 = vmin.xlane.f32.xlu2 %v2904_v1  ;;  %v1990_v50 = vsub.f32 %v11363_v7, %v8743_v6  ;;  %v11364_v25 = vld [vmem:[#allocation110_spill] sm:$0xff]  ;;  %v1628_v35 = vld [vmem:[#allocation4 + $0x88] sm:$0xff]  ;;  %11367 = vst [vmem:[#allocation112_spill] sm:$0xff] %v9150_v58  ;;  %6617 = vpow2.f32 %v2111_v20  ;;  %v3143_v45 = vsub.s32 %v9150_v58, %v11309_v48 }
 0x61b   : > { %3026 = vst.msk [vmem:[#allocation6 + $0x18] sm:$0xff] %vm10904_vm4, %v2994_v62  ;;  %v2442_v24 = vpop.xlane.xlu1 %2441  ;;  %v1962_v6 = vsub.f32 %v11364_v25, %v9046_v10  ;;  %v2664_v10 = vsel %vm2663_vm9, %v2659_v40, inf  ;;  %v1756_v43 = vmul.f32 %v6608_v28, %v1628_v35  ;;  %v2893_v47 = vshll.u32 %v2892_v39, 16  ;;  %v11371_v40 = vld [vmem:[#allocation88_spill] sm:$0xff] }
 0x61c   : > { %v2443_v27 = vcvt.f32.s32 %v2442_v24  ;;  %v2113_v62 = vmul.f32 1.442695, %v1990_v50  ;;  %v2988_v20 = vld [vmem:[#allocation6 + $0xe8] sm:$0xff] }
 0x61d   : > { %v2179_v3 = vpop.xlane.xlu2 %2178  ;;  %v6612_v11 = vpop.eup %6611  ;;  %v2057_v24 = vmul.f32 1.442695, %v1962_v6  ;;  %v1613_v6 = vld [vmem:[#allocation4 + $0x10] sm:$0xff] }
 0x61e   : > { %v2446_v13 = vadd.s32 %v2445_v60, %v2443_v27  ;;  %v2237_v18 = vadd.f32 %v2179_v3, %v1757_v36  ;;  %v11368_v27 = vld [vmem:[#allocation165_spill] sm:$0xff]  ;;  %v11369_v36 = vld [vmem:[#allocation102_spill] sm:$0xff]  ;;  %6619 = vpow2.f32 %v2113_v62 }
 0x61f   : > { %v2164_v2 = vpop.xlane.xlu0 %2163  ;;  %v1959_v30 = vsub.f32 %v11369_v36, %v11368_v27  ;;  %v11370_v3 = vld [vmem:[#allocation101_spill] sm:$0xff]  ;;  %6621 = vpow2.f32 %v2055_v56 }
 0x620   : > { %v2992_v63 = vsel %vm2928_vm10, %v2446_v13, %v2960_v54  ;;  %2270 = vst.msk [vmem:[#allocation4 + $0x90] sm:$0xff] %vm10904_vm4, %v2237_v18  ;;  %v2232_v1 = vadd.f32 %v2164_v2, %v1752_v41  ;;  %2873 = vmin.xlane.f32.xlu1 %v11366_v33  ;;  %v6614_v54 = vpop.eup %6613  ;;  %v1960_v41 = vsub.f32 %v11370_v3, %v11368_v27  ;;  %6623 = vpow2.f32 %v2057_v24  ;;  %v9166_v62 = vld [vmem:[%s10495_s3 + $0xd8] sm:$0xff] }
 0x621   : > { %3024 = vst.msk [vmem:[#allocation6 + $0x8] sm:$0xff] %vm10904_vm4, %v2992_v63  ;;  %3215 = vperm.xlu0 %6469, %v3140_v29   ;;  %v6616_v18 = vpop.eup %6615  ;;  %v2051_v21 = vmul.f32 1.442695, %v1959_v30  ;;  %v2213_v35 = vadd.f32 %v6614_v54, %v6612_v11  ;;  %v11373_v56 = vld [vmem:[#allocation145_spill] sm:$0xff]  ;;  %v11376_v11 = vld [vmem:[#allocation199_spill] sm:$0xff]  ;;  %v3146_v54 = vsub.s32 %v9166_v62, %v11309_v48 }
 0x622   : > { %2265 = vst.msk [vmem:[#allocation4 + $0x68] sm:$0xff] %vm10904_vm4, %v2232_v1  ;;  %2665 = vmin.xlane.f32.xlu2 %v2664_v10  ;;  %v2053_v46 = vmul.f32 1.442695, %v1960_v41  ;;  %v6618_v63 = vpop.eup %6617  ;;  %v2764_v1 = vcvt.f32.s32 %v11282_v0  ;;  %v1741_v51 = vmul.f32 %v6616_v18, %v1613_v6  ;;  %v2652_v18 = vcvt.f32.s32 %v8959_v5  ;;  %v9186_v5 = vld [vmem:[%s10495_s3 + $0xf0] sm:$0xff] }
 0x623   : > { %v2176_v60 = vpop.xlane.xlu1 %2175  ;;  %11372 = vst [vmem:[#allocation116_spill] sm:$0xff] %v9166_v62  ;;  %6625 = vpow2.f32 %v2051_v21  ;;  %v2732_v6 = vcvt.f32.s32 %v11289_v19 }
 0x624   : > { %v2236_v50 = vadd.f32 %v2176_v60, %v1756_v43  ;;  %v6620_v10 = vpop.eup %6619  ;;  %v11374_v43 = vld [vmem:[#allocation142_spill] sm:$0xff]  ;;  %6627 = vpow2.f32 %v2053_v46  ;;  %v2765_v41 = vshll.u32 %v2764_v1, 16  ;;  %11379 = vst [vmem:[#allocation259_spill] sm:$0xff] %v9186_v5 }
 0x625   : > { %v2134_v29 = vpop.xlane.xlu2 %2133  ;;  %v1664_v24 = vsub.f32 %v11374_v43, %v11373_v56  ;;  %v11375_v60 = vld [vmem:[#allocation198_spill] sm:$0xff]  ;;  %v6622_v27 = vpop.eup %6621 }
 0x626   : > { %2269 = vst.msk [vmem:[#allocation4 + $0x88] sm:$0xff] %vm10904_vm4, %v2236_v50  ;;  %v2222_v13 = vadd.f32 %v2134_v29, %v1742_v22  ;;  %vm2956_vm11 = vcmp.gt.f32.partialorder %v11376_v11, %v11375_v60  ;;  %v6624_v39 = vpop.eup %6623 }
 0x627   : > { %v2890_v28 = vpop.xlane.xlu0 %2889 }
 0x628   : > { %2255 = vst.msk [vmem:[#allocation4 + $0x18] sm:$0xff] %vm10904_vm4, %v2222_v13  ;;  %v2891_v2 = vcvt.f32.s32 %v2890_v28  ;;  %2633 = vmin.xlane.f32.xlu1 %v11371_v40  ;;  %v1717_v13 = vmul.f32 1.442695, %v1664_v24  ;;  %v2980_v28 = vld [vmem:[#allocation6 + $0xa8] sm:$0xff]  ;;  %v2733_v24 = vshll.u32 %v2732_v6, 16  ;;  %v11385_v6 = vld [vmem:[#allocation133_spill] sm:$0xff] }
 0x629   : > { %3224 = vperm.xlu0 %6469, %v3143_v45   ;;  %v2210_v45 = vadd.f32 %v6620_v10, %v6618_v63  ;;  %v6626_v46 = vpop.eup %6625 }
 0x62a   : > { %v2894_v33 = vadd.s32 %v2893_v47, %v2891_v2  ;;  %2214 = vadd.xlane.f32.xlu2 %v2213_v35  ;;  %v2168_v47 = vadd.f32 %v6624_v39, %v6622_v27  ;;  %v11377_v2 = vld [vmem:[#allocation141_spill] sm:$0xff]  ;;  %v11378_v35 = vld [vmem:[#allocation143_spill] sm:$0xff]  ;;  %v6628_v19 = vpop.eup %6627  ;;  %6629 = vpow2.f32 %v1717_v13  ;;  %v11382_v27 = vld [vmem:[#allocation204_spill] sm:$0xff] }
 0x62b   : > { %v2131_v22 = vpop.xlane.xlu1 %2130  ;;  %v1663_v40 = vsub.f32 %v11274_v42, %v11377_v2  ;;  %vm2948_vm12 = vcmp.gt.f32.partialorder %v11378_v35, %v11374_v43  ;;  %v2653_v42 = vshll.u32 %v2652_v18, 16  ;;  %v2978_v39 = vld [vmem:[#allocation6 + $0x98] sm:$0xff]  ;;  %v2165_v18 = vadd.f32 %v6628_v19, %v6626_v46  ;;  %v11384_v13 = vld [vmem:[#allocation131_spill] sm:$0xff]  ;;  %v11387_v46 = vld [vmem:[#allocation152_spill] sm:$0xff] }
 0x62c   : > { %v3020_v30 = vsel %vm2956_vm11, %v2894_v33, %v2988_v20  ;;  %v2221_v0 = vadd.f32 %v2131_v22, %v1741_v51  ;;  %v2524_v20 = vcvt.f32.s32 %v11293_v4  ;;  %v11380_v33 = vld [vmem:[#allocation153_spill] sm:$0xff]  ;;  %v11381_v51 = vld [vmem:[#allocation148_spill] sm:$0xff]  ;;  %vm2946_vm14 = vcmp.gt.f32.partialorder %v11385_v6, %v11384_v13 }
 0x62d   : > { %3052 = vst.msk [vmem:[#allocation6 + $0xe8] sm:$0xff] %vm10904_vm4, %v3020_v30  ;;  %v2762_v50 = vpop.xlane.xlu2 %2761  ;;  %v1649_v10 = vsub.f32 %v11381_v51, %v11380_v33  ;;  %v2973_v4 = vld [vmem:[#allocation6 + $0x70] sm:$0xff]  ;;  %v1715_v22 = vmul.f32 1.442695, %v1663_v40  ;;  %v11383_v30 = vld [vmem:[#allocation206_spill] sm:$0xff]  ;;  %v2492_v2 = vcvt.f32.s32 %v11299_v16  ;;  %vm2933_vm15 = vcmp.gt.f32.partialorder %v11387_v46, %v11381_v51  ;;  %v1632_v19 = vld [vmem:[#allocation4 + $0xa8] sm:$0xff] }
 0x62e   : > { %2254 = vst.msk [vmem:[#allocation4 + $0x10] sm:$0xff] %vm10904_vm4, %v2221_v0  ;;  %v2763_v29 = vcvt.f32.s32 %v2762_v50  ;;  %vm2941_vm13 = vcmp.gt.f32.partialorder %v11383_v30, %v11382_v27  ;;  %v1631_v51 = vld [vmem:[#allocation4 + $0xa0] sm:$0xff]  ;;  %v11393_v46 = vld [vmem:[#allocation168_spill] sm:$0xff] }
 0x62f   : > { %6631 = vpow2.f32 %v1715_v22  ;;  %v11390_v22 = vld [vmem:[#allocation106_spill] sm:$0xff] }
 0x630   : > { %v2766_v21 = vadd.s32 %v2765_v41, %v2763_v29  ;;  %2211 = vadd.xlane.f32.xlu1 %v2210_v45  ;;  %v2525_v41 = vshll.u32 %v2524_v20, 16 }
 0x631   : > { %3233 = vperm.xlu0 %6469, %v3146_v54   ;;  %v3149_v54 = vsub.s32 %v9186_v5, %v11309_v48  ;;  %v11435_v5 = vld [vmem:[#allocation175_spill] sm:$0xff] }
 0x632   : > { %v3012_v63 = vsel %vm2948_vm12, %v2766_v21, %v2980_v28  ;;  %2169 = vadd.xlane.f32.xlu2 %v2168_v47  ;;  %v2650_v1 = vpop.xlane.xlu0 %2649  ;;  %v1687_v28 = vmul.f32 1.442695, %v1649_v10  ;;  %v2965_v47 = vld [vmem:[#allocation6 + $0x30] sm:$0xff]  ;;  %v2493_v10 = vshll.u32 %v2492_v2, 16 }
 0x633   : > { %3044 = vst.msk [vmem:[#allocation6 + $0xa8] sm:$0xff] %vm10904_vm4, %v3012_v63  ;;  %v2651_v56 = vcvt.f32.s32 %v2650_v1  ;;  %v2730_v43 = vpop.xlane.xlu1 %2729  ;;  %v6630_v63 = vpop.eup %6629  ;;  %v11386_v1 = vld [vmem:[#allocation147_spill] sm:$0xff] }
 0x634   : > { %v2731_v11 = vcvt.f32.s32 %v2730_v43  ;;  %v1648_v20 = vsub.f32 %v11279_v32, %v11386_v1  ;;  %6633 = vpow2.f32 %v1687_v28 }
 0x635   : > { %v2654_v0 = vadd.s32 %v2653_v42, %v2651_v56  ;;  %v2522_v50 = vpop.xlane.xlu2 %2521  ;;  %v1760_v56 = vmul.f32 %v6630_v63, %v1632_v19  ;;  %v6632_v30 = vpop.eup %6631 }
 0x636   : > { %v2734_v29 = vadd.s32 %v2733_v24, %v2731_v11  ;;  %v2523_v45 = vcvt.f32.s32 %v2522_v50  ;;  %v1685_v43 = vmul.f32 1.442695, %v1648_v20  ;;  %v2963_v24 = vld [vmem:[#allocation6 + $0x20] sm:$0xff]  ;;  %v11392_v20 = vld [vmem:[#allocation173_spill] sm:$0xff] }
 0x637   : > { %v3005_v21 = vsel %vm2941_vm13, %v2654_v0, %v2973_v4  ;;  %v11388_v0 = vld [vmem:[#allocation132_spill] sm:$0xff]  ;;  %v1667_v19 = vsub.f32 %v11393_v46, %v11392_v20 }
 0x638   : > { %3037 = vst.msk [vmem:[#allocation6 + $0x70] sm:$0xff] %vm10904_vm4, %v3005_v21  ;;  %v3010_v40 = vsel %vm2946_vm14, %v2734_v29, %v2978_v39  ;;  %v2526_v35 = vadd.s32 %v2525_v41, %v2523_v45  ;;  %2166 = vadd.xlane.f32.xlu1 %v2165_v18  ;;  %v11389_v39 = vld [vmem:[#allocation134_spill] sm:$0xff]  ;;  %v1617_v41 = vld [vmem:[#allocation4 + $0x30] sm:$0xff]  ;;  %6635 = vpow2.f32 %v1685_v43  ;;  %v1759_v29 = vmul.f32 %v6632_v30, %v1631_v51 }
 0x639   : > { %3042 = vst.msk [vmem:[#allocation6 + $0x98] sm:$0xff] %vm10904_vm4, %v3010_v40  ;;  %3242 = vperm.xlu0 %6469, %v3149_v54   ;;  %vm2931_vm0 = vcmp.gt.f32.partialorder %v11389_v39, %v11388_v0  ;;  %v9213_v18 = vld [vmem:[%s10495_s3 + $0x68] sm:$0xff]  ;;  %v1616_v40 = vld [vmem:[#allocation4 + $0x28] sm:$0xff]  ;;  %v11395_v51 = vld [vmem:[#allocation169_spill] sm:$0xff] }
 0x63a   : > { %v2997_v33 = vsel %vm2933_vm15, %v2526_v35, %v2965_v47  ;;  %v6634_v54 = vpop.eup %6633  ;;  %v3132_v47 = vsub.s32 %v9213_v18, %v11309_v48  ;;  %v11391_v35 = vld [vmem:[#allocation257_spill] sm:$0xff]  ;;  %v11394_v0 = vld [vmem:[#allocation160_spill] sm:$0xff]  ;;  %vm2951_vm1 = vcmp.gt.f32.partialorder %v11395_v51, %v11393_v46 }
 0x63b   : > { %3029 = vst.msk [vmem:[#allocation6 + $0x30] sm:$0xff] %vm10904_vm4, %v2997_v33  ;;  %v2490_v16 = vpop.xlane.xlu1 %2489  ;;  %v1745_v21 = vmul.f32 %v6634_v54, %v1617_v41  ;;  %v2812_v63 = vcvt.f32.s32 %v11391_v35  ;;  %v1666_v39 = vsub.f32 %v11304_v44, %v11394_v0  ;;  %v9239_v41 = vld [vmem:[%s10495_s3 + $0x70] sm:$0xff]  ;;  %v9247_v44 = vld [vmem:[%s10495_s3 + $0x98] sm:$0xff] }
 0x63c   : > { %v2491_v42 = vcvt.f32.s32 %v2490_v16  ;;  %v9225_v16 = vld [vmem:[%s10495_s3 + $0x80] sm:$0xff]  ;;  %v3138_v20 = vsub.s32 %v9247_v44, %v11309_v48  ;;  %v11403_v0 = vld [vmem:[#allocation79_spill] sm:$0xff] }
 0x63d   : > { %v2188_v4 = vpop.xlane.xlu2 %2187 }
 0x63e   : > { %v2494_v32 = vadd.s32 %v2493_v10, %v2491_v42  ;;  %v2240_v11 = vadd.f32 %v2188_v4, %v1760_v56  ;;  %v6636_v2 = vpop.eup %6635  ;;  %v2813_v56 = vshll.u32 %v2812_v63, 16  ;;  %v1723_v4 = vmul.f32 1.442695, %v1667_v19  ;;  %v11399_v19 = vld [vmem:[#allocation149_spill] sm:$0xff] }
 0x63f   : > { %v1744_v1 = vmul.f32 %v6636_v2, %v1616_v40  ;;  %v3133_v40 = vsub.s32 %v9239_v41, %v11309_v48 }
 0x640   : > { %v2995_v50 = vsel %vm2931_vm0, %v2494_v32, %v2963_v24  ;;  %2273 = vst.msk [vmem:[#allocation4 + $0xa8] sm:$0xff] %vm10904_vm4, %v2240_v11  ;;  %2921 = vmin.xlane.f32.xlu1 %v11390_v22  ;;  %v3135_v24 = vsub.s32 %v9225_v16, %v11309_v48  ;;  %v2983_v32 = vld [vmem:[#allocation6 + $0xc0] sm:$0xff]  ;;  %v2780_v11 = vcvt.f32.s32 %v11319_v23  ;;  %6637 = vpow2.f32 %v1723_v4  ;;  %v11401_v4 = vld [vmem:[#allocation172_spill] sm:$0xff] }
 0x641   : > { %3027 = vst.msk [vmem:[#allocation6 + $0x20] sm:$0xff] %vm10904_vm4, %v2995_v50  ;;  %v11396_v50 = vld [vmem:[#allocation264_spill] sm:$0xff] }
 0x642   : > { %v2572_v22 = vcvt.f32.s32 %v11396_v50 }
 0x643   : > { %v2185_v45 = vpop.xlane.xlu1 %2184 }
 0x644   : > { %v2239_v28 = vadd.f32 %v2185_v45, %v1759_v29  ;;  %v11397_v29 = vld [vmem:[#allocation178_spill] sm:$0xff]  ;;  %v2573_v35 = vshll.u32 %v2572_v22, 16  ;;  %v9274_v22 = vld [vmem:[%s10495_s3 + $0xb0] sm:$0xff] }
 0x645   : > { %v2143_v13 = vpop.xlane.xlu2 %2142  ;;  %v11398_v45 = vld [vmem:[#allocation174_spill] sm:$0xff]  ;;  %11406 = vst [vmem:[#allocation235_spill] sm:$0xff] %v9274_v22 }
 0x646   : > { %2272 = vst.msk [vmem:[#allocation4 + $0xa0] sm:$0xff] %vm10904_vm4, %v2239_v28  ;;  %v2225_v6 = vadd.f32 %v2143_v13, %v1745_v21  ;;  %v1652_v28 = vsub.f32 %v11398_v45, %v11397_v29  ;;  %v2781_v21 = vshll.u32 %v2780_v11, 16  ;;  %v11402_v11 = vld [vmem:[#allocation177_spill] sm:$0xff] }
 0x647   : > { %vm2936_vm3 = vcmp.gt.f32.partialorder %v11402_v11, %v11398_v45 }
 0x648   : > { %2258 = vst.msk [vmem:[#allocation4 + $0x30] sm:$0xff] %vm10904_vm4, %v2225_v6  ;;  %v1721_v6 = vmul.f32 1.442695, %v1666_v39  ;;  %v1693_v46 = vmul.f32 1.442695, %v1652_v28  ;;  %v11404_v39 = vld [vmem:[#allocation137_spill] sm:$0xff] }
 0x649   : > { %vm3249_vm5 = vcmp.eq.s32.totalorder %v11404_v39, %v11403_v0 }
 0x64a   : > { %3191 = vperm.xlu2 %6468, %v3132_v47   ;;  %v2981_v47 = vld [vmem:[#allocation6 + $0xb0] sm:$0xff]  ;;  %6639 = vpow2.f32 %v1721_v6 }
 0x64b   : > { %v2140_v33 = vpop.xlane.xlu1 %2139  ;;  %6641 = vpow2.f32 %v1693_v46  ;;  %v11407_v6 = vld [vmem:[#allocation40_spill] sm:$0xff]  ;;  %v11409_v46 = vld [vmem:[#allocation161_spill] sm:$0xff] }
 0x64c   : > { %v2224_v10 = vadd.f32 %v2140_v33, %v1744_v1  ;;  %v11400_v33 = vld [vmem:[#allocation151_spill] sm:$0xff] }
 0x64d   : > { %v2810_v42 = vpop.xlane.xlu2 %2809  ;;  %vm2949_vm2 = vcmp.gt.f32.partialorder %v11400_v33, %v11399_v19  ;;  %v11410_v19 = vld [vmem:[#allocation159_spill] sm:$0xff]  ;;  %v1634_v33 = vld [vmem:[#allocation4 + $0xb8] sm:$0xff] }
 0x64e   : > { %2257 = vst.msk [vmem:[#allocation4 + $0x28] sm:$0xff] %vm10904_vm4, %v2224_v10  ;;  %v2811_v43 = vcvt.f32.s32 %v2810_v42  ;;  %v2968_v10 = vld [vmem:[#allocation6 + $0x48] sm:$0xff]  ;;  %v2540_v42 = vcvt.f32.s32 %v11327_v37  ;;  %v9266_v37 = vld [vmem:[%s10495_s3 + $0x88] sm:$0xff]  ;;  %vm2934_vm7 = vcmp.gt.f32.partialorder %v11410_v19, %v11409_v46 }
 0x64f   : > { %v11418_v46 = vld [vmem:[#allocation155_spill] sm:$0xff] }
 0x650   : > { %v2814_v30 = vadd.s32 %v2813_v56, %v2811_v43  ;;  %v2860_v19 = vcvt.f32.s32 %v11418_v46 }
 0x652   : > { %v3015_v54 = vsel %vm2951_vm1, %v2814_v30, %v2983_v32  ;;  %3200 = vperm.xlu2 %6468, %v3135_v24   ;;  %v6638_v24 = vpop.eup %6637  ;;  %v1651_v32 = vsub.f32 %v11310_v55, %v11401_v4  ;;  %v1635_v30 = vld [vmem:[#allocation4 + $0xc0] sm:$0xff]  ;;  %v11405_v55 = vld [vmem:[#allocation140_spill] sm:$0xff] }
 0x653   : > { %3047 = vst.msk [vmem:[#allocation6 + $0xc0] sm:$0xff] %vm10904_vm4, %v3015_v54  ;;  %v2778_v23 = vpop.xlane.xlu1 %2777  ;;  %vm3250_vm6 = vcmp.eq.s32.totalorder %v11405_v55, %v11403_v0  ;;  %v2541_v54 = vshll.u32 %v2540_v42, 16  ;;  %v1763_v45 = vmul.f32 %v6638_v24, %v1635_v30  ;;  %v11411_v24 = vld [vmem:[#allocation97_spill] sm:$0xff]  ;;  %v9304_v30 = vld [vmem:[%s10495_s3 + $0xc8] sm:$0xff] }
 0x654   : > { %v2779_v13 = vcvt.f32.s32 %v2778_v23  ;;  %v1691_v28 = vmul.f32 1.442695, %v1651_v32  ;;  %v2966_v23 = vld [vmem:[#allocation6 + $0x38] sm:$0xff]  ;;  %vm3255_vm8 = vcmp.eq.s32.totalorder %v11404_v39, %v11411_v24  ;;  %vm3256_vm9 = vcmp.eq.s32.totalorder %v11405_v55, %v11411_v24  ;;  %11412 = vst [vmem:[#allocation150_spill] sm:$0xff] %v9304_v30 }
 0x655   : > { %v2570_v2 = vpop.xlane.xlu2 %2569  ;;  %v9297_v32 = vld [vmem:[%s10495_s3 + $0xa0] sm:$0xff] }
 0x656   : > { %v2782_v63 = vadd.s32 %v2781_v21, %v2779_v13  ;;  %v2571_v1 = vcvt.f32.s32 %v2570_v2  ;;  %v3136_v13 = vsub.s32 %v9266_v37, %v11309_v48  ;;  %6643 = vpow2.f32 %v1691_v28  ;;  %v11414_v28 = vld [vmem:[#allocation53_spill] sm:$0xff] }
 0x658   : > { %v3013_v56 = vsel %vm2949_vm2, %v2782_v63, %v2981_v47  ;;  %v2574_v43 = vadd.s32 %v2573_v35, %v2571_v1  ;;  %v3345_v47 = vsel %vm3249_vm5, %v11407_v6, 0.0  ;;  %v3141_v35 = vsub.s32 %v9274_v22, %v11309_v48  ;;  %v11408_v63 = vld [vmem:[#allocation41_spill] sm:$0xff] }
 0x659   : > { %3045 = vst.msk [vmem:[#allocation6 + $0xb0] sm:$0xff] %vm10904_vm4, %v3013_v56  ;;  %3194 = vperm.xlu1 %6470, %v3133_v40   ;;  %v3346_v1 = vsel %vm3250_vm6, %v11408_v63, 0.0  ;;  %v1619_v63 = vld [vmem:[#allocation4 + $0x40] sm:$0xff] }
 0x65a   : > { %v3000_v51 = vsel %vm2936_vm3, %v2574_v43, %v2968_v10  ;;  %3209 = vperm.xlu2 %6468, %v3138_v20   ;;  %v6640_v20 = vpop.eup %6639  ;;  %v3410_v56 = vadd.f32 %v3346_v1, %v3345_v47  ;;  %v1620_v43 = vld [vmem:[#allocation4 + $0x48] sm:$0xff]  ;;  %v9312_v47 = vpop.permute.xlu0 %3188 }
 0x65b   : > { %3032 = vst.msk [vmem:[#allocation6 + $0x48] sm:$0xff] %vm10904_vm4, %v3000_v51  ;;  %v2538_v50 = vpop.xlane.xlu1 %2537  ;;  %v6642_v42 = vpop.eup %6641  ;;  %v1762_v4 = vmul.f32 %v6640_v20, %v1634_v33  ;;  %v11417_v1 = vld [vmem:[#allocation103_spill] sm:$0xff] }
 0x65c   : > { %v2539_v29 = vcvt.f32.s32 %v2538_v50  ;;  %v1748_v51 = vmul.f32 %v6642_v42, %v1620_v43  ;;  %v11413_v50 = vld [vmem:[#allocation52_spill] sm:$0xff]  ;;  %vm3261_vm10 = vcmp.eq.s32.totalorder %v11404_v39, %v11417_v1  ;;  %vm3262_vm11 = vcmp.eq.s32.totalorder %v11405_v55, %v11417_v1  ;;  %v11421_v43 = vld [vmem:[#allocation187_spill] sm:$0xff] }
 0x65d   : > { %v2197_v21 = vpop.xlane.xlu2 %2196  ;;  %v9326_v42 = vld [vmem:[%s10495_s3 + $0xb8] sm:$0xff] }
 0x65e   : > { %v2542_v2 = vadd.s32 %v2541_v54, %v2539_v29  ;;  %v2243_v40 = vadd.f32 %v2197_v21, %v1763_v45  ;;  %v3351_v54 = vsel %vm3255_vm8, %v11413_v50, 0.0  ;;  %v3139_v45 = vsub.s32 %v9297_v32, %v11309_v48  ;;  %v11415_v21 = vld [vmem:[#allocation222_spill] sm:$0xff]  ;;  %11419 = vst [vmem:[#allocation135_spill] sm:$0xff] %v9326_v42 }
 0x65f   : > { %v3142_v50 = vsub.s32 %v9326_v42, %v11309_v48 }
 0x660   : > { %v2998_v10 = vsel %vm2934_vm7, %v2542_v2, %v2966_v23  ;;  %2276 = vst.msk [vmem:[#allocation4 + $0xc0] sm:$0xff] %vm10904_vm4, %v2243_v40  ;;  %v3352_v23 = vsel %vm3256_vm9, %v11414_v28, 0.0  ;;  %v3144_v40 = vsub.s32 %v9304_v30, %v11309_v48 }
 0x661   : > { %3030 = vst.msk [vmem:[#allocation6 + $0x38] sm:$0xff] %vm10904_vm4, %v2998_v10  ;;  %3203 = vperm.xlu1 %6470, %v3136_v13   ;;  %v11416_v13 = vld [vmem:[#allocation220_spill] sm:$0xff]  ;;  %v3419_v20 = vadd.f32 %v3352_v23, %v3351_v54  ;;  %v2861_v23 = vshll.u32 %v2860_v19, 16 }
 0x662   : > { %3218 = vperm.xlu2 %6468, %v3141_v35   ;;  %v1674_v6 = vsub.f32 %v11416_v13, %v11415_v21  ;;  %v6644_v35 = vpop.eup %6643  ;;  %v11423_v54 = vld [vmem:[#allocation64_spill] sm:$0xff] }
 0x663   : > { %3411 = vadd.xlane.f32.xlu0 %v3410_v56  ;;  %v2194_v11 = vpop.xlane.xlu1 %2193  ;;  %v1747_v10 = vmul.f32 %v6644_v35, %v1619_v63  ;;  %v11420_v56 = vld [vmem:[#allocation191_spill] sm:$0xff] }
 0x664   : > { %v2242_v0 = vadd.f32 %v2194_v11, %v1762_v4  ;;  %v1737_v33 = vmul.f32 1.442695, %v1674_v6  ;;  %v1670_v24 = vsub.f32 %v11421_v43, %v11420_v56  ;;  %v9333_v11 = vld [vmem:[%s10495_s3 + $0xe0] sm:$0xff]  ;;  %v11425_v35 = vld [vmem:[#allocation247_spill] sm:$0xff]  ;;  %v11427_v56 = vld [vmem:[#allocation188_spill] sm:$0xff] }
 0x665   : > { %v2152_v29 = vpop.xlane.xlu2 %2151  ;;  %11422 = vst [vmem:[#allocation111_spill] sm:$0xff] %v9333_v11  ;;  %v3147_v6 = vsub.s32 %v9333_v11, %v11309_v48  ;;  %v2828_v63 = vcvt.f32.s32 %v11425_v35  ;;  %vm2954_vm12 = vcmp.gt.f32.partialorder %v11427_v56, %v11421_v43  ;;  %v11434_v35 = vld [vmem:[#allocation77_spill] sm:$0xff]  ;;  %v2984_v56 = vld [vmem:[#allocation6 + $0xc8] sm:$0xff]  ;;  %v2971_v11 = vld [vmem:[#allocation6 + $0x60] sm:$0xff] }
 0x666   : > { %2275 = vst.msk [vmem:[#allocation4 + $0xb8] sm:$0xff] %vm10904_vm4, %v2242_v0  ;;  %v2228_v2 = vadd.f32 %v2152_v29, %v1748_v51  ;;  %v3357_v29 = vsel %vm3261_vm10, %v11423_v54, 0.0  ;;  %6645 = vpow2.f32 %v1737_v33  ;;  %v11429_v33 = vld [vmem:[#allocation107_spill] sm:$0xff]  ;;  %v11432_v54 = vld [vmem:[#allocation192_spill] sm:$0xff] }
 0x668   : > { %2261 = vst.msk [vmem:[#allocation4 + $0x48] sm:$0xff] %vm10904_vm4, %v2228_v2  ;;  %v1729_v2 = vmul.f32 1.442695, %v1670_v24  ;;  %v2620_v24 = vcvt.f32.s32 %v11429_v33 }
 0x669   : > { %3212 = vperm.xlu1 %6470, %v3139_v45   ;;  %v11424_v45 = vld [vmem:[#allocation65_spill] sm:$0xff] }
 0x66a   : > { %3227 = vperm.xlu2 %6468, %v3144_v40   ;;  %v3358_v28 = vsel %vm3262_vm11, %v11424_v45, 0.0  ;;  %v2986_v40 = vld [vmem:[#allocation6 + $0xd8] sm:$0xff]  ;;  %6647 = vpow2.f32 %v1729_v2  ;;  %v2621_v33 = vshll.u32 %v2620_v24, 16 }
 0x66b   : > { %3420 = vadd.xlane.f32.xlu0 %v3419_v20  ;;  %v2149_v4 = vpop.xlane.xlu1 %2148  ;;  %v9346_v20 = vpop.permute.xlu0 %3197  ;;  %v3428_v19 = vadd.f32 %v3358_v28, %v3357_v29  ;;  %v9368_v29 = vld [vmem:[%s10495_s3 + $0xf8] sm:$0xff]  ;;  %v2829_v28 = vshll.u32 %v2828_v63, 16 }
 0x66c   : > { %v2227_v0 = vadd.f32 %v2149_v4, %v1747_v10  ;;  %v11426_v10 = vld [vmem:[#allocation183_spill] sm:$0xff]  ;;  %v11428_v4 = vld [vmem:[#allocation113_spill] sm:$0xff]  ;;  %v6646_v45 = vpop.eup %6645 }
 0x66d   : > { %v2858_v51 = vpop.xlane.xlu2 %2857  ;;  %v1669_v1 = vsub.f32 %v11332_v61, %v11426_v10  ;;  %vm3267_vm13 = vcmp.eq.s32.totalorder %v11404_v39, %v11428_v4  ;;  %vm3268_vm14 = vcmp.eq.s32.totalorder %v11405_v55, %v11428_v4  ;;  %v11431_v61 = vld [vmem:[#allocation196_spill] sm:$0xff]  ;;  %v11437_v4 = vld [vmem:[#allocation255_spill] sm:$0xff] }
 0x66e   : > { %2260 = vst.msk [vmem:[#allocation4 + $0x40] sm:$0xff] %vm10904_vm4, %v2227_v0  ;;  %v2859_v21 = vcvt.f32.s32 %v2858_v51  ;;  %v9360_v51 = vld [vmem:[%s10495_s3 + $0xd0] sm:$0xff]  ;;  %v1655_v43 = vsub.f32 %v11432_v54, %v11431_v61  ;;  %v3150_v61 = vsub.s32 %v9368_v29, %v11309_v48 }
 0x66f   : > { %11430 = vst [vmem:[#allocation219_spill] sm:$0xff] %v9360_v51  ;;  %v1727_v10 = vmul.f32 1.442695, %v1669_v1  ;;  %v3145_v2 = vsub.s32 %v9360_v51, %v11309_v48  ;;  %v11438_v51 = vld [vmem:[#allocation190_spill] sm:$0xff] }
 0x670   : > { %v2862_v46 = vadd.s32 %v2861_v23, %v2859_v21  ;;  %v1642_v21 = vld [vmem:[#allocation4 + $0xf8] sm:$0xff]  ;;  %v6648_v22 = vpop.eup %6647  ;;  %v1654_v24 = vsub.f32 %v11336_v49, %v11438_v51 }
 0x671   : > { %3221 = vperm.xlu1 %6470, %v3142_v50   ;;  %v1770_v62 = vmul.f32 %v6646_v45, %v1642_v21  ;;  %6649 = vpow2.f32 %v1727_v10  ;;  %v2969_v21 = vld [vmem:[#allocation6 + $0x50] sm:$0xff] }
 0x672   : > { %v3018_v0 = vsel %vm2954_vm12, %v2862_v46, %v2986_v40  ;;  %3236 = vperm.xlu2 %6468, %v3147_v6   ;;  %v11433_v6 = vld [vmem:[#allocation76_spill] sm:$0xff]  ;;  %v3364_v46 = vsel %vm3268_vm14, %v11434_v35, 0.0  ;;  %v2588_v35 = vcvt.f32.s32 %v11437_v4 }
 0x673   : > { %3050 = vst.msk [vmem:[#allocation6 + $0xd8] sm:$0xff] %vm10904_vm4, %v3018_v0  ;;  %3429 = vadd.xlane.f32.xlu0 %v3428_v19  ;;  %v2826_v50 = vpop.xlane.xlu1 %2825  ;;  %v3363_v40 = vsel %vm3267_vm13, %v11433_v6, 0.0  ;;  %v11436_v6 = vld [vmem:[#allocation176_spill] sm:$0xff] }
 0x674   : > { %v2827_v23 = vcvt.f32.s32 %v2826_v50  ;;  %v1699_v50 = vmul.f32 1.442695, %v1655_v43  ;;  %vm2952_vm15 = vcmp.gt.f32.partialorder %v11436_v6, %v11435_v5  ;;  %v3437_v42 = vadd.f32 %v3364_v46, %v3363_v40  ;;  %v1638_v5 = vld [vmem:[#allocation4 + $0xd8] sm:$0xff] }
 0x675   : > { %v2618_v19 = vpop.xlane.xlu2 %2617  ;;  %v2589_v51 = vshll.u32 %v2588_v35, 16  ;;  %v1622_v35 = vld [vmem:[#allocation4 + $0x58] sm:$0xff] }
 0x676   : > { %v2830_v63 = vadd.s32 %v2829_v28, %v2827_v23  ;;  %v2619_v0 = vcvt.f32.s32 %v2618_v19  ;;  %v11439_v28 = vld [vmem:[#allocation195_spill] sm:$0xff]  ;;  %6651 = vpow2.f32 %v1699_v50  ;;  %v11441_v19 = vld [vmem:[#allocation182_spill] sm:$0xff] }
 0x677   : > { %vm2939_vm0 = vcmp.gt.f32.partialorder %v11439_v28, %v11432_v54  ;;  %v9393_v23 = vld [vmem:[%s10495_s3 + $0xe8] sm:$0xff]  ;;  %v6650_v10 = vpop.eup %6649 }
 0x678   : > { %v3016_v1 = vsel %vm2952_vm15, %v2830_v63, %v2984_v56  ;;  %v2622_v30 = vadd.s32 %v2621_v33, %v2619_v0  ;;  %v2218_v58 = vpop.xlane.xlu0 %2217  ;;  %v11440_v56 = vld [vmem:[#allocation184_spill] sm:$0xff]  ;;  %v11442_v28 = vld [vmem:[#allocation218_spill] sm:$0xff] }
 0x679   : > { %3048 = vst.msk [vmem:[#allocation6 + $0xc8] sm:$0xff] %vm10904_vm4, %v3016_v1  ;;  %v2250_v43 = vadd.f32 %v2218_v58, %v1770_v62  ;;  %3230 = vperm.xlu1 %6470, %v3145_v2   ;;  %v1766_v58 = vmul.f32 %v6648_v22, %v1638_v5  ;;  %v1697_v62 = vmul.f32 1.442695, %v1654_v24  ;;  %vm2937_vm1 = vcmp.gt.f32.partialorder %v11441_v19, %v11440_v56  ;;  %v1623_v22 = vld [vmem:[#allocation4 + $0x60] sm:$0xff] }
 0x67a   : > { %v3003_v45 = vsel %vm2939_vm0, %v2622_v30, %v2971_v11  ;;  %3245 = vperm.xlu2 %6468, %v3150_v61   ;;  %v3148_v30 = vsub.s32 %v9393_v23, %v11309_v48  ;;  %v2908_v1 = vcvt.f32.s32 %v9036_v31  ;;  %v11446_v31 = vld [vmem:[#allocation205_spill] sm:$0xff]  ;;  %v2668_v56 = vcvt.f32.s32 %v9081_v59 }
 0x67b   : > { %3035 = vst.msk [vmem:[#allocation6 + $0x60] sm:$0xff] %vm10904_vm4, %v3003_v45  ;;  %3438 = vadd.xlane.f32.xlu0 %v3437_v42  ;;  %v2586_v49 = vpop.xlane.xlu1 %2585  ;;  %v1637_v42 = vld [vmem:[#allocation4 + $0xd0] sm:$0xff]  ;;  %6653 = vpow2.f32 %v1697_v62  ;;  %v2974_v59 = vld [vmem:[#allocation6 + $0x78] sm:$0xff] }
 0x67c   : > { %2283 = vst.msk [vmem:[#allocation4 + $0xf8] sm:$0xff] %vm10904_vm4, %v2250_v43  ;;  %v2587_v54 = vcvt.f32.s32 %v2586_v49  ;;  %v6652_v33 = vpop.eup %6651  ;;  %v1765_v63 = vmul.f32 %v6650_v10, %v1637_v42  ;;  %v11443_v43 = vld [vmem:[#allocation217_spill] sm:$0xff]  ;;  %v11447_v42 = vld [vmem:[#allocation211_spill] sm:$0xff] }
 0x67d   : > { %v2206_v40 = vpop.xlane.xlu2 %2205  ;;  %v1751_v48 = vmul.f32 %v6652_v33, %v1623_v22  ;;  %v1673_v5 = vsub.f32 %v11443_v43, %v11442_v28  ;;  %vm2957_vm2 = vcmp.gt.f32.partialorder %v11446_v31, %v11443_v43  ;;  %v11451_v28 = vld [vmem:[#allocation87_spill] sm:$0xff] }
 0x67e   : > { %v2590_v11 = vadd.s32 %v2589_v51, %v2587_v54  ;;  %v2246_v46 = vadd.f32 %v2206_v40, %v1766_v58  ;;  %v2909_v54 = vshll.u32 %v2908_v1, 16  ;;  %v11444_v40 = vld [vmem:[#allocation261_spill] sm:$0xff]  ;;  %v2636_v43 = vcvt.f32.s32 %v11451_v28  ;;  %v2972_v31 = vld [vmem:[#allocation6 + $0x68] sm:$0xff] }
 0x67f   : > { %v1735_v62 = vmul.f32 1.442695, %v1673_v5  ;;  %v11449_v1 = vld [vmem:[#allocation193_spill] sm:$0xff] }
 0x680   : > { %v3001_v2 = vsel %vm2937_vm1, %v2590_v11, %v2969_v21  ;;  %2279 = vst.msk [vmem:[#allocation4 + $0xd8] sm:$0xff] %vm10904_vm4, %v2246_v46  ;;  %v2989_v21 = vld [vmem:[#allocation6 + $0xf0] sm:$0xff] }
 0x681   : > { %3033 = vst.msk [vmem:[#allocation6 + $0x50] sm:$0xff] %vm10904_vm4, %v3001_v2  ;;  %3239 = vperm.xlu1 %6470, %v3148_v30   ;;  %v6654_v4 = vpop.eup %6653  ;;  %v2876_v30 = vcvt.f32.s32 %v11444_v40  ;;  %v11445_v46 = vld [vmem:[#allocation201_spill] sm:$0xff]  ;;  %v11448_v2 = vld [vmem:[#allocation208_spill] sm:$0xff]  ;;  %6655 = vpow2.f32 %v1735_v62  ;;  %v11454_v40 = vld [vmem:[#allocation83_spill] sm:$0xff] }
 0x682   : > { %v1750_v24 = vmul.f32 %v6654_v4, %v1622_v35  ;;  %v1672_v10 = vsub.f32 %v11375_v60, %v11445_v46  ;;  %v1658_v33 = vsub.f32 %v11448_v2, %v11447_v42  ;;  %v1641_v62 = vld [vmem:[#allocation4 + $0xf0] sm:$0xff]  ;;  %vm3251_vm6 = vcmp.eq.s32.totalorder %v11404_v39, %v11454_v40 }
 0x683   : > { %v2203_v0 = vpop.xlane.xlu1 %2202  ;;  %vm3252_vm7 = vcmp.eq.s32.totalorder %v11405_v55, %v11454_v40  ;;  %v11463_v40 = vld [vmem:[#allocation57_spill] sm:$0xff] }
 0x684   : > { %v2245_v61 = vadd.f32 %v2203_v0, %v1765_v63  ;;  %v2877_v63 = vshll.u32 %v2876_v30, 16  ;;  %v1705_v35 = vmul.f32 1.442695, %v1658_v33 }
 0x685   : > { %v2161_v50 = vpop.xlane.xlu2 %2160 }
 0x686   : > { %2278 = vst.msk [vmem:[#allocation4 + $0xd0] sm:$0xff] %vm10904_vm4, %v2245_v61  ;;  %v2231_v6 = vadd.f32 %v2161_v50, %v1751_v48  ;;  %v1733_v61 = vmul.f32 1.442695, %v1672_v10  ;;  %v2987_v48 = vld [vmem:[#allocation6 + $0xe0] sm:$0xff] }
 0x688   : > { %2264 = vst.msk [vmem:[#allocation4 + $0x60] sm:$0xff] %vm10904_vm4, %v2231_v6  ;;  %v2669_v6 = vshll.u32 %v2668_v56, 16  ;;  %6657 = vpow2.f32 %v1733_v61  ;;  %v11457_v61 = vld [vmem:[#allocation200_spill] sm:$0xff] }
 0x689   : > { %6659 = vpow2.f32 %v1705_v35  ;;  %vm2940_vm8 = vcmp.gt.f32.partialorder %v11457_v61, %v11354_v8  ;;  %v11458_v35 = vld [vmem:[#allocation90_spill] sm:$0xff] }
 0x68a   : > { %vm3247_vm9 = vcmp.eq.s32.totalorder %v11404_v39, %v11458_v35  ;;  %vm3248_vm10 = vcmp.eq.s32.totalorder %v11405_v55, %v11458_v35 }
 0x68b   : > { %v2158_v45 = vpop.xlane.xlu1 %2157 }
 0x68c   : > { %v2230_v49 = vadd.f32 %v2158_v45, %v1750_v24  ;;  %v11450_v24 = vld [vmem:[#allocation194_spill] sm:$0xff] }
 0x68d   : > { %v2906_v51 = vpop.xlane.xlu2 %2905  ;;  %vm2955_vm3 = vcmp.gt.f32.partialorder %v11450_v24, %v11449_v1  ;;  %v11459_v24 = vld [vmem:[#allocation89_spill] sm:$0xff] }
 0x68e   : > { %2263 = vst.msk [vmem:[#allocation4 + $0x58] sm:$0xff] %vm10904_vm4, %v2230_v49  ;;  %v2907_v58 = vcvt.f32.s32 %v2906_v51  ;;  %v6656_v49 = vpop.eup %6655  ;;  %v11452_v51 = vld [vmem:[#allocation207_spill] sm:$0xff]  ;;  %vm3257_vm11 = vcmp.eq.s32.totalorder %v11404_v39, %v11459_v24  ;;  %vm3258_vm12 = vcmp.eq.s32.totalorder %v11405_v55, %v11459_v24 }
 0x68f   : > { %v1769_v46 = vmul.f32 %v6656_v49, %v1641_v62  ;;  %v11461_v49 = vld [vmem:[#allocation37_spill] sm:$0xff]  ;;  %v11462_v62 = vld [vmem:[#allocation56_spill] sm:$0xff] }
 0x690   : > { %v2910_v11 = vadd.s32 %v2909_v54, %v2907_v58  ;;  %v1657_v54 = vsub.f32 %v11382_v27, %v11452_v51  ;;  %v11453_v58 = vld [vmem:[#allocation209_spill] sm:$0xff]  ;;  %v3344_v51 = vsel %vm3248_vm10, %v11461_v49, 0.0  ;;  %v11473_v49 = vld [vmem:[#allocation92_spill] sm:$0xff] }
 0x691   : > { %vm2942_vm5 = vcmp.gt.f32.partialorder %v11453_v58, %v11448_v2  ;;  %v11456_v2 = vld [vmem:[#allocation45_spill] sm:$0xff] }
 0x692   : > { %v3021_v19 = vsel %vm2957_vm2, %v2910_v11, %v2989_v21  ;;  %v2637_v11 = vshll.u32 %v2636_v43, 16  ;;  %v1703_v10 = vmul.f32 1.442695, %v1657_v54  ;;  %v3348_v33 = vsel %vm3252_vm7, %v11456_v2, 0.0  ;;  %v11460_v43 = vld [vmem:[#allocation36_spill] sm:$0xff]  ;;  %v9447_v54 = vpop.permute.xlu0 %3206 }
 0x693   : > { %3053 = vst.msk [vmem:[#allocation6 + $0xf0] sm:$0xff] %vm10904_vm4, %v3021_v19  ;;  %v2874_v22 = vpop.xlane.xlu1 %2873  ;;  %v11455_v19 = vld [vmem:[#allocation44_spill] sm:$0xff] }
 0x694   : > { %v2875_v0 = vcvt.f32.s32 %v2874_v22  ;;  %v3347_v42 = vsel %vm3251_vm6, %v11455_v19, 0.0  ;;  %6661 = vpow2.f32 %v1703_v10  ;;  %v11465_v19 = vld [vmem:[#allocation96_spill] sm:$0xff] }
 0x695   : > { %v2666_v50 = vpop.xlane.xlu2 %2665  ;;  %vm3263_vm15 = vcmp.eq.s32.totalorder %v11404_v39, %v11465_v19  ;;  %vm3264_vm0 = vcmp.eq.s32.totalorder %v11405_v55, %v11465_v19 }
 0x696   : > { %v2878_v60 = vadd.s32 %v2877_v63, %v2875_v0  ;;  %v2667_v4 = vcvt.f32.s32 %v2666_v50  ;;  %v6658_v0 = vpop.eup %6657 }
 0x698   : > { %v3019_v5 = vsel %vm2955_vm3, %v2878_v60, %v2987_v48  ;;  %v2670_v45 = vadd.s32 %v2669_v6, %v2667_v4  ;;  %v1640_v48 = vld [vmem:[#allocation4 + $0xe8] sm:$0xff]  ;;  %v6660_v6 = vpop.eup %6659  ;;  %v3413_v60 = vadd.f32 %v3348_v33, %v3347_v42  ;;  %v1626_v4 = vld [vmem:[#allocation4 + $0x78] sm:$0xff]  ;;  %vm3259_vm3 = vcmp.eq.s32.totalorder %v11404_v39, %v11473_v49 }
 0x699   : > { %3051 = vst.msk [vmem:[#allocation6 + $0xe0] sm:$0xff] %vm10904_vm4, %v3019_v5  ;;  %v1768_v1 = vmul.f32 %v6658_v0, %v1640_v48  ;;  %v1754_v28 = vmul.f32 %v6660_v6, %v1626_v4  ;;  %v3343_v5 = vsel %vm3247_vm9, %v11460_v43, 0.0  ;;  %v11467_v0 = vld [vmem:[#allocation49_spill] sm:$0xff]  ;;  %v11468_v48 = vld [vmem:[#allocation68_spill] sm:$0xff]  ;;  %v11470_v4 = vld [vmem:[#allocation94_spill] sm:$0xff] }
 0x69a   : > { %v3006_v21 = vsel %vm2942_vm5, %v2670_v45, %v2974_v59  ;;  %v3407_v10 = vadd.f32 %v3344_v51, %v3343_v5  ;;  %v11469_v6 = vld [vmem:[#allocation69_spill] sm:$0xff]  ;;  %vm3260_vm5 = vcmp.eq.s32.totalorder %v11405_v55, %v11473_v49 }
 0x69b   : > { %3038 = vst.msk [vmem:[#allocation6 + $0x78] sm:$0xff] %vm10904_vm4, %v3006_v21  ;;  %v2634_v30 = vpop.xlane.xlu1 %2633  ;;  %v3353_v21 = vsel %vm3257_vm11, %v11462_v62, 0.0 }
 0x69c   : > { %v2635_v27 = vcvt.f32.s32 %v2634_v30  ;;  %v3354_v30 = vsel %vm3258_vm12, %v11463_v40, 0.0  ;;  %v11475_v40 = vld [vmem:[#allocation60_spill] sm:$0xff] }
 0x69d   : > { %v2215_v56 = vpop.xlane.xlu2 %2214 }
 0x69e   : > { %v2638_v22 = vadd.s32 %v2637_v11, %v2635_v27  ;;  %v2249_v63 = vadd.f32 %v2215_v56, %v1769_v46  ;;  %v6662_v11 = vpop.eup %6661  ;;  %v1625_v27 = vld [vmem:[#allocation4 + $0x70] sm:$0xff]  ;;  %v3422_v46 = vadd.f32 %v3354_v30, %v3353_v21  ;;  %v3355_v30 = vsel %vm3259_vm3, %v11475_v40, 0.0  ;;  %v11486_v40 = vld [vmem:[#allocation63_spill] sm:$0xff] }
 0x69f   : > { %v1753_v56 = vmul.f32 %v6662_v11, %v1625_v27  ;;  %v11476_v11 = vld [vmem:[#allocation61_spill] sm:$0xff]  ;;  %vm3277_vm3 = vcmp.eq.s32.totalorder %v11404_v39, %v9346_v20 }
 0x6a0   : > { %v3004_v50 = vsel %vm2940_vm8, %v2638_v22, %v2972_v31  ;;  %2282 = vst.msk [vmem:[#allocation4 + $0xf0] sm:$0xff] %vm10904_vm4, %v2249_v63  ;;  %v11464_v31 = vld [vmem:[#allocation85_spill] sm:$0xff]  ;;  %v11466_v22 = vld [vmem:[#allocation48_spill] sm:$0xff]  ;;  %v3356_v27 = vsel %vm3260_vm5, %v11476_v11, 0.0  ;;  %vm3278_vm5 = vcmp.eq.s32.totalorder %v11405_v55, %v9346_v20  ;;  %v11487_v20 = vld [vmem:[#allocation74_spill] sm:$0xff] }
 0x6a1   : > { %3036 = vst.msk [vmem:[#allocation6 + $0x68] sm:$0xff] %vm10904_vm4, %v3004_v50  ;;  %vm3253_vm13 = vcmp.eq.s32.totalorder %v11404_v39, %v11464_v31  ;;  %vm3254_vm14 = vcmp.eq.s32.totalorder %v11405_v55, %v11464_v31  ;;  %v3359_v50 = vsel %vm3263_vm15, %v11468_v48, 0.0  ;;  %vm3271_vm15 = vcmp.eq.s32.totalorder %v11404_v39, %v9312_v47 }
 0x6a2   : > { %v3349_v63 = vsel %vm3253_vm13, %v11466_v22, 0.0  ;;  %v3350_v61 = vsel %vm3254_vm14, %v11467_v0, 0.0  ;;  %v11479_v22 = vld [vmem:[#allocation39_spill] sm:$0xff] }
 0x6a3   : > { %3414 = vadd.xlane.f32.xlu2 %v3413_v60  ;;  %v2212_v8 = vpop.xlane.xlu1 %2211  ;;  %v3360_v60 = vsel %vm3264_vm0, %v11469_v6, 0.0  ;;  %v11480_v6 = vld [vmem:[#allocation99_spill] sm:$0xff]  ;;  %vm3272_vm0 = vcmp.eq.s32.totalorder %v11405_v55, %v9312_v47 }
 0x6a4   : > { %v2248_v59 = vadd.f32 %v2212_v8, %v1768_v1  ;;  %v11471_v1 = vld [vmem:[#allocation95_spill] sm:$0xff]  ;;  %v3431_v5 = vadd.f32 %v3360_v60, %v3359_v50  ;;  %vm3265_vm11 = vcmp.eq.s32.totalorder %v11404_v39, %v11480_v6  ;;  %vm3266_vm12 = vcmp.eq.s32.totalorder %v11405_v55, %v11480_v6 }
 0x6a5   : > { %v2170_v45 = vpop.xlane.xlu2 %2169  ;;  %v11472_v8 = vld [vmem:[#allocation203_spill] sm:$0xff] }
 0x6a6   : > { %2281 = vst.msk [vmem:[#allocation4 + $0xe8] sm:$0xff] %vm10904_vm4, %v2248_v59  ;;  %v2234_v58 = vadd.f32 %v2170_v45, %v1754_v28  ;;  %v2924_v59 = vcvt.f32.s32 %v11472_v8  ;;  %v9471_v28 = vpop.permute.xlu0 %3215  ;;  %v3416_v45 = vadd.f32 %v3350_v61, %v3349_v63  ;;  %v11484_v8 = vld [vmem:[#allocation51_spill] sm:$0xff] }
 0x6a8   : > { %2267 = vst.msk [vmem:[#allocation4 + $0x78] sm:$0xff] %vm10904_vm4, %v2234_v58  ;;  %v11474_v58 = vld [vmem:[#allocation104_spill] sm:$0xff]  ;;  %v2925_v62 = vshll.u32 %v2924_v59, 16 }
 0x6a9   : > { %vm3269_vm6 = vcmp.eq.s32.totalorder %v11404_v39, %v11474_v58  ;;  %vm3270_vm7 = vcmp.eq.s32.totalorder %v11405_v55, %v11474_v58  ;;  %v3368_v58 = vsel %vm3272_vm0, %v11206_v52, 0.0  ;;  %v3373_v52 = vsel %vm3277_vm3, %v11237_v57, 0.0 }
 0x6aa   : > { %v3365_v31 = vsel %vm3269_vm6, %v11349_v34, 0.0  ;;  %v3366_v19 = vsel %vm3270_vm7, %v11350_v12, 0.0  ;;  %v3425_v34 = vadd.f32 %v3356_v27, %v3355_v30  ;;  %vm3289_vm0 = vcmp.eq.s32.totalorder %v11404_v39, %v9471_v28 }
 0x6ab   : > { %3423 = vadd.xlane.f32.xlu2 %v3422_v46  ;;  %v2167_v42 = vpop.xlane.xlu1 %2166  ;;  %3408 = vadd.xlane.f32.xlu1 %v3407_v10  ;;  %v2990_v46 = vld [vmem:[#allocation6 + $0xf8] sm:$0xff]  ;;  %v3440_v48 = vadd.f32 %v3366_v19, %v3365_v31  ;;  %v3374_v31 = vsel %vm3278_vm5, %v11364_v25, 0.0 }
 0x6ac   : > { %v2233_v2 = vadd.f32 %v2167_v42, %v1753_v56  ;;  %v11477_v42 = vld [vmem:[#allocation221_spill] sm:$0xff]  ;;  %v3452_v57 = vadd.f32 %v3374_v31, %v3373_v52 }
 0x6ad   : > { %v3192_v33 = vpop.permute.xlu2 %3191  ;;  %vm2958_vm10 = vcmp.gt.f32.partialorder %v11477_v42, %v11416_v13  ;;  %v11481_v13 = vld [vmem:[#allocation72_spill] sm:$0xff] }
 0x6ae   : > { %2266 = vst.msk [vmem:[#allocation4 + $0x70] sm:$0xff] %vm10904_vm4, %v2233_v2  ;;  %vm3273_vm1 = vcmp.eq.s32.totalorder %v11404_v39, %v3192_v33  ;;  %vm3274_vm2 = vcmp.eq.s32.totalorder %v11405_v55, %v3192_v33  ;;  %v11478_v2 = vld [vmem:[#allocation38_spill] sm:$0xff]  ;;  %v9492_v50 = vpop.permute.xlu0 %3224  ;;  %v3361_v60 = vsel %vm3265_vm11, %v11481_v13, 0.0  ;;  %vm3284_vm11 = vcmp.eq.s32.totalorder %v11405_v55, %v9447_v54 }
 0x6af   : > { %v3369_v35 = vsel %vm3273_vm1, %v11470_v4, 0.0  ;;  %v3370_v24 = vsel %vm3274_vm2, %v11471_v1, 0.0  ;;  %v11482_v4 = vld [vmem:[#allocation73_spill] sm:$0xff]  ;;  %v11483_v1 = vld [vmem:[#allocation50_spill] sm:$0xff] }
 0x6b0   : > { %v3446_v43 = vadd.f32 %v3370_v24, %v3369_v35  ;;  %v3362_v35 = vsel %vm3266_vm12, %v11482_v4, 0.0  ;;  %v11493_v4 = vld [vmem:[#allocation91_spill] sm:$0xff] }
 0x6b2   : > { %3447 = vadd.xlane.f32.xlu0 %v3446_v43 }
 0x6b3   : > { %3432 = vadd.xlane.f32.xlu2 %v3431_v5  ;;  %3417 = vadd.xlane.f32.xlu1 %v3416_v45  ;;  %v2922_v51 = vpop.xlane.xlu1 %2921  ;;  %v3434_v5 = vadd.f32 %v3362_v35, %v3361_v60 }
 0x6b4   : > { %v2923_v21 = vcvt.f32.s32 %v2922_v51  ;;  %v3367_v51 = vsel %vm3271_vm15, %v11205_v53, 0.0 }
 0x6b5   : > { %v3201_v10 = vpop.permute.xlu2 %3200  ;;  %v3443_v27 = vadd.f32 %v3368_v58, %v3367_v51  ;;  %v11495_v51 = vld [vmem:[#allocation58_spill] sm:$0xff] }
 0x6b6   : > { %v2926_v56 = vadd.s32 %v2925_v62, %v2923_v21  ;;  %vm3279_vm8 = vcmp.eq.s32.totalorder %v11404_v39, %v3201_v10  ;;  %vm3280_vm9 = vcmp.eq.s32.totalorder %v11405_v55, %v3201_v10  ;;  %v9508_v45 = vpop.permute.xlu0 %3233  ;;  %v11485_v62 = vld [vmem:[#allocation62_spill] sm:$0xff]  ;;  %v3385_v58 = vsel %vm3289_vm0, %v11495_v51, 0.0 }
 0x6b7   : > { %v3375_v33 = vsel %vm3279_vm8, %v11478_v2, 0.0  ;;  %v3376_v63 = vsel %vm3280_vm9, %v11479_v22, 0.0  ;;  %v11488_v2 = vld [vmem:[#allocation75_spill] sm:$0xff] }
 0x6b8   : > { %v3022_v0 = vsel %vm2958_vm10, %v2926_v56, %v2990_v46  ;;  %v3455_v61 = vadd.f32 %v3376_v63, %v3375_v33  ;;  %vm3283_vm10 = vcmp.eq.s32.totalorder %v11404_v39, %v9447_v54 }
 0x6b9   : > { %3054 = vst.msk [vmem:[#allocation6 + $0xf8] sm:$0xff] %vm10904_vm4, %v3022_v0  ;;  %v11490_v0 = vld [vmem:[#allocation42_spill] sm:$0xff] }
 0x6ba   : > { %3456 = vadd.xlane.f32.xlu0 %v3455_v61 }
 0x6bb   : > { %3441 = vadd.xlane.f32.xlu2 %v3440_v48  ;;  %3426 = vadd.xlane.f32.xlu1 %v3425_v34  ;;  %v11491_v48 = vld [vmem:[#allocation43_spill] sm:$0xff] }
 0x6bd   : > { %v3210_v12 = vpop.permute.xlu2 %3209 }
 0x6be   : > { %vm3285_vm13 = vcmp.eq.s32.totalorder %v11404_v39, %v3210_v12  ;;  %vm3286_vm14 = vcmp.eq.s32.totalorder %v11405_v55, %v3210_v12  ;;  %v9526_v56 = vpop.permute.xlu0 %3242  ;;  %v11492_v12 = vld [vmem:[#allocation47_spill] sm:$0xff] }
 0x6bf   : > { %v3381_v24 = vsel %vm3285_vm13, %v11483_v1, 0.0  ;;  %v3382_v59 = vsel %vm3286_vm14, %v11484_v8, 0.0  ;;  %v3380_v13 = vsel %vm3284_vm11, %v11492_v12, 0.0  ;;  %v11494_v1 = vld [vmem:[#allocation93_spill] sm:$0xff]  ;;  %vm3301_vm11 = vcmp.eq.s32.totalorder %v11404_v39, %v9508_v45 }
 0x6c0   : > { %v3464_v43 = vadd.f32 %v3382_v59, %v3381_v24  ;;  %vm3308_vm0 = vcmp.eq.s32.totalorder %v11405_v55, %v9526_v56 }
 0x6c2   : > { %3465 = vadd.xlane.f32.xlu0 %v3464_v43 }
 0x6c3   : > { %3435 = vadd.xlane.f32.xlu1 %v3434_v5 }
 0x6c5   : > { %v3219_v49 = vpop.permute.xlu2 %3218 }
 0x6c6   : > { %vm3291_vm1 = vcmp.eq.s32.totalorder %v11404_v39, %v3219_v49  ;;  %vm3292_vm2 = vcmp.eq.s32.totalorder %v11405_v55, %v3219_v49  ;;  %v3315_v49 = vld [vmem:[#allocation5 + $0x20] sm:$0xff] }
 0x6c7   : > { %v3387_v21 = vsel %vm3291_vm1, %v11485_v62, 0.0  ;;  %v3388_v30 = vsel %vm3292_vm2, %v11486_v40, 0.0  ;;  %vm3290_vm1 = vcmp.eq.s32.totalorder %v11405_v55, %v9471_v28  ;;  %v11496_v62 = vld [vmem:[#allocation54_spill] sm:$0xff]  ;;  %v11497_v40 = vld [vmem:[#allocation55_spill] sm:$0xff] }
 0x6c8   : > { %v3473_v11 = vadd.f32 %v3388_v30, %v3387_v21 }
 0x6ca   : > { %3474 = vadd.xlane.f32.xlu0 %v3473_v11 }
 0x6cb   : > { %v3195_v53 = vpop.permute.xlu1 %3194  ;;  %3444 = vadd.xlane.f32.xlu1 %v3443_v27  ;;  %v11498_v27 = vld [vmem:[#allocation59_spill] sm:$0xff] }
 0x6cc   : > { %vm3275_vm6 = vcmp.eq.s32.totalorder %v11404_v39, %v3195_v53  ;;  %vm3276_vm7 = vcmp.eq.s32.totalorder %v11405_v55, %v3195_v53  ;;  %v3386_v53 = vsel %vm3290_vm1, %v11498_v27, 0.0  ;;  %v3311_v27 = vld [vmem:[#allocation5] sm:$0xff] }
 0x6cd   : > { %v3371_v47 = vsel %vm3275_vm6, %v11369_v36, 0.0  ;;  %v3372_v46 = vsel %vm3276_vm7, %v11370_v3, 0.0  ;;  %v3228_v10 = vpop.permute.xlu2 %3227  ;;  %v3312_v36 = vld [vmem:[#allocation5 + $0x8] sm:$0xff]  ;;  %v11489_v3 = vld [vmem:[#allocation46_spill] sm:$0xff]  ;;  %vm3295_vm7 = vcmp.eq.s32.totalorder %v11404_v39, %v9492_v50 }
 0x6ce   : > { %v3449_v19 = vadd.f32 %v3372_v46, %v3371_v47  ;;  %vm3297_vm8 = vcmp.eq.s32.totalorder %v11404_v39, %v3228_v10  ;;  %vm3298_vm9 = vcmp.eq.s32.totalorder %v11405_v55, %v3228_v10  ;;  %v3379_v63 = vsel %vm3283_vm10, %v11489_v3, 0.0  ;;  %v11499_v47 = vld [vmem:[#allocation163_spill] sm:$0xff]  ;;  %v11500_v10 = vld [vmem:[#allocation164_spill] sm:$0xff]  ;;  %v11503_v3 = vld [vmem:[#allocation70_spill] sm:$0xff] }
 0x6cf   : > { %v3393_v42 = vsel %vm3297_vm8, %v11487_v20, 0.0  ;;  %v3394_v33 = vsel %vm3298_vm9, %v11488_v2, 0.0  ;;  %v3461_v43 = vadd.f32 %v3380_v13, %v3379_v63  ;;  %vm3296_vm8 = vcmp.eq.s32.totalorder %v11405_v55, %v9492_v50  ;;  %v3321_v13 = vld [vmem:[#allocation5 + $0x50] sm:$0xff] }
 0x6d0   : > { %v3482_v22 = vadd.f32 %v3394_v33, %v3393_v42  ;;  %3450 = vadd.xlane.f32.xlu2 %v3449_v19  ;;  %v3470_v42 = vadd.f32 %v3386_v53, %v3385_v58  ;;  %v3318_v33 = vld [vmem:[#allocation5 + $0x38] sm:$0xff]  ;;  %v3391_v63 = vsel %vm3295_vm7, %v11503_v3, 0.0 }
 0x6d2   : > { %3483 = vadd.xlane.f32.xlu0 %v3482_v22  ;;  %v11501_v22 = vld [vmem:[#allocation66_spill] sm:$0xff] }
 0x6d3   : > { %v3204_v25 = vpop.permute.xlu1 %3203  ;;  %3453 = vadd.xlane.f32.xlu1 %v3452_v57 }
 0x6d4   : > { %vm3281_vm12 = vcmp.eq.s32.totalorder %v11404_v39, %v3204_v25  ;;  %vm3282_vm13 = vcmp.eq.s32.totalorder %v11405_v55, %v3204_v25  ;;  %v11502_v25 = vld [vmem:[#allocation67_spill] sm:$0xff] }
 0x6d5   : > { %v3377_v61 = vsel %vm3281_vm12, %v11490_v0, 0.0  ;;  %v3378_v34 = vsel %vm3282_vm13, %v11491_v48, 0.0  ;;  %v3237_v6 = vpop.permute.xlu2 %3236  ;;  %v11504_v0 = vld [vmem:[#allocation71_spill] sm:$0xff]  ;;  %vm3302_vm12 = vcmp.eq.s32.totalorder %v11405_v55, %v9508_v45 }
 0x6d6   : > { %v3458_v60 = vadd.f32 %v3378_v34, %v3377_v61  ;;  %vm3303_vm14 = vcmp.eq.s32.totalorder %v11404_v39, %v3237_v6  ;;  %vm3304_vm15 = vcmp.eq.s32.totalorder %v11405_v55, %v3237_v6  ;;  %v3412_v54 = vpop.xlane.xlu0 %3411  ;;  %v3392_v61 = vsel %vm3296_vm8, %v11504_v0, 0.0  ;;  %v3320_v0 = vld [vmem:[#allocation5 + $0x48] sm:$0xff] }
 0x6d7   : > { %v3399_v35 = vsel %vm3303_vm14, %v11493_v4, 0.0  ;;  %v3400_v24 = vsel %vm3304_vm15, %v11494_v1, 0.0  ;;  %v3504_v8 = vadd.f32 %v3412_v54, %v3312_v36  ;;  %v3479_v50 = vadd.f32 %v3392_v61, %v3391_v63  ;;  %v11505_v54 = vld [vmem:[#allocation80_spill] sm:$0xff]  ;;  %v3330_v63 = vld [vmem:[#allocation5 + $0x98] sm:$0xff] }
 0x6d8   : > { %v3491_v59 = vadd.f32 %v3400_v24, %v3399_v35  ;;  %3459 = vadd.xlane.f32.xlu2 %v3458_v60  ;;  %v11506_v35 = vld [vmem:[#allocation84_spill] sm:$0xff]  ;;  %v11507_v24 = vld [vmem:[#allocation86_spill] sm:$0xff]  ;;  %vm3307_vm15 = vcmp.eq.s32.totalorder %v11404_v39, %v9526_v56 }
 0x6d9   : > { %3536 = vst.msk [vmem:[#allocation5 + $0x8] sm:$0xff] %vm10904_vm4, %v3504_v8  ;;  %v3397_v1 = vsel %vm3301_vm11, %v11506_v35, 0.0  ;;  %v3398_v8 = vsel %vm3302_vm12, %v11507_v24, 0.0  ;;  %v3403_v58 = vsel %vm3307_vm15, %v11217_v15, 0.0  ;;  %v3324_v15 = vld [vmem:[#allocation5 + $0x68] sm:$0xff]  ;;  %v3325_v35 = vld [vmem:[#allocation5 + $0x70] sm:$0xff] }
 0x6da   : > { %3492 = vadd.xlane.f32.xlu0 %v3491_v59  ;;  %v3488_v45 = vadd.f32 %v3398_v8, %v3397_v1  ;;  %v3336_v24 = vld [vmem:[#allocation5 + $0xc8] sm:$0xff] }
 0x6db   : > { %v3213_v5 = vpop.permute.xlu1 %3212  ;;  %3462 = vadd.xlane.f32.xlu1 %v3461_v43 }
 0x6dc   : > { %vm3287_vm2 = vcmp.eq.s32.totalorder %v11404_v39, %v3213_v5  ;;  %vm3288_vm3 = vcmp.eq.s32.totalorder %v11405_v55, %v3213_v5 }
 0x6dd   : > { %v3383_v21 = vsel %vm3287_vm2, %v11496_v62, 0.0  ;;  %v3384_v30 = vsel %vm3288_vm3, %v11497_v40, 0.0  ;;  %v3246_v11 = vpop.permute.xlu2 %3245  ;;  %v3404_v62 = vsel %vm3308_vm0, %v11218_v38, 0.0  ;;  %v3319_v38 = vld [vmem:[#allocation5 + $0x40] sm:$0xff] }
 0x6de   : > { %v3467_v52 = vadd.f32 %v3384_v30, %v3383_v21  ;;  %vm3309_vm5 = vcmp.eq.s32.totalorder %v11404_v39, %v3246_v11  ;;  %vm3310_vm6 = vcmp.eq.s32.totalorder %v11405_v55, %v3246_v11  ;;  %v3421_v28 = vpop.xlane.xlu0 %3420  ;;  %v3497_v40 = vadd.f32 %v3404_v62, %v3403_v58  ;;  %v3313_v30 = vld [vmem:[#allocation5 + $0x10] sm:$0xff]  ;;  %v3339_v58 = vld [vmem:[#allocation5 + $0xe0] sm:$0xff] }
 0x6df   : > { %v3405_v46 = vsel %vm3309_vm5, %v11499_v47, 0.0  ;;  %v3406_v31 = vsel %vm3310_vm6, %v11500_v10, 0.0  ;;  %v3507_v19 = vadd.f32 %v3421_v28, %v3315_v49 }
 0x6e0   : > { %v3500_v20 = vadd.f32 %v3406_v31, %v3405_v46  ;;  %3468 = vadd.xlane.f32.xlu2 %v3467_v52 }
 0x6e1   : > { %3539 = vst.msk [vmem:[#allocation5 + $0x20] sm:$0xff] %vm10904_vm4, %v3507_v19 }
 0x6e2   : > { %3501 = vadd.xlane.f32.xlu0 %v3500_v20  ;;  %v3327_v20 = vld [vmem:[#allocation5 + $0x80] sm:$0xff] }
 0x6e3   : > { %v3222_v2 = vpop.permute.xlu1 %3221  ;;  %3471 = vadd.xlane.f32.xlu1 %v3470_v42  ;;  %v3322_v42 = vld [vmem:[#allocation5 + $0x58] sm:$0xff] }
 0x6e4   : > { %vm3293_vm9 = vcmp.eq.s32.totalorder %v11404_v39, %v3222_v2  ;;  %vm3294_vm10 = vcmp.eq.s32.totalorder %v11405_v55, %v3222_v2  ;;  %v3317_v2 = vld [vmem:[#allocation5 + $0x30] sm:$0xff] }
 0x6e5   : > { %v3389_v57 = vsel %vm3293_vm9, %v11501_v22, 0.0  ;;  %v3390_v36 = vsel %vm3294_vm10, %v11502_v25, 0.0 }
 0x6e6   : > { %v3476_v48 = vadd.f32 %v3390_v36, %v3389_v57  ;;  %v3430_v34 = vpop.xlane.xlu0 %3429 }
 0x6e7   : > { %v3510_v6 = vadd.f32 %v3430_v34, %v3318_v33 }
 0x6e8   : > { %3477 = vadd.xlane.f32.xlu2 %v3476_v48 }
 0x6e9   : > { %3542 = vst.msk [vmem:[#allocation5 + $0x38] sm:$0xff] %vm10904_vm4, %v3510_v6 }
 0x6eb   : > { %v3231_v12 = vpop.permute.xlu1 %3230  ;;  %3480 = vadd.xlane.f32.xlu1 %v3479_v50  ;;  %v3333_v50 = vld [vmem:[#allocation5 + $0xb0] sm:$0xff] }
 0x6ec   : > { %vm3299_vm13 = vcmp.eq.s32.totalorder %v11404_v39, %v3231_v12  ;;  %vm3300_vm14 = vcmp.eq.s32.totalorder %v11405_v55, %v3231_v12  ;;  %v3323_v12 = vld [vmem:[#allocation5 + $0x60] sm:$0xff] }
 0x6ed   : > { %v3395_v60 = vsel %vm3299_vm13, %v11344_v14, 0.0  ;;  %v3396_v4 = vsel %vm3300_vm14, %v11505_v54, 0.0 }
 0x6ee   : > { %v3485_v59 = vadd.f32 %v3396_v4, %v3395_v60  ;;  %v3439_v43 = vpop.xlane.xlu0 %3438 }
 0x6ef   : > { %v3513_v5 = vadd.f32 %v3439_v43, %v3321_v13 }
 0x6f0   : > { %3486 = vadd.xlane.f32.xlu2 %v3485_v59  ;;  %v3326_v59 = vld [vmem:[#allocation5 + $0x78] sm:$0xff] }
 0x6f1   : > { %3545 = vst.msk [vmem:[#allocation5 + $0x50] sm:$0xff] %vm10904_vm4, %v3513_v5 }
 0x6f3   : > { %v3240_v14 = vpop.permute.xlu1 %3239  ;;  %3489 = vadd.xlane.f32.xlu1 %v3488_v45 }
 0x6f4   : > { %vm3305_vm1 = vcmp.eq.s32.totalorder %v11404_v39, %v3240_v14  ;;  %vm3306_vm2 = vcmp.eq.s32.totalorder %v11405_v55, %v3240_v14  ;;  %v3316_v39 = vld [vmem:[#allocation5 + $0x28] sm:$0xff] }
 0x6f5   : > { %v3401_v49 = vsel %vm3305_vm1, %v11362_v26, 0.0  ;;  %v3402_v51 = vsel %vm3306_vm2, %v11363_v7, 0.0  ;;  %v3314_v7 = vld [vmem:[#allocation5 + $0x18] sm:$0xff] }
 0x6f6   : > { %v3494_v21 = vadd.f32 %v3402_v51, %v3401_v49  ;;  %v3328_v49 = vld [vmem:[#allocation5 + $0x88] sm:$0xff] }
 0x6f8   : > { %3495 = vadd.xlane.f32.xlu2 %v3494_v21  ;;  %v3329_v21 = vld [vmem:[#allocation5 + $0x90] sm:$0xff] }
 0x6fb   : > { %3498 = vadd.xlane.f32.xlu1 %v3497_v40 }
 0x716   : > { %v3415_v56 = vpop.xlane.xlu2 %3414 }
 0x717   : > { %v3505_v11 = vadd.f32 %v3415_v56, %v3313_v30 }
 0x719   : > { %3537 = vst.msk [vmem:[#allocation5 + $0x10] sm:$0xff] %vm10904_vm4, %v3505_v11 }
 0x71e   : > { %v3424_v55 = vpop.xlane.xlu2 %3423  ;;  %v3409_v53 = vpop.xlane.xlu1 %3408 }
 0x71f   : > { %v3508_v26 = vadd.f32 %v3424_v55, %v3316_v39  ;;  %v3503_v52 = vadd.f32 %v3409_v53, %v3311_v27  ;;  %v3331_v39 = vld [vmem:[#allocation5 + $0xa0] sm:$0xff]  ;;  %v3342_v55 = vld [vmem:[#allocation5 + $0xf8] sm:$0xff] }
 0x721   : > { %3540 = vst.msk [vmem:[#allocation5 + $0x28] sm:$0xff] %vm10904_vm4, %v3508_v26  ;;  %v3332_v26 = vld [vmem:[#allocation5 + $0xa8] sm:$0xff] }
 0x722   : > { %3535 = vst.msk [vmem:[#allocation5] sm:$0xff] %vm10904_vm4, %v3503_v52 }
 0x725   : > { %v3448_v28 = vpop.xlane.xlu0 %3447 }
 0x726   : > { %v3516_v47 = vadd.f32 %v3448_v28, %v3324_v15  ;;  %v3433_v46 = vpop.xlane.xlu2 %3432  ;;  %v3418_v10 = vpop.xlane.xlu1 %3417  ;;  %v3334_v28 = vld [vmem:[#allocation5 + $0xb8] sm:$0xff] }
 0x727   : > { %v3511_v31 = vadd.f32 %v3433_v46, %v3319_v38  ;;  %v3506_v19 = vadd.f32 %v3418_v10, %v3314_v7  ;;  %v3335_v10 = vld [vmem:[#allocation5 + $0xc0] sm:$0xff] }
 0x728   : > { %3548 = vst.msk [vmem:[#allocation5 + $0x68] sm:$0xff] %vm10904_vm4, %v3516_v47 }
 0x729   : > { %3543 = vst.msk [vmem:[#allocation5 + $0x40] sm:$0xff] %vm10904_vm4, %v3511_v31 }
 0x72a   : > { %3538 = vst.msk [vmem:[#allocation5 + $0x18] sm:$0xff] %vm10904_vm4, %v3506_v19 }
 0x72d   : > { %v3457_v33 = vpop.xlane.xlu0 %3456 }
 0x72e   : > { %v3519_v22 = vadd.f32 %v3457_v33, %v3327_v20  ;;  %v3442_v57 = vpop.xlane.xlu2 %3441  ;;  %v3427_v25 = vpop.xlane.xlu1 %3426  ;;  %v3337_v20 = vld [vmem:[#allocation5 + $0xd0] sm:$0xff]  ;;  %v3338_v33 = vld [vmem:[#allocation5 + $0xd8] sm:$0xff] }
 0x72f   : > { %v3514_v36 = vadd.f32 %v3442_v57, %v3322_v42  ;;  %v3509_v3 = vadd.f32 %v3427_v25, %v3317_v2  ;;  %v3340_v25 = vld [vmem:[#allocation5 + $0xe8] sm:$0xff] }
 0x730   : > { %3551 = vst.msk [vmem:[#allocation5 + $0x80] sm:$0xff] %vm10904_vm4, %v3519_v22 }
 0x731   : > { %3546 = vst.msk [vmem:[#allocation5 + $0x58] sm:$0xff] %vm10904_vm4, %v3514_v36 }
 0x732   : > { %3541 = vst.msk [vmem:[#allocation5 + $0x30] sm:$0xff] %vm10904_vm4, %v3509_v3 }
 0x735   : > { %v3466_v61 = vpop.xlane.xlu0 %3465 }
 0x736   : > { %v3522_v48 = vadd.f32 %v3466_v61, %v3330_v63  ;;  %v3436_v34 = vpop.xlane.xlu1 %3435  ;;  %v3341_v63 = vld [vmem:[#allocation5 + $0xf0] sm:$0xff] }
 0x737   : > { %v3512_v6 = vadd.f32 %v3436_v34, %v3320_v0 }
 0x738   : > { %3554 = vst.msk [vmem:[#allocation5 + $0x98] sm:$0xff] %vm10904_vm4, %v3522_v48 }
 0x739   : > { %3544 = vst.msk [vmem:[#allocation5 + $0x48] sm:$0xff] %vm10904_vm4, %v3512_v6 }
 0x73d   : > { %v3475_v13 = vpop.xlane.xlu0 %3474 }
 0x73e   : > { %v3525_v60 = vadd.f32 %v3475_v13, %v3333_v50  ;;  %v3445_v54 = vpop.xlane.xlu1 %3444 }
 0x73f   : > { %v3515_v4 = vadd.f32 %v3445_v54, %v3323_v12 }
 0x740   : > { %3557 = vst.msk [vmem:[#allocation5 + $0xb0] sm:$0xff] %vm10904_vm4, %v3525_v60 }
 0x741   : > { %3547 = vst.msk [vmem:[#allocation5 + $0x60] sm:$0xff] %vm10904_vm4, %v3515_v4 }
 0x743   : > { %v3451_v1 = vpop.xlane.xlu2 %3450 }
 0x744   : > { %v3517_v8 = vadd.f32 %v3451_v1, %v3325_v35 }
 0x745   : > { %v3484_v43 = vpop.xlane.xlu0 %3483 }
 0x746   : > { %3549 = vst.msk [vmem:[#allocation5 + $0x70] sm:$0xff] %vm10904_vm4, %v3517_v8  ;;  %v3528_v5 = vadd.f32 %v3484_v43, %v3336_v24  ;;  %v3454_v45 = vpop.xlane.xlu1 %3453 }
 0x747   : > { %v3518_v14 = vadd.f32 %v3454_v45, %v3326_v59 }
 0x748   : > { %3560 = vst.msk [vmem:[#allocation5 + $0xc8] sm:$0xff] %vm10904_vm4, %v3528_v5 }
 0x749   : > { %3550 = vst.msk [vmem:[#allocation5 + $0x78] sm:$0xff] %vm10904_vm4, %v3518_v14 }
 0x74b   : > { %v3460_v51 = vpop.xlane.xlu2 %3459 }
 0x74c   : > { %v3520_v62 = vadd.f32 %v3460_v51, %v3328_v49 }
 0x74d   : > { %v3493_v40 = vpop.xlane.xlu0 %3492 }
 0x74e   : > { %3552 = vst.msk [vmem:[#allocation5 + $0x88] sm:$0xff] %vm10904_vm4, %v3520_v62  ;;  %v3531_v30 = vadd.f32 %v3493_v40, %v3339_v58  ;;  %v3463_v56 = vpop.xlane.xlu1 %3462 }
 0x74f   : > { %v3521_v11 = vadd.f32 %v3463_v56, %v3329_v21 }
 0x750   : > { %3563 = vst.msk [vmem:[#allocation5 + $0xe0] sm:$0xff] %vm10904_vm4, %v3531_v30 }
 0x751   : > { %3553 = vst.msk [vmem:[#allocation5 + $0x90] sm:$0xff] %vm10904_vm4, %v3521_v11 }
 0x753   : > { %v3469_v27 = vpop.xlane.xlu2 %3468 }
 0x754   : > { %v3523_v53 = vadd.f32 %v3469_v27, %v3331_v39 }
 0x755   : > { %v3502_v52 = vpop.xlane.xlu0 %3501 }
 0x756   : > { %3555 = vst.msk [vmem:[#allocation5 + $0xa0] sm:$0xff] %vm10904_vm4, %v3523_v53  ;;  %v3534_v15 = vadd.f32 %v3502_v52, %v3342_v55  ;;  %v3472_v38 = vpop.xlane.xlu1 %3471 }
 0x757   : > { %v3524_v7 = vadd.f32 %v3472_v38, %v3332_v26 }
 0x758   : > { %3566 = vst.msk [vmem:[#allocation5 + $0xf8] sm:$0xff] %vm10904_vm4, %v3534_v15 }
 0x759   : > { %3556 = vst.msk [vmem:[#allocation5 + $0xa8] sm:$0xff] %vm10904_vm4, %v3524_v7 }
 0x75b   : > { %v3478_v47 = vpop.xlane.xlu2 %3477 }
 0x75c   : > { %v3526_v46 = vadd.f32 %v3478_v47, %v3334_v28 }
 0x75e   : > { %3558 = vst.msk [vmem:[#allocation5 + $0xb8] sm:$0xff] %vm10904_vm4, %v3526_v46  ;;  %v3481_v31 = vpop.xlane.xlu1 %3480 }
 0x75f   : > { %v3527_v19 = vadd.f32 %v3481_v31, %v3335_v10 }
 0x761   : > { %3559 = vst.msk [vmem:[#allocation5 + $0xc0] sm:$0xff] %vm10904_vm4, %v3527_v19 }
 0x763   : > { %v3487_v42 = vpop.xlane.xlu2 %3486 }
 0x764   : > { %v3529_v2 = vadd.f32 %v3487_v42, %v3337_v20 }
 0x766   : > { %3561 = vst.msk [vmem:[#allocation5 + $0xd0] sm:$0xff] %vm10904_vm4, %v3529_v2  ;;  %v3490_v22 = vpop.xlane.xlu1 %3489 }
 0x767   : > { %v3530_v57 = vadd.f32 %v3490_v22, %v3338_v33 }
 0x769   : > { %3562 = vst.msk [vmem:[#allocation5 + $0xd8] sm:$0xff] %vm10904_vm4, %v3530_v57 }
 0x76b   : > { %v3496_v36 = vpop.xlane.xlu2 %3495 }
 0x76c   : > { %v3532_v3 = vadd.f32 %v3496_v36, %v3340_v25 }
 0x76d   : > { %3570 = sbr.rel (%p6044_p1) target bundleno = 2622 (0xa3e), region = 60 }
 0x76e   : > { %3564 = vst.msk [vmem:[#allocation5 + $0xe8] sm:$0xff] %vm10904_vm4, %v3532_v3  ;;  %v3499_v0 = vpop.xlane.xlu1 %3498 }
 0x76f   : > { %v3533_v61 = vadd.f32 %v3499_v0, %v3341_v63 }
 0x771   : > { %3565 = vst.msk [vmem:[#allocation5 + $0xf0] sm:$0xff] %vm10904_vm4, %v3533_v61 }
 0x772   : > { %v11508_v48 = vld [vmem:[#allocation27_spill] sm:$0xff]  ;;  %v11509_v34 = vld [vmem:[#allocation24_spill] sm:$0xff]  ;;  %v11510_v6 = vld [vmem:[#allocation25_spill] sm:$0xff]  ;;  %v6923_v54 = vmov 0   ;;  %vm4555_vm1 = vcmp.ne.s32.totalorder %v9213_v18, 0  ;;  %vm4556_vm2 = vcmp.ne.s32.totalorder %v9239_v41, 0 }
 0x773   : > { %vm4542_vm3 = vcmp.ne.s32.totalorder %v11508_v48, 0  ;;  %vm4543_vm5 = vcmp.ne.s32.totalorder %v11509_v34, 0  ;;  %vm4544_vm6 = vcmp.ne.s32.totalorder %v11510_v6, 0  ;;  %v11511_v50 = vld [vmem:[#allocation26_spill] sm:$0xff]  ;;  %v11512_v12 = vld [vmem:[#allocation31_spill] sm:$0xff]  ;;  %v11513_v13 = vld [vmem:[#allocation28_spill] sm:$0xff]  ;;  %6663 = vset.pattern.permute.xlu0 %v6923_v54  ;;  %6664 = vset.pattern.permute.xlu1 %v6923_v54 }
 0x774   : > { %vm4545_vm7 = vcmp.ne.s32.totalorder %v11511_v50, 0  ;;  %vm4546_vm8 = vcmp.ne.s32.totalorder %v11512_v12, 0  ;;  %vm4547_vm9 = vcmp.ne.s32.totalorder %v11513_v13, 0  ;;  %v11514_v60 = vld [vmem:[#allocation29_spill] sm:$0xff]  ;;  %v11515_v4 = vld [vmem:[#allocation34_spill] sm:$0xff]  ;;  %v11518_v24 = vld [vmem:[#allocation35_spill] sm:$0xff]  ;;  %6665 = vset.pattern.permute.xlu2 %v6923_v54 }
 0x775   : > { %vm4548_vm10 = vcmp.ne.s32.totalorder %v11514_v60, 0  ;;  %vm4549_vm11 = vcmp.ne.s32.totalorder %v11515_v4, 0  ;;  %v11516_v35 = vld [vmem:[#allocation30_spill] sm:$0xff]  ;;  %v11517_v1 = vld [vmem:[#allocation33_spill] sm:$0xff]  ;;  %vm4552_vm14 = vcmp.ne.s32.totalorder %v11518_v24, 0  ;;  %v11519_v8 = vld [vmem:[#allocation32_spill] sm:$0xff] }
 0x776   : > { %vm4550_vm12 = vcmp.ne.s32.totalorder %v11516_v35, 0  ;;  %vm4551_vm13 = vcmp.ne.s32.totalorder %v11517_v1, 0  ;;  %vm4553_vm15 = vcmp.ne.s32.totalorder %v11519_v8, 0  ;;  %v11520_v59 = vld [vmem:[#allocation105_spill] sm:$0xff]  ;;  %v5002_v5 = vsel %vm4542_vm3, 1, %v6923_v54 }
 0x777   : > { %vm4554_vm0 = vcmp.ne.s32.totalorder %v11520_v59, 0  ;;  %v11521_v43 = vld [vmem:[#allocation109_spill] sm:$0xff]  ;;  %v5003_v45 = vsel %vm4543_vm5, 1, %v6923_v54  ;;  %v5004_v14 = vsel %vm4544_vm6, 1, %v6923_v54  ;;  %v5005_v49 = vsel %vm4545_vm7, 1, %v6923_v54 }
 0x778   : > { %vm4557_vm4 = vcmp.ne.s32.totalorder %v11521_v43, 0  ;;  %v5006_v51 = vsel %vm4546_vm8, 1, %v6923_v54  ;;  %v5007_v58 = vsel %vm4547_vm9, 1, %v6923_v54  ;;  %v5008_v62 = vsel %vm4548_vm10, 1, %v6923_v54 }
 0x779   : > { %v5009_v21 = vsel %vm4549_vm11, 1, %v6923_v54  ;;  %v5010_v40 = vsel %vm4550_vm12, 1, %v6923_v54  ;;  %v5011_v30 = vsel %vm4551_vm13, 1, %v6923_v54  ;;  %v5012_v56 = vsel %vm4552_vm14, 1, %v6923_v54 }
 0x77a   : > { %v5013_v11 = vsel %vm4553_vm15, 1, %v6923_v54  ;;  %v5014_v39 = vsel %vm4554_vm0, 1, %v6923_v54  ;;  %v5015_v27 = vsel %vm4555_vm1, 1, %v6923_v54  ;;  %v5016_v55 = vsel %vm4556_vm2, 1, %v6923_v54 }
 0x77b   : > { %v5017_v53 = vsel %vm4557_vm4, 1, %v6923_v54  ;;  %vm11522_vm3 = vcmask 7168  }
 0x77c   : > { %v5034_v26 = vsel %vm11522_vm3, %v5002_v5, 0  ;;  %vm11523_vm5 = vmmov %vm11522_vm3  ;;  %v4574_v5 = vld [vmem:[%s10496_s4] sm:$0xff] }
 0x77d   : > { %v5035_v52 = vsel %vm11523_vm5, %v5003_v45, 0  ;;  %vm11524_vm6 = vmmov %vm11522_vm3  ;;  %v4575_v45 = vld [vmem:[%s10496_s4 + $0x8] sm:$0xff] }
 0x77e   : > { %v5036_v15 = vsel %vm11524_vm6, %v5004_v14, 0  ;;  %vm11525_vm7 = vmmov %vm11522_vm3  ;;  %v9714_v14 = vld [vmem:[%s10496_s4 + $0x10] sm:$0xff]  ;;  %vm4607_vm5 = vcmp.ne.s32.totalorder %v4575_v45, 0 }
 0x77f   : > { %v5037_v38 = vsel %vm11525_vm7, %v5005_v49, 0  ;;  %vm11526_vm8 = vmmov %vm11522_vm3  ;;  %vm4608_vm6 = vcmp.ne.s32.totalorder %v9714_v14, 0 }
 0x780   : > { %v5038_v7 = vsel %vm11526_vm8, %v5006_v51, 0  ;;  %vm11527_vm9 = vmmov %vm11522_vm3 }
 0x781   : > { %v5040_v28 = vsel %vm11527_vm9, %v5007_v58, 0  ;;  %vm11528_vm10 = vmmov %vm11522_vm3  ;;  %v5039_v46 = vadd.s32 %v5038_v7, %v5034_v26  ;;  %v9755_v26 = vld [vmem:[%s10496_s4 + $0x50] sm:$0xff]  ;;  %v4638_v7 = vld [vmem:[#allocation6] sm:$0xff] }
 0x782   : > { %v5042_v47 = vsel %vm11528_vm10, %v5008_v62, 0  ;;  %v5041_v10 = vadd.s32 %v5040_v28, %v5035_v52  ;;  %vm11529_vm11 = vmmov %vm11522_vm3  ;;  %v9760_v52 = vld [vmem:[%s10496_s4 + $0x58] sm:$0xff]  ;;  %v4639_v28 = vld [vmem:[#allocation6 + $0x8] sm:$0xff] }
 0x783   : > { %v5043_v31 = vadd.s32 %v5042_v47, %v5036_v15  ;;  %v5044_v19 = vsel %vm11529_vm11, %v5009_v21, 0  ;;  %vm11530_vm4 = vmmov %vm11522_vm3  ;;  %v9720_v21 = vld [vmem:[%s10496_s4 + $0x18] sm:$0xff] }
 0x784   : > { %v5045_v20 = vadd.s32 %v5044_v19, %v5037_v38  ;;  %v5046_v42 = vsel %vm11530_vm4, %v5010_v40, 0  ;;  %vm11531_vm12 = vmmov %vm11522_vm3  ;;  %v9725_v40 = vld [vmem:[%s10496_s4 + $0x20] sm:$0xff]  ;;  %v4640_v47 = vld [vmem:[#allocation6 + $0x10] sm:$0xff]  ;;  %vm4609_vm7 = vcmp.ne.s32.totalorder %v9720_v21, 0 }
 0x785   : > { %v5048_v2 = vsel %vm11531_vm12, %v5011_v30, 0  ;;  %vm11532_vm13 = vmmov %vm11522_vm3  ;;  %v5047_v22 = vadd.s32 %v5046_v42, %v5039_v46  ;;  %v9730_v30 = vld [vmem:[%s10496_s4 + $0x28] sm:$0xff]  ;;  %v9765_v38 = vld [vmem:[%s10496_s4 + $0x60] sm:$0xff]  ;;  %vm4610_vm8 = vcmp.ne.s32.totalorder %v9725_v40, 0 }
 0x786   : > { %v5050_v33 = vsel %vm11532_vm13, %v5012_v56, 0  ;;  %v5049_v57 = vadd.s32 %v5048_v2, %v5041_v10  ;;  %vm11533_vm14 = vmmov %vm11522_vm3  ;;  %v9770_v46 = vld [vmem:[%s10496_s4 + $0x68] sm:$0xff]  ;;  %vm4611_vm9 = vcmp.ne.s32.totalorder %v9730_v30, 0  ;;  %v4641_v10 = vld [vmem:[#allocation6 + $0x18] sm:$0xff]  ;;  %vm4670_vm13 = vcmp.eq.s32.totalorder %v4638_v7, %v11508_v48 }
 0x787   : > { %v5051_v25 = vadd.s32 %v5050_v33, %v5043_v31  ;;  %v5052_v36 = vsel %vm11533_vm14, %v5013_v11, 0  ;;  %vm11534_vm15 = vmmov %vm11522_vm3  ;;  %v9735_v11 = vld [vmem:[%s10496_s4 + $0x30] sm:$0xff]  ;;  %v4642_v31 = vld [vmem:[#allocation6 + $0x20] sm:$0xff]  ;;  %vm4671_vm14 = vcmp.eq.s32.totalorder %v4639_v28, %v11509_v34 }
 0x788   : > { %v5053_v3 = vadd.s32 %v5052_v36, %v5045_v20  ;;  %v5054_v63 = vsel %vm11534_vm15, %v5014_v39, 0  ;;  %vm11535_vm0 = vmmov %vm11522_vm3  ;;  %v9740_v39 = vld [vmem:[%s10496_s4 + $0x38] sm:$0xff]  ;;  %vm4606_vm3 = vcmp.ne.s32.totalorder %v4574_v5, 0  ;;  %v9781_v20 = vld [vmem:[%s10496_s4 + $0x70] sm:$0xff]  ;;  %vm4672_vm15 = vcmp.eq.s32.totalorder %v4640_v47, %v11510_v6 }
 0x789   : > { %v5056_v0 = vsel %vm11535_vm0, %v5015_v27, 0  ;;  %vm11536_vm1 = vmmov %vm11535_vm0  ;;  %v5055_v49 = vadd.s32 %v5054_v63, %v5047_v22  ;;  %v9745_v27 = vld [vmem:[%s10496_s4 + $0x40] sm:$0xff]  ;;  %v4643_v42 = vld [vmem:[#allocation6 + $0x28] sm:$0xff] }
 0x78a   : > { %v5058_v61 = vsel %vm11536_vm1, %v5016_v55, 0  ;;  %v5057_v51 = vadd.s32 %v5056_v0, %v5049_v57  ;;  %vm11537_vm2 = vmmov %vm11535_vm0  ;;  %v4644_v2 = vld [vmem:[#allocation6 + $0x30] sm:$0xff]  ;;  %v4645_v33 = vld [vmem:[#allocation6 + $0x38] sm:$0xff]  ;;  %vm4674_vm1 = vcmp.eq.s32.totalorder %v4642_v31, %v11512_v12 }
 0x78b   : > { %v5059_v58 = vadd.s32 %v5058_v61, %v5051_v25  ;;  %v5060_v62 = vsel %vm11537_vm2, %v5017_v53, 0  ;;  %v9750_v53 = vld [vmem:[%s10496_s4 + $0x48] sm:$0xff]  ;;  %v9787_v57 = vld [vmem:[#allocation6 + $0x48] sm:$0xff]  ;;  %v9789_v25 = vld [vmem:[#allocation6 + $0x50] sm:$0xff]  ;;  %vm4673_vm2 = vcmp.eq.s32.totalorder %v4641_v10, %v11511_v50 }
 0x78c   : > { %v5061_v56 = vadd.s32 %v5060_v62, %v5053_v3  ;;  %v5094_v55 = vadd.s32 %v5057_v51, %v5055_v49  ;;  %v4646_v22 = vld [vmem:[#allocation6 + $0x40] sm:$0xff]  ;;  %v9797_v3 = vld [vmem:[#allocation6 + $0x58] sm:$0xff]  ;;  %vm9803_vm12 = vmand %vm4670_vm13, %vm4606_vm3  ;;  %vm4680_vm11 = vcmp.eq.s32.totalorder %v9789_v25, %v11518_v24 }
 0x78d   : > { %v9799_v63 = vld [vmem:[#allocation6 + $0x60] sm:$0xff]  ;;  %v9810_v48 = vld [vmem:[%s10496_s4 + $0x78] sm:$0xff]  ;;  %v9813_v61 = vld [vmem:[#allocation6 + $0x68] sm:$0xff]  ;;  %vm4678_vm0 = vcmp.eq.s32.totalorder %v4646_v22, %v11516_v35  ;;  %vm4681_vm10 = vcmp.eq.s32.totalorder %v9797_v3, %v11519_v8  ;;  %v5150_v34 = vsel %vm9803_vm12, 1, %v6923_v54 }
 0x78e   : > { %v5095_v15 = vadd.s32 %v5061_v56, %v5059_v58  ;;  %vm4703_vm13 = vmand %vm4671_vm14, %vm4607_vm5  ;;  %v9823_v49 = vld [vmem:[#allocation6 + $0x70] sm:$0xff]  ;;  %v9825_v51 = vld [vmem:[#allocation6 + $0x78] sm:$0xff]  ;;  %vm4682_vm3 = vcmp.eq.s32.totalorder %v9799_v63, %v11520_v59 }
 0x78f   : > { %vm4704_vm5 = vmand %vm4672_vm15, %vm4608_vm6  ;;  %v5151_v6 = vsel %vm4703_vm13, 1, %v6923_v54  ;;  %vm11541_vm13 = vcmp.eq.s32.totalorder %v4643_v42, %v11513_v13  ;;  %vm11547_vm15 = vcmp.ne.s32.totalorder %v9740_v39, 0  ;;  %v11559_v24 = vld [vmem:[#allocation135_spill] sm:$0xff]  ;;  %v11562_v8 = vld [vmem:[#allocation112_spill] sm:$0xff] }
 0x790   : > { %v9776_v19 = vadd.s32 %v5095_v15, %v5094_v55  ;;  %vm4705_vm4 = vmand %vm4673_vm2, %vm4609_vm7  ;;  %v5152_v50 = vsel %vm4704_vm5, 1, %v6923_v54  ;;  %vm11540_vm7 = vcmask 7168   ;;  %v11566_v59 = vld [vmem:[#allocation150_spill] sm:$0xff] }
 0x791   : > { %vm4706_vm14 = vmand %vm4674_vm1, %vm4610_vm8  ;;  %v5153_v45 = vsel %vm4705_vm4, 1, %v6923_v54  ;;  %v5182_v14 = vsel %vm11540_vm7, %v5150_v34, 0  ;;  %vm11543_vm1 = vcmp.ne.s32.totalorder %v9735_v11, 0  ;;  %vm11544_vm4 = vcmp.eq.s32.totalorder %v4644_v2, %v11514_v60 }
 0x792   : > { %v5098_v36 = vshrl.u32 %v9776_v19, 16  ;;  %vm4707_vm6 = vmand %vm11541_vm13, %vm4611_vm9  ;;  %v5154_v12 = vsel %vm4706_vm14, 1, %v6923_v54  ;;  %v5184_v21 = vsel %vm11540_vm7, %v5152_v50, 0  ;;  %vm11548_vm9 = vcmp.eq.s32.totalorder %v4645_v33, %v11515_v4 }
 0x793   : > { %vm11542_vm8 = vmmov %vm11540_vm7  ;;  %v5155_v62 = vsel %vm4707_vm6, 1, %v6923_v54  ;;  %vm11550_vm6 = vcmp.ne.s32.totalorder %v9745_v27, 0 }
 0x794   : > { %v5100_v5 = vcvt.s32.f32 %v5098_v36  ;;  %v5183_v58 = vsel %vm11542_vm8, %v5151_v6, 0  ;;  %vm4708_vm5 = vmand %vm11544_vm4, %vm11543_vm1  ;;  %vm4558_vm8 = vcmp.ne.s32.totalorder %v9225_v16, 0  ;;  %vm4561_vm4 = vcmp.ne.s32.totalorder %v9247_v44, 0  ;;  %v9950_v36 = vld [vmem:[#allocation6] sm:$0xff] }
 0x795   : > { %vm11545_vm12 = vmmov %vm11540_vm7  ;;  %v5156_v13 = vsel %vm4708_vm5, 1, %v6923_v54  ;;  %4051 = vst [vmem:[#allocation1] ss:$9 sm:$0xff] %v9950_v36  ;;  %v5517_v34 = vsel %vm4558_vm8, 1, %v6923_v54  ;;  %vm11580_vm8 = vcmp.ne.s32.totalorder %v11559_v24, 0 }
 0x796   : > { %5103 = vadd.xlane.f32.xlu0 %v5100_v5  ;;  %v5185_v40 = vsel %vm11545_vm12, %v5153_v45, 0  ;;  %vm11546_vm2 = vmmov %vm11540_vm7  ;;  %vm11552_vm7 = vcmp.ne.s32.totalorder %v9750_v53, 0  ;;  %v11578_v5 = vld [vmem:[#allocation259_spill] sm:$0xff]  ;;  %v5520_v45 = vsel %vm4561_vm4, 1, %v6923_v54 }
 0x797   : > { %v5186_v30 = vsel %vm11546_vm2, %v5154_v12, 0  ;;  %vm4709_vm14 = vmand %vm11548_vm9, %vm11547_vm15  ;;  %vm4560_vm15 = vcmp.ne.s32.totalorder %v9096_v9, 0  ;;  %vm11553_vm9 = vcmp.eq.s32.totalorder %v9787_v57, %v11517_v1  ;;  %v11557_v1 = vld [vmem:[#allocation235_spill] sm:$0xff] }
 0x798   : > { %v5187_v56 = vadd.s32 %v5186_v30, %v5182_v14  ;;  %vm11549_vm13 = vmmov %vm11546_vm2  ;;  %v5157_v60 = vsel %vm4709_vm14, 1, %v6923_v54  ;;  %vm4563_vm14 = vcmp.ne.s32.totalorder %v9122_v17, 0  ;;  %v5519_v50 = vsel %vm4560_vm15, 1, %v6923_v54 }
 0x799   : > { %v5188_v11 = vsel %vm11549_vm13, %v5155_v62, 0  ;;  %vm4710_vm1 = vmand %vm4678_vm0, %vm11550_vm6  ;;  %vm11555_vm6 = vcmp.ne.s32.totalorder %v9755_v26, 0  ;;  %vm11582_vm15 = vcmp.ne.s32.totalorder %v11566_v59, 0 }
 0x79a   : > { %v5189_v55 = vadd.s32 %v5188_v11, %v5183_v58  ;;  %vm11551_vm12 = vmmov %vm11546_vm2  ;;  %vm4559_vm2 = vcmp.ne.s32.totalorder %v9266_v37, 0  ;;  %v5158_v4 = vsel %vm4710_vm1, 1, %v6923_v54  ;;  %vm11558_vm1 = vcmp.ne.s32.totalorder %v9760_v52, 0 }
 0x79b   : > { %v5190_v39 = vsel %vm11551_vm12, %v5156_v13, 0  ;;  %vm4711_vm13 = vmand %vm11553_vm9, %vm11552_vm7  ;;  %vm4564_vm7 = vcmp.ne.s32.totalorder %v11557_v1, 0  ;;  %v5518_v6 = vsel %vm4559_vm2, 1, %v6923_v54  ;;  %v5522_v58 = vsel %vm4563_vm14, 1, %v6923_v54 }
 0x79c   : > { %v5191_v35 = vadd.s32 %v5190_v39, %v5184_v21  ;;  %vm11554_vm0 = vmmov %vm11551_vm12  ;;  %v5159_v15 = vsel %vm4711_vm13, 1, %v6923_v54  ;;  %vm11560_vm13 = vcmp.ne.s32.totalorder %v9765_v38, 0  ;;  %v5523_v62 = vsel %vm4564_vm7, 1, %v6923_v54 }
 0x79d   : > { %v5192_v27 = vsel %vm11554_vm0, %v5157_v60, 0  ;;  %vm4712_vm12 = vmand %vm4680_vm11, %vm11555_vm6  ;;  %v5196_v47 = vsel %vm11554_vm0, %v5159_v15, 0  ;;  %v5524_v21 = vsel %vm11580_vm8, 1, %v6923_v54  ;;  %vm11581_vm2 = vcmp.ne.s32.totalorder %v11562_v8, 0 }
 0x79e   : > { %v5193_v53 = vadd.s32 %v5192_v27, %v5185_v40  ;;  %vm11556_vm5 = vmmov %vm11554_vm0  ;;  %v5160_v28 = vsel %vm4712_vm12, 1, %v6923_v54  ;;  %v5197_v52 = vadd.s32 %v5196_v47, %v5189_v55  ;;  %vm11563_vm12 = vcmp.ne.s32.totalorder %v9770_v46, 0 }
 0x79f   : > { %v5194_v7 = vsel %vm11556_vm5, %v5158_v4, 0  ;;  %vm4713_vm9 = vmand %vm4681_vm10, %vm11558_vm1  ;;  %vm11564_vm1 = vcmp.eq.s32.totalorder %v9813_v61, %v9213_v18  ;;  %v11570_v18 = vld [vmem:[#allocation219_spill] sm:$0xff]  ;;  %v5525_v40 = vsel %vm11581_vm2, 1, %v6923_v54  ;;  %v5526_v30 = vsel %vm11582_vm15, 1, %v6923_v54 }
 0x7a0   : > { %v5195_v26 = vadd.s32 %v5194_v7, %v5187_v56  ;;  %vm4714_vm5 = vmand %vm4682_vm3, %vm11560_vm13  ;;  %v5161_v10 = vsel %vm4713_vm9, 1, %v6923_v54  ;;  %vm11567_vm9 = vcmp.ne.s32.totalorder %v9781_v20, 0  ;;  %vm11568_vm13 = vcmp.eq.s32.totalorder %v9823_v49, %v9239_v41  ;;  %v11574_v41 = vld [vmem:[#allocation116_spill] sm:$0xff]  ;;  %v11576_v61 = vld [vmem:[#allocation111_spill] sm:$0xff] }
 0x7a1   : > { %vm11561_vm6 = vmmov %vm11554_vm0  ;;  %v5162_v42 = vsel %vm4714_vm5, 1, %v6923_v54  ;;  %vm11571_vm5 = vcmp.ne.s32.totalorder %v9810_v48, 0 }
 0x7a2   : > { %v5198_v31 = vsel %vm11561_vm6, %v5160_v28, 0  ;;  %vm4715_vm0 = vmand %vm11564_vm1, %vm11563_vm12  ;;  %vm4568_vm12 = vcmp.ne.s32.totalorder %v11570_v18, 0 }
 0x7a3   : > { %v5199_v38 = vadd.s32 %v5198_v31, %v5191_v35  ;;  %vm11565_vm11 = vmmov %vm11561_vm6  ;;  %v5163_v33 = vsel %vm4715_vm0, 1, %v6923_v54  ;;  %vm4570_vm0 = vcmp.ne.s32.totalorder %v11576_v61, 0  ;;  %v5527_v13 = vsel %vm4568_vm12, 1, %v6923_v54 }
 0x7a4   : > { %v5200_v2 = vsel %vm11565_vm11, %v5161_v10, 0  ;;  %vm4716_vm6 = vmand %vm11568_vm13, %vm11567_vm9  ;;  %vm4569_vm9 = vcmp.ne.s32.totalorder %v11574_v41, 0  ;;  %v5529_v60 = vsel %vm4570_vm0, 1, %v6923_v54 }
 0x7a5   : > { %v5201_v46 = vadd.s32 %v5200_v2, %v5193_v53  ;;  %vm11569_vm10 = vmmov %vm11565_vm11  ;;  %vm11572_vm11 = vcmp.eq.s32.totalorder %v9825_v51, %v11521_v43  ;;  %v5164_v57 = vsel %vm4716_vm6, 1, %v6923_v54  ;;  %vm4571_vm6 = vcmp.ne.s32.totalorder %v9393_v23, 0 }
 0x7a6   : > { %v5202_v22 = vsel %vm11569_vm10, %v5162_v42, 0  ;;  %vm4717_vm1 = vmand %vm11572_vm11, %vm11571_vm5  ;;  %vm4573_vm5 = vcmp.ne.s32.totalorder %v9368_v29, 0  ;;  %vm11579_vm11 = vcmp.ne.s32.totalorder %v9297_v32, 0  ;;  %v5528_v56 = vsel %vm4569_vm9, 1, %v6923_v54 }
 0x7a7   : > { %v5203_v20 = vadd.s32 %v5202_v22, %v5195_v26  ;;  %vm11573_vm3 = vmmov %vm11569_vm10  ;;  %v5165_v3 = vsel %vm4717_vm1, 1, %v6923_v54  ;;  %v5521_v14 = vsel %vm11579_vm11, 1, %v6923_v54  ;;  %v5530_v55 = vsel %vm4571_vm6, 1, %v6923_v54 }
 0x7a8   : > { %v5204_v25 = vsel %vm11573_vm3, %v5163_v33, 0  ;;  %vm11575_vm10 = vmmov %vm11573_vm3  ;;  %v5532_v4 = vsel %vm4573_vm5, 1, %v6923_v54 }
 0x7a9   : > { %v5205_v63 = vadd.s32 %v5204_v25, %v5197_v52  ;;  %v5206_v0 = vsel %vm11575_vm10, %v5164_v57, 0  ;;  %vm11577_vm13 = vmmov %vm11573_vm3  ;;  %vm4572_vm3 = vcmp.ne.s32.totalorder %v11578_v5, 0  ;;  %v4590_v25 = vld [vmem:[%s10496_s4 + $0x80] sm:$0xff] }
 0x7aa   : > { %v5207_v43 = vadd.s32 %v5206_v0, %v5199_v38  ;;  %v5208_v48 = vsel %vm11577_vm13, %v5165_v3, 0  ;;  %v5531_v39 = vsel %vm4572_vm3, 1, %v6923_v54  ;;  %vm11583_vm4 = vmmov %vm11575_vm10  ;;  %v10029_v3 = vld [vmem:[%s10496_s4 + $0x88] sm:$0xff] }
 0x7ab   : > { %v5209_v49 = vadd.s32 %v5208_v48, %v5201_v46  ;;  %v5242_v51 = vadd.s32 %v5205_v63, %v5203_v20  ;;  %v5561_v35 = vsel %vm11583_vm4, %v5517_v34, 0  ;;  %vm11584_vm14 = vmmov %vm11583_vm4  ;;  %v10045_v34 = vld [vmem:[%s10496_s4 + $0xa0] sm:$0xff] }
 0x7ac   : > { %v5563_v27 = vsel %vm11584_vm14, %v5518_v6, 0  ;;  %vm11585_vm7 = vmmov %vm11583_vm4  ;;  %vm4623_vm14 = vcmp.ne.s32.totalorder %v10029_v3, 0 }
 0x7ad   : > { %v5243_v12 = vadd.s32 %v5209_v49, %v5207_v43  ;;  %v5565_v15 = vsel %vm11585_vm7, %v5519_v50, 0  ;;  %vm11586_vm12 = vmmov %vm11583_vm4  ;;  %v10035_v49 = vld [vmem:[%s10496_s4 + $0x90] sm:$0xff] }
 0x7ae   : > { %v5567_v7 = vsel %vm11586_vm12, %v5520_v45, 0  ;;  %vm11587_vm1 = vmmov %vm11583_vm4  ;;  %vm4622_vm4 = vcmp.ne.s32.totalorder %v4590_v25, 0  ;;  %vm4624_vm7 = vcmp.ne.s32.totalorder %v10035_v49, 0  ;;  %v3603_v49 = vld [vmem:[#allocation4] sm:$0xff] }
 0x7af   : > { %v9996_v11 = vadd.s32 %v5243_v12, %v5242_v51  ;;  %v5569_v28 = vsel %vm11587_vm1, %v5521_v14, 0  ;;  %vm11588_vm9 = vmmov %vm11587_vm1  ;;  %v10040_v51 = vld [vmem:[%s10496_s4 + $0x98] sm:$0xff]  ;;  %v10053_v12 = vld [vmem:[%s10496_s4 + $0xa8] sm:$0xff]  ;;  %6666 = vlog2.f32 %v3603_v49 }
 0x7b0   : > { %v5571_v26 = vsel %vm11588_vm9, %v5522_v58, 0  ;;  %v5570_v47 = vadd.s32 %v5569_v28, %v5561_v35  ;;  %vm11589_vm10 = vmmov %vm11587_vm1  ;;  %v10058_v58 = vld [vmem:[%s10496_s4 + $0xb0] sm:$0xff]  ;;  %v4658_v28 = vld [vmem:[#allocation6 + $0xa0] sm:$0xff]  ;;  %vm4625_vm12 = vcmp.ne.s32.totalorder %v10040_v51, 0  ;;  %vm4627_vm9 = vcmp.ne.s32.totalorder %v10053_v12, 0 }
 0x7b1   : > { %v5246_v53 = vshrl.u32 %v9996_v11, 16  ;;  %v5572_v10 = vadd.s32 %v5571_v26, %v5563_v27  ;;  %v5573_v52 = vsel %vm11589_vm10, %v5523_v62, 0  ;;  %vm11590_vm0 = vmmov %vm11587_vm1  ;;  %v10063_v62 = vld [vmem:[%s10496_s4 + $0xb8] sm:$0xff]  ;;  %v10094_v26 = vld [vmem:[%s10496_s4 + $0xe8] sm:$0xff]  ;;  %vm4626_vm1 = vcmp.ne.s32.totalorder %v10045_v34, 0 }
 0x7b2   : > { %v5575_v31 = vsel %vm11590_vm0, %v5524_v21, 0  ;;  %v5574_v38 = vadd.s32 %v5573_v52, %v5565_v15  ;;  %vm11591_vm13 = vmmov %vm11590_vm0  ;;  %v10088_v15 = vld [vmem:[%s10496_s4 + $0xe0] sm:$0xff]  ;;  %v3604_v12 = vld [vmem:[#allocation4 + $0x8] sm:$0xff] }
 0x7b3   : > { %v5248_v42 = vcvt.s32.f32 %v5246_v53  ;;  %v5576_v2 = vadd.s32 %v5575_v31, %v5567_v7  ;;  %v5577_v33 = vsel %vm11591_vm13, %v5525_v40, 0  ;;  %vm11592_vm6 = vmmov %vm11590_vm0  ;;  %v4656_v53 = vld [vmem:[#allocation6 + $0x90] sm:$0xff]  ;;  %v4657_v7 = vld [vmem:[#allocation6 + $0x98] sm:$0xff]  ;;  %6668 = vlog2.f32 %v3604_v12 }
 0x7b4   : > { %v5578_v46 = vadd.s32 %v5577_v33, %v5570_v47  ;;  %v5579_v22 = vsel %vm11592_vm6, %v5526_v30, 0  ;;  %vm11593_vm3 = vmmov %vm11590_vm0  ;;  %v4659_v47 = vld [vmem:[#allocation6 + $0xa8] sm:$0xff]  ;;  %v10114_v33 = vld [vmem:[#allocation6 + $0xd0] sm:$0xff]  ;;  %vm4690_vm6 = vcmp.eq.s32.totalorder %v4658_v28, %v9297_v32 }
 0x7b5   : > { %v5581_v57 = vsel %vm11593_vm3, %v5527_v13, 0  ;;  %vm11594_vm5 = vmmov %vm11590_vm0  ;;  %5251 = vadd.xlane.f32.xlu1 %v5248_v42  ;;  %v5580_v63 = vadd.s32 %v5579_v22, %v5572_v10  ;;  %v10068_v13 = vld [vmem:[%s10496_s4 + $0xc0] sm:$0xff]  ;;  %v4660_v10 = vld [vmem:[#allocation6 + $0xb0] sm:$0xff] }
 0x7b6   : > { %v5583_v20 = vsel %vm11594_vm5, %v5528_v56, 0  ;;  %v5582_v0 = vadd.s32 %v5581_v57, %v5574_v38  ;;  %vm11595_vm11 = vmmov %vm11590_vm0  ;;  %v10073_v56 = vld [vmem:[%s10496_s4 + $0xc8] sm:$0xff]  ;;  %v10105_v31 = vld [vmem:[%s10496_s4 + $0xf0] sm:$0xff] }
 0x7b7   : > { %v5584_v43 = vadd.s32 %v5583_v20, %v5576_v2  ;;  %v5585_v48 = vsel %vm11595_vm11, %v5529_v60, 0  ;;  %vm11596_vm8 = vmmov %vm11590_vm0  ;;  %v10078_v60 = vld [vmem:[%s10496_s4 + $0xd0] sm:$0xff]  ;;  %v4661_v42 = vld [vmem:[#allocation6 + $0xb8] sm:$0xff] }
 0x7b8   : > { %v5586_v6 = vadd.s32 %v5585_v48, %v5578_v46  ;;  %v5587_v50 = vsel %vm11596_vm8, %v5530_v55, 0  ;;  %vm11597_vm2 = vmmov %vm11590_vm0  ;;  %v10083_v55 = vld [vmem:[%s10496_s4 + $0xd8] sm:$0xff]  ;;  %v4662_v38 = vld [vmem:[#allocation6 + $0xc0] sm:$0xff] }
 0x7b9   : > { %v5589_v45 = vsel %vm11597_vm2, %v5531_v39, 0  ;;  %vm11598_vm15 = vmmov %vm11590_vm0  ;;  %v5588_v21 = vadd.s32 %v5587_v50, %v5580_v63  ;;  %v4654_v39 = vld [vmem:[#allocation6 + $0x80] sm:$0xff]  ;;  %v10110_v2 = vld [vmem:[#allocation6 + $0xc8] sm:$0xff]  ;;  %vm4688_vm2 = vcmp.eq.s32.totalorder %v4656_v53, %v9096_v9 }
 0x7ba   : > { %v5591_v14 = vsel %vm11598_vm15, %v5532_v4, 0  ;;  %v5590_v40 = vadd.s32 %v5589_v45, %v5582_v0  ;;  %v4655_v4 = vld [vmem:[#allocation6 + $0x88] sm:$0xff]  ;;  %v10116_v46 = vld [vmem:[#allocation6 + $0xd8] sm:$0xff]  ;;  %v10118_v22 = vld [vmem:[#allocation6 + $0xe0] sm:$0xff]  ;;  %vm4686_vm5 = vcmp.eq.s32.totalorder %v4654_v39, %v9225_v16  ;;  %vm4689_vm15 = vcmp.eq.s32.totalorder %v4657_v7, %v9247_v44 }
 0x7bb   : > { %v5592_v30 = vadd.s32 %v5591_v14, %v5584_v43  ;;  %v5593_v35 = vadd.s32 %v5588_v21, %v5586_v6  ;;  %vm4687_vm11 = vcmp.eq.s32.totalorder %v4655_v4, %v9266_v37  ;;  %v10124_v20 = vld [vmem:[#allocation6 + $0xe8] sm:$0xff]  ;;  %v10126_v63 = vld [vmem:[#allocation6 + $0xf0] sm:$0xff]  ;;  %vm10131_vm3 = vmand %vm4686_vm5, %vm4622_vm4  ;;  %vm4698_vm8 = vcmp.eq.s32.totalorder %v10118_v22, %v11576_v61 }
 0x7bc   : > { %v10138_v16 = vld [vmem:[%s10496_s4 + $0xf8] sm:$0xff]  ;;  %v10141_v43 = vld [vmem:[#allocation6 + $0xf8] sm:$0xff]  ;;  %vm10151_vm5 = vmand %vm4687_vm11, %vm4623_vm14  ;;  %vm4697_vm11 = vcmp.eq.s32.totalorder %v10116_v46, %v11574_v41  ;;  %vm4699_vm10 = vcmp.eq.s32.totalorder %v10124_v20, %v9393_v23  ;;  %vm4700_vm13 = vcmp.eq.s32.totalorder %v10126_v63, %v11578_v5  ;;  %v5665_v9 = vsel %vm10131_vm3, 1, %v6923_v54  ;;  %v6667_v41 = vpop.eup %6666 }
 0x7bd   : > { %v5594_v27 = vadd.s32 %v5592_v30, %v5590_v40  ;;  %vm4720_vm4 = vmand %vm4688_vm2, %vm4624_vm7  ;;  %v5666_v44 = vsel %vm10151_vm5, 1, %v6923_v54  ;;  %vm11607_vm5 = vcmp.ne.s32.totalorder %v10058_v58, 0  ;;  %v5097_v14 = vand.u32 65535, %v9776_v19  ;;  %v3605_v40 = vld [vmem:[#allocation4 + $0x10] sm:$0xff]  ;;  %v6669_v46 = vpop.eup %6668  ;;  %v3571_v25 = vld [vmem:[#allocation3] sm:$0xff] }
 0x7be   : > { %vm4721_vm0 = vmand %vm4689_vm15, %vm4625_vm12  ;;  %v5667_v37 = vsel %vm4720_vm4, 1, %v6923_v54  ;;  %vm11603_vm12 = vcmp.eq.s32.totalorder %v4659_v47, %v9122_v17  ;;  %vm11608_vm4 = vcmp.eq.s32.totalorder %v4660_v10, %v11557_v1  ;;  %6670 = vlog2.f32 %v3605_v40  ;;  %v3609_v10 = vld [vmem:[#allocation4 + $0x30] sm:$0xff] }
 0x7bf   : > { %v10100_v52 = vadd.s32 %v5594_v27, %v5593_v35  ;;  %vm4722_vm14 = vmand %vm4690_vm6, %vm4626_vm1  ;;  %v5668_v3 = vsel %vm4721_vm0, 1, %v6923_v54  ;;  %vm11604_vm1 = vcmask 7168   ;;  %v5099_v39 = vcvt.s32.f32 %v5097_v14  ;;  %v3731_v14 = vld [vmem:[#allocation5] sm:$0xff] }
 0x7c0   : > { %vm4723_vm15 = vmand %vm11603_vm12, %vm4627_vm9  ;;  %v5669_v32 = vsel %vm4722_vm14, 1, %v6923_v54  ;;  %v5709_v51 = vsel %vm11604_vm1, %v5665_v9, 0  ;;  %vm11611_vm9 = vcmp.ne.s32.totalorder %v10063_v62, 0  ;;  %vm11612_vm14 = vcmp.eq.s32.totalorder %v4661_v42, %v11559_v24  ;;  %v3606_v24 = vld [vmem:[#allocation4 + $0x18] sm:$0xff] }
 0x7c1   : > { %v5597_v57 = vshrl.u32 %v10100_v52, 16  ;;  %vm11605_vm6 = vmmov %vm11604_vm1  ;;  %v5670_v50 = vsel %vm4723_vm15, 1, %v6923_v54  ;;  %vm11614_vm15 = vcmp.ne.s32.totalorder %v10068_v13, 0  ;;  %5101 = vadd.xlane.f32.xlu2 %v5099_v39  ;;  %6672 = vlog2.f32 %v3606_v24  ;;  %v3732_v39 = vld [vmem:[#allocation5 + $0x8] sm:$0xff] }
 0x7c2   : > { %v5711_v34 = vsel %vm11605_vm6, %v5666_v44, 0  ;;  %vm11606_vm3 = vmmov %vm11604_vm1  ;;  %vm11615_vm6 = vcmp.eq.s32.totalorder %v4662_v38, %v11562_v8  ;;  %v3607_v8 = vld [vmem:[#allocation4 + $0x20] sm:$0xff]  ;;  %v3636_v23 = vmul.f32 0.6931472, %v6667_v41 }
 0x7c3   : > { %v5599_v48 = vcvt.s32.f32 %v5597_v57  ;;  %v5713_v6 = vsel %vm11606_vm3, %v5667_v37, 0  ;;  %vm4724_vm2 = vmand %vm11608_vm4, %vm11607_vm5  ;;  %vm11617_vm5 = vcmp.ne.s32.totalorder %v10073_v56, 0  ;;  %6674 = vlog2.f32 %v3607_v8 }
 0x7c4   : > { %vm11609_vm0 = vmmov %vm11604_vm1  ;;  %v5671_v21 = vsel %vm4724_vm2, 1, %v6923_v54  ;;  %vm11618_vm2 = vcmp.eq.s32.totalorder %v10110_v2, %v11566_v59  ;;  %v3608_v59 = vld [vmem:[#allocation4 + $0x28] sm:$0xff]  ;;  %v6671_v57 = vpop.eup %6670 }
 0x7c5   : > { %5602 = vadd.xlane.f32.xlu0 %v5599_v48  ;;  %v5715_v45 = vsel %vm11609_vm0, %v5668_v3, 0  ;;  %vm11610_vm7 = vmmov %vm11609_vm0  ;;  %6676 = vlog2.f32 %v3608_v59  ;;  %v3611_v48 = vld [vmem:[#allocation4 + $0x40] sm:$0xff] }
 0x7c6   : > { %v5717_v17 = vsel %vm11610_vm7, %v5669_v32, 0  ;;  %vm4725_vm12 = vmand %vm11612_vm14, %vm11611_vm9  ;;  %vm11619_vm9 = vcmp.ne.s32.totalorder %v10078_v60, 0  ;;  %vm11620_vm14 = vcmp.eq.s32.totalorder %v10114_v33, %v11570_v18  ;;  %v3610_v33 = vld [vmem:[#allocation4 + $0x38] sm:$0xff]  ;;  %6678 = vlog2.f32 %v3609_v10  ;;  %v3572_v32 = vld [vmem:[#allocation3 + $0x8] sm:$0xff] }
 0x7c7   : > { %v5718_v58 = vadd.s32 %v5717_v17, %v5709_v51  ;;  %vm11613_vm1 = vmmov %vm11609_vm0  ;;  %v5672_v19 = vsel %vm4725_vm12, 1, %v6923_v54  ;;  %v6673_v9 = vpop.eup %6672  ;;  %6680 = vlog2.f32 %v3610_v33  ;;  %v3613_v51 = vld [vmem:[#allocation4 + $0x50] sm:$0xff]  ;;  %v3614_v17 = vld [vmem:[#allocation4 + $0x58] sm:$0xff] }
 0x7c8   : > { %v5719_v1 = vsel %vm11613_vm1, %v5670_v50, 0  ;;  %vm4726_vm7 = vmand %vm11615_vm6, %vm11614_vm15  ;;  %v5723_v13 = vsel %vm11609_vm0, %v5672_v19, 0  ;;  %vm11622_vm15 = vcmp.ne.s32.totalorder %v10083_v55, 0  ;;  %6682 = vlog2.f32 %v3611_v48  ;;  %v3578_v33 = vld [vmem:[#allocation3 + $0x38] sm:$0xff]  ;;  %v3737_v48 = vld [vmem:[#allocation5 + $0x30] sm:$0xff] }
 0x7c9   : > { %v5720_v30 = vadd.s32 %v5719_v1, %v5711_v34  ;;  %vm11616_vm3 = vmmov %vm11609_vm0  ;;  %v5673_v4 = vsel %vm4726_vm7, 1, %v6923_v54  ;;  %v5724_v56 = vadd.s32 %v5723_v13, %v5715_v45  ;;  %v6675_v37 = vpop.eup %6674  ;;  %v3573_v45 = vld [vmem:[#allocation3 + $0x10] sm:$0xff] }
 0x7ca   : > { %v5721_v62 = vsel %vm11616_vm3, %v5671_v21, 0  ;;  %vm4727_vm4 = vmand %vm11618_vm2, %vm11617_vm5  ;;  %vm11624_vm3 = vcmp.ne.s32.totalorder %v10088_v15, 0  ;;  %v3615_v21 = vld [vmem:[#allocation4 + $0x60] sm:$0xff]  ;;  %v3644_v1 = vmul.f32 0.6931472, %v6675_v37 }
 0x7cb   : > { %v5722_v35 = vadd.s32 %v5721_v62, %v5713_v6  ;;  %vm4728_vm12 = vmand %vm11620_vm14, %vm11619_vm9  ;;  %v5674_v27 = vsel %vm4727_vm4, 1, %v6923_v54  ;;  %v6677_v34 = vpop.eup %6676  ;;  %v3640_v6 = vmul.f32 0.6931472, %v6671_v57  ;;  %v3575_v62 = vld [vmem:[#allocation3 + $0x20] sm:$0xff]  ;;  %v3736_v57 = vld [vmem:[#allocation5 + $0x28] sm:$0xff] }
 0x7cc   : > { %vm11621_vm1 = vmmov %vm11609_vm0  ;;  %v5675_v60 = vsel %vm4728_vm12, 1, %v6923_v54  ;;  %vm11630_vm12 = vcmp.eq.s32.totalorder %v10141_v43, %v9368_v29  ;;  %v3612_v29 = vld [vmem:[#allocation4 + $0x48] sm:$0xff]  ;;  %v3638_v43 = vmul.f32 0.6931472, %v6669_v46  ;;  %v6679_v12 = vpop.eup %6678 }
 0x7cd   : > { %v5725_v53 = vsel %vm11621_vm1, %v5673_v4, 0  ;;  %vm4729_vm6 = vmand %vm4697_vm11, %vm11622_vm15  ;;  %vm11626_vm11 = vcmp.ne.s32.totalorder %v10094_v26, 0  ;;  %6684 = vlog2.f32 %v3612_v29  ;;  %v6681_v24 = vpop.eup %6680  ;;  %v3576_v4 = vld [vmem:[#allocation3 + $0x28] sm:$0xff]  ;;  %v3701_v13 = vadd.f32 %v3640_v6, %v3573_v45 }
 0x7ce   : > { %v5726_v7 = vadd.s32 %v5725_v53, %v5718_v58  ;;  %vm11623_vm7 = vmmov %vm11609_vm0  ;;  %v5676_v28 = vsel %vm4729_vm6, 1, %v6923_v54  ;;  %v3642_v58 = vmul.f32 0.6931472, %v6673_v9  ;;  %6686 = vlog2.f32 %v3613_v51  ;;  %v3616_v53 = vld [vmem:[#allocation4 + $0x68] sm:$0xff]  ;;  %v3738_v51 = vld [vmem:[#allocation5 + $0x38] sm:$0xff] }
 0x7cf   : > { %v5727_v18 = vsel %vm11623_vm7, %v5674_v27, 0  ;;  %vm4730_vm5 = vmand %vm4698_vm8, %vm11624_vm3  ;;  %v5731_v61 = vsel %vm11609_vm0, %v5676_v28, 0  ;;  %vm11627_vm8 = vcmp.ne.s32.totalorder %v10105_v31, 0  ;;  %v3700_v40 = vadd.f32 %v3638_v43, %v3572_v32  ;;  %v3617_v28 = vld [vmem:[#allocation4 + $0x70] sm:$0xff]  ;;  %v3580_v43 = vld [vmem:[#allocation3 + $0x48] sm:$0xff] }
 0x7d0   : > { %v5728_v47 = vadd.s32 %v5727_v18, %v5720_v30  ;;  %vm11625_vm2 = vmmov %vm11609_vm0  ;;  %v5677_v15 = vsel %vm4730_vm5, 1, %v6923_v54  ;;  %v5732_v2 = vadd.s32 %v5731_v61, %v5724_v56  ;;  %v3574_v30 = vld [vmem:[#allocation3 + $0x18] sm:$0xff]  ;;  %6688 = vlog2.f32 %v3614_v17  ;;  %v3577_v18 = vld [vmem:[#allocation3 + $0x30] sm:$0xff] }
 0x7d1   : > { %v5729_v55 = vsel %vm11625_vm2, %v5675_v60, 0  ;;  %vm4731_vm4 = vmand %vm4699_vm10, %vm11626_vm11  ;;  %vm11629_vm10 = vcmp.ne.s32.totalorder %v10138_v16, 0  ;;  %v3648_v59 = vmul.f32 0.6931472, %v6679_v12  ;;  %6690 = vlog2.f32 %v3615_v21  ;;  %v3733_v60 = vld [vmem:[#allocation5 + $0x10] sm:$0xff]  ;;  %v3582_v12 = vld [vmem:[#allocation3 + $0x58] sm:$0xff] }
 0x7d2   : > { %v5730_v42 = vadd.s32 %v5729_v55, %v5722_v35  ;;  %vm4732_vm9 = vmand %vm4700_vm13, %vm11627_vm8  ;;  %v5678_v38 = vsel %vm4731_vm4, 1, %v6923_v54  ;;  %v3646_v35 = vmul.f32 0.6931472, %v6677_v34  ;;  %v3703_v55 = vadd.f32 %v3644_v1, %v3575_v62  ;;  %v3581_v32 = vld [vmem:[#allocation3 + $0x50] sm:$0xff]  ;;  %v3739_v1 = vld [vmem:[#allocation5 + $0x40] sm:$0xff] }
 0x7d3   : > { %vm11628_vm14 = vmmov %vm11609_vm0  ;;  %v5679_v31 = vsel %vm4732_vm9, 1, %v6923_v54  ;;  %v3764_v10 = vsub.f32 %v3700_v40, %v3732_v39  ;;  %v3650_v61 = vmul.f32 0.6931472, %v6681_v24  ;;  %6692 = vlog2.f32 %v3616_v53  ;;  %v3583_v62 = vld [vmem:[#allocation3 + $0x60] sm:$0xff]  ;;  %v3740_v24 = vld [vmem:[#allocation5 + $0x48] sm:$0xff] }
 0x7d4   : > { %v5733_v26 = vsel %vm11628_vm14, %v5677_v15, 0  ;;  %vm4733_vm1 = vmand %vm11630_vm12, %vm11629_vm10  ;;  %v3765_v46 = vsub.f32 %v3701_v13, %v3733_v60  ;;  %6694 = vlog2.f32 %v3617_v28  ;;  %v3741_v13 = vld [vmem:[#allocation5 + $0x50] sm:$0xff]  ;;  %v3619_v60 = vld [vmem:[#allocation4 + $0x80] sm:$0xff] }
 0x7d5   : > { %v5734_v22 = vadd.s32 %v5733_v26, %v5726_v7  ;;  %vm11631_vm15 = vmmov %vm11609_vm0  ;;  %v5680_v20 = vsel %vm4733_vm1, 1, %v6923_v54  ;;  %v3699_v54 = vadd.f32 %v3636_v23, %v3571_v25  ;;  %v6683_v7 = vpop.eup %6682  ;;  %v3704_v23 = vadd.f32 %v3646_v35, %v3576_v4 }
 0x7d6   : > { %v5735_v5 = vsel %vm11631_vm15, %v5678_v38, 0  ;;  %vm11632_vm13 = vmmov %vm11609_vm0  ;;  %v6685_v41 = vpop.eup %6684  ;;  %v3734_v38 = vld [vmem:[#allocation5 + $0x18] sm:$0xff] }
 0x7d7   : > { %v5736_v63 = vadd.s32 %v5735_v5, %v5728_v47  ;;  %v5737_v0 = vsel %vm11632_vm13, %v5679_v31, 0  ;;  %vm11633_vm6 = vmmov %vm11609_vm0  ;;  %v3763_v8 = vsub.f32 %v3699_v54, %v3731_v14  ;;  %v3702_v47 = vadd.f32 %v3642_v58, %v3574_v30  ;;  %v6687_v26 = vpop.eup %6686  ;;  %v3618_v31 = vld [vmem:[#allocation4 + $0x78] sm:$0xff] }
 0x7d8   : > { %v5738_v16 = vadd.s32 %v5737_v0, %v5730_v42  ;;  %v5739_v44 = vsel %vm11633_vm6, %v5680_v20, 0  ;;  %v3705_v5 = vadd.f32 %v3648_v59, %v3577_v18  ;;  %vm11634_vm7 = vmmov %vm11609_vm0  ;;  %v3579_v0 = vld [vmem:[#allocation3 + $0x40] sm:$0xff]  ;;  %v3654_v25 = vmul.f32 0.6931472, %v6685_v41 }
 0x7d9   : > { %v5740_v3 = vadd.s32 %v5739_v44, %v5732_v2  ;;  %v5741_v49 = vadd.s32 %v5736_v63, %v5734_v22  ;;  %v3735_v2 = vld [vmem:[#allocation5 + $0x20] sm:$0xff]  ;;  %v3652_v22 = vmul.f32 0.6931472, %v6683_v7  ;;  %v4895_v20 = vsel %vm11634_vm7, %v3763_v8, 0.0  ;;  %v6689_v63 = vpop.eup %6688  ;;  %vm11635_vm3 = vmmov %vm11609_vm0 }
 0x7da   : > { %v3766_v9 = vsub.f32 %v3702_v47, %v3734_v38  ;;  %v4896_v44 = vsel %vm11635_vm3, %v3764_v10, 0.0  ;;  %v6691_v29 = vpop.eup %6690  ;;  %v3656_v37 = vmul.f32 0.6931472, %v6687_v26  ;;  %6696 = vlog2.f32 %v3618_v31  ;;  %vm11636_vm5 = vmmov %vm11609_vm0  ;;  %v3620_v10 = vld [vmem:[#allocation4 + $0x88] sm:$0xff]  ;;  %v3621_v38 = vld [vmem:[#allocation4 + $0x90] sm:$0xff] }
 0x7db   : > { %v5742_v50 = vadd.s32 %v5740_v3, %v5738_v16  ;;  %v3767_v16 = vsub.f32 %v3703_v55, %v3735_v2  ;;  %v3706_v3 = vadd.f32 %v3650_v61, %v3578_v33  ;;  %v3768_v34 = vsub.f32 %v3704_v23, %v3736_v57  ;;  %v6693_v14 = vpop.eup %6692  ;;  %vm11637_vm2 = vmmov %vm11609_vm0  ;;  %v3622_v2 = vld [vmem:[#allocation4 + $0x98] sm:$0xff] }
 0x7dc   : > { %v4898_v6 = vsel %vm11636_vm5, %v3765_v46, 0.0  ;;  %v3658_v54 = vmul.f32 0.6931472, %v6689_v63  ;;  %v3769_v45 = vsub.f32 %v3705_v5, %v3737_v48  ;;  %v3660_v21 = vmul.f32 0.6931472, %v6691_v29  ;;  %vm11638_vm11 = vmmov %vm11609_vm0  ;;  %v6695_v30 = vpop.eup %6694  ;;  %v3584_v46 = vld [vmem:[#allocation3 + $0x68] sm:$0xff] }
 0x7dd   : > { %v5743_v19 = vadd.s32 %v5742_v50, %v5741_v49  ;;  %v4897_v49 = vadd.f32 %v4896_v44, %v4895_v20  ;;  %v3707_v50 = vadd.f32 %v3652_v22, %v3579_v0  ;;  %v3708_v58 = vadd.f32 %v3654_v25, %v3580_v43  ;;  %vm11639_vm4 = vmmov %vm11609_vm0  ;;  %v3742_v22 = vld [vmem:[#allocation5 + $0x58] sm:$0xff]  ;;  %v3623_v63 = vld [vmem:[#allocation4 + $0xa0] sm:$0xff] }
 0x7de   : > { %v4900_v40 = vsel %vm11637_vm2, %v3766_v9, 0.0  ;;  %v3709_v39 = vadd.f32 %v3656_v37, %v3581_v32  ;;  %v3770_v4 = vsub.f32 %v3706_v3, %v3738_v51  ;;  %v4904_v8 = vsel %vm11639_vm4, %v3768_v34, 0.0  ;;  %vm11640_vm8 = vmmov %vm11609_vm0  ;;  %v3585_v25 = vld [vmem:[#allocation3 + $0x70] sm:$0xff]  ;;  %v3743_v48 = vld [vmem:[#allocation5 + $0x60] sm:$0xff] }
 0x7df   : > { %v5745_v27 = vshrl.u32 %v5743_v19, 16  ;;  %v5744_v56 = vand.u32 65535, %v5743_v19  ;;  %v4899_v17 = vadd.f32 %v4898_v6, %v4897_v49  ;;  %v4902_v19 = vsel %vm11638_vm11, %v3767_v16, 0.0  ;;  %vm11641_vm9 = vmmov %vm11609_vm0  ;;  %v3624_v3 = vld [vmem:[#allocation4 + $0xa8] sm:$0xff]  ;;  %v3586_v32 = vld [vmem:[#allocation3 + $0x78] sm:$0xff] }
 0x7e0   : > { %v3771_v53 = vsub.f32 %v3707_v50, %v3739_v1  ;;  %v6697_v7 = vpop.eup %6696  ;;  %v3664_v18 = vmul.f32 0.6931472, %v6695_v30  ;;  %v10281_v28 = vadd.f32 %v3660_v21, %v3583_v62  ;;  %v3772_v47 = vsub.f32 %v3708_v58, %v3740_v24  ;;  %vm11642_vm14 = vmmov %vm11609_vm0  ;;  %v3744_v51 = vld [vmem:[#allocation5 + $0x68] sm:$0xff]  ;;  %v3746_v62 = vld [vmem:[#allocation5 + $0x78] sm:$0xff] }
 0x7e1   : > { %v5747_v15 = vcvt.s32.f32 %v5745_v27  ;;  %v5746_v42 = vcvt.s32.f32 %v5744_v56  ;;  %v4901_v35 = vadd.f32 %v4900_v40, %v4899_v17  ;;  %v3662_v27 = vmul.f32 0.6931472, %v6693_v14  ;;  %vm11643_vm10 = vmmov %vm11609_vm0  ;;  %v3745_v14 = vld [vmem:[#allocation5 + $0x70] sm:$0xff] }
 0x7e2   : > { %v10279_v56 = vadd.f32 %v3658_v54, %v3582_v12  ;;  %v4906_v55 = vsel %vm11609_vm0, %v3769_v45, 0.0  ;;  %v3773_v41 = vsub.f32 %v3709_v39, %v3741_v13  ;;  %v5245_v61 = vand.u32 65535, %v9996_v11  ;;  %v3625_v45 = vld [vmem:[#allocation4 + $0xb0] sm:$0xff]  ;;  %vm11644_vm12 = vmmov %vm11609_vm0  ;;  %v3587_v13 = vld [vmem:[#allocation3 + $0x80] sm:$0xff] }
 0x7e3   : > { %5750 = vadd.xlane.f32.xlu1 %v5747_v15  ;;  %5748 = vadd.xlane.f32.xlu0 %v5746_v42  ;;  %v4903_v59 = vadd.f32 %v4902_v19, %v4901_v35  ;;  %v4908_v42 = vsel %vm11640_vm8, %v3770_v4, 0.0  ;;  %6698 = vlog2.f32 %v3619_v60  ;;  %v3827_v26 = vrot.slane %v9950_v36, 1  ;;  %v3626_v19 = vld [vmem:[#allocation4 + $0xb8] sm:$0xff]  ;;  %vm11645_vm1 = vmmov %vm11609_vm0  ;;  %v3588_v60 = vld [vmem:[#allocation3 + $0x88] sm:$0xff] }
 0x7e4   : > { %v3828_v33 = vrot.slane %v9950_v36, 2  ;;  %v3829_v23 = vrot.slane %v9950_v36, 3  ;;  %v3666_v31 = vmul.f32 0.6931472, %v6697_v7  ;;  %v5247_v57 = vcvt.s32.f32 %v5245_v61  ;;  %vm11646_vm15 = vmmov %vm11609_vm0  ;;  %v3591_v61 = vld [vmem:[#allocation3 + $0xa0] sm:$0xff] }
 0x7e5   : > { %v4905_v15 = vadd.f32 %v4904_v8, %v4903_v59  ;;  %6700 = vlog2.f32 %v3620_v10  ;;  %v4910_v20 = vsel %vm11641_vm9, %v3771_v53, 0.0  ;;  %v3830_v11 = vrot.slane %v9950_v36, 4  ;;  %4053 = vst [vmem:[#allocation1 + $0x1] ss:$9 sm:$0xff] %v3827_v26  ;;  %v3627_v8 = vld [vmem:[#allocation4 + $0xc0] sm:$0xff]  ;;  %vm11647_vm13 = vmmov %vm11609_vm0 }
 0x7e6   : > { %6702 = vlog2.f32 %v3621_v38  ;;  %v3831_v0 = vrot.slane %v9950_v36, 5  ;;  %5249 = vadd.xlane.f32.xlu2 %v5247_v57  ;;  %v5596_v16 = vand.u32 65535, %v10100_v52  ;;  %v3832_v44 = vrot.slane %v9950_v36, 6  ;;  %4055 = vst [vmem:[#allocation1 + $0x2] ss:$9 sm:$0xff] %v3828_v33  ;;  %v3629_v38 = vld [vmem:[#allocation4 + $0xd0] sm:$0xff]  ;;  %vm11648_vm6 = vmmov %vm11609_vm0 }
 0x7e7   : > { %v4907_v5 = vadd.f32 %v4906_v55, %v4905_v15  ;;  %6704 = vlog2.f32 %v3622_v2  ;;  %v3712_v29 = vadd.f32 %v3662_v27, %v3584_v46  ;;  %v3774_v43 = vsub.f32 %v10279_v56, %v3742_v22  ;;  %4057 = vst [vmem:[#allocation1 + $0x3] ss:$9 sm:$0xff] %v3829_v23  ;;  %v10301_v56 = vld [vmem:[#allocation6 + $0x8] sm:$0xff]  ;;  %vm11649_vm7 = vmmov %vm11609_vm0 }
 0x7e8   : > { %v4912_v37 = vsel %vm11642_vm14, %v3772_v47, 0.0  ;;  %v3833_v49 = vrot.slane %v9950_v36, 7  ;;  %6706 = vlog2.f32 %v3623_v63  ;;  %4059 = vst [vmem:[#allocation1 + $0x4] ss:$9 sm:$0xff] %v3830_v11  ;;  %v3713_v52 = vadd.f32 %v3664_v18, %v3585_v25  ;;  %v3589_v47 = vld [vmem:[#allocation3 + $0x90] sm:$0xff]  ;;  %v3628_v55 = vld [vmem:[#allocation4 + $0xc8] sm:$0xff]  ;;  %vm11650_vm3 = vmmov %vm11609_vm0 }
 0x7e9   : > { %v4909_v9 = vadd.f32 %v4908_v42, %v4907_v5  ;;  %v6699_v6 = vpop.eup %6698  ;;  %v3775_v54 = vsub.f32 %v10281_v28, %v3743_v48  ;;  %v4914_v50 = vsel %vm11643_vm10, %v3773_v41, 0.0  ;;  %4061 = vst [vmem:[#allocation1 + $0x5] ss:$9 sm:$0xff] %v3831_v0  ;;  %v5598_v21 = vcvt.s32.f32 %v5596_v16  ;;  %v3590_v42 = vld [vmem:[#allocation3 + $0x98] sm:$0xff]  ;;  %v3748_v22 = vld [vmem:[#allocation5 + $0x88] sm:$0xff]  ;;  %v3749_v0 = vld [vmem:[#allocation5 + $0x90] sm:$0xff] }
 0x7ea   : > { %6708 = vlog2.f32 %v3624_v3  ;;  %4063 = vst [vmem:[#allocation1 + $0x6] ss:$9 sm:$0xff] %v3832_v44  ;;  %v3714_v58 = vadd.f32 %v3666_v31, %v3586_v32  ;;  %v3776_v1 = vsub.f32 %v3712_v29, %v3744_v51  ;;  %v4916_v40 = vsel %vm11644_vm12, %v3774_v43, 0.0  ;;  %v3747_v31 = vld [vmem:[#allocation5 + $0x80] sm:$0xff]  ;;  %v3630_v63 = vld [vmem:[#allocation4 + $0xd8] sm:$0xff]  ;;  %v3592_v3 = vld [vmem:[#allocation3 + $0xa8] sm:$0xff] }
 0x7eb   : > { %v4911_v34 = vadd.f32 %v4910_v20, %v4909_v9  ;;  %v6701_v17 = vpop.eup %6700  ;;  %4065 = vst [vmem:[#allocation1 + $0x7] ss:$9 sm:$0xff] %v3833_v49  ;;  %v3668_v24 = vmul.f32 0.6931472, %v6699_v6  ;;  %6710 = vlog2.f32 %v3625_v45  ;;  %v3777_v4 = vsub.f32 %v3713_v52, %v3745_v14  ;;  %v3631_v49 = vld [vmem:[#allocation4 + $0xe0] sm:$0xff]  ;;  %v3750_v32 = vld [vmem:[#allocation5 + $0x98] sm:$0xff]  ;;  %vm11651_vm5 = vmmov %vm11609_vm0 }
 0x7ec   : > { %v6703_v36 = vpop.eup %6702  ;;  %v4918_v35 = vsel %vm11645_vm1, %v3775_v54, 0.0  ;;  %v3670_v27 = vmul.f32 0.6931472, %v6701_v17  ;;  %6712 = vlog2.f32 %v3626_v19  ;;  %v3778_v18 = vsub.f32 %v3714_v58, %v3746_v62  ;;  %v3632_v6 = vld [vmem:[#allocation4 + $0xe8] sm:$0xff]  ;;  %vm11652_vm2 = vmmov %vm11609_vm0 }
 0x7ed   : > { %v4913_v12 = vadd.f32 %v4912_v37, %v4911_v34  ;;  %v6705_v30 = vpop.eup %6704  ;;  %v3672_v7 = vmul.f32 0.6931472, %v6703_v36  ;;  %v4920_v28 = vsel %vm11646_vm15, %v3776_v1, 0.0  ;;  %6714 = vlog2.f32 %v3627_v8  ;;  %v3633_v1 = vld [vmem:[#allocation4 + $0xf0] sm:$0xff]  ;;  %vm11653_vm11 = vmmov %vm11609_vm0 }
 0x7ee   : > { %v6707_v53 = vpop.eup %6706  ;;  %5600 = vadd.xlane.f32.xlu2 %v5598_v21  ;;  %v3674_v10 = vmul.f32 0.6931472, %v6705_v30  ;;  %v3715_v2 = vadd.f32 %v3668_v24, %v3587_v13  ;;  %v3834_v26 = vrot.slane %v10301_v56, 1  ;;  %v4922_v33 = vsel %vm11647_vm13, %v3777_v4, 0.0  ;;  %v3751_v21 = vld [vmem:[#allocation5 + $0xa0] sm:$0xff]  ;;  %v3752_v24 = vld [vmem:[#allocation5 + $0xa8] sm:$0xff]  ;;  %vm11654_vm4 = vmmov %vm11609_vm0 }
 0x7ef   : > { %v4915_v39 = vadd.f32 %v4914_v50, %v4913_v12  ;;  %v3676_v23 = vmul.f32 0.6931472, %v6707_v53  ;;  %v3716_v46 = vadd.f32 %v3670_v27, %v3588_v60  ;;  %v3835_v5 = vrot.slane %v10301_v56, 2  ;;  %v3593_v12 = vld [vmem:[#allocation3 + $0xb0] sm:$0xff]  ;;  %v3595_v53 = vld [vmem:[#allocation3 + $0xc0] sm:$0xff]  ;;  %vm11655_vm8 = vmmov %vm11609_vm0 }
 0x7f0   : > { %v6709_v41 = vpop.eup %6708  ;;  %6716 = vlog2.f32 %v3628_v55  ;;  %v3717_v11 = vadd.f32 %v3672_v7, %v3589_v47  ;;  %v3836_v48 = vrot.slane %v10301_v56, 3  ;;  %v4924_v9 = vsel %vm11648_vm6, %v3778_v18, 0.0  ;;  %v3634_v18 = vld [vmem:[#allocation4 + $0xf8] sm:$0xff]  ;;  %vm11656_vm9 = vmmov %vm11609_vm0 }
 0x7f1   : > { %v4917_v59 = vadd.f32 %v4916_v40, %v4915_v39  ;;  %v6711_v57 = vpop.eup %6710  ;;  %v3678_v16 = vmul.f32 0.6931472, %v6709_v41  ;;  %v3718_v44 = vadd.f32 %v3674_v10, %v3590_v42  ;;  %v3837_v29 = vrot.slane %v10301_v56, 4  ;;  %v3594_v39 = vld [vmem:[#allocation3 + $0xb8] sm:$0xff]  ;;  %v10318_v41 = vld [vmem:[#allocation6 + $0x10] sm:$0xff]  ;;  %v3596_v42 = vld [vmem:[#allocation3 + $0xc8] sm:$0xff] }
 0x7f2   : > { %v4066_v25 = vld [vmem:[#allocation1] sm:$0xff]  ;;  %v6713_v43 = vpop.eup %6712  ;;  %6718 = vlog2.f32 %v3629_v38  ;;  %v3779_v51 = vsub.f32 %v3715_v2, %v3747_v31  ;;  %v3838_v34 = vrot.slane %v10301_v56, 5  ;;  %v3680_v52 = vmul.f32 0.6931472, %v6711_v57  ;;  %vm11657_vm14 = vmmov %vm11609_vm0 }
 0x7f3   : > { %v4919_v15 = vadd.f32 %v4918_v35, %v4917_v59  ;;  %4067 = vst [vmem:[#allocation1] ss:$9 sm:$0xff] %v10301_v56  ;;  %v3719_v54 = vadd.f32 %v3676_v23, %v3591_v61  ;;  %v3780_v50 = vsub.f32 %v3716_v46, %v3748_v22  ;;  %v3839_v45 = vrot.slane %v10301_v56, 6  ;;  %v6715_v17 = vpop.eup %6714  ;;  %v3753_v59 = vld [vmem:[#allocation5 + $0xb0] sm:$0xff]  ;;  %v3754_v61 = vld [vmem:[#allocation5 + $0xb8] sm:$0xff]  ;;  %vm11658_vm10 = vmmov %vm11609_vm0 }
 0x7f4   : > { %4068 = vst [vmem:[#allocation1 + $0x1] ss:$9 sm:$0xff] %v3834_v26  ;;  %6720 = vlog2.f32 %v3630_v63  ;;  %v3781_v36 = vsub.f32 %v3717_v11, %v3749_v0  ;;  %v3840_v58 = vrot.slane %v10301_v56, 7  ;;  %v3682_v40 = vmul.f32 0.6931472, %v6713_v43  ;;  %v3597_v22 = vld [vmem:[#allocation3 + $0xd0] sm:$0xff]  ;;  %vm11659_vm12 = vmmov %vm11609_vm0 }
 0x7f5   : > { %v4921_v20 = vadd.f32 %v4920_v28, %v4919_v15  ;;  %4069 = vst [vmem:[#allocation1 + $0x2] ss:$9 sm:$0xff] %v3835_v5  ;;  %6722 = vlog2.f32 %v3631_v49  ;;  %v3720_v19 = vadd.f32 %v3678_v16, %v3592_v3  ;;  %v3782_v30 = vsub.f32 %v3718_v44, %v3750_v32  ;;  %v3755_v5 = vld [vmem:[#allocation5 + $0xc0] sm:$0xff]  ;;  %v3756_v16 = vld [vmem:[#allocation5 + $0xc8] sm:$0xff]  ;;  %vm11660_vm1 = vmmov %vm11609_vm0 }
 0x7f6   : > { %4070 = vst [vmem:[#allocation1 + $0x3] ss:$9 sm:$0xff] %v3836_v48  ;;  %v6717_v62 = vpop.eup %6716  ;;  %6724 = vlog2.f32 %v3632_v6  ;;  %v5425_v4 = vsel %vm11649_vm7, %v3779_v51, 0.0  ;;  %v3684_v35 = vmul.f32 0.6931472, %v6715_v17  ;;  %v3721_v13 = vadd.f32 %v3680_v52, %v3593_v12  ;;  %v3757_v6 = vld [vmem:[#allocation5 + $0xd0] sm:$0xff]  ;;  %vm11661_vm15 = vmmov %vm11609_vm0 }
 0x7f7   : > { %4347 = vperm.xlu0 %6663, %v4066_v25   ;;  %v4923_v37 = vadd.f32 %v4922_v33, %v4921_v20  ;;  %4071 = vst [vmem:[#allocation1 + $0x4] ss:$9 sm:$0xff] %v3837_v29  ;;  %v3783_v8 = vsub.f32 %v3719_v54, %v3751_v21  ;;  %v5427_v27 = vsel %vm11650_vm3, %v3780_v50, 0.0  ;;  %6726 = vlog2.f32 %v3633_v1  ;;  %v3758_v1 = vld [vmem:[#allocation5 + $0xd8] sm:$0xff]  ;;  %vm11662_vm13 = vmmov %vm11609_vm0 }
 0x7f8   : > { %4072 = vst [vmem:[#allocation1 + $0x5] ss:$9 sm:$0xff] %v3838_v34  ;;  %v6719_v56 = vpop.eup %6718  ;;  %v5428_v60 = vadd.f32 %v5427_v27, %v5425_v4  ;;  %v5429_v7 = vsel %vm11651_vm5, %v3781_v36, 0.0  ;;  %v3686_v28 = vmul.f32 0.6931472, %v6717_v62  ;;  %v3722_v47 = vadd.f32 %v3682_v40, %v3594_v39  ;;  %v3599_v34 = vld [vmem:[#allocation3 + $0xe0] sm:$0xff]  ;;  %vm11663_vm6 = vmmov %vm11609_vm0 }
 0x7f9   : > { %v4925_v14 = vadd.f32 %v4924_v9, %v4923_v37  ;;  %4073 = vst [vmem:[#allocation1 + $0x6] ss:$9 sm:$0xff] %v3839_v45  ;;  %v3784_v55 = vsub.f32 %v3720_v19, %v3752_v24  ;;  %v5431_v10 = vsel %vm11652_vm2, %v3782_v30, 0.0  ;;  %v3688_v26 = vmul.f32 0.6931472, %v6719_v56  ;;  %v3598_v9 = vld [vmem:[#allocation3 + $0xd8] sm:$0xff] }
 0x7fa   : > { %4074 = vst [vmem:[#allocation1 + $0x7] ss:$9 sm:$0xff] %v3840_v58  ;;  %v6721_v15 = vpop.eup %6720  ;;  %v5430_v38 = vadd.f32 %v5429_v7, %v5428_v60  ;;  %v3723_v33 = vadd.f32 %v3684_v35, %v3595_v53  ;;  %v3785_v23 = vsub.f32 %v3721_v13, %v3753_v59  ;;  %v5433_v46 = vsel %vm11653_vm11, %v3783_v8, 0.0  ;;  %v3600_v45 = vld [vmem:[#allocation3 + $0xe8] sm:$0xff]  ;;  %v3601_v4 = vld [vmem:[#allocation3 + $0xf0] sm:$0xff]  ;;  %v3759_v35 = vld [vmem:[#allocation5 + $0xe0] sm:$0xff] }
 0x7fb   : > { %4958 = vadd.xlane.f32.xlu1 %v4925_v14  ;;  %v6723_v2 = vpop.eup %6722  ;;  %6728 = vlog2.f32 %v3634_v18  ;;  %v3841_v20 = vrot.slane %v10318_v41, 1  ;;  %v3690_v63 = vmul.f32 0.6931472, %v6721_v15  ;;  %v3724_v11 = vadd.f32 %v3686_v28, %v3596_v42  ;;  %v3602_v59 = vld [vmem:[#allocation3 + $0xf8] sm:$0xff]  ;;  %v3760_v60 = vld [vmem:[#allocation5 + $0xe8] sm:$0xff] }
 0x7fc   : > { %v6725_v31 = vpop.eup %6724  ;;  %v5432_v57 = vadd.f32 %v5431_v10, %v5430_v38  ;;  %v3786_v0 = vsub.f32 %v3722_v47, %v3754_v61  ;;  %v5435_v25 = vsel %vm11654_vm4, %v3784_v55, 0.0  ;;  %v3842_v29 = vrot.slane %v10318_v41, 2  ;;  %v3761_v55 = vld [vmem:[#allocation5 + $0xf0] sm:$0xff]  ;;  %v3798_v61 = vld [vmem:[#allocation6 + $0x18] sm:$0xff] }
 0x7fd   : > { %v6727_v48 = vpop.eup %6726  ;;  %v3843_v43 = vrot.slane %v10318_v41, 3  ;;  %v3692_v37 = vmul.f32 0.6931472, %v6723_v2  ;;  %v3725_v3 = vadd.f32 %v3688_v26, %v3597_v22  ;;  %v3787_v49 = vsub.f32 %v3723_v33, %v3755_v5  ;;  %v3762_v38 = vld [vmem:[#allocation5 + $0xf8] sm:$0xff] }
 0x7fe   : > { %v5434_v44 = vadd.f32 %v5433_v46, %v5432_v57  ;;  %v5437_v32 = vsel %vm11609_vm0, %v3785_v23, 0.0  ;;  %v3844_v54 = vrot.slane %v10318_v41, 4  ;;  %v3845_v50 = vrot.slane %v10318_v41, 5 }
 0x7ff   : > { %v3694_v17 = vmul.f32 0.6931472, %v6725_v31  ;;  %v3726_v14 = vadd.f32 %v3690_v63, %v3598_v9  ;;  %v3788_v12 = vsub.f32 %v3724_v11, %v3756_v16  ;;  %v5439_v21 = vsel %vm11655_vm8, %v3786_v0, 0.0 }
 0x800   : > { %v5436_v52 = vadd.f32 %v5435_v25, %v5434_v44  ;;  %v3696_v58 = vmul.f32 0.6931472, %v6727_v48  ;;  %v3846_v19 = vrot.slane %v10318_v41, 6  ;;  %v3727_v30 = vadd.f32 %v3692_v37, %v3599_v34  ;;  %v3799_v37 = vld [vmem:[#allocation6 + $0x20] sm:$0xff] }
 0x801   : > { %v4075_v51 = vld [vmem:[#allocation1] sm:$0xff]  ;;  %v6729_v36 = vpop.eup %6728  ;;  %v3789_v62 = vsub.f32 %v3725_v3, %v3757_v6  ;;  %v5441_v39 = vsel %vm11656_vm9, %v3787_v49, 0.0  ;;  %v3847_v24 = vrot.slane %v10318_v41, 7  ;;  %v3728_v27 = vadd.f32 %v3694_v17, %v3600_v45 }
 0x802   : > { %4076 = vst [vmem:[#allocation1] ss:$9 sm:$0xff] %v10318_v41  ;;  %4350 = vperm.xlu0 %6663, %v4075_v51   ;;  %v5438_v40 = vadd.f32 %v5437_v32, %v5436_v52  ;;  %v3698_v8 = vmul.f32 0.6931472, %v6729_v36  ;;  %v3790_v56 = vsub.f32 %v3726_v14, %v3758_v1  ;;  %v5443_v53 = vsel %vm11657_vm14, %v3788_v12, 0.0 }
 0x803   : > { %4077 = vst [vmem:[#allocation1 + $0x1] ss:$9 sm:$0xff] %v3841_v20  ;;  %v3729_v18 = vadd.f32 %v3696_v58, %v3601_v4  ;;  %v3791_v28 = vsub.f32 %v3727_v30, %v3759_v35  ;;  %v5445_v47 = vsel %vm11658_vm10, %v3789_v62, 0.0  ;;  %v3792_v15 = vsub.f32 %v3728_v27, %v3760_v60 }
 0x804   : > { %4078 = vst [vmem:[#allocation1 + $0x2] ss:$9 sm:$0xff] %v3842_v29  ;;  %v5440_v13 = vadd.f32 %v5439_v21, %v5438_v40  ;;  %v3730_v41 = vadd.f32 %v3698_v8, %v3602_v59  ;;  %v5447_v42 = vsel %vm11659_vm12, %v3790_v56, 0.0  ;;  %v3848_v46 = vrot.slane %v3798_v61, 1  ;;  %v3801_v40 = vld [vmem:[#allocation6 + $0x30] sm:$0xff]  ;;  %v3802_v8 = vld [vmem:[#allocation6 + $0x38] sm:$0xff] }
 0x805   : > { %4079 = vst [vmem:[#allocation1 + $0x3] ss:$9 sm:$0xff] %v3843_v43  ;;  %v3793_v26 = vsub.f32 %v3729_v18, %v3761_v55  ;;  %v5449_v33 = vsel %vm11660_vm1, %v3791_v28, 0.0  ;;  %v5451_v22 = vsel %vm11661_vm15, %v3792_v15, 0.0  ;;  %v3849_v5 = vrot.slane %v3798_v61, 2 }
 0x806   : > { %4080 = vst [vmem:[#allocation1 + $0x4] ss:$9 sm:$0xff] %v3844_v54  ;;  %v5442_v7 = vadd.f32 %v5441_v39, %v5440_v13  ;;  %v3794_v31 = vsub.f32 %v3730_v41, %v3762_v38  ;;  %v3850_v63 = vrot.slane %v3798_v61, 3  ;;  %v3851_v0 = vrot.slane %v3798_v61, 4 }
 0x807   : > { %4081 = vst [vmem:[#allocation1 + $0x5] ss:$9 sm:$0xff] %v3845_v50  ;;  %v5453_v11 = vsel %vm11662_vm13, %v3793_v26, 0.0  ;;  %v3852_v48 = vrot.slane %v3798_v61, 5  ;;  %v3853_v16 = vrot.slane %v3798_v61, 6  ;;  %v3854_v29 = vrot.slane %v3798_v61, 7 }
 0x808   : > { %4082 = vst [vmem:[#allocation1 + $0x6] ss:$9 sm:$0xff] %v3846_v19  ;;  %v5444_v10 = vadd.f32 %v5443_v53, %v5442_v7  ;;  %v5455_v9 = vsel %vm11663_vm6, %v3794_v31, 0.0  ;;  %v3855_v3 = vrot.slane %v3799_v37, 1  ;;  %v3856_v49 = vrot.slane %v3799_v37, 2  ;;  %v3800_v50 = vld [vmem:[#allocation6 + $0x28] sm:$0xff] }
 0x809   : > { %4083 = vst [vmem:[#allocation1 + $0x7] ss:$9 sm:$0xff] %v3847_v24  ;;  %v3857_v51 = vrot.slane %v3799_v37, 3  ;;  %v3858_v34 = vrot.slane %v3799_v37, 4  ;;  %v3859_v6 = vrot.slane %v3799_v37, 5  ;;  %v3860_v52 = vrot.slane %v3799_v37, 6 }
 0x80a   : > { %v5446_v2 = vadd.f32 %v5445_v47, %v5444_v10  ;;  %v3861_v54 = vrot.slane %v3799_v37, 7  ;;  %v3862_v45 = vrot.slane %v3800_v50, 1  ;;  %v3863_v17 = vrot.slane %v3800_v50, 2  ;;  %v3803_v47 = vld [vmem:[#allocation6 + $0x40] sm:$0xff]  ;;  %v3804_v26 = vld [vmem:[#allocation6 + $0x48] sm:$0xff] }
 0x80b   : > { %v3864_v14 = vrot.slane %v3800_v50, 3  ;;  %v3865_v21 = vrot.slane %v3800_v50, 4  ;;  %v3866_v36 = vrot.slane %v3800_v50, 5  ;;  %v3867_v58 = vrot.slane %v3800_v50, 6 }
 0x80c   : > { %v5448_v23 = vadd.f32 %v5447_v42, %v5446_v2  ;;  %v3868_v1 = vrot.slane %v3800_v50, 7  ;;  %v3869_v19 = vrot.slane %v3801_v40, 1  ;;  %v3870_v30 = vrot.slane %v3801_v40, 2 }
 0x80d   : > { %v3871_v62 = vrot.slane %v3801_v40, 3  ;;  %v3872_v24 = vrot.slane %v3801_v40, 4  ;;  %v3873_v4 = vrot.slane %v3801_v40, 5  ;;  %v3874_v35 = vrot.slane %v3801_v40, 6 }
 0x80e   : > { %v5450_v57 = vadd.f32 %v5449_v33, %v5448_v23  ;;  %v3875_v13 = vrot.slane %v3801_v40, 7  ;;  %v3876_v27 = vrot.slane %v3802_v8, 1  ;;  %v3877_v56 = vrot.slane %v3802_v8, 2 }
 0x80f   : > { %v3878_v59 = vrot.slane %v3802_v8, 3  ;;  %v3879_v60 = vrot.slane %v3802_v8, 4  ;;  %v3880_v7 = vrot.slane %v3802_v8, 5  ;;  %v3881_v18 = vrot.slane %v3802_v8, 6 }
 0x810   : > { %v4084_v20 = vld [vmem:[#allocation1] sm:$0xff]  ;;  %v5452_v25 = vadd.f32 %v5451_v22, %v5450_v57  ;;  %v3882_v28 = vrot.slane %v3802_v8, 7  ;;  %v3883_v55 = vrot.slane %v3803_v47, 1  ;;  %v3884_v10 = vrot.slane %v3803_v47, 2 }
 0x811   : > { %4085 = vst [vmem:[#allocation1] ss:$9 sm:$0xff] %v3798_v61  ;;  %v3885_v15 = vrot.slane %v3803_v47, 3  ;;  %v3886_v42 = vrot.slane %v3803_v47, 4  ;;  %v3887_v61 = vrot.slane %v3803_v47, 5  ;;  %v3888_v38 = vrot.slane %v3803_v47, 6 }
 0x812   : > { %4086 = vst [vmem:[#allocation1 + $0x1] ss:$9 sm:$0xff] %v3848_v46  ;;  %v5454_v44 = vadd.f32 %v5453_v11, %v5452_v25  ;;  %v3889_v2 = vrot.slane %v3803_v47, 7  ;;  %v3890_v33 = vrot.slane %v3804_v26, 1  ;;  %v3891_v23 = vrot.slane %v3804_v26, 2 }
 0x813   : > { %4087 = vst [vmem:[#allocation1 + $0x2] ss:$9 sm:$0xff] %v3849_v5  ;;  %v3892_v46 = vrot.slane %v3804_v26, 3  ;;  %v3893_v22 = vrot.slane %v3804_v26, 4  ;;  %v3894_v5 = vrot.slane %v3804_v26, 5  ;;  %v3895_v57 = vrot.slane %v3804_v26, 6 }
 0x814   : > { %4353 = vperm.xlu1 %6664, %v4084_v20   ;;  %4088 = vst [vmem:[#allocation1 + $0x3] ss:$9 sm:$0xff] %v3850_v63  ;;  %v5456_v43 = vadd.f32 %v5455_v9, %v5454_v44  ;;  %v3896_v20 = vrot.slane %v3804_v26, 7  ;;  %v3805_v63 = vld [vmem:[#allocation6 + $0x50] sm:$0xff]  ;;  %vm4445_vm7 = vcmask 130112   ;;  %vm4449_vm3 = vcmask 195712  }
 0x815   : > { %4089 = vst [vmem:[#allocation1 + $0x4] ss:$9 sm:$0xff] %v3851_v0  ;;  %v3897_v11 = vrot.slane %v3805_v63, 1  ;;  %v3898_v0 = vrot.slane %v3805_v63, 2  ;;  %v3900_v9 = vrot.slane %v3805_v63, 4  ;;  %v3902_v44 = vrot.slane %v3805_v63, 6 }
 0x816   : > { %4090 = vst [vmem:[#allocation1 + $0x5] ss:$9 sm:$0xff] %v3852_v48  ;;  %5457 = vadd.xlane.f32.xlu2 %v5456_v43  ;;  %v3899_v48 = vrot.slane %v3805_v63, 3  ;;  %v3806_v43 = vld [vmem:[#allocation6 + $0x58] sm:$0xff]  ;;  %vm4453_vm5 = vcmask 261312   ;;  %vm4457_vm2 = vcmask 326912  }
 0x817   : > { %4091 = vst [vmem:[#allocation1 + $0x6] ss:$9 sm:$0xff] %v3853_v16  ;;  %v3901_v16 = vrot.slane %v3805_v63, 5  ;;  %vm4461_vm11 = vcmask 392512   ;;  %vm4465_vm4 = vcmask 458112   ;;  %vm4469_vm0 = vcmask 523712  }
 0x818   : > { %4092 = vst [vmem:[#allocation1 + $0x7] ss:$9 sm:$0xff] %v3854_v29  ;;  %v3903_v29 = vrot.slane %v3805_v63, 7  ;;  %vm4473_vm8 = vcmask 589312   ;;  %vm4477_vm9 = vcmask 654912   ;;  %vm4481_vm14 = vcmask 720512  }
 0x819   : > { %vm4485_vm10 = vcmask 786112   ;;  %vm4489_vm12 = vcmask 851712   ;;  %vm4493_vm1 = vcmask 917312   ;;  %vm4497_vm15 = vcmask 982912  }
 0x81a   : > { %vm4501_vm13 = vcmask 1048512   ;;  %vm4535_vm6 = vcmask 1040384  }
 0x81f   : > { %v4093_v32 = vld [vmem:[#allocation1] sm:$0xff] }
 0x820   : > { %4356 = vperm.xlu1 %6664, %v4093_v32   ;;  %4094 = vst [vmem:[#allocation1] ss:$9 sm:$0xff] %v3799_v37  ;;  %v3904_v37 = vrot.slane %v3806_v43, 1  ;;  %v3906_v32 = vrot.slane %v3806_v43, 3 }
 0x821   : > { %4095 = vst [vmem:[#allocation1 + $0x1] ss:$9 sm:$0xff] %v3855_v3  ;;  %v3905_v3 = vrot.slane %v3806_v43, 2 }
 0x822   : > { %4096 = vst [vmem:[#allocation1 + $0x2] ss:$9 sm:$0xff] %v3856_v49 }
 0x823   : > { %4097 = vst [vmem:[#allocation1 + $0x3] ss:$9 sm:$0xff] %v3857_v51  ;;  %v3907_v51 = vrot.slane %v3806_v43, 4 }
 0x824   : > { %4098 = vst [vmem:[#allocation1 + $0x4] ss:$9 sm:$0xff] %v3858_v34  ;;  %v3908_v34 = vrot.slane %v3806_v43, 5 }
 0x825   : > { %4099 = vst [vmem:[#allocation1 + $0x5] ss:$9 sm:$0xff] %v3859_v6  ;;  %v3909_v6 = vrot.slane %v3806_v43, 6 }
 0x826   : > { %4100 = vst [vmem:[#allocation1 + $0x6] ss:$9 sm:$0xff] %v3860_v52  ;;  %v3910_v52 = vrot.slane %v3806_v43, 7 }
 0x827   : > { %4101 = vst [vmem:[#allocation1 + $0x7] ss:$9 sm:$0xff] %v3861_v54  ;;  %v3807_v54 = vld [vmem:[#allocation6 + $0x60] sm:$0xff] }
 0x82e   : > { %v4102_v12 = vld [vmem:[#allocation1] sm:$0xff] }
 0x82f   : > { %4103 = vst [vmem:[#allocation1] ss:$9 sm:$0xff] %v3800_v50  ;;  %4359 = vperm.xlu2 %6665, %v4102_v12   ;;  %v3911_v50 = vrot.slane %v3807_v54, 1  ;;  %v3914_v12 = vrot.slane %v3807_v54, 4 }
 0x830   : > { %4104 = vst [vmem:[#allocation1 + $0x1] ss:$9 sm:$0xff] %v3862_v45  ;;  %v3912_v45 = vrot.slane %v3807_v54, 2 }
 0x831   : > { %4105 = vst [vmem:[#allocation1 + $0x2] ss:$9 sm:$0xff] %v3863_v17  ;;  %v3913_v17 = vrot.slane %v3807_v54, 3 }
 0x832   : > { %4106 = vst [vmem:[#allocation1 + $0x3] ss:$9 sm:$0xff] %v3864_v14 }
 0x833   : > { %4107 = vst [vmem:[#allocation1 + $0x4] ss:$9 sm:$0xff] %v3865_v21  ;;  %v3915_v21 = vrot.slane %v3807_v54, 5 }
 0x834   : > { %4108 = vst [vmem:[#allocation1 + $0x5] ss:$9 sm:$0xff] %v3866_v36  ;;  %v3916_v36 = vrot.slane %v3807_v54, 6 }
 0x835   : > { %4109 = vst [vmem:[#allocation1 + $0x6] ss:$9 sm:$0xff] %v3867_v58  ;;  %v3917_v58 = vrot.slane %v3807_v54, 7 }
 0x836   : > { %4110 = vst [vmem:[#allocation1 + $0x7] ss:$9 sm:$0xff] %v3868_v1  ;;  %v3808_v1 = vld [vmem:[#allocation6 + $0x68] sm:$0xff] }
 0x83d   : > { %v4111_v39 = vld [vmem:[#allocation1] sm:$0xff] }
 0x83e   : > { %4112 = vst [vmem:[#allocation1] ss:$9 sm:$0xff] %v3801_v40  ;;  %4362 = vperm.xlu2 %6665, %v4111_v39   ;;  %v3918_v40 = vrot.slane %v3808_v1, 1  ;;  %v3921_v39 = vrot.slane %v3808_v1, 4 }
 0x83f   : > { %4113 = vst [vmem:[#allocation1 + $0x1] ss:$9 sm:$0xff] %v3869_v19  ;;  %v3919_v19 = vrot.slane %v3808_v1, 2 }
 0x840   : > { %4114 = vst [vmem:[#allocation1 + $0x2] ss:$9 sm:$0xff] %v3870_v30 }
 0x841   : > { %4115 = vst [vmem:[#allocation1 + $0x3] ss:$9 sm:$0xff] %v3871_v62  ;;  %v3920_v62 = vrot.slane %v3808_v1, 3 }
 0x842   : > { %4116 = vst [vmem:[#allocation1 + $0x4] ss:$9 sm:$0xff] %v3872_v24  ;;  %v3922_v24 = vrot.slane %v3808_v1, 5 }
 0x843   : > { %4117 = vst [vmem:[#allocation1 + $0x5] ss:$9 sm:$0xff] %v3873_v4  ;;  %v3923_v4 = vrot.slane %v3808_v1, 6 }
 0x844   : > { %4118 = vst [vmem:[#allocation1 + $0x6] ss:$9 sm:$0xff] %v3874_v35  ;;  %v3924_v35 = vrot.slane %v3808_v1, 7 }
 0x845   : > { %4119 = vst [vmem:[#allocation1 + $0x7] ss:$9 sm:$0xff] %v3875_v13  ;;  %v3809_v13 = vld [vmem:[#allocation6 + $0x70] sm:$0xff] }
 0x84c   : > { %v4120_v53 = vld [vmem:[#allocation1] sm:$0xff] }
 0x84d   : > { %4365 = vperm.xlu0 %6663, %v4120_v53   ;;  %4121 = vst [vmem:[#allocation1] ss:$9 sm:$0xff] %v3802_v8  ;;  %v3925_v8 = vrot.slane %v3809_v13, 1  ;;  %v3927_v53 = vrot.slane %v3809_v13, 3 }
 0x84e   : > { %4122 = vst [vmem:[#allocation1 + $0x1] ss:$9 sm:$0xff] %v3876_v27  ;;  %v3926_v27 = vrot.slane %v3809_v13, 2 }
 0x84f   : > { %4123 = vst [vmem:[#allocation1 + $0x2] ss:$9 sm:$0xff] %v3877_v56 }
 0x850   : > { %4124 = vst [vmem:[#allocation1 + $0x3] ss:$9 sm:$0xff] %v3878_v59  ;;  %v3928_v59 = vrot.slane %v3809_v13, 4 }
 0x851   : > { %4125 = vst [vmem:[#allocation1 + $0x4] ss:$9 sm:$0xff] %v3879_v60  ;;  %v3929_v60 = vrot.slane %v3809_v13, 5 }
 0x852   : > { %4126 = vst [vmem:[#allocation1 + $0x5] ss:$9 sm:$0xff] %v3880_v7  ;;  %v3930_v7 = vrot.slane %v3809_v13, 6 }
 0x853   : > { %4127 = vst [vmem:[#allocation1 + $0x6] ss:$9 sm:$0xff] %v3881_v18  ;;  %v3931_v18 = vrot.slane %v3809_v13, 7 }
 0x854   : > { %4128 = vst [vmem:[#allocation1 + $0x7] ss:$9 sm:$0xff] %v3882_v28  ;;  %v3810_v28 = vld [vmem:[#allocation6 + $0x78] sm:$0xff] }
 0x85b   : > { %v4129_v41 = vld [vmem:[#allocation1] sm:$0xff] }
 0x85c   : > { %4368 = vperm.xlu1 %6664, %v4129_v41   ;;  %4130 = vst [vmem:[#allocation1] ss:$9 sm:$0xff] %v3803_v47  ;;  %v3932_v47 = vrot.slane %v3810_v28, 1 }
 0x85d   : > { %4131 = vst [vmem:[#allocation1 + $0x1] ss:$9 sm:$0xff] %v3883_v55  ;;  %v3933_v55 = vrot.slane %v3810_v28, 2 }
 0x85e   : > { %4132 = vst [vmem:[#allocation1 + $0x2] ss:$9 sm:$0xff] %v3884_v10  ;;  %v3934_v10 = vrot.slane %v3810_v28, 3 }
 0x85f   : > { %4133 = vst [vmem:[#allocation1 + $0x3] ss:$9 sm:$0xff] %v3885_v15  ;;  %v3935_v15 = vrot.slane %v3810_v28, 4 }
 0x860   : > { %4134 = vst [vmem:[#allocation1 + $0x4] ss:$9 sm:$0xff] %v3886_v42  ;;  %v3936_v42 = vrot.slane %v3810_v28, 5 }
 0x861   : > { %4135 = vst [vmem:[#allocation1 + $0x5] ss:$9 sm:$0xff] %v3887_v61  ;;  %v3937_v61 = vrot.slane %v3810_v28, 6 }
 0x862   : > { %4136 = vst [vmem:[#allocation1 + $0x6] ss:$9 sm:$0xff] %v3888_v38  ;;  %v3938_v38 = vrot.slane %v3810_v28, 7 }
 0x863   : > { %4137 = vst [vmem:[#allocation1 + $0x7] ss:$9 sm:$0xff] %v3889_v2  ;;  %v3811_v2 = vld [vmem:[#allocation6 + $0x80] sm:$0xff] }
 0x86a   : > { %v4138_v31 = vld [vmem:[#allocation1] sm:$0xff] }
 0x86b   : > { %4139 = vst [vmem:[#allocation1] ss:$9 sm:$0xff] %v3804_v26  ;;  %4371 = vperm.xlu2 %6665, %v4138_v31   ;;  %v3939_v26 = vrot.slane %v3811_v2, 1  ;;  %v3942_v31 = vrot.slane %v3811_v2, 4 }
 0x86c   : > { %4140 = vst [vmem:[#allocation1 + $0x1] ss:$9 sm:$0xff] %v3890_v33  ;;  %v3940_v33 = vrot.slane %v3811_v2, 2 }
 0x86d   : > { %4141 = vst [vmem:[#allocation1 + $0x2] ss:$9 sm:$0xff] %v3891_v23 }
 0x86e   : > { %4142 = vst [vmem:[#allocation1 + $0x3] ss:$9 sm:$0xff] %v3892_v46  ;;  %v3941_v46 = vrot.slane %v3811_v2, 3 }
 0x86f   : > { %4143 = vst [vmem:[#allocation1 + $0x4] ss:$9 sm:$0xff] %v3893_v22  ;;  %v3943_v22 = vrot.slane %v3811_v2, 5 }
 0x870   : > { %4144 = vst [vmem:[#allocation1 + $0x5] ss:$9 sm:$0xff] %v3894_v5  ;;  %v3944_v5 = vrot.slane %v3811_v2, 6 }
 0x871   : > { %4145 = vst [vmem:[#allocation1 + $0x6] ss:$9 sm:$0xff] %v3895_v57  ;;  %v3945_v57 = vrot.slane %v3811_v2, 7 }
 0x872   : > { %4146 = vst [vmem:[#allocation1 + $0x7] ss:$9 sm:$0xff] %v3896_v20  ;;  %v3812_v20 = vld [vmem:[#allocation6 + $0x88] sm:$0xff] }
 0x879   : > { %v4147_v25 = vld [vmem:[#allocation1] sm:$0xff] }
 0x87a   : > { %4374 = vperm.xlu0 %6663, %v4147_v25   ;;  %4148 = vst [vmem:[#allocation1] ss:$9 sm:$0xff] %v3805_v63  ;;  %v3946_v63 = vrot.slane %v3812_v20, 1  ;;  %v3948_v25 = vrot.slane %v3812_v20, 3 }
 0x87b   : > { %4149 = vst [vmem:[#allocation1 + $0x1] ss:$9 sm:$0xff] %v3897_v11  ;;  %v3947_v11 = vrot.slane %v3812_v20, 2 }
 0x87c   : > { %4150 = vst [vmem:[#allocation1 + $0x2] ss:$9 sm:$0xff] %v3898_v0 }
 0x87d   : > { %4151 = vst [vmem:[#allocation1 + $0x3] ss:$9 sm:$0xff] %v3899_v48  ;;  %v3949_v48 = vrot.slane %v3812_v20, 4 }
 0x87e   : > { %4152 = vst [vmem:[#allocation1 + $0x4] ss:$9 sm:$0xff] %v3900_v9  ;;  %v3950_v9 = vrot.slane %v3812_v20, 5 }
 0x87f   : > { %4153 = vst [vmem:[#allocation1 + $0x5] ss:$9 sm:$0xff] %v3901_v16  ;;  %v3951_v16 = vrot.slane %v3812_v20, 6 }
 0x880   : > { %4154 = vst [vmem:[#allocation1 + $0x6] ss:$9 sm:$0xff] %v3902_v44  ;;  %v3952_v44 = vrot.slane %v3812_v20, 7 }
 0x881   : > { %4155 = vst [vmem:[#allocation1 + $0x7] ss:$9 sm:$0xff] %v3903_v29  ;;  %v3813_v29 = vld [vmem:[#allocation6 + $0x90] sm:$0xff] }
 0x888   : > { %v4156_v49 = vld [vmem:[#allocation1] sm:$0xff] }
 0x889   : > { %4377 = vperm.xlu1 %6664, %v4156_v49   ;;  %4157 = vst [vmem:[#allocation1] ss:$9 sm:$0xff] %v3806_v43  ;;  %v3953_v43 = vrot.slane %v3813_v29, 1 }
 0x88a   : > { %4158 = vst [vmem:[#allocation1 + $0x1] ss:$9 sm:$0xff] %v3904_v37  ;;  %v3954_v37 = vrot.slane %v3813_v29, 2 }
 0x88b   : > { %4159 = vst [vmem:[#allocation1 + $0x2] ss:$9 sm:$0xff] %v3905_v3  ;;  %v3955_v3 = vrot.slane %v3813_v29, 3 }
 0x88c   : > { %4160 = vst [vmem:[#allocation1 + $0x3] ss:$9 sm:$0xff] %v3906_v32  ;;  %v3956_v32 = vrot.slane %v3813_v29, 4 }
 0x88d   : > { %4161 = vst [vmem:[#allocation1 + $0x4] ss:$9 sm:$0xff] %v3907_v51  ;;  %v3957_v51 = vrot.slane %v3813_v29, 5 }
 0x88e   : > { %4162 = vst [vmem:[#allocation1 + $0x5] ss:$9 sm:$0xff] %v3908_v34  ;;  %v3958_v34 = vrot.slane %v3813_v29, 6 }
 0x88f   : > { %4163 = vst [vmem:[#allocation1 + $0x6] ss:$9 sm:$0xff] %v3909_v6  ;;  %v3959_v6 = vrot.slane %v3813_v29, 7 }
 0x890   : > { %4164 = vst [vmem:[#allocation1 + $0x7] ss:$9 sm:$0xff] %v3910_v52  ;;  %v3814_v52 = vld [vmem:[#allocation6 + $0x98] sm:$0xff] }
 0x897   : > { %v4165_v14 = vld [vmem:[#allocation1] sm:$0xff] }
 0x898   : > { %4166 = vst [vmem:[#allocation1] ss:$9 sm:$0xff] %v3807_v54  ;;  %4380 = vperm.xlu2 %6665, %v4165_v14   ;;  %v3960_v54 = vrot.slane %v3814_v52, 1  ;;  %v3963_v14 = vrot.slane %v3814_v52, 4 }
 0x899   : > { %4167 = vst [vmem:[#allocation1 + $0x1] ss:$9 sm:$0xff] %v3911_v50  ;;  %v3961_v50 = vrot.slane %v3814_v52, 2 }
 0x89a   : > { %4168 = vst [vmem:[#allocation1 + $0x2] ss:$9 sm:$0xff] %v3912_v45 }
 0x89b   : > { %4169 = vst [vmem:[#allocation1 + $0x3] ss:$9 sm:$0xff] %v3913_v17  ;;  %v3962_v17 = vrot.slane %v3814_v52, 3 }
 0x89c   : > { %4170 = vst [vmem:[#allocation1 + $0x4] ss:$9 sm:$0xff] %v3914_v12  ;;  %v3964_v12 = vrot.slane %v3814_v52, 5 }
 0x89d   : > { %4171 = vst [vmem:[#allocation1 + $0x5] ss:$9 sm:$0xff] %v3915_v21  ;;  %v3965_v21 = vrot.slane %v3814_v52, 6 }
 0x89e   : > { %4172 = vst [vmem:[#allocation1 + $0x6] ss:$9 sm:$0xff] %v3916_v36  ;;  %v3966_v36 = vrot.slane %v3814_v52, 7 }
 0x89f   : > { %4173 = vst [vmem:[#allocation1 + $0x7] ss:$9 sm:$0xff] %v3917_v58  ;;  %v3815_v58 = vld [vmem:[#allocation6 + $0xa0] sm:$0xff] }
 0x8a6   : > { %v4174_v30 = vld [vmem:[#allocation1] sm:$0xff] }
 0x8a7   : > { %4383 = vperm.xlu0 %6663, %v4174_v30   ;;  %4175 = vst [vmem:[#allocation1] ss:$9 sm:$0xff] %v3808_v1  ;;  %v3967_v1 = vrot.slane %v3815_v58, 1  ;;  %v3969_v30 = vrot.slane %v3815_v58, 3 }
 0x8a8   : > { %4176 = vst [vmem:[#allocation1 + $0x1] ss:$9 sm:$0xff] %v3918_v40  ;;  %v3968_v40 = vrot.slane %v3815_v58, 2 }
 0x8a9   : > { %4177 = vst [vmem:[#allocation1 + $0x2] ss:$9 sm:$0xff] %v3919_v19 }
 0x8aa   : > { %4178 = vst [vmem:[#allocation1 + $0x3] ss:$9 sm:$0xff] %v3920_v62  ;;  %v3970_v62 = vrot.slane %v3815_v58, 4 }
 0x8ab   : > { %4179 = vst [vmem:[#allocation1 + $0x4] ss:$9 sm:$0xff] %v3921_v39  ;;  %v3971_v39 = vrot.slane %v3815_v58, 5 }
 0x8ac   : > { %4180 = vst [vmem:[#allocation1 + $0x5] ss:$9 sm:$0xff] %v3922_v24  ;;  %v3972_v24 = vrot.slane %v3815_v58, 6 }
 0x8ad   : > { %4181 = vst [vmem:[#allocation1 + $0x6] ss:$9 sm:$0xff] %v3923_v4  ;;  %v3973_v4 = vrot.slane %v3815_v58, 7 }
 0x8ae   : > { %4182 = vst [vmem:[#allocation1 + $0x7] ss:$9 sm:$0xff] %v3924_v35  ;;  %v3816_v35 = vld [vmem:[#allocation6 + $0xa8] sm:$0xff] }
 0x8b5   : > { %v4183_v56 = vld [vmem:[#allocation1] sm:$0xff] }
 0x8b6   : > { %4386 = vperm.xlu1 %6664, %v4183_v56   ;;  %4184 = vst [vmem:[#allocation1] ss:$9 sm:$0xff] %v3809_v13  ;;  %v3974_v13 = vrot.slane %v3816_v35, 1 }
 0x8b7   : > { %4185 = vst [vmem:[#allocation1 + $0x1] ss:$9 sm:$0xff] %v3925_v8  ;;  %v3975_v8 = vrot.slane %v3816_v35, 2 }
 0x8b8   : > { %4186 = vst [vmem:[#allocation1 + $0x2] ss:$9 sm:$0xff] %v3926_v27  ;;  %v3976_v27 = vrot.slane %v3816_v35, 3 }
 0x8b9   : > { %4187 = vst [vmem:[#allocation1 + $0x3] ss:$9 sm:$0xff] %v3927_v53  ;;  %v3977_v53 = vrot.slane %v3816_v35, 4 }
 0x8ba   : > { %4188 = vst [vmem:[#allocation1 + $0x4] ss:$9 sm:$0xff] %v3928_v59  ;;  %v3978_v59 = vrot.slane %v3816_v35, 5 }
 0x8bb   : > { %4189 = vst [vmem:[#allocation1 + $0x5] ss:$9 sm:$0xff] %v3929_v60  ;;  %v3979_v60 = vrot.slane %v3816_v35, 6 }
 0x8bc   : > { %4190 = vst [vmem:[#allocation1 + $0x6] ss:$9 sm:$0xff] %v3930_v7  ;;  %v3980_v7 = vrot.slane %v3816_v35, 7 }
 0x8bd   : > { %4191 = vst [vmem:[#allocation1 + $0x7] ss:$9 sm:$0xff] %v3931_v18  ;;  %v3817_v18 = vld [vmem:[#allocation6 + $0xb0] sm:$0xff] }
 0x8c4   : > { %v4192_v41 = vld [vmem:[#allocation1] sm:$0xff] }
 0x8c5   : > { %4193 = vst [vmem:[#allocation1] ss:$9 sm:$0xff] %v3810_v28  ;;  %4389 = vperm.xlu2 %6665, %v4192_v41   ;;  %v3981_v28 = vrot.slane %v3817_v18, 1  ;;  %v3984_v41 = vrot.slane %v3817_v18, 4 }
 0x8c6   : > { %4194 = vst [vmem:[#allocation1 + $0x1] ss:$9 sm:$0xff] %v3932_v47  ;;  %v3982_v47 = vrot.slane %v3817_v18, 2 }
 0x8c7   : > { %4195 = vst [vmem:[#allocation1 + $0x2] ss:$9 sm:$0xff] %v3933_v55 }
 0x8c8   : > { %4196 = vst [vmem:[#allocation1 + $0x3] ss:$9 sm:$0xff] %v3934_v10  ;;  %v3983_v10 = vrot.slane %v3817_v18, 3 }
 0x8c9   : > { %4197 = vst [vmem:[#allocation1 + $0x4] ss:$9 sm:$0xff] %v3935_v15  ;;  %v3985_v15 = vrot.slane %v3817_v18, 5 }
 0x8ca   : > { %4198 = vst [vmem:[#allocation1 + $0x5] ss:$9 sm:$0xff] %v3936_v42  ;;  %v3986_v42 = vrot.slane %v3817_v18, 6 }
 0x8cb   : > { %4199 = vst [vmem:[#allocation1 + $0x6] ss:$9 sm:$0xff] %v3937_v61  ;;  %v3987_v61 = vrot.slane %v3817_v18, 7 }
 0x8cc   : > { %4200 = vst [vmem:[#allocation1 + $0x7] ss:$9 sm:$0xff] %v3938_v38  ;;  %v3818_v38 = vld [vmem:[#allocation6 + $0xb8] sm:$0xff] }
 0x8d3   : > { %v4201_v23 = vld [vmem:[#allocation1] sm:$0xff] }
 0x8d4   : > { %4392 = vperm.xlu0 %6663, %v4201_v23   ;;  %4202 = vst [vmem:[#allocation1] ss:$9 sm:$0xff] %v3811_v2  ;;  %v3988_v2 = vrot.slane %v3818_v38, 1  ;;  %v3990_v23 = vrot.slane %v3818_v38, 3 }
 0x8d5   : > { %4203 = vst [vmem:[#allocation1 + $0x1] ss:$9 sm:$0xff] %v3939_v26  ;;  %v3989_v26 = vrot.slane %v3818_v38, 2 }
 0x8d6   : > { %4204 = vst [vmem:[#allocation1 + $0x2] ss:$9 sm:$0xff] %v3940_v33 }
 0x8d7   : > { %4205 = vst [vmem:[#allocation1 + $0x3] ss:$9 sm:$0xff] %v3941_v46  ;;  %v3991_v46 = vrot.slane %v3818_v38, 4 }
 0x8d8   : > { %4206 = vst [vmem:[#allocation1 + $0x4] ss:$9 sm:$0xff] %v3942_v31  ;;  %v3992_v31 = vrot.slane %v3818_v38, 5 }
 0x8d9   : > { %4207 = vst [vmem:[#allocation1 + $0x5] ss:$9 sm:$0xff] %v3943_v22  ;;  %v3993_v22 = vrot.slane %v3818_v38, 6 }
 0x8da   : > { %4208 = vst [vmem:[#allocation1 + $0x6] ss:$9 sm:$0xff] %v3944_v5  ;;  %v3994_v5 = vrot.slane %v3818_v38, 7 }
 0x8db   : > { %4209 = vst [vmem:[#allocation1 + $0x7] ss:$9 sm:$0xff] %v3945_v57  ;;  %v3819_v57 = vld [vmem:[#allocation6 + $0xc0] sm:$0xff] }
 0x8e2   : > { %v4210_v0 = vld [vmem:[#allocation1] sm:$0xff] }
 0x8e3   : > { %4395 = vperm.xlu1 %6664, %v4210_v0   ;;  %4211 = vst [vmem:[#allocation1] ss:$9 sm:$0xff] %v3812_v20  ;;  %v3995_v20 = vrot.slane %v3819_v57, 1 }
 0x8e4   : > { %4212 = vst [vmem:[#allocation1 + $0x1] ss:$9 sm:$0xff] %v3946_v63  ;;  %v3996_v63 = vrot.slane %v3819_v57, 2 }
 0x8e5   : > { %4213 = vst [vmem:[#allocation1 + $0x2] ss:$9 sm:$0xff] %v3947_v11  ;;  %v3997_v11 = vrot.slane %v3819_v57, 3 }
 0x8e6   : > { %4214 = vst [vmem:[#allocation1 + $0x3] ss:$9 sm:$0xff] %v3948_v25  ;;  %v3998_v25 = vrot.slane %v3819_v57, 4 }
 0x8e7   : > { %4215 = vst [vmem:[#allocation1 + $0x4] ss:$9 sm:$0xff] %v3949_v48  ;;  %v3999_v48 = vrot.slane %v3819_v57, 5 }
 0x8e8   : > { %4216 = vst [vmem:[#allocation1 + $0x5] ss:$9 sm:$0xff] %v3950_v9  ;;  %v4000_v9 = vrot.slane %v3819_v57, 6 }
 0x8e9   : > { %4217 = vst [vmem:[#allocation1 + $0x6] ss:$9 sm:$0xff] %v3951_v16  ;;  %v4001_v16 = vrot.slane %v3819_v57, 7 }
 0x8ea   : > { %4218 = vst [vmem:[#allocation1 + $0x7] ss:$9 sm:$0xff] %v3952_v44  ;;  %v3820_v44 = vld [vmem:[#allocation6 + $0xc8] sm:$0xff] }
 0x8f1   : > { %v4219_v49 = vld [vmem:[#allocation1] sm:$0xff] }
 0x8f2   : > { %4220 = vst [vmem:[#allocation1] ss:$9 sm:$0xff] %v3813_v29  ;;  %4398 = vperm.xlu2 %6665, %v4219_v49   ;;  %v4002_v29 = vrot.slane %v3820_v44, 1  ;;  %v4005_v49 = vrot.slane %v3820_v44, 4 }
 0x8f3   : > { %4221 = vst [vmem:[#allocation1 + $0x1] ss:$9 sm:$0xff] %v3953_v43  ;;  %v4003_v43 = vrot.slane %v3820_v44, 2 }
 0x8f4   : > { %4222 = vst [vmem:[#allocation1 + $0x2] ss:$9 sm:$0xff] %v3954_v37 }
 0x8f5   : > { %4223 = vst [vmem:[#allocation1 + $0x3] ss:$9 sm:$0xff] %v3955_v3  ;;  %v4004_v3 = vrot.slane %v3820_v44, 3 }
 0x8f6   : > { %4224 = vst [vmem:[#allocation1 + $0x4] ss:$9 sm:$0xff] %v3956_v32  ;;  %v4006_v32 = vrot.slane %v3820_v44, 5 }
 0x8f7   : > { %4225 = vst [vmem:[#allocation1 + $0x5] ss:$9 sm:$0xff] %v3957_v51  ;;  %v4007_v51 = vrot.slane %v3820_v44, 6 }
 0x8f8   : > { %4226 = vst [vmem:[#allocation1 + $0x6] ss:$9 sm:$0xff] %v3958_v34  ;;  %v4008_v34 = vrot.slane %v3820_v44, 7 }
 0x8f9   : > { %4227 = vst [vmem:[#allocation1 + $0x7] ss:$9 sm:$0xff] %v3959_v6  ;;  %v3821_v6 = vld [vmem:[#allocation6 + $0xd0] sm:$0xff] }
 0x900   : > { %v4228_v45 = vld [vmem:[#allocation1] sm:$0xff] }
 0x901   : > { %4401 = vperm.xlu0 %6663, %v4228_v45   ;;  %4229 = vst [vmem:[#allocation1] ss:$9 sm:$0xff] %v3814_v52  ;;  %v10340_v52 = vpop.xlane.xlu0 %5103 }
 0x902   : > { %4230 = vst [vmem:[#allocation1 + $0x1] ss:$9 sm:$0xff] %v3960_v54  ;;  %v4009_v54 = vrot.slane %v3821_v6, 1 }
 0x903   : > { %4231 = vst [vmem:[#allocation1 + $0x2] ss:$9 sm:$0xff] %v3961_v50  ;;  %v4010_v50 = vrot.slane %v3821_v6, 2 }
 0x904   : > { %4232 = vst [vmem:[#allocation1 + $0x3] ss:$9 sm:$0xff] %v3962_v17  ;;  %v4011_v17 = vrot.slane %v3821_v6, 3 }
 0x905   : > { %4233 = vst [vmem:[#allocation1 + $0x4] ss:$9 sm:$0xff] %v3963_v14  ;;  %v4012_v14 = vrot.slane %v3821_v6, 4 }
 0x906   : > { %4234 = vst [vmem:[#allocation1 + $0x5] ss:$9 sm:$0xff] %v3964_v12  ;;  %v4013_v12 = vrot.slane %v3821_v6, 5 }
 0x907   : > { %4235 = vst [vmem:[#allocation1 + $0x6] ss:$9 sm:$0xff] %v3965_v21  ;;  %v4014_v21 = vrot.slane %v3821_v6, 6 }
 0x908   : > { %4236 = vst [vmem:[#allocation1 + $0x7] ss:$9 sm:$0xff] %v3966_v36  ;;  %v10342_v36 = vpop.xlane.xlu2 %5101 }
 0x90f   : > { %v4237_v19 = vld [vmem:[#allocation1] sm:$0xff] }
 0x910   : > { %4404 = vperm.xlu1 %6664, %v4237_v19   ;;  %4238 = vst [vmem:[#allocation1] ss:$9 sm:$0xff] %v3815_v58  ;;  %v4015_v58 = vrot.slane %v3821_v6, 7  ;;  %v3822_v19 = vld [vmem:[#allocation6 + $0xd8] sm:$0xff] }
 0x911   : > { %4239 = vst [vmem:[#allocation1 + $0x1] ss:$9 sm:$0xff] %v3967_v1  ;;  %v10344_v1 = vpop.xlane.xlu1 %5251 }
 0x912   : > { %4240 = vst [vmem:[#allocation1 + $0x2] ss:$9 sm:$0xff] %v3968_v40  ;;  %v10346_v40 = vpop.xlane.xlu0 %5602 }
 0x913   : > { %4241 = vst [vmem:[#allocation1 + $0x3] ss:$9 sm:$0xff] %v3969_v30  ;;  %v4016_v30 = vrot.slane %v3822_v19, 1 }
 0x914   : > { %4242 = vst [vmem:[#allocation1 + $0x4] ss:$9 sm:$0xff] %v3970_v62  ;;  %v10348_v62 = vpop.xlane.xlu2 %5249 }
 0x915   : > { %4243 = vst [vmem:[#allocation1 + $0x5] ss:$9 sm:$0xff] %v3971_v39  ;;  %v4017_v39 = vrot.slane %v3822_v19, 2 }
 0x916   : > { %4244 = vst [vmem:[#allocation1 + $0x6] ss:$9 sm:$0xff] %v3972_v24 }
 0x917   : > { %4245 = vst [vmem:[#allocation1 + $0x7] ss:$9 sm:$0xff] %v3973_v4 }
 0x919   : > { %v10350_v4 = vpop.xlane.xlu1 %5750 }
 0x91e   : > { %v4246_v56 = vld [vmem:[#allocation1] sm:$0xff] }
 0x91f   : > { %4247 = vst [vmem:[#allocation1] ss:$9 sm:$0xff] %v3816_v35  ;;  %4407 = vperm.xlu2 %6665, %v4246_v56   ;;  %v4018_v35 = vrot.slane %v3822_v19, 3  ;;  %v4021_v56 = vrot.slane %v3822_v19, 6 }
 0x920   : > { %4248 = vst [vmem:[#allocation1 + $0x1] ss:$9 sm:$0xff] %v3974_v13  ;;  %v4019_v13 = vrot.slane %v3822_v19, 4 }
 0x921   : > { %4249 = vst [vmem:[#allocation1 + $0x2] ss:$9 sm:$0xff] %v3975_v8  ;;  %v4020_v8 = vrot.slane %v3822_v19, 5 }
 0x922   : > { %4250 = vst [vmem:[#allocation1 + $0x3] ss:$9 sm:$0xff] %v3976_v27  ;;  %v10352_v27 = vpop.xlane.xlu0 %5748 }
 0x923   : > { %4251 = vst [vmem:[#allocation1 + $0x4] ss:$9 sm:$0xff] %v3977_v53  ;;  %v4022_v53 = vrot.slane %v3822_v19, 7 }
 0x924   : > { %4252 = vst [vmem:[#allocation1 + $0x5] ss:$9 sm:$0xff] %v3978_v59  ;;  %v10354_v59 = vpop.xlane.xlu2 %5600 }
 0x925   : > { %4253 = vst [vmem:[#allocation1 + $0x6] ss:$9 sm:$0xff] %v3979_v60  ;;  %v3823_v60 = vld [vmem:[#allocation6 + $0xe0] sm:$0xff] }
 0x926   : > { %4254 = vst [vmem:[#allocation1 + $0x7] ss:$9 sm:$0xff] %v3980_v7  ;;  %v10356_v7 = vpop.xlane.xlu1 %4958 }
 0x92d   : > { %v4255_v55 = vld [vmem:[#allocation1] sm:$0xff] }
 0x92e   : > { %4410 = vperm.xlu0 %6663, %v4255_v55   ;;  %4256 = vst [vmem:[#allocation1] ss:$9 sm:$0xff] %v3817_v18  ;;  %v4348_v18 = vpop.permute.xlu0 %4347 }
 0x92f   : > { %4257 = vst [vmem:[#allocation1 + $0x1] ss:$9 sm:$0xff] %v3981_v28  ;;  %v4023_v28 = vrot.slane %v3823_v60, 1 }
 0x930   : > { %4258 = vst [vmem:[#allocation1 + $0x2] ss:$9 sm:$0xff] %v3982_v47  ;;  %v4024_v47 = vrot.slane %v3823_v60, 2 }
 0x931   : > { %4259 = vst [vmem:[#allocation1 + $0x3] ss:$9 sm:$0xff] %v3983_v10  ;;  %v4025_v10 = vrot.slane %v3823_v60, 3 }
 0x932   : > { %4260 = vst [vmem:[#allocation1 + $0x4] ss:$9 sm:$0xff] %v3984_v41  ;;  %v4026_v41 = vrot.slane %v3823_v60, 4 }
 0x933   : > { %4261 = vst [vmem:[#allocation1 + $0x5] ss:$9 sm:$0xff] %v3985_v15  ;;  %v4027_v15 = vrot.slane %v3823_v60, 5 }
 0x934   : > { %4262 = vst [vmem:[#allocation1 + $0x6] ss:$9 sm:$0xff] %v3986_v42  ;;  %v4028_v42 = vrot.slane %v3823_v60, 6 }
 0x935   : > { %4263 = vst [vmem:[#allocation1 + $0x7] ss:$9 sm:$0xff] %v3987_v61  ;;  %v4029_v61 = vrot.slane %v3823_v60, 7 }
 0x93c   : > { %v4264_v33 = vld [vmem:[#allocation1] sm:$0xff] }
 0x93d   : > { %4413 = vperm.xlu1 %6664, %v4264_v33   ;;  %4265 = vst [vmem:[#allocation1] ss:$9 sm:$0xff] %v3818_v38  ;;  %v10358_v38 = vpop.xlane.xlu2 %5457  ;;  %v5106_v33 = vcvt.f32.s32 %v10340_v52 }
 0x93e   : > { %4266 = vst [vmem:[#allocation1 + $0x1] ss:$9 sm:$0xff] %v3988_v2  ;;  %v11664_v2 = vld [vmem:[#allocation137_spill] sm:$0xff] }
 0x93f   : > { %4267 = vst [vmem:[#allocation1 + $0x2] ss:$9 sm:$0xff] %v3989_v26  ;;  %v10361_v26 = vadd.s32 4294967288, %v11664_v2 }
 0x940   : > { %4268 = vst [vmem:[#allocation1 + $0x3] ss:$9 sm:$0xff] %v3990_v23  ;;  %v4354_v23 = vpop.permute.xlu1 %4353 }
 0x941   : > { %4269 = vst [vmem:[#allocation1 + $0x4] ss:$9 sm:$0xff] %v3991_v46  ;;  %v10365_v46 = vadd.s32 4294967280, %v11664_v2 }
 0x942   : > { %4270 = vst [vmem:[#allocation1 + $0x5] ss:$9 sm:$0xff] %v3992_v31  ;;  %v4351_v31 = vpop.permute.xlu0 %4350 }
 0x943   : > { %4271 = vst [vmem:[#allocation1 + $0x6] ss:$9 sm:$0xff] %v3993_v22  ;;  %v5254_v22 = vcvt.f32.s32 %v10344_v1  ;;  %v5604_v1 = vcvt.f32.s32 %v10354_v59  ;;  %v3825_v59 = vld [vmem:[#allocation6 + $0xf0] sm:$0xff] }
 0x944   : > { %4272 = vst [vmem:[#allocation1 + $0x7] ss:$9 sm:$0xff] %v3994_v5  ;;  %v4442_v5 = vperm.slane %v4348_v18, %v11664_v2 }
 0x94b   : > { %v4273_v0 = vld [vmem:[#allocation1] sm:$0xff] }
 0x94c   : > { %4274 = vst [vmem:[#allocation1] ss:$9 sm:$0xff] %v3819_v57  ;;  %4416 = vperm.xlu2 %6665, %v4273_v0   ;;  %v4444_v57 = vperm.slane %v4351_v31, %v10361_v26  ;;  %v4448_v0 = vperm.slane %v4354_v23, %v10365_v46  ;;  %v4040_v31 = vrot.slane %v3825_v59, 4 }
 0x94d   : > { %4275 = vst [vmem:[#allocation1 + $0x1] ss:$9 sm:$0xff] %v3995_v20  ;;  %v5105_v20 = vcvt.f32.s32 %v10342_v36 }
 0x94e   : > { %4276 = vst [vmem:[#allocation1 + $0x2] ss:$9 sm:$0xff] %v3996_v63  ;;  %v5107_v63 = vshll.u32 %v5106_v33, 16 }
 0x94f   : > { %4277 = vst [vmem:[#allocation1 + $0x3] ss:$9 sm:$0xff] %v3997_v11  ;;  %v3824_v11 = vld [vmem:[#allocation6 + $0xe8] sm:$0xff] }
 0x950   : > { %4278 = vst [vmem:[#allocation1 + $0x4] ss:$9 sm:$0xff] %v3998_v25  ;;  %v10373_v25 = vadd.s32 4294967264, %v11664_v2 }
 0x951   : > { %4279 = vst [vmem:[#allocation1 + $0x5] ss:$9 sm:$0xff] %v3999_v48  ;;  %v5255_v48 = vshll.u32 %v5254_v22, 16 }
 0x952   : > { %4280 = vst [vmem:[#allocation1 + $0x6] ss:$9 sm:$0xff] %v4000_v9  ;;  %v5253_v9 = vcvt.f32.s32 %v10348_v62 }
 0x953   : > { %4281 = vst [vmem:[#allocation1 + $0x7] ss:$9 sm:$0xff] %v4001_v16  ;;  %v4446_v16 = vsel %vm4445_vm7, %v4444_v57, %v4442_v5  ;;  %v4041_v57 = vrot.slane %v3825_v59, 5 }
 0x954   : > { %v4450_v52 = vsel %vm4449_vm3, %v4448_v0, %v4446_v16  ;;  %v4043_v0 = vrot.slane %v3825_v59, 7 }
 0x95a   : > { %v4282_v37 = vld [vmem:[#allocation1] sm:$0xff] }
 0x95b   : > { %4419 = vperm.xlu0 %6663, %v4282_v37   ;;  %4283 = vst [vmem:[#allocation1] ss:$9 sm:$0xff] %v3820_v44  ;;  %v5108_v44 = vadd.s32 %v5107_v63, %v5105_v20  ;;  %v5753_v37 = vcvt.f32.s32 %v10350_v4  ;;  %v4042_v63 = vrot.slane %v3825_v59, 6 }
 0x95c   : > { %4284 = vst [vmem:[#allocation1 + $0x1] ss:$9 sm:$0xff] %v4002_v29  ;;  %v5605_v29 = vcvt.f32.s32 %v10346_v40  ;;  %v4036_v40 = vrot.slane %v3824_v11, 7 }
 0x95d   : > { %4285 = vst [vmem:[#allocation1 + $0x2] ss:$9 sm:$0xff] %v4003_v43  ;;  %v4030_v43 = vrot.slane %v3824_v11, 1 }
 0x95e   : > { %4286 = vst [vmem:[#allocation1 + $0x3] ss:$9 sm:$0xff] %v4004_v3  ;;  %v4031_v3 = vrot.slane %v3824_v11, 2 }
 0x95f   : > { %4287 = vst [vmem:[#allocation1 + $0x4] ss:$9 sm:$0xff] %v4005_v49  ;;  %v4360_v49 = vpop.permute.xlu2 %4359 }
 0x960   : > { %4288 = vst [vmem:[#allocation1 + $0x5] ss:$9 sm:$0xff] %v4006_v32  ;;  %v10380_v32 = vadd.s32 4294967272, %v11664_v2 }
 0x961   : > { %4289 = vst [vmem:[#allocation1 + $0x6] ss:$9 sm:$0xff] %v4007_v51 }
 0x962   : > { %4290 = vst [vmem:[#allocation1 + $0x7] ss:$9 sm:$0xff] %v4008_v34  ;;  %v4032_v34 = vrot.slane %v3824_v11, 3 }
 0x969   : > { %v4291_v45 = vld [vmem:[#allocation1] sm:$0xff] }
 0x96a   : > { %4422 = vperm.xlu1 %6664, %v4291_v45   ;;  %4292 = vst [vmem:[#allocation1] ss:$9 sm:$0xff] %v3821_v6  ;;  %v4456_v6 = vperm.slane %v4360_v49, %v10373_v25  ;;  %v4033_v45 = vrot.slane %v3824_v11, 4 }
 0x96b   : > { %4293 = vst [vmem:[#allocation1 + $0x1] ss:$9 sm:$0xff] %v4009_v54  ;;  %v4357_v54 = vpop.permute.xlu1 %4356 }
 0x96c   : > { %4294 = vst [vmem:[#allocation1 + $0x2] ss:$9 sm:$0xff] %v4010_v50  ;;  %v5256_v50 = vadd.s32 %v5255_v48, %v5253_v9 }
 0x96d   : > { %4295 = vst [vmem:[#allocation1 + $0x3] ss:$9 sm:$0xff] %v4011_v17  ;;  %v4452_v17 = vperm.slane %v4357_v54, %v10380_v32 }
 0x96e   : > { %4296 = vst [vmem:[#allocation1 + $0x4] ss:$9 sm:$0xff] %v4012_v14  ;;  %v4034_v14 = vrot.slane %v3824_v11, 5  ;;  %v5257_v62 = vrot.slane %v5256_v50, 4 }
 0x96f   : > { %4297 = vst [vmem:[#allocation1 + $0x5] ss:$9 sm:$0xff] %v4013_v12  ;;  %v4960_v12 = vrot.slane %v10356_v7, 4  ;;  %v4454_v36 = vsel %vm4453_vm5, %v4452_v17, %v4450_v52 }
 0x970   : > { %4298 = vst [vmem:[#allocation1 + $0x6] ss:$9 sm:$0xff] %v4014_v21  ;;  %v4035_v21 = vrot.slane %v3824_v11, 6 }
 0x971   : > { %4299 = vst [vmem:[#allocation1 + $0x7] ss:$9 sm:$0xff] %v4015_v58  ;;  %v5606_v58 = vshll.u32 %v5605_v29, 16  ;;  %v4961_v4 = vadd.f32 %v4960_v12, %v10356_v7  ;;  %v4039_v7 = vrot.slane %v3825_v59, 3 }
 0x978   : > { %v4300_v24 = vld [vmem:[#allocation1] sm:$0xff] }
 0x979   : > { %4425 = vperm.xlu0 %6663, %v4300_v24   ;;  %4301 = vst [vmem:[#allocation1] ss:$9 sm:$0xff] %v3822_v19  ;;  %v10389_v19 = vsel %vm4457_vm2, %v4456_v6, %v4454_v36  ;;  %v5752_v24 = vcvt.f32.s32 %v10352_v27 }
 0x97a   : > { %4302 = vst [vmem:[#allocation1 + $0x1] ss:$9 sm:$0xff] %v4016_v30  ;;  %v5109_v30 = vrot.slane %v5108_v44, 4 }
 0x97b   : > { %4303 = vst [vmem:[#allocation1 + $0x2] ss:$9 sm:$0xff] %v4017_v39  ;;  %v5754_v39 = vshll.u32 %v5753_v37, 16 }
 0x97c   : > { %4304 = vst [vmem:[#allocation1 + $0x3] ss:$9 sm:$0xff] %v4018_v35  ;;  %v5607_v35 = vadd.s32 %v5606_v58, %v5604_v1 }
 0x97d   : > { %4305 = vst [vmem:[#allocation1 + $0x4] ss:$9 sm:$0xff] %v4019_v13  ;;  %v5459_v13 = vrot.slane %v10358_v38, 4 }
 0x97e   : > { %4306 = vst [vmem:[#allocation1 + $0x5] ss:$9 sm:$0xff] %v4020_v8  ;;  %v5110_v8 = vadd.s32 %v5109_v30, %v5108_v44  ;;  %v5608_v18 = vrot.slane %v5607_v35, 4  ;;  %v4366_v30 = vpop.permute.xlu0 %4365 }
 0x97f   : > { %4307 = vst [vmem:[#allocation1 + $0x6] ss:$9 sm:$0xff] %v4021_v56  ;;  %v5258_v56 = vadd.s32 %v5257_v62, %v5256_v50  ;;  %v4363_v62 = vpop.permute.xlu2 %4362 }
 0x980   : > { %4308 = vst [vmem:[#allocation1 + $0x7] ss:$9 sm:$0xff] %v4022_v53  ;;  %v5755_v53 = vadd.s32 %v5754_v39, %v5752_v24  ;;  %v5111_v27 = vrot.slane %v5110_v8, 2  ;;  %v5609_v33 = vadd.s32 %v5608_v18, %v5607_v35  ;;  %v4369_v39 = vpop.permute.xlu1 %4368 }
 0x982   : > { %v5610_v44 = vrot.slane %v5609_v33, 2 }
 0x986   : > { %v4375_v24 = vpop.permute.xlu0 %4374 }
 0x987   : > { %v4309_v55 = vld [vmem:[#allocation1] sm:$0xff] }
 0x988   : > { %4428 = vperm.xlu2 %6665, %v4309_v55   ;;  %4310 = vst [vmem:[#allocation1] ss:$9 sm:$0xff] %v3823_v60  ;;  %v4962_v60 = vrot.slane %v4961_v4, 2  ;;  %v4037_v55 = vrot.slane %v3825_v59, 1  ;;  %v4378_v35 = vpop.permute.xlu1 %4377 }
 0x989   : > { %4311 = vst [vmem:[#allocation1 + $0x1] ss:$9 sm:$0xff] %v4023_v28  ;;  %v5460_v28 = vadd.f32 %v5459_v13, %v10358_v38 }
 0x98a   : > { %4312 = vst [vmem:[#allocation1 + $0x2] ss:$9 sm:$0xff] %v4024_v47  ;;  %v5756_v47 = vrot.slane %v5755_v53, 4 }
 0x98b   : > { %4313 = vst [vmem:[#allocation1 + $0x3] ss:$9 sm:$0xff] %v4025_v10  ;;  %v5259_v10 = vrot.slane %v5258_v56, 2  ;;  %v5461_v23 = vrot.slane %v5460_v28, 2 }
 0x98c   : > { %4314 = vst [vmem:[#allocation1 + $0x4] ss:$9 sm:$0xff] %v4026_v41  ;;  %v4038_v41 = vrot.slane %v3825_v59, 2  ;;  %v5757_v5 = vadd.s32 %v5756_v47, %v5755_v53  ;;  %v4459_v47 = vadd.s32 4294967256, %v11664_v2 }
 0x98d   : > { %4315 = vst [vmem:[#allocation1 + $0x5] ss:$9 sm:$0xff] %v4027_v15  ;;  %v5260_v22 = vadd.s32 %v5259_v10, %v5258_v56  ;;  %v5462_v9 = vadd.f32 %v5461_v23, %v5460_v28  ;;  %v4463_v10 = vadd.s32 4294967248, %v11664_v2 }
 0x98e   : > { %4316 = vst [vmem:[#allocation1 + $0x6] ss:$9 sm:$0xff] %v4028_v42  ;;  %v4963_v42 = vadd.f32 %v4962_v60, %v4961_v4  ;;  %v5758_v29 = vrot.slane %v5757_v5, 2  ;;  %v4372_v4 = vpop.permute.xlu2 %4371  ;;  %v10395_v13 = vpop.permute.xlu0 %4383 }
 0x98f   : > { %4317 = vst [vmem:[#allocation1 + $0x7] ss:$9 sm:$0xff] %v4029_v61  ;;  %v5112_v61 = vadd.s32 %v5111_v27, %v5110_v8  ;;  %v5463_v37 = vrot.slane %v5462_v9, 1 }
 0x990   : > { %v4964_v20 = vrot.slane %v4963_v42, 1  ;;  %v5759_v49 = vadd.s32 %v5758_v29, %v5757_v5  ;;  %v10399_v56 = vpop.permute.xlu1 %4386 }
 0x991   : > { %v5113_v38 = vrot.slane %v5112_v61, 1 }
 0x992   : > { %v4965_v48 = vadd.f32 %v4964_v20, %v4963_v42  ;;  %v5760_v52 = vrot.slane %v5759_v49, 1 }
 0x993   : > { %v5114_v16 = vadd.s32 %v5113_v38, %v5112_v61  ;;  %v4467_v61 = vadd.s32 4294967240, %v11664_v2 }
 0x994   : > { %6199 = vpush %v4965_v48  ;;  %v5761_v50 = vadd.s32 %v5760_v52, %v5759_v49 }
 0x995   : > { %6201 = vpush %v5114_v16  ;;  %v4468_v38 = vperm.slane %v4369_v39, %v4467_v61 }
 0x996   : > { %v4318_v51 = vld [vmem:[#allocation1] sm:$0xff]  ;;  %v10397_v8 = vpop.permute.xlu2 %4380  ;;  %v10401_v53 = vpop.permute.xlu0 %4392 }
 0x997   : > { %4431 = vperm.xlu1 %6664, %v4318_v51   ;;  %4319 = vst [vmem:[#allocation1] ss:$9 sm:$0xff] %v3824_v11  ;;  %v5261_v11 = vrot.slane %v5260_v22, 1  ;;  %v5464_v51 = vadd.f32 %v5463_v37, %v5462_v9 }
 0x998   : > { %4320 = vst [vmem:[#allocation1 + $0x1] ss:$9 sm:$0xff] %v4030_v43  ;;  %v4396_v60 = vpop.permute.xlu1 %4395 }
 0x999   : > { %4321 = vst [vmem:[#allocation1 + $0x2] ss:$9 sm:$0xff] %v4031_v3  ;;  %v5262_v43 = vadd.s32 %v5261_v11, %v5260_v22  ;;  %v5611_v3 = vadd.s32 %v5610_v44, %v5609_v33  ;;  %v4464_v33 = vperm.slane %v4366_v30, %v4463_v10  ;;  %v4479_v44 = vadd.s32 4294967216, %v11664_v2 }
 0x99a   : > { %4322 = vst [vmem:[#allocation1 + $0x3] ss:$9 sm:$0xff] %v4032_v34  ;;  %v3826_v34 = vld [vmem:[#allocation6 + $0xf8] sm:$0xff] }
 0x99b   : > { %4323 = vst [vmem:[#allocation1 + $0x4] ss:$9 sm:$0xff] %v4033_v45  ;;  %v5612_v6 = vrot.slane %v5611_v3, 1  ;;  %v4044_v45 = vrot.slane %v3826_v34, 1  ;;  %v4045_v17 = vrot.slane %v3826_v34, 2  ;;  %v4046_v12 = vrot.slane %v3826_v34, 3 }
 0x99c   : > { %4324 = vst [vmem:[#allocation1 + $0x5] ss:$9 sm:$0xff] %v4034_v14  ;;  %v4048_v36 = vrot.slane %v3826_v34, 5  ;;  %v4049_v58 = vrot.slane %v3826_v34, 6  ;;  %v4050_v1 = vrot.slane %v3826_v34, 7 }
 0x99d   : > { %4325 = vst [vmem:[#allocation1 + $0x6] ss:$9 sm:$0xff] %v4035_v21  ;;  %v5613_v54 = vadd.s32 %v5612_v6, %v5611_v3  ;;  %v4047_v21 = vrot.slane %v3826_v34, 4 }
 0x99e   : > { %4326 = vst [vmem:[#allocation1 + $0x7] ss:$9 sm:$0xff] %v4036_v40  ;;  %v4402_v18 = vpop.permute.xlu0 %4401 }
 0x99f   : > { %6203 = vpush %v5262_v43  ;;  %v4506_v23 = vperm.slane %v4402_v18, %v10365_v46  ;;  %v4475_v46 = vadd.s32 4294967224, %v11664_v2 }
 0x9a0   : > { %6205 = vpush %v5464_v51 }
 0x9a1   : > { %6207 = vpush %v5613_v54  ;;  %v4476_v29 = vperm.slane %v4375_v24, %v4475_v46  ;;  %v4487_v54 = vadd.s32 4294967200, %v11664_v2 }
 0x9a2   : > { %6209 = vpush %v5761_v50 }
 0x9a5   : > { %v4327_v15 = vld [vmem:[#allocation1] sm:$0xff] }
 0x9a6   : > { %4434 = vperm.xlu0 %6663, %v4327_v15   ;;  %4328 = vst [vmem:[#allocation1] ss:$9 sm:$0xff] %v3825_v59  ;;  %v10403_v59 = vpop.permute.xlu2 %4389  ;;  %v4411_v27 = vpop.permute.xlu0 %4410  ;;  %v4503_v15 = vperm.slane %v4396_v60, %v11664_v2 }
 0x9a7   : > { %4329 = vst [vmem:[#allocation1 + $0x1] ss:$9 sm:$0xff] %v4037_v55  ;;  %v4405_v55 = vpop.permute.xlu1 %4404 }
 0x9a8   : > { %4330 = vst [vmem:[#allocation1 + $0x2] ss:$9 sm:$0xff] %v4038_v41  ;;  %v4460_v41 = vperm.slane %v4363_v62, %v4459_v47  ;;  %v4488_v62 = vperm.slane %v10395_v13, %v4487_v54  ;;  %v4499_v13 = vadd.s32 4294967176, %v11664_v2 }
 0x9a9   : > { %4331 = vst [vmem:[#allocation1 + $0x3] ss:$9 sm:$0xff] %v4039_v7 }
 0x9aa   : > { %4332 = vst [vmem:[#allocation1 + $0x4] ss:$9 sm:$0xff] %v4040_v31  ;;  %v4462_v31 = vsel %vm4461_vm11, %v4460_v41, %v10389_v19 }
 0x9ab   : > { %4333 = vst [vmem:[#allocation1 + $0x5] ss:$9 sm:$0xff] %v4041_v57  ;;  %v4471_v57 = vadd.s32 4294967232, %v11664_v2 }
 0x9ac   : > { %4334 = vst [vmem:[#allocation1 + $0x6] ss:$9 sm:$0xff] %v4042_v63  ;;  %v4466_v63 = vsel %vm4465_vm4, %v4464_v33, %v4462_v31  ;;  %v4500_v31 = vperm.slane %v10401_v53, %v4499_v13 }
 0x9ad   : > { %4335 = vst [vmem:[#allocation1 + $0x7] ss:$9 sm:$0xff] %v4043_v0  ;;  %v4472_v0 = vperm.slane %v4372_v4, %v4471_v57  ;;  %v4470_v48 = vsel %vm4469_vm0, %v4468_v38, %v4466_v63 }
 0x9ae   : > { %v4399_v28 = vpop.permute.xlu2 %4398 }
 0x9af   : > { %v4504_v7 = vperm.slane %v4399_v28, %v10361_v26  ;;  %v4414_v5 = vpop.permute.xlu1 %4413  ;;  %v4508_v26 = vperm.slane %v4405_v55, %v10380_v32  ;;  %v4512_v32 = vperm.slane %v4411_v27, %v4459_v47  ;;  %v4474_v37 = vsel %vm4473_vm8, %v4472_v0, %v4470_v48 }
 0x9b0   : > { %v4514_v49 = vperm.slane %v4414_v5, %v4463_v10  ;;  %v4478_v6 = vsel %vm4477_vm9, %v4476_v29, %v4474_v37 }
 0x9b1   : > { %v4505_v22 = vsel %vm4445_vm7, %v4504_v7, %v4503_v15 }
 0x9b2   : > { %v4507_v11 = vsel %vm4449_vm3, %v4506_v23, %v4505_v22 }
 0x9b3   : > { %v4509_v9 = vsel %vm4453_vm5, %v4508_v26, %v4507_v11 }
 0x9b4   : > { %v4336_v14 = vld [vmem:[#allocation1] sm:$0xff] }
 0x9b5   : > { %4437 = vperm.xlu2 %6665, %v4336_v14   ;;  %4337 = vst [vmem:[#allocation1] ss:$9 sm:$0xff] %v3826_v34  ;;  %v4480_v34 = vperm.slane %v4378_v35, %v4479_v44 }
 0x9b6   : > { %4338 = vst [vmem:[#allocation1 + $0x1] ss:$9 sm:$0xff] %v4044_v45  ;;  %v4408_v42 = vpop.permute.xlu2 %4407 }
 0x9b7   : > { %4339 = vst [vmem:[#allocation1 + $0x2] ss:$9 sm:$0xff] %v4045_v17  ;;  %v4510_v19 = vperm.slane %v4408_v42, %v10373_v25  ;;  %v4483_v25 = vadd.s32 4294967208, %v11664_v2 }
 0x9b8   : > { %4340 = vst [vmem:[#allocation1 + $0x3] ss:$9 sm:$0xff] %v4046_v12 }
 0x9b9   : > { %4341 = vst [vmem:[#allocation1 + $0x4] ss:$9 sm:$0xff] %v4047_v21  ;;  %v4511_v3 = vsel %vm4457_vm2, %v4510_v19, %v4509_v9  ;;  %v4484_v17 = vperm.slane %v10397_v8, %v4483_v25  ;;  %v4495_v8 = vadd.s32 4294967184, %v11664_v2 }
 0x9ba   : > { %4342 = vst [vmem:[#allocation1 + $0x5] ss:$9 sm:$0xff] %v4048_v36  ;;  %v4513_v52 = vsel %vm4461_vm11, %v4512_v32, %v4511_v3  ;;  %v4482_v36 = vsel %vm4481_vm14, %v4480_v34, %v4478_v6 }
 0x9bb   : > { %4343 = vst [vmem:[#allocation1 + $0x6] ss:$9 sm:$0xff] %v4049_v58  ;;  %v4515_v50 = vsel %vm4465_vm4, %v4514_v49, %v4513_v52  ;;  %v4486_v4 = vsel %vm4485_vm10, %v4484_v17, %v4482_v36  ;;  %v4496_v15 = vperm.slane %v10403_v59, %v4495_v8 }
 0x9bc   : > { %4344 = vst [vmem:[#allocation1 + $0x7] ss:$9 sm:$0xff] %v4050_v1  ;;  %v4491_v1 = vadd.s32 4294967192, %v11664_v2  ;;  %v4490_v27 = vsel %vm4489_vm12, %v4488_v62, %v4486_v4  ;;  %v11665_v2 = vlaneseq }
 0x9be   : > { %v4417_v16 = vpop.permute.xlu2 %4416  ;;  %v4492_v28 = vperm.slane %v10399_v56, %v4491_v1  ;;  %vm4539_vm7 = vcmp.lt.s32.totalorder %v11665_v2, 256 }
 0x9bf   : > { %v4516_v14 = vperm.slane %v4417_v16, %v4467_v61 }
 0x9c0   : > { %v4494_v42 = vsel %vm4493_vm1, %v4492_v28, %v4490_v27 }
 0x9c1   : > { %v4498_v22 = vsel %vm4497_vm15, %v4496_v15, %v4494_v42 }
 0x9c2   : > { %v4502_v38 = vsel %vm4501_vm13, %v4500_v31, %v4498_v22 }
 0x9c3   : > { %v4345_v40 = vld [vmem:[#allocation1] sm:$0xff] }
 0x9c4   : > { %4440 = vperm.xlu1 %6664, %v4345_v40   ;;  %v4517_v40 = vsel %vm4469_vm0, %v4516_v14, %v4515_v50 }
 0x9c5   : > { %s6200_s30 = spop %6199 }
 0x9c6   : > { %s4967_s15 = smul.f32 0.0078125, %s6200_s30  ;;  %s6202_s16 = spop %6201 }
 0x9c7   : > { %5117 = sst [smem:[#allocation17]] %s6202_s16 }
 0x9c8   : > { %4969 = sst [smem:[#allocation13]] %s4967_s15 }
 0x9cd   : > { %v4420_v20 = vpop.permute.xlu0 %4419 }
 0x9ce   : > { %v4518_v45 = vperm.slane %v4420_v20, %v4471_v57 }
 0x9d0   : > { %s6204_s19 = spop %6203  ;;  %v4519_v39 = vsel %vm4473_vm8, %v4518_v45, %v4517_v40 }
 0x9d1   : > { %s6206_s23 = spop %6205  ;;  %5265 = sst [smem:[#allocation15]] %s6204_s19 }
 0x9d2   : > { %s5466_s22 = smul.f32 0.0078125, %s6206_s23  ;;  %s6208_s0 = spop %6207 }
 0x9d3   : > { %s6210_s9 = spop %6209  ;;  %5616 = sst [smem:[#allocation17 + $0x1]] %s6208_s0 }
 0x9d4   : > { %5468 = sst [smem:[#allocation13 + $0x1]] %s5466_s22 }
 0x9d5   : > { %5764 = sst [smem:[#allocation15 + $0x1]] %s6210_s9 }
 0x9dc   : > { %v4423_v43 = vpop.permute.xlu1 %4422 }
 0x9dd   : > { %v4520_v21 = vperm.slane %v4423_v43, %v4475_v46 }
 0x9df   : > { %v4521_v35 = vsel %vm4477_vm9, %v4520_v21, %v4519_v39 }
 0x9e2   : > { %v4429_v12 = vpop.permute.xlu2 %4428 }
 0x9e3   : > { %v4524_v47 = vperm.slane %v4429_v12, %v4483_v25 }
 0x9eb   : > { %v4426_v51 = vpop.permute.xlu0 %4425 }
 0x9ec   : > { %v4522_v58 = vperm.slane %v4426_v51, %v4479_v44 }
 0x9ee   : > { %v4523_v60 = vsel %vm4481_vm14, %v4522_v58, %v4521_v35 }
 0x9ef   : > { %v4525_v41 = vsel %vm4485_vm10, %v4524_v47, %v4523_v60 }
 0xa09   : > { %v4432_v30 = vpop.permute.xlu1 %4431 }
 0xa0a   : > { %v4526_v18 = vperm.slane %v4432_v30, %v4487_v54 }
 0xa0c   : > { %v4527_v7 = vsel %vm4489_vm12, %v4526_v18, %v4525_v41 }
 0xa0f   : > { %v4438_v10 = vpop.permute.xlu2 %4437 }
 0xa10   : > { %v4530_v33 = vperm.slane %v4438_v10, %v4495_v8 }
 0xa18   : > { %v4435_v24 = vpop.permute.xlu0 %4434 }
 0xa19   : > { %v4528_v55 = vperm.slane %v4435_v24, %v4491_v1 }
 0xa1b   : > { %v4529_v61 = vsel %vm4493_vm1, %v4528_v55, %v4527_v7 }
 0xa1c   : > { %v4531_v5 = vsel %vm4497_vm15, %v4530_v33, %v4529_v61 }
 0xa36   : > { %v4441_v23 = vpop.permute.xlu1 %4440 }
 0xa37   : > { %v4532_v56 = vperm.slane %v4441_v23, %v4499_v13 }
 0xa39   : > { %v4533_v57 = vsel %vm4501_vm13, %v4532_v56, %v4531_v5 }
 0xa3a   : > { %v4534_v20 = vrot.slane %v4533_v57, 7 }
 0xa3c   : > { %v4536_v26 = vsel %vm4535_vm6, %v4502_v38, %v4534_v20 }
 0xa3d   : > { %4541 = vst.msk [vmem:[#allocation14] sm:$0x3] %vm4539_vm7, %v4536_v26 }
 0xa3e PF: > { %p6244_p4 = scmp.eq.s32.totalorder %s6997_s13, 1  ;;  %s5793_s17 = sshll.u32 %s10500_s8, 4  ;;  %s5794_s17 = int_to_ptr.hbm [resolvable:$true] %s5793_s17 }
 0xa3f   : > { %s6924_s20 = smov [#allocation15]   ;;  %s5771_s25 = sshll.u32 %s10498_s6, 4  ;;  %s5772_s25 = int_to_ptr.hbm [resolvable:$true] %s5771_s25 }
 0xa40   : > { %6222 = dma.smem_to_hbm (%p6244_p4), %s6924_s20, 16, %s5794_s17, [#allocation16]  }
 0xa41   : > { %s6925_s28 = smov [#allocation13]   ;;  %s6926_s29 = smov [#allocation14]  }
 0xa42   : > { %6218 = dma.smem_to_hbm (%p6244_p4), %s6925_s28, 16, %s5772_s25, [#allocation10]  }
 0xa43   : > { %s5781_s27 = sshll.u32 %s6926_s29, 4  ;;  %s5783_s16 = sshll.u32 %s10499_s7, 4  ;;  %s5782_s27 = int_to_ptr.vmem [resolvable:$true] %s5781_s27  ;;  %s5784_s16 = int_to_ptr.hbm [resolvable:$true] %s5783_s16 }
 0xa44   : > { %6220 = dma.vmem_to_hbm [thread:$0]  (%p6244_p4), %s5782_s27, 32, %s5784_s16, [#allocation9]  }
 0xa45   : > { %s11666_s22 = sld [smem:[#allocation266_spill]]  ;;  %s6927_s9 = smov [#allocation17]  }
 0xa4b   : > { %s5803_s0 = sshll.u32 %s11666_s22, 4  ;;  %s5804_s0 = int_to_ptr.hbm [resolvable:$true] %s5803_s0 }
 0xa4c   : > { %6224 = dma.smem_to_hbm (%p6244_p4), %s6927_s9, 16, %s5804_s0, [#allocation16]  }
 0xa4d   : > { %6885 = dma.done.wait (%p6244_p4), [#allocation10], 16  }
 0xa4e   : > { %6887 = vsyncadd (%p6244_p4), [#allocation10], 4294967280 }
 0xa4f   : > { %6889 = dma.done.wait (%p6244_p4), [#allocation9], 32  }
 0xa50   : > { %6891 = vsyncadd (%p6244_p4), [#allocation9], 4294967264 }
 0xa51   : > { %6893 = dma.done.wait (%p6244_p4), [#allocation16], 32  }
 0xa52   : > { %6895 = vsyncadd (%p6244_p4), [#allocation16], 4294967264 }
 0xa53   : > { %5827 = sfence }
 0xa54 PF: > { %p24_p5 = scmp.ge.s32.totalorder %s7022_s21, 4   ;;  %s11667_s30 = smov %s6902_s10 }
 0xa55   : > { %s11668_s10 = smov %s6906_s11  ;;  %s11669_s11 = smov %s7032_s26 }
 0xa56   : > { %s11670_s12 = smov %s7022_s21  ;;  %26 = sbr.rel (!%p24_p5) target bundleno = 10 (0xa), region = 132 }
 0xa5b   :  { %5833 = vsyncpa [#allocation8], 1 }
 0xa5c   :  { %5835 = vsyncpa [#allocation8 + $0x1], 1 }
 0xa5d   :  { %5836 = vsyncpa [#allocation12], 1 }
 0xa5e   :  { %5838 = vsyncpa [#allocation12 + $0x1], 1 }
 0xa5f   :  { %5839 = vsyncpa [#allocation9], 1 }
 0xa60   :  { %5841 = vsyncpa [#allocation9 + $0x1], 1 }
 0xa61   :  { %5842 = vsyncpa [#allocation10], 1 }
 0xa62   :  { %5844 = vsyncpa [#allocation10 + $0x1], 1 }
 0xa63   :  { %5845 = vsyncpa [#allocation16], 1 }

</bundles_post_ra>
